<compile_context>
chip_gen: v6e
topology: v6e:2x2x1
jax: 0.10.0
libtpu: 0.0.40
codegen_flags: <defaults>
</compile_context>

<pallas_src>
import functools

import jax
import jax.numpy as jnp
from jax import lax
from jax.experimental import pallas as pl
from jax.experimental.pallas import tpu as pltpu


# ----------------------------------------------------------------------------
# Model constants
# ----------------------------------------------------------------------------
D_MODEL = 256 + 64             # 320
N_HEADS = 4
HEAD_DIM = D_MODEL // N_HEADS  # 80  (real head dim; scale folded into wq/bq)
HEAD_PAD = 128                 # lane-padded per-head width
LSTM_H = 128
LN_EPS = 1e-5
_VMEM_LIMIT = 48 * 1024 * 1024  # > v5e 16 MiB default, < v7x 64 MiB physical

# Compat shim: newer JAX exposes pltpu.CompilerParams, older TPUCompilerParams.
_CompilerParams = getattr(pltpu, "CompilerParams", None) or getattr(
    pltpu, "TPUCompilerParams")


def _cparams(*sems):
    return _CompilerParams(dimension_semantics=tuple(sems),
                           vmem_limit_bytes=_VMEM_LIMIT)


# ----------------------------------------------------------------------------
# Kernel helpers
# ----------------------------------------------------------------------------
def _mm(a, b):
    return jnp.dot(a, b, preferred_element_type=jnp.float32)


def _ln(x, g, b, eps=LN_EPS):
    x = x.astype(jnp.float32)
    mean = jnp.mean(x, axis=-1, keepdims=True)
    xc = x - mean
    var = jnp.mean(xc * xc, axis=-1, keepdims=True)
    return xc * lax.rsqrt(var + eps) * g + b


# ----------------------------------------------------------------------------
# Kernel 1: visual reduction + LSTM gate projection (fused, row-tiled)
# ----------------------------------------------------------------------------
def _vis_gates_kernel(x_ref, w1_ref, b1_ref, w2_ref, b2_ref,
                      wih_ref, bih_ref, o_ref):
    # Linear(Dv,512)+ReLU, Linear(512,256), Linear(256,1024); the 512-wide and
    # 256-wide intermediates never leave VMEM.
    h = jnp.maximum(_mm(x_ref[...], w1_ref[...]) + b1_ref[...], 0.0)
    v256 = _mm(h, w2_ref[...]) + b2_ref[...]
    o_ref[...] = (_mm(v256, wih_ref[...]) + bih_ref[...]).astype(o_ref.dtype)


# ----------------------------------------------------------------------------
# Generic row-tiled pallas_call wrapper
# ----------------------------------------------------------------------------
def _pick_tm(m, tm_max=256, min_tile=8):
    for t in (512, 256, 128, 64, 32, 16, 8):
        if t <= tm_max and t <= m and m % t == 0 and t % min_tile == 0:
            return t
    return m                      # small / ragged: single whole-array block


def _row_tiled(kernel, args, row_flags, out_cols, out_dtype=jnp.float32,
               tm_max=256):
    """Run `kernel` over row tiles. args[i] is row-tiled if row_flags[i]."""
    m = next(a.shape[0] for a, r in zip(args, row_flags) if r)
    min_tile = 16 if out_dtype == jnp.bfloat16 else 8
    tm = _pick_tm(m, tm_max, min_tile)
    in_specs = []
    for a, r in zip(args, row_flags):
        if r:
            in_specs.append(pl.BlockSpec((tm, a.shape[1]), lambda i: (i, 0)))
        else:                      # broadcast (weights / biases), all 2-D
            in_specs.append(pl.BlockSpec(a.shape, lambda i: (0, 0)))
    return pl.pallas_call(
        kernel,
        grid=(m // tm,),
        in_specs=in_specs,
        out_specs=pl.BlockSpec((tm, out_cols), lambda i: (i, 0)),
        out_shape=jax.ShapeDtypeStruct((m, out_cols), out_dtype),
        compiler_params=_cparams("parallel"),
    )(*args)


# ----------------------------------------------------------------------------
# Kernel 2: bidirectional LSTM recurrence (fwd & bwd interleaved per step)
# ----------------------------------------------------------------------------
def _lstm_bidir_kernel(T, H):
    def kernel(gx_ref, whhf_ref, whhb_ref, out_ref, hf_s, cf_s, hb_s, cb_s):
        hf_s[...] = jnp.zeros_like(hf_s)
        cf_s[...] = jnp.zeros_like(cf_s)
        hb_s[...] = jnp.zeros_like(hb_s)
        cb_s[...] = jnp.zeros_like(cb_s)

        def cell(gates, c_prev):           # PyTorch gate order i, f, g, o
            i_g = jax.nn.sigmoid(gates[:, 0 * H:1 * H])
            f_g = jax.nn.sigmoid(gates[:, 1 * H:2 * H])
            g_g = jnp.tanh(gates[:, 2 * H:3 * H])
            o_g = jax.nn.sigmoid(gates[:, 3 * H:4 * H])
            c = f_g * c_prev + i_g * g_g
            return o_g * jnp.tanh(c), c

        # Two independent recurrence chains per step hide MXU/EUP latency.
        @pl.loop(0, T)
        def _(s):
            tf = s
            tb = T - 1 - s
            gf = gx_ref[tf][:, :4 * H].astype(jnp.float32) \
                + _mm(hf_s[...], whhf_ref[...])
            gb = gx_ref[tb][:, 4 * H:].astype(jnp.float32) \
                + _mm(hb_s[...], whhb_ref[...])
            hf, cf = cell(gf, cf_s[...])
            hb, cb = cell(gb, cb_s[...])
            hf_s[...] = hf
            cf_s[...] = cf
            hb_s[...] = hb
            cb_s[...] = cb
            out_ref[tf, :, 0:H] = hf            # forward half of the lanes
            out_ref[tb, :, H:2 * H] = hb        # backward half of the lanes

    return kernel


def _pick_bb(bc):
    # Largest MXU-friendly batch block; multiples of 16 keep the bf16 gx block
    # layout-legal. Falls back to the whole batch (block == array dim).
    for t in (32, 16):
        if bc % t == 0:
            return t
    return bc  # TODO(synk): pad the batch when bc is large and not 16-divisible


def lstm_bidir(gx, whh_f, whh_b):
    """gx: (T, Bc, 8H) time-major bf16 gate pre-activations [fwd 4H | bwd 4H]."""
    T, Bc, G = gx.shape
    H = G // 8
    bb = _pick_bb(Bc)
    return pl.pallas_call(
        _lstm_bidir_kernel(T, H),
        grid=(Bc // bb,),
        in_specs=[pl.BlockSpec((T, bb, G), lambda i: (0, i, 0)),
                  pl.BlockSpec((H, 4 * H), lambda i: (0, 0)),
                  pl.BlockSpec((H, 4 * H), lambda i: (0, 0))],
        out_specs=pl.BlockSpec((T, bb, 2 * H), lambda i: (0, i, 0)),
        out_shape=jax.ShapeDtypeStruct((T, Bc, 2 * H), jnp.float32),
        scratch_shapes=[pltpu.VMEM((bb, H), jnp.float32)] * 4,
        compiler_params=_cparams("parallel"),
    )(gx, whh_f, whh_b)


# ----------------------------------------------------------------------------
# Kernel 3: audio encoder + concat + transformer layer + head (fully fused)
# ----------------------------------------------------------------------------
def _encoder_head_kernel(vis_ref, aud_ref, *refs):
    (a_w1, a_b1, a_g1, a_bt1, a_w2, a_b2, a_g2, a_bt2,
     ln1_g, ln1_b, w_qkv, b_qkv, wo, bo, ln2_g, ln2_b,
     f_w1, f_b1, f_w2, f_b2,
     h_w1, h_b1, h_g, h_bt, h_w2, h_b2, o_ref) = refs

    # ---- audio encoder: Linear + LN + ReLU + Linear + LN + ReLU -------------
    a = aud_ref[0].astype(jnp.float32)                              # (T, Da)
    ah = jnp.maximum(_ln(_mm(a, a_w1[...]) + a_b1[...],
                         a_g1[...], a_bt1[...]), 0.0)
    aud = jnp.maximum(_ln(_mm(ah, a_w2[...]) + a_b2[...],
                          a_g2[...], a_bt2[...]), 0.0)               # (T, 64)

    # ---- concat (stays in VMEM) ---------------------------------------------
    x = jnp.concatenate([vis_ref[0].astype(jnp.float32), aud], axis=-1)  # (T,320)

    # ---- self-attention block (norm_first) ----------------------------------
    xn = _ln(x, ln1_g[...], ln1_b[...])
    qkv = _mm(xn, w_qkv[...]) + b_qkv[...]          # (T, 3*N_HEADS*HEAD_PAD)
    attn = jnp.zeros((x.shape[0], D_MODEL), jnp.float32)
    for h in range(N_HEADS):                        # static unroll over heads
        q = qkv[:, h * HEAD_PAD:(h + 1) * HEAD_PAD]
        k = qkv[:, (N_HEADS + h) * HEAD_PAD:(N_HEADS + h + 1) * HEAD_PAD]
        v = qkv[:, (2 * N_HEADS + h) * HEAD_PAD:(2 * N_HEADS + h + 1) * HEAD_PAD]
        s = lax.dot_general(q, k, (((1,), (1,)), ((), ())),
                            preferred_element_type=jnp.float32)
        s = s - jnp.max(s, axis=-1, keepdims=True)
        p = jnp.exp(s)
        p = p / jnp.sum(p, axis=-1, keepdims=True)          # exact softmax
        ctx = _mm(p, v)                                     # (T, HEAD_PAD)
        attn = attn + _mm(ctx, wo[h * HEAD_PAD:(h + 1) * HEAD_PAD, :])
    y1 = x + attn + bo[...]

    # ---- feed-forward block (norm_first) ------------------------------------
    y1n = _ln(y1, ln2_g[...], ln2_b[...])
    hdn = jnp.maximum(_mm(y1n, f_w1[...]) + f_b1[...], 0.0)
    y2 = y1 + _mm(hdn, f_w2[...]) + f_b2[...]

    # ---- head: Linear + LN + ReLU + Linear (lane-padded output) -------------
    hh = jnp.maximum(_ln(_mm(y2, h_w1[...]) + h_b1[...],
                         h_g[...], h_bt[...]), 0.0)
    o_ref[0] = (_mm(hh, h_w2[...]) + h_b2[...]).astype(o_ref.dtype)


def encoder_head(p, vis_enc, aud):
    Bc, T, Da = aud.shape
    r2 = lambda v: v.reshape(1, -1)
    weights = [p['a_w1'], r2(p['a_b1']), r2(p['a_ln1_g']), r2(p['a_ln1_b']),
               p['a_w2'], r2(p['a_b2']), r2(p['a_ln2_g']), r2(p['a_ln2_b']),
               r2(p['t_ln1_g']), r2(p['t_ln1_b']), p['w_qkv'], p['b_qkv'],
               p['wo_pad'], r2(p['bo']), r2(p['t_ln2_g']), r2(p['t_ln2_b']),
               p['ff_w1'], r2(p['ff_b1']), p['ff_w2'], r2(p['ff_b2']),
               p['h_w1'], r2(p['h_b1']), r2(p['h_ln_g']), r2(p['h_ln_b']),
               p['h_w2_pad'], p['h_b2_pad']]
    c_pad = p['h_w2_pad'].shape[1]
    in_specs = [pl.BlockSpec((1, T, vis_enc.shape[-1]), lambda b: (b, 0, 0)),
                pl.BlockSpec((1, T, Da), lambda b: (b, 0, 0))]
    in_specs += [pl.BlockSpec(w.shape, lambda b: (0, 0)) for w in weights]
    return pl.pallas_call(
        _encoder_head_kernel,
        grid=(Bc,),
        in_specs=in_specs,
        out_specs=pl.BlockSpec((1, T, c_pad), lambda b: (b, 0, 0)),
        out_shape=jax.ShapeDtypeStruct((Bc, T, c_pad), jnp.float32),
        compiler_params=_cparams("parallel"),
    )(vis_enc, aud, *weights)


# ----------------------------------------------------------------------------
# Parameters
# ----------------------------------------------------------------------------
def _xavier(key, shape):
    fan_in, fan_out = shape[0], shape[1]
    limit = (6.0 / (fan_in + fan_out)) ** 0.5
    return jax.random.uniform(key, shape, jnp.float32, -limit, limit)


def init_params(key, vis_dim, aud_dim, num_classes):
    keys = iter(jax.random.split(key, 32))
    nk = lambda: next(keys)
    orth = jax.nn.initializers.orthogonal()
    z = lambda n: jnp.zeros((n,), jnp.float32)
    o = lambda n: jnp.ones((n,), jnp.float32)
    p = {}
    # vis_dim_reduction: Linear(vis,512) ReLU [Drop] Linear(512,256)
    p['vr_w1'], p['vr_b1'] = _xavier(nk(), (vis_dim, 512)), z(512)
    p['vr_w2'], p['vr_b2'] = _xavier(nk(), (512, 256)), z(256)
    # bidirectional LSTM(256 -> 128), gate order i,f,g,o; biases zero
    p['lstm_wih_f'] = _xavier(nk(), (256, 4 * LSTM_H))
    p['lstm_whh_f'] = orth(nk(), (LSTM_H, 4 * LSTM_H), jnp.float32)
    p['lstm_b_f'] = z(4 * LSTM_H)
    p['lstm_wih_b'] = _xavier(nk(), (256, 4 * LSTM_H))
    p['lstm_whh_b'] = orth(nk(), (LSTM_H, 4 * LSTM_H), jnp.float32)
    p['lstm_b_b'] = z(4 * LSTM_H)
    # audio encoder
    p['a_w1'], p['a_b1'] = _xavier(nk(), (aud_dim, 128)), z(128)
    p['a_ln1_g'], p['a_ln1_b'] = o(128), z(128)
    p['a_w2'], p['a_b2'] = _xavier(nk(), (128, 64)), z(64)
    p['a_ln2_g'], p['a_ln2_b'] = o(64), z(64)
    # transformer encoder layer (d=320, nhead=4, ff=512, norm_first)
    p['t_ln1_g'], p['t_ln1_b'] = o(D_MODEL), z(D_MODEL)
    p['wq'], p['bq'] = _xavier(nk(), (D_MODEL, D_MODEL)), z(D_MODEL)
    p['wk'], p['bk'] = _xavier(nk(), (D_MODEL, D_MODEL)), z(D_MODEL)
    p['wv'], p['bv'] = _xavier(nk(), (D_MODEL, D_MODEL)), z(D_MODEL)
    p['wo'], p['bo'] = _xavier(nk(), (D_MODEL, D_MODEL)), z(D_MODEL)
    p['t_ln2_g'], p['t_ln2_b'] = o(D_MODEL), z(D_MODEL)
    p['ff_w1'], p['ff_b1'] = _xavier(nk(), (D_MODEL, 512)), z(512)
    p['ff_w2'], p['ff_b2'] = _xavier(nk(), (512, D_MODEL)), z(D_MODEL)
    # head
    p['h_w1'], p['h_b1'] = _xavier(nk(), (D_MODEL, 128)), z(128)
    p['h_ln_g'], p['h_ln_b'] = o(128), z(128)
    p['h_w2'], p['h_b2'] = _xavier(nk(), (128, num_classes)), z(num_classes)
    return p


def prepare_params(p):
    """Derive fused / lane-padded weights once (outside jit)."""
    q = dict(p)
    # Fused LSTM input projection for both directions: (256, 1024).
    q['lstm_wih_cat'] = jnp.concatenate([p['lstm_wih_f'], p['lstm_wih_b']], 1)
    q['lstm_b_cat'] = jnp.concatenate([p['lstm_b_f'], p['lstm_b_b']]).reshape(1, -1)

    # Per-head lane padding 80 -> 128 for q/k/v projections (zero columns do
    # not change scores; padded v columns are killed by zero rows of wo_pad).
    def pad_proj(w, b):
        wr = w.reshape(D_MODEL, N_HEADS, HEAD_DIM)
        wp = jnp.zeros((D_MODEL, N_HEADS, HEAD_PAD), w.dtype
                       ).at[:, :, :HEAD_DIM].set(wr)
        br = b.reshape(N_HEADS, HEAD_DIM)
        bp = jnp.zeros((N_HEADS, HEAD_PAD), b.dtype).at[:, :HEAD_DIM].set(br)
        return wp.reshape(D_MODEL, N_HEADS * HEAD_PAD), bp.reshape(-1)

    scale = 1.0 / (HEAD_DIM ** 0.5)                 # softmax scale folded into q
    wq, bq = pad_proj(p['wq'] * scale, p['bq'] * scale)
    wk, bk = pad_proj(p['wk'], p['bk'])
    wv, bv = pad_proj(p['wv'], p['bv'])
    q['w_qkv'] = jnp.concatenate([wq, wk, wv], axis=1)              # (320, 1536)
    q['b_qkv'] = jnp.concatenate([bq, bk, bv]).reshape(1, -1)       # (1, 1536)

    wo = p['wo'].reshape(N_HEADS, HEAD_DIM, D_MODEL)
    wo_pad = jnp.zeros((N_HEADS, HEAD_PAD, D_MODEL), wo.dtype
                       ).at[:, :HEAD_DIM, :].set(wo)
    q['wo_pad'] = wo_pad.reshape(N_HEADS * HEAD_PAD, D_MODEL)       # (512, 320)

    # Pad classifier output lanes to 128 (unmasked stores); sliced back later.
    c = p['h_w2'].shape[1]
    c_pad = max(128, ((c + 127) // 128) * 128)
    q['h_w2_pad'] = jnp.zeros((p['h_w2'].shape[0], c_pad), jnp.float32
                              ).at[:, :c].set(p['h_w2'])
    q['h_b2_pad'] = jnp.zeros((1, c_pad), jnp.float32).at[0, :c].set(p['h_b2'])
    return q


# ----------------------------------------------------------------------------
# Forward
# ----------------------------------------------------------------------------
def forward_chunk(params, vis, aud):
    """vis: (Bc, T, vis_dim), aud: (Bc, T, aud_dim) -> (Bc, T, num_classes)."""
    Bc, T, Dv = vis.shape
    M = Bc * T
    C = params['h_w2'].shape[1]
    r2 = lambda v: v.reshape(1, -1)

    # ---- visual reduction + LSTM gate projection (one fused kernel) ---------
    gx = _row_tiled(
        _vis_gates_kernel,
        [vis.reshape(M, Dv),
         params['vr_w1'], r2(params['vr_b1']),
         params['vr_w2'], r2(params['vr_b2']),
         params['lstm_wih_cat'], params['lstm_b_cat']],
        [True] + [False] * 6, 8 * LSTM_H, out_dtype=jnp.bfloat16)   # (M, 1024)

    # One layout transpose to time-major for the recurrence (bf16 halves it).
    gx = gx.reshape(Bc, T, 8 * LSTM_H).transpose(1, 0, 2)           # (T,Bc,1024)
    vis_enc = lstm_bidir(gx, params['lstm_whh_f'], params['lstm_whh_b'])
    vis_enc = vis_enc.transpose(1, 0, 2)                            # (Bc, T, 256)

    # ---- audio enc + concat + transformer layer + head (one fused kernel) ---
    out_pad = encoder_head(params, vis_enc, aud)                    # (Bc,T,c_pad)
    return out_pad[..., :C]


@functools.partial(jax.jit, static_argnames=("chunk_size",))
def av_summarizer_forward(params, visual, audio, chunk_size=128):
    """Matches the PyTorch forward: per-128-frame chunks; chunks are
    independent (state reset each chunk), so full chunks fold into batch."""
    B, S, Dv = visual.shape
    Da = audio.shape[-1]
    n_full = S // chunk_size
    rem = S - n_full * chunk_size
    outs = []
    if n_full:
        vis_f = visual[:, :n_full * chunk_size].reshape(B * n_full, chunk_size, Dv)
        aud_f = audio[:, :n_full * chunk_size].reshape(B * n_full, chunk_size, Da)
        out_f = forward_chunk(params, vis_f, aud_f)
        outs.append(out_f.reshape(B, n_full * chunk_size, -1))
    if rem:
        outs.append(forward_chunk(params,
                                  visual[:, n_full * chunk_size:],
                                  audio[:, n_full * chunk_size:]))
    return outs[0] if len(outs) == 1 else jnp.concatenate(outs, axis=1)


# ----------------------------------------------------------------------------
if __name__ == "__main__":
    B, S = 2, 8
    VIS_DIM, AUD_DIM, NUM_CLASSES = 256, 64, 5   # small, consistent with module

    root = jax.random.PRNGKey(0)
    k_params, k_vis, k_aud = jax.random.split(root, 3)

    params = prepare_params(init_params(k_params, VIS_DIM, AUD_DIM, NUM_CLASSES))
    visual = jax.random.normal(k_vis, (B, S, VIS_DIM), jnp.float32)
    audio = jax.random.normal(k_aud, (B, S, AUD_DIM), jnp.float32)

    out = av_summarizer_forward(params, visual, audio)
    out = jax.block_until_ready(out)

    assert out.shape == (B, S, NUM_CLASSES), out.shape
    assert bool(jnp.all(jnp.isfinite(out)))
    print("KERNEL_OK")
</pallas_src>

<mosaic_0001>
module attributes {stable_mosaic.version = 11 : i64} {
  func.func @kernel(%arg0: i32, %arg1: memref<8x2x1024xbf16, #tpu.memory_space<vmem>>, %arg2: memref<128x512xf32, #tpu.memory_space<vmem>>, %arg3: memref<128x512xf32, #tpu.memory_space<vmem>>, %arg4: memref<8x2x256xf32, #tpu.memory_space<vmem>>, %arg5: memref<2x128xf32, #tpu.memory_space<vmem>>, %arg6: memref<2x128xf32, #tpu.memory_space<vmem>>, %arg7: memref<2x128xf32, #tpu.memory_space<vmem>>, %arg8: memref<2x128xf32, #tpu.memory_space<vmem>>) attributes {dimension_semantics = [#tpu.dimension_semantics<parallel>], iteration_bounds = array<i64: 1>, scalar_prefetch = 0 : i64, scratch_operands = 4 : i64, tpu.core_type = #tpu.core_type<tc>, window_params = [{transform_indices = @transform_0, window_bounds = array<i64: 8, 2, 1024>}, {pipeline_mode = #tpu.pipeline_mode<synchronous>, transform_indices = @transform_1, window_bounds = array<i64: 128, 512>}, {pipeline_mode = #tpu.pipeline_mode<synchronous>, transform_indices = @transform_2, window_bounds = array<i64: 128, 512>}, {transform_indices = @transform_3, window_bounds = array<i64: 8, 2, 256>}]} {
    %cst = arith.constant 0.000000e+00 : f32
    %0 = vector.broadcast %cst : f32 to vector<2x128xf32>
    %c0 = arith.constant 0 : index
    %c0_0 = arith.constant 0 : index
    %1 = vector.load %arg5[%c0, %c0_0] : memref<2x128xf32, #tpu.memory_space<vmem>>, vector<2x128xf32>
    tpu.vector_store %arg5[%c0, %c0_0], %0 {strides = array<i32>} : memref<2x128xf32, #tpu.memory_space<vmem>>, vector<2x128xf32>,
    %cst_1 = arith.constant 0.000000e+00 : f32
    %2 = vector.broadcast %cst_1 : f32 to vector<2x128xf32>
    %c0_2 = arith.constant 0 : index
    %c0_3 = arith.constant 0 : index
    %3 = vector.load %arg6[%c0_2, %c0_3] : memref<2x128xf32, #tpu.memory_space<vmem>>, vector<2x128xf32>
    tpu.vector_store %arg6[%c0_2, %c0_3], %2 {strides = array<i32>} : memref<2x128xf32, #tpu.memory_space<vmem>>, vector<2x128xf32>,
    %cst_4 = arith.constant 0.000000e+00 : f32
    %4 = vector.broadcast %cst_4 : f32 to vector<2x128xf32>
    %c0_5 = arith.constant 0 : index
    %c0_6 = arith.constant 0 : index
    %5 = vector.load %arg7[%c0_5, %c0_6] : memref<2x128xf32, #tpu.memory_space<vmem>>, vector<2x128xf32>
    tpu.vector_store %arg7[%c0_5, %c0_6], %4 {strides = array<i32>} : memref<2x128xf32, #tpu.memory_space<vmem>>, vector<2x128xf32>,
    %cst_7 = arith.constant 0.000000e+00 : f32
    %6 = vector.broadcast %cst_7 : f32 to vector<2x128xf32>
    %c0_8 = arith.constant 0 : index
    %c0_9 = arith.constant 0 : index
    %7 = vector.load %arg8[%c0_8, %c0_9] : memref<2x128xf32, #tpu.memory_space<vmem>>, vector<2x128xf32>
    tpu.vector_store %arg8[%c0_8, %c0_9], %6 {strides = array<i32>} : memref<2x128xf32, #tpu.memory_space<vmem>>, vector<2x128xf32>,
    %c0_i32 = arith.constant 0 : i32
    %c8_i32 = arith.constant 8 : i32
    %8 = arith.addi %c0_i32, %c8_i32 : i32
    %c1_i32 = arith.constant 1 : i32
    scf.for %arg9 = %c0_i32 to %8 step %c1_i32  : i32 {
      %c1_i32_11 = arith.constant 1 : i32
      %9 = arith.muli %arg9, %c1_i32_11 : i32
      %c0_i32_12 = arith.constant 0 : i32
      %10 = arith.addi %c0_i32_12, %9 : i32
      %c7_i32 = arith.constant 7 : i32
      %11 = arith.subi %c7_i32, %10 : i32
      %12 = arith.index_cast %10 : i32 to index
      %c0_13 = arith.constant 0 : index
      %c0_14 = arith.constant 0 : index
      %13 = vector.load %arg1[%12, %c0_13, %c0_14] : memref<8x2x1024xbf16, #tpu.memory_space<vmem>>, vector<1x2x1024xbf16>
      %14 = vector.shape_cast %13 : vector<1x2x1024xbf16> to vector<2x1024xbf16>
      %15 = vector.extract_strided_slice %14 {offsets = [0, 0], sizes = [2, 512], strides = [1, 1]} : vector<2x1024xbf16> to vector<2x512xbf16>
      %16 = arith.extf %15 : vector<2x512xbf16> to vector<2x512xf32>
      %c0_15 = arith.constant 0 : index
      %c0_16 = arith.constant 0 : index
      %17 = vector.load %arg5[%c0_15, %c0_16] : memref<2x128xf32, #tpu.memory_space<vmem>>, vector<2x128xf32>
      %c0_17 = arith.constant 0 : index
      %c0_18 = arith.constant 0 : index
      %18 = vector.load %arg2[%c0_17, %c0_18] : memref<128x512xf32, #tpu.memory_space<vmem>>, vector<128x512xf32>
      %cst_19 = arith.constant dense<0.000000e+00> : vector<2x512xf32>
      %19 = tpu.matmul %17, %18, %cst_19 {dimension_numbers = #tpu.dot_dimension_numbers<[1], [0], [0], [1], [0, 0, 1, 1], [], []>} : vector<2x128xf32>, vector<128x512xf32>, vector<2x512xf32> -> vector<2x512xf32>
      %20 = arith.addf %16, %19 : vector<2x512xf32>
      %21 = arith.index_cast %11 : i32 to index
      %c0_20 = arith.constant 0 : index
      %c0_21 = arith.constant 0 : index
      %22 = vector.load %arg1[%21, %c0_20, %c0_21] : memref<8x2x1024xbf16, #tpu.memory_space<vmem>>, vector<1x2x1024xbf16>
      %23 = vector.shape_cast %22 : vector<1x2x1024xbf16> to vector<2x1024xbf16>
      %24 = vector.extract_strided_slice %23 {offsets = [0, 512], sizes = [2, 512], strides = [1, 1]} : vector<2x1024xbf16> to vector<2x512xbf16>
      %25 = arith.extf %24 : vector<2x512xbf16> to vector<2x512xf32>
      %c0_22 = arith.constant 0 : index
      %c0_23 = arith.constant 0 : index
      %26 = vector.load %arg7[%c0_22, %c0_23] : memref<2x128xf32, #tpu.memory_space<vmem>>, vector<2x128xf32>
      %c0_24 = arith.constant 0 : index
      %c0_25 = arith.constant 0 : index
      %27 = vector.load %arg3[%c0_24, %c0_25] : memref<128x512xf32, #tpu.memory_space<vmem>>, vector<128x512xf32>
      %cst_26 = arith.constant dense<0.000000e+00> : vector<2x512xf32>
      %28 = tpu.matmul %26, %27, %cst_26 {dimension_numbers = #tpu.dot_dimension_numbers<[1], [0], [0], [1], [0, 0, 1, 1], [], []>} : vector<2x128xf32>, vector<128x512xf32>, vector<2x512xf32> -> vector<2x512xf32>
      %29 = arith.addf %25, %28 : vector<2x512xf32>
      %c0_27 = arith.constant 0 : index
      %c0_28 = arith.constant 0 : index
      %30 = vector.load %arg6[%c0_27, %c0_28] : memref<2x128xf32, #tpu.memory_space<vmem>>, vector<2x128xf32>
      %31 = vector.extract_strided_slice %20 {offsets = [0, 0], sizes = [2, 128], strides = [1, 1]} : vector<2x512xf32> to vector<2x128xf32>
      %32 = arith.negf %31 : vector<2x128xf32>
      %33 = math.exp %32 : vector<2x128xf32>
      %cst_29 = arith.constant 1.000000e+00 : f32
      %34 = vector.broadcast %cst_29 : f32 to vector<2x128xf32>
      %35 = arith.addf %34, %33 : vector<2x128xf32>
      %36 = arith.divf %34, %35 : vector<2x128xf32>
      %37 = vector.extract_strided_slice %20 {offsets = [0, 128], sizes = [2, 128], strides = [1, 1]} : vector<2x512xf32> to vector<2x128xf32>
      %38 = arith.negf %37 : vector<2x128xf32>
      %39 = math.exp %38 : vector<2x128xf32>
      %cst_30 = arith.constant 1.000000e+00 : f32
      %40 = vector.broadcast %cst_30 : f32 to vector<2x128xf32>
      %41 = arith.addf %40, %39 : vector<2x128xf32>
      %42 = arith.divf %40, %41 : vector<2x128xf32>
      %43 = vector.extract_strided_slice %20 {offsets = [0, 256], sizes = [2, 128], strides = [1, 1]} : vector<2x512xf32> to vector<2x128xf32>
      %44 = math.tanh %43 : vector<2x128xf32>
      %45 = vector.extract_strided_slice %20 {offsets = [0, 384], sizes = [2, 128], strides = [1, 1]} : vector<2x512xf32> to vector<2x128xf32>
      %46 = arith.negf %45 : vector<2x128xf32>
      %47 = math.exp %46 : vector<2x128xf32>
      %cst_31 = arith.constant 1.000000e+00 : f32
      %48 = vector.broadcast %cst_31 : f32 to vector<2x128xf32>
      %49 = arith.addf %48, %47 : vector<2x128xf32>
      %50 = arith.divf %48, %49 : vector<2x128xf32>
      %51 = arith.mulf %42, %30 : vector<2x128xf32>
      %52 = arith.mulf %36, %44 : vector<2x128xf32>
      %53 = arith.addf %51, %52 : vector<2x128xf32>
      %54 = math.tanh %53 : vector<2x128xf32>
      %55 = arith.mulf %50, %54 : vector<2x128xf32>
      %c0_32 = arith.constant 0 : index
      %c0_33 = arith.constant 0 : index
      %56 = vector.load %arg8[%c0_32, %c0_33] : memref<2x128xf32, #tpu.memory_space<vmem>>, vector<2x128xf32>
      %57 = vector.extract_strided_slice %29 {offsets = [0, 0], sizes = [2, 128], strides = [1, 1]} : vector<2x512xf32> to vector<2x128xf32>
      %58 = arith.negf %57 : vector<2x128xf32>
      %59 = math.exp %58 : vector<2x128xf32>
      %cst_34 = arith.constant 1.000000e+00 : f32
      %60 = vector.broadcast %cst_34 : f32 to vector<2x128xf32>
      %61 = arith.addf %60, %59 : vector<2x128xf32>
      %62 = arith.divf %60, %61 : vector<2x128xf32>
      %63 = vector.extract_strided_slice %29 {offsets = [0, 128], sizes = [2, 128], strides = [1, 1]} : vector<2x512xf32> to vector<2x128xf32>
      %64 = arith.negf %63 : vector<2x128xf32>
      %65 = math.exp %64 : vector<2x128xf32>
      %cst_35 = arith.constant 1.000000e+00 : f32
      %66 = vector.broadcast %cst_35 : f32 to vector<2x128xf32>
      %67 = arith.addf %66, %65 : vector<2x128xf32>
      %68 = arith.divf %66, %67 : vector<2x128xf32>
      %69 = vector.extract_strided_slice %29 {offsets = [0, 256], sizes = [2, 128], strides = [1, 1]} : vector<2x512xf32> to vector<2x128xf32>
      %70 = math.tanh %69 : vector<2x128xf32>
      %71 = vector.extract_strided_slice %29 {offsets = [0, 384], sizes = [2, 128], strides = [1, 1]} : vector<2x512xf32> to vector<2x128xf32>
      %72 = arith.negf %71 : vector<2x128xf32>
      %73 = math.exp %72 : vector<2x128xf32>
      %cst_36 = arith.constant 1.000000e+00 : f32
      %74 = vector.broadcast %cst_36 : f32 to vector<2x128xf32>
      %75 = arith.addf %74, %73 : vector<2x128xf32>
      %76 = arith.divf %74, %75 : vector<2x128xf32>
      %77 = arith.mulf %68, %56 : vector<2x128xf32>
      %78 = arith.mulf %62, %70 : vector<2x128xf32>
      %79 = arith.addf %77, %78 : vector<2x128xf32>
      %80 = math.tanh %79 : vector<2x128xf32>
      %81 = arith.mulf %76, %80 : vector<2x128xf32>
      %c0_37 = arith.constant 0 : index
      %c0_38 = arith.constant 0 : index
      %82 = vector.load %arg5[%c0_37, %c0_38] : memref<2x128xf32, #tpu.memory_space<vmem>>, vector<2x128xf32>
      tpu.vector_store %arg5[%c0_37, %c0_38], %55 {strides = array<i32>} : memref<2x128xf32, #tpu.memory_space<vmem>>, vector<2x128xf32>,
      %c0_39 = arith.constant 0 : index
      %c0_40 = arith.constant 0 : index
      %83 = vector.load %arg6[%c0_39, %c0_40] : memref<2x128xf32, #tpu.memory_space<vmem>>, vector<2x128xf32>
      tpu.vector_store %arg6[%c0_39, %c0_40], %53 {strides = array<i32>} : memref<2x128xf32, #tpu.memory_space<vmem>>, vector<2x128xf32>,
      %c0_41 = arith.constant 0 : index
      %c0_42 = arith.constant 0 : index
      %84 = vector.load %arg7[%c0_41, %c0_42] : memref<2x128xf32, #tpu.memory_space<vmem>>, vector<2x128xf32>
      tpu.vector_store %arg7[%c0_41, %c0_42], %81 {strides = array<i32>} : memref<2x128xf32, #tpu.memory_space<vmem>>, vector<2x128xf32>,
      %c0_43 = arith.constant 0 : index
      %c0_44 = arith.constant 0 : index
      %85 = vector.load %arg8[%c0_43, %c0_44] : memref<2x128xf32, #tpu.memory_space<vmem>>, vector<2x128xf32>
      tpu.vector_store %arg8[%c0_43, %c0_44], %79 {strides = array<i32>} : memref<2x128xf32, #tpu.memory_space<vmem>>, vector<2x128xf32>,
      %86 = arith.index_cast %10 : i32 to index
      %c0_45 = arith.constant 0 : index
      %c0_46 = arith.constant 0 : index
      %87 = vector.load %arg4[%86, %c0_45, %c0_46] : memref<8x2x256xf32, #tpu.memory_space<vmem>>, vector<1x2x128xf32>
      %88 = vector.shape_cast %87 : vector<1x2x128xf32> to vector<2x128xf32>
      %89 = vector.shape_cast %55 : vector<2x128xf32> to vector<1x2x128xf32>
      tpu.vector_store %arg4[%86, %c0_45, %c0_46], %89 {strides = array<i32>} : memref<8x2x256xf32, #tpu.memory_space<vmem>>, vector<1x2x128xf32>,
      %90 = arith.index_cast %11 : i32 to index
      %c0_47 = arith.constant 0 : index
      %c128 = arith.constant 128 : index
      %91 = vector.load %arg4[%90, %c0_47, %c128] : memref<8x2x256xf32, #tpu.memory_space<vmem>>, vector<1x2x128xf32>
      %92 = vector.shape_cast %91 : vector<1x2x128xf32> to vector<2x128xf32>
      %93 = vector.shape_cast %81 : vector<2x128xf32> to vector<1x2x128xf32>
      tpu.vector_store %arg4[%90, %c0_47, %c128], %93 {strides = array<i32>} : memref<8x2x256xf32, #tpu.memory_space<vmem>>, vector<1x2x128xf32>,
    }
    %c8_i32_10 = arith.constant 8 : i32
    return
  }
  func.func @transform_0(%arg0: i32) -> (i32, i32, i32) {
    %c0_i32 = arith.constant 0 : i32
    %c0_i32_0 = arith.constant 0 : i32
    %c0_i32_1 = arith.constant 0 : i32
    return %c0_i32, %arg0, %c0_i32_0 : i32, i32, i32
  }
  func.func @transform_1(%arg0: i32) -> (i32, i32) {
    %c0_i32 = arith.constant 0 : i32
    %c0_i32_0 = arith.constant 0 : i32
    %c0_i32_1 = arith.constant 0 : i32
    return %c0_i32, %c0_i32_0 : i32, i32
  }
  func.func @transform_2(%arg0: i32) -> (i32, i32) {
    %c0_i32 = arith.constant 0 : i32
    %c0_i32_0 = arith.constant 0 : i32
    %c0_i32_1 = arith.constant 0 : i32
    return %c0_i32, %c0_i32_0 : i32, i32
  }
  func.func @transform_3(%arg0: i32) -> (i32, i32, i32) {
    %c0_i32 = arith.constant 0 : i32
    %c0_i32_0 = arith.constant 0 : i32
    %c0_i32_1 = arith.constant 0 : i32
    return %c0_i32, %arg0, %c0_i32_0 : i32, i32, i32
  }
}

module attributes {stable_mosaic.version = 11 : i64} {
  func.func @_vis_gates_kernel(%arg0: i32, %arg1: memref<16x256xf32, #tpu.memory_space<vmem>>, %arg2: memref<256x512xf32, #tpu.memory_space<vmem>>, %arg3: memref<1x512xf32, #tpu.memory_space<vmem>>, %arg4: memref<512x256xf32, #tpu.memory_space<vmem>>, %arg5: memref<1x256xf32, #tpu.memory_space<vmem>>, %arg6: memref<256x1024xf32, #tpu.memory_space<vmem>>, %arg7: memref<1x1024xf32, #tpu.memory_space<vmem>>, %arg8: memref<16x1024xbf16, #tpu.memory_space<vmem>>) attributes {dimension_semantics = [#tpu.dimension_semantics<parallel>], iteration_bounds = array<i64: 1>, scalar_prefetch = 0 : i64, scratch_operands = 0 : i64, tpu.core_type = #tpu.core_type<tc>, window_params = [{transform_indices = @transform_0, window_bounds = array<i64: 16, 256>}, {pipeline_mode = #tpu.pipeline_mode<synchronous>, transform_indices = @transform_1, window_bounds = array<i64: 256, 512>}, {pipeline_mode = #tpu.pipeline_mode<synchronous>, transform_indices = @transform_2, window_bounds = array<i64: 1, 512>}, {pipeline_mode = #tpu.pipeline_mode<synchronous>, transform_indices = @transform_3, window_bounds = array<i64: 512, 256>}, {pipeline_mode = #tpu.pipeline_mode<synchronous>, transform_indices = @transform_4, window_bounds = array<i64: 1, 256>}, {pipeline_mode = #tpu.pipeline_mode<synchronous>, transform_indices = @transform_5, window_bounds = array<i64: 256, 1024>}, {pipeline_mode = #tpu.pipeline_mode<synchronous>, transform_indices = @transform_6, window_bounds = array<i64: 1, 1024>}, {transform_indices = @transform_7, window_bounds = array<i64: 16, 1024>}]} {
    %c0 = arith.constant 0 : index
    %c0_0 = arith.constant 0 : index
    %0 = vector.load %arg1[%c0, %c0_0] : memref<16x256xf32, #tpu.memory_space<vmem>>, vector<16x256xf32>
    %c0_1 = arith.constant 0 : index
    %c0_2 = arith.constant 0 : index
    %1 = vector.load %arg2[%c0_1, %c0_2] : memref<256x512xf32, #tpu.memory_space<vmem>>, vector<256x512xf32>
    %cst = arith.constant dense<0.000000e+00> : vector<16x512xf32>
    %2 = tpu.matmul %0, %1, %cst {dimension_numbers = #tpu.dot_dimension_numbers<[1], [0], [0], [1], [0, 0, 1, 1], [], []>} : vector<16x256xf32>, vector<256x512xf32>, vector<16x512xf32> -> vector<16x512xf32>
    %c0_3 = arith.constant 0 : index
    %c0_4 = arith.constant 0 : index
    %3 = vector.load %arg3[%c0_3, %c0_4] : memref<1x512xf32, #tpu.memory_space<vmem>>, vector<1x512xf32>
    %4 = vector.broadcast %3 : vector<1x512xf32> to vector<16x512xf32>
    %5 = arith.addf %2, %4 : vector<16x512xf32>
    %cst_5 = arith.constant 0.000000e+00 : f32
    %6 = vector.broadcast %cst_5 : f32 to vector<16x512xf32>
    %7 = arith.maximumf %5, %6 : vector<16x512xf32>
    %c0_6 = arith.constant 0 : index
    %c0_7 = arith.constant 0 : index
    %8 = vector.load %arg4[%c0_6, %c0_7] : memref<512x256xf32, #tpu.memory_space<vmem>>, vector<512x256xf32>
    %cst_8 = arith.constant dense<0.000000e+00> : vector<16x256xf32>
    %9 = tpu.matmul %7, %8, %cst_8 {dimension_numbers = #tpu.dot_dimension_numbers<[1], [0], [0], [1], [0, 0, 1, 1], [], []>} : vector<16x512xf32>, vector<512x256xf32>, vector<16x256xf32> -> vector<16x256xf32>
    %c0_9 = arith.constant 0 : index
    %c0_10 = arith.constant 0 : index
    %10 = vector.load %arg5[%c0_9, %c0_10] : memref<1x256xf32, #tpu.memory_space<vmem>>, vector<1x256xf32>
    %11 = vector.broadcast %10 : vector<1x256xf32> to vector<16x256xf32>
    %12 = arith.addf %9, %11 : vector<16x256xf32>
    %c0_11 = arith.constant 0 : index
    %c0_12 = arith.constant 0 : index
    %13 = vector.load %arg6[%c0_11, %c0_12] : memref<256x1024xf32, #tpu.memory_space<vmem>>, vector<256x1024xf32>
    %cst_13 = arith.constant dense<0.000000e+00> : vector<16x1024xf32>
    %14 = tpu.matmul %12, %13, %cst_13 {dimension_numbers = #tpu.dot_dimension_numbers<[1], [0], [0], [1], [0, 0, 1, 1], [], []>} : vector<16x256xf32>, vector<256x1024xf32>, vector<16x1024xf32> -> vector<16x1024xf32>
    %c0_14 = arith.constant 0 : index
    %c0_15 = arith.constant 0 : index
    %15 = vector.load %arg7[%c0_14, %c0_15] : memref<1x1024xf32, #tpu.memory_space<vmem>>, vector<1x1024xf32>
    %16 = vector.broadcast %15 : vector<1x1024xf32> to vector<16x1024xf32>
    %17 = arith.addf %14, %16 : vector<16x1024xf32>
    %18 = arith.truncf %17 : vector<16x1024xf32> to vector<16x1024xbf16>
    %c0_16 = arith.constant 0 : index
    %c0_17 = arith.constant 0 : index
    %19 = vector.load %arg8[%c0_16, %c0_17] : memref<16x1024xbf16, #tpu.memory_space<vmem>>, vector<16x1024xbf16>
    tpu.vector_store %arg8[%c0_16, %c0_17], %18 {strides = array<i32>} : memref<16x1024xbf16, #tpu.memory_space<vmem>>, vector<16x1024xbf16>,
    return
  }
  func.func @transform_0(%arg0: i32) -> (i32, i32) {
    %c0_i32 = arith.constant 0 : i32
    %c0_i32_0 = arith.constant 0 : i32
    return %arg0, %c0_i32 : i32, i32
  }
  func.func @transform_1(%arg0: i32) -> (i32, i32) {
    %c0_i32 = arith.constant 0 : i32
    %c0_i32_0 = arith.constant 0 : i32
    %c0_i32_1 = arith.constant 0 : i32
    return %c0_i32, %c0_i32_0 : i32, i32
  }
  func.func @transform_2(%arg0: i32) -> (i32, i32) {
    %c0_i32 = arith.constant 0 : i32
    %c0_i32_0 = arith.constant 0 : i32
    %c0_i32_1 = arith.constant 0 : i32
    return %c0_i32, %c0_i32_0 : i32, i32
  }
  func.func @transform_3(%arg0: i32) -> (i32, i32) {
    %c0_i32 = arith.constant 0 : i32
    %c0_i32_0 = arith.constant 0 : i32
    %c0_i32_1 = arith.constant 0 : i32
    return %c0_i32, %c0_i32_0 : i32, i32
  }
  func.func @transform_4(%arg0: i32) -> (i32, i32) {
    %c0_i32 = arith.constant 0 : i32
    %c0_i32_0 = arith.constant 0 : i32
    %c0_i32_1 = arith.constant 0 : i32
    return %c0_i32, %c0_i32_0 : i32, i32
  }
  func.func @transform_5(%arg0: i32) -> (i32, i32) {
    %c0_i32 = arith.constant 0 : i32
    %c0_i32_0 = arith.constant 0 : i32
    %c0_i32_1 = arith.constant 0 : i32
    return %c0_i32, %c0_i32_0 : i32, i32
  }
  func.func @transform_6(%arg0: i32) -> (i32, i32) {
    %c0_i32 = arith.constant 0 : i32
    %c0_i32_0 = arith.constant 0 : i32
    %c0_i32_1 = arith.constant 0 : i32
    return %c0_i32, %c0_i32_0 : i32, i32
  }
  func.func @transform_7(%arg0: i32) -> (i32, i32) {
    %c0_i32 = arith.constant 0 : i32
    %c0_i32_0 = arith.constant 0 : i32
    return %arg0, %c0_i32 : i32, i32
  }
}

module attributes {stable_mosaic.version = 11 : i64} {
  func.func @_encoder_head_kernel(%arg0: i32, %arg1: memref<1x8x256xf32, #tpu.memory_space<vmem>>, %arg2: memref<1x8x64xf32, #tpu.memory_space<vmem>>, %arg3: memref<64x128xf32, #tpu.memory_space<vmem>>, %arg4: memref<1x128xf32, #tpu.memory_space<vmem>>, %arg5: memref<1x128xf32, #tpu.memory_space<vmem>>, %arg6: memref<1x128xf32, #tpu.memory_space<vmem>>, %arg7: memref<128x64xf32, #tpu.memory_space<vmem>>, %arg8: memref<1x64xf32, #tpu.memory_space<vmem>>, %arg9: memref<1x64xf32, #tpu.memory_space<vmem>>, %arg10: memref<1x64xf32, #tpu.memory_space<vmem>>, %arg11: memref<1x320xf32, #tpu.memory_space<vmem>>, %arg12: memref<1x320xf32, #tpu.memory_space<vmem>>, %arg13: memref<320x1536xf32, #tpu.memory_space<vmem>>, %arg14: memref<1x1536xf32, #tpu.memory_space<vmem>>, %arg15: memref<512x320xf32, #tpu.memory_space<vmem>>, %arg16: memref<1x320xf32, #tpu.memory_space<vmem>>, %arg17: memref<1x320xf32, #tpu.memory_space<vmem>>, %arg18: memref<1x320xf32, #tpu.memory_space<vmem>>, %arg19: memref<320x512xf32, #tpu.memory_space<vmem>>, %arg20: memref<1x512xf32, #tpu.memory_space<vmem>>, %arg21: memref<512x320xf32, #tpu.memory_space<vmem>>, %arg22: memref<1x320xf32, #tpu.memory_space<vmem>>, %arg23: memref<320x128xf32, #tpu.memory_space<vmem>>, %arg24: memref<1x128xf32, #tpu.memory_space<vmem>>, %arg25: memref<1x128xf32, #tpu.memory_space<vmem>>, %arg26: memref<1x128xf32, #tpu.memory_space<vmem>>, %arg27: memref<128x128xf32, #tpu.memory_space<vmem>>, %arg28: memref<1x128xf32, #tpu.memory_space<vmem>>, %arg29: memref<1x8x128xf32, #tpu.memory_space<vmem>>) attributes {dimension_semantics = [#tpu.dimension_semantics<parallel>], iteration_bounds = array<i64: 2>, scalar_prefetch = 0 : i64, scratch_operands = 0 : i64, tpu.core_type = #tpu.core_type<tc>, window_params = [{transform_indices = @transform_0, window_bounds = array<i64: 1, 8, 256>}, {transform_indices = @transform_1, window_bounds = array<i64: 1, 8, 64>}, {pipeline_mode = #tpu.pipeline_mode<synchronous>, transform_indices = @transform_2, window_bounds = array<i64: 64, 128>}, {pipeline_mode = #tpu.pipeline_mode<synchronous>, transform_indices = @transform_3, window_bounds = array<i64: 1, 128>}, {pipeline_mode = #tpu.pipeline_mode<synchronous>, transform_indices = @transform_4, window_bounds = array<i64: 1, 128>}, {pipeline_mode = #tpu.pipeline_mode<synchronous>, transform_indices = @transform_5, window_bounds = array<i64: 1, 128>}, {pipeline_mode = #tpu.pipeline_mode<synchronous>, transform_indices = @transform_6, window_bounds = array<i64: 128, 64>}, {pipeline_mode = #tpu.pipeline_mode<synchronous>, transform_indices = @transform_7, window_bounds = array<i64: 1, 64>}, {pipeline_mode = #tpu.pipeline_mode<synchronous>, transform_indices = @transform_8, window_bounds = array<i64: 1, 64>}, {pipeline_mode = #tpu.pipeline_mode<synchronous>, transform_indices = @transform_9, window_bounds = array<i64: 1, 64>}, {pipeline_mode = #tpu.pipeline_mode<synchronous>, transform_indices = @transform_10, window_bounds = array<i64: 1, 320>}, {pipeline_mode = #tpu.pipeline_mode<synchronous>, transform_indices = @transform_11, window_bounds = array<i64: 1, 320>}, {pipeline_mode = #tpu.pipeline_mode<synchronous>, transform_indices = @transform_12, window_bounds = array<i64: 320, 1536>}, {pipeline_mode = #tpu.pipeline_mode<synchronous>, transform_indices = @transform_13, window_bounds = array<i64: 1, 1536>}, {pipeline_mode = #tpu.pipeline_mode<synchronous>, transform_indices = @transform_14, window_bounds = array<i64: 512, 320>}, {pipeline_mode = #tpu.pipeline_mode<synchronous>, transform_indices = @transform_15, window_bounds = array<i64: 1, 320>}, {pipeline_mode = #tpu.pipeline_mode<synchronous>, transform_indices = @transform_16, window_bounds = array<i64: 1, 320>}, {pipeline_mode = #tpu.pipeline_mode<synchronous>, transform_indices = @transform_17, window_bounds = array<i64: 1, 320>}, {pipeline_mode = #tpu.pipeline_mode<synchronous>, transform_indices = @transform_18, window_bounds = array<i64: 320, 512>}, {pipeline_mode = #tpu.pipeline_mode<synchronous>, transform_indices = @transform_19, window_bounds = array<i64: 1, 512>}, {pipeline_mode = #tpu.pipeline_mode<synchronous>, transform_indices = @transform_20, window_bounds = array<i64: 512, 320>}, {pipeline_mode = #tpu.pipeline_mode<synchronous>, transform_indices = @transform_21, window_bounds = array<i64: 1, 320>}, {pipeline_mode = #tpu.pipeline_mode<synchronous>, transform_indices = @transform_22, window_bounds = array<i64: 320, 128>}, {pipeline_mode = #tpu.pipeline_mode<synchronous>, transform_indices = @transform_23, window_bounds = array<i64: 1, 128>}, {pipeline_mode = #tpu.pipeline_mode<synchronous>, transform_indices = @transform_24, window_bounds = array<i64: 1, 128>}, {pipeline_mode = #tpu.pipeline_mode<synchronous>, transform_indices = @transform_25, window_bounds = array<i64: 1, 128>}, {pipeline_mode = #tpu.pipeline_mode<synchronous>, transform_indices = @transform_26, window_bounds = array<i64: 128, 128>}, {pipeline_mode = #tpu.pipeline_mode<synchronous>, transform_indices = @transform_27, window_bounds = array<i64: 1, 128>}, {transform_indices = @transform_28, window_bounds = array<i64: 1, 8, 128>}]} {
    %c0 = arith.constant 0 : index
    %c0_0 = arith.constant 0 : index
    %c0_1 = arith.constant 0 : index
    %0 = vector.load %arg2[%c0, %c0_0, %c0_1] : memref<1x8x64xf32, #tpu.memory_space<vmem>>, vector<1x8x64xf32>
    %1 = vector.shape_cast %0 : vector<1x8x64xf32> to vector<8x64xf32>
    %c0_2 = arith.constant 0 : index
    %c0_3 = arith.constant 0 : index
    %2 = vector.load %arg3[%c0_2, %c0_3] : memref<64x128xf32, #tpu.memory_space<vmem>>, vector<64x128xf32>
    %cst = arith.constant dense<0.000000e+00> : vector<8x128xf32>
    %3 = tpu.matmul %1, %2, %cst {dimension_numbers = #tpu.dot_dimension_numbers<[1], [0], [0], [1], [0, 0, 1, 1], [], []>} : vector<8x64xf32>, vector<64x128xf32>, vector<8x128xf32> -> vector<8x128xf32>
    %c0_4 = arith.constant 0 : index
    %c0_5 = arith.constant 0 : index
    %4 = vector.load %arg4[%c0_4, %c0_5] : memref<1x128xf32, #tpu.memory_space<vmem>>, vector<1x128xf32>
    %5 = vector.broadcast %4 : vector<1x128xf32> to vector<8x128xf32>
    %6 = arith.addf %3, %5 : vector<8x128xf32>
    %c0_6 = arith.constant 0 : index
    %c0_7 = arith.constant 0 : index
    %7 = vector.load %arg5[%c0_6, %c0_7] : memref<1x128xf32, #tpu.memory_space<vmem>>, vector<1x128xf32>
    %c0_8 = arith.constant 0 : index
    %c0_9 = arith.constant 0 : index
    %8 = vector.load %arg6[%c0_8, %c0_9] : memref<1x128xf32, #tpu.memory_space<vmem>>, vector<1x128xf32>
    %cst_10 = arith.constant dense<0.000000e+00> : vector<8xf32>
    %9 = vector.multi_reduction <add>, %6, %cst_10 [1] : vector<8x128xf32> to vector<8xf32>
    %10 = vector.shape_cast %9 : vector<8xf32> to vector<8x1xf32>
    %cst_11 = arith.constant 1.280000e+02 : f32
    %11 = vector.broadcast %cst_11 : f32 to vector<8x1xf32>
    %12 = arith.divf %10, %11 : vector<8x1xf32>
    %13 = vector.broadcast %12 : vector<8x1xf32> to vector<8x128xf32>
    %14 = arith.subf %6, %13 : vector<8x128xf32>
    %15 = arith.mulf %14, %14 : vector<8x128xf32>
    %cst_12 = arith.constant dense<0.000000e+00> : vector<8xf32>
    %16 = vector.multi_reduction <add>, %15, %cst_12 [1] : vector<8x128xf32> to vector<8xf32>
    %17 = vector.shape_cast %16 : vector<8xf32> to vector<8x1xf32>
    %cst_13 = arith.constant 1.280000e+02 : f32
    %18 = vector.broadcast %cst_13 : f32 to vector<8x1xf32>
    %19 = arith.divf %17, %18 : vector<8x1xf32>
    %cst_14 = arith.constant 9.99999974E-6 : f32
    %20 = vector.broadcast %cst_14 : f32 to vector<8x1xf32>
    %21 = arith.addf %19, %20 : vector<8x1xf32>
    %22 = math.rsqrt %21 : vector<8x1xf32>
    %23 = vector.broadcast %22 : vector<8x1xf32> to vector<8x128xf32>
    %24 = arith.mulf %14, %23 : vector<8x128xf32>
    %25 = vector.broadcast %7 : vector<1x128xf32> to vector<8x128xf32>
    %26 = arith.mulf %24, %25 : vector<8x128xf32>
    %27 = vector.broadcast %8 : vector<1x128xf32> to vector<8x128xf32>
    %28 = arith.addf %26, %27 : vector<8x128xf32>
    %cst_15 = arith.constant 0.000000e+00 : f32
    %29 = vector.broadcast %cst_15 : f32 to vector<8x128xf32>
    %30 = arith.maximumf %28, %29 : vector<8x128xf32>
    %c0_16 = arith.constant 0 : index
    %c0_17 = arith.constant 0 : index
    %31 = vector.load %arg7[%c0_16, %c0_17] : memref<128x64xf32, #tpu.memory_space<vmem>>, vector<128x64xf32>
    %cst_18 = arith.constant dense<0.000000e+00> : vector<8x64xf32>
    %32 = tpu.matmul %30, %31, %cst_18 {dimension_numbers = #tpu.dot_dimension_numbers<[1], [0], [0], [1], [0, 0, 1, 1], [], []>} : vector<8x128xf32>, vector<128x64xf32>, vector<8x64xf32> -> vector<8x64xf32>
    %c0_19 = arith.constant 0 : index
    %c0_20 = arith.constant 0 : index
    %33 = vector.load %arg8[%c0_19, %c0_20] : memref<1x64xf32, #tpu.memory_space<vmem>>, vector<1x64xf32>
    %34 = vector.broadcast %33 : vector<1x64xf32> to vector<8x64xf32>
    %35 = arith.addf %32, %34 : vector<8x64xf32>
    %c0_21 = arith.constant 0 : index
    %c0_22 = arith.constant 0 : index
    %36 = vector.load %arg9[%c0_21, %c0_22] : memref<1x64xf32, #tpu.memory_space<vmem>>, vector<1x64xf32>
    %c0_23 = arith.constant 0 : index
    %c0_24 = arith.constant 0 : index
    %37 = vector.load %arg10[%c0_23, %c0_24] : memref<1x64xf32, #tpu.memory_space<vmem>>, vector<1x64xf32>
    %cst_25 = arith.constant dense<0.000000e+00> : vector<8xf32>
    %38 = vector.multi_reduction <add>, %35, %cst_25 [1] : vector<8x64xf32> to vector<8xf32>
    %39 = vector.shape_cast %38 : vector<8xf32> to vector<8x1xf32>
    %cst_26 = arith.constant 6.400000e+01 : f32
    %40 = vector.broadcast %cst_26 : f32 to vector<8x1xf32>
    %41 = arith.divf %39, %40 : vector<8x1xf32>
    %42 = vector.broadcast %41 : vector<8x1xf32> to vector<8x64xf32>
    %43 = arith.subf %35, %42 : vector<8x64xf32>
    %44 = arith.mulf %43, %43 : vector<8x64xf32>
    %cst_27 = arith.constant dense<0.000000e+00> : vector<8xf32>
    %45 = vector.multi_reduction <add>, %44, %cst_27 [1] : vector<8x64xf32> to vector<8xf32>
    %46 = vector.shape_cast %45 : vector<8xf32> to vector<8x1xf32>
    %cst_28 = arith.constant 6.400000e+01 : f32
    %47 = vector.broadcast %cst_28 : f32 to vector<8x1xf32>
    %48 = arith.divf %46, %47 : vector<8x1xf32>
    %cst_29 = arith.constant 9.99999974E-6 : f32
    %49 = vector.broadcast %cst_29 : f32 to vector<8x1xf32>
    %50 = arith.addf %48, %49 : vector<8x1xf32>
    %51 = math.rsqrt %50 : vector<8x1xf32>
    %52 = vector.broadcast %51 : vector<8x1xf32> to vector<8x64xf32>
    %53 = arith.mulf %43, %52 : vector<8x64xf32>
    %54 = vector.broadcast %36 : vector<1x64xf32> to vector<8x64xf32>
    %55 = arith.mulf %53, %54 : vector<8x64xf32>
    %56 = vector.broadcast %37 : vector<1x64xf32> to vector<8x64xf32>
    %57 = arith.addf %55, %56 : vector<8x64xf32>
    %cst_30 = arith.constant 0.000000e+00 : f32
    %58 = vector.broadcast %cst_30 : f32 to vector<8x64xf32>
    %59 = arith.maximumf %57, %58 : vector<8x64xf32>
    %c0_31 = arith.constant 0 : index
    %c0_32 = arith.constant 0 : index
    %c0_33 = arith.constant 0 : index
    %60 = vector.load %arg1[%c0_31, %c0_32, %c0_33] : memref<1x8x256xf32, #tpu.memory_space<vmem>>, vector<1x8x256xf32>
    %61 = vector.shape_cast %60 : vector<1x8x256xf32> to vector<8x256xf32>
    %62 = tpu.concatenate %61, %59 in 1 : vector<8x256xf32>, vector<8x64xf32> -> vector<8x320xf32>
    %c0_34 = arith.constant 0 : index
    %c0_35 = arith.constant 0 : index
    %63 = vector.load %arg11[%c0_34, %c0_35] : memref<1x320xf32, #tpu.memory_space<vmem>>, vector<1x320xf32>
    %c0_36 = arith.constant 0 : index
    %c0_37 = arith.constant 0 : index
    %64 = vector.load %arg12[%c0_36, %c0_37] : memref<1x320xf32, #tpu.memory_space<vmem>>, vector<1x320xf32>
    %cst_38 = arith.constant dense<0.000000e+00> : vector<8xf32>
    %65 = vector.multi_reduction <add>, %62, %cst_38 [1] : vector<8x320xf32> to vector<8xf32>
    %66 = vector.shape_cast %65 : vector<8xf32> to vector<8x1xf32>
    %cst_39 = arith.constant 3.200000e+02 : f32
    %67 = vector.broadcast %cst_39 : f32 to vector<8x1xf32>
    %68 = arith.divf %66, %67 : vector<8x1xf32>
    %69 = vector.broadcast %68 : vector<8x1xf32> to vector<8x320xf32>
    %70 = arith.subf %62, %69 : vector<8x320xf32>
    %71 = arith.mulf %70, %70 : vector<8x320xf32>
    %cst_40 = arith.constant dense<0.000000e+00> : vector<8xf32>
    %72 = vector.multi_reduction <add>, %71, %cst_40 [1] : vector<8x320xf32> to vector<8xf32>
    %73 = vector.shape_cast %72 : vector<8xf32> to vector<8x1xf32>
    %cst_41 = arith.constant 3.200000e+02 : f32
    %74 = vector.broadcast %cst_41 : f32 to vector<8x1xf32>
    %75 = arith.divf %73, %74 : vector<8x1xf32>
    %cst_42 = arith.constant 9.99999974E-6 : f32
    %76 = vector.broadcast %cst_42 : f32 to vector<8x1xf32>
    %77 = arith.addf %75, %76 : vector<8x1xf32>
    %78 = math.rsqrt %77 : vector<8x1xf32>
    %79 = vector.broadcast %78 : vector<8x1xf32> to vector<8x320xf32>
    %80 = arith.mulf %70, %79 : vector<8x320xf32>
    %81 = vector.broadcast %63 : vector<1x320xf32> to vector<8x320xf32>
    %82 = arith.mulf %80, %81 : vector<8x320xf32>
    %83 = vector.broadcast %64 : vector<1x320xf32> to vector<8x320xf32>
    %84 = arith.addf %82, %83 : vector<8x320xf32>
    %c0_43 = arith.constant 0 : index
    %c0_44 = arith.constant 0 : index
    %85 = vector.load %arg13[%c0_43, %c0_44] : memref<320x1536xf32, #tpu.memory_space<vmem>>, vector<320x1536xf32>
    %cst_45 = arith.constant dense<0.000000e+00> : vector<8x1536xf32>
    %86 = tpu.matmul %84, %85, %cst_45 {dimension_numbers = #tpu.dot_dimension_numbers<[1], [0], [0], [1], [0, 0, 1, 1], [], []>} : vector<8x320xf32>, vector<320x1536xf32>, vector<8x1536xf32> -> vector<8x1536xf32>
    %c0_46 = arith.constant 0 : index
    %c0_47 = arith.constant 0 : index
    %87 = vector.load %arg14[%c0_46, %c0_47] : memref<1x1536xf32, #tpu.memory_space<vmem>>, vector<1x1536xf32>
    %88 = vector.broadcast %87 : vector<1x1536xf32> to vector<8x1536xf32>
    %89 = arith.addf %86, %88 : vector<8x1536xf32>
    %cst_48 = arith.constant 0.000000e+00 : f32
    %90 = vector.broadcast %cst_48 : f32 to vector<8x320xf32>
    %91 = vector.extract_strided_slice %89 {offsets = [0, 0], sizes = [8, 128], strides = [1, 1]} : vector<8x1536xf32> to vector<8x128xf32>
    %92 = vector.extract_strided_slice %89 {offsets = [0, 512], sizes = [8, 128], strides = [1, 1]} : vector<8x1536xf32> to vector<8x128xf32>
    %93 = vector.extract_strided_slice %89 {offsets = [0, 1024], sizes = [8, 128], strides = [1, 1]} : vector<8x1536xf32> to vector<8x128xf32>
    %cst_49 = arith.constant dense<0.000000e+00> : vector<8x8xf32>
    %94 = tpu.matmul %91, %92, %cst_49 {dimension_numbers = #tpu.dot_dimension_numbers<[1], [1], [0], [0], [0, 0, 1, 0], [], []>} : vector<8x128xf32>, vector<8x128xf32>, vector<8x8xf32> -> vector<8x8xf32>
    %cst_50 = arith.constant dense<0xFF800000> : vector<8xf32>
    %95 = vector.multi_reduction <maximumf>, %94, %cst_50 [1] : vector<8x8xf32> to vector<8xf32>
    %96 = vector.shape_cast %95 : vector<8xf32> to vector<8x1xf32>
    %97 = vector.broadcast %96 : vector<8x1xf32> to vector<8x8xf32>
    %98 = arith.subf %94, %97 : vector<8x8xf32>
    %99 = math.exp %98 : vector<8x8xf32>
    %cst_51 = arith.constant dense<0.000000e+00> : vector<8xf32>
    %100 = vector.multi_reduction <add>, %99, %cst_51 [1] : vector<8x8xf32> to vector<8xf32>
    %101 = vector.shape_cast %100 : vector<8xf32> to vector<8x1xf32>
    %102 = vector.broadcast %101 : vector<8x1xf32> to vector<8x8xf32>
    %103 = arith.divf %99, %102 : vector<8x8xf32>
    %cst_52 = arith.constant dense<0.000000e+00> : vector<8x128xf32>
    %104 = tpu.matmul %103, %93, %cst_52 {dimension_numbers = #tpu.dot_dimension_numbers<[1], [0], [0], [1], [0, 0, 1, 1], [], []>} : vector<8x8xf32>, vector<8x128xf32>, vector<8x128xf32> -> vector<8x128xf32>
    %c0_53 = arith.constant 0 : index
    %c0_54 = arith.constant 0 : index
    %105 = vector.load %arg15[%c0_53, %c0_54] : memref<512x320xf32, #tpu.memory_space<vmem>>, vector<128x320xf32>
    %cst_55 = arith.constant dense<0.000000e+00> : vector<8x320xf32>
    %106 = tpu.matmul %104, %105, %cst_55 {dimension_numbers = #tpu.dot_dimension_numbers<[1], [0], [0], [1], [0, 0, 1, 1], [], []>} : vector<8x128xf32>, vector<128x320xf32>, vector<8x320xf32> -> vector<8x320xf32>
    %107 = arith.addf %90, %106 : vector<8x320xf32>
    %108 = vector.extract_strided_slice %89 {offsets = [0, 128], sizes = [8, 128], strides = [1, 1]} : vector<8x1536xf32> to vector<8x128xf32>
    %109 = vector.extract_strided_slice %89 {offsets = [0, 640], sizes = [8, 128], strides = [1, 1]} : vector<8x1536xf32> to vector<8x128xf32>
    %110 = vector.extract_strided_slice %89 {offsets = [0, 1152], sizes = [8, 128], strides = [1, 1]} : vector<8x1536xf32> to vector<8x128xf32>
    %cst_56 = arith.constant dense<0.000000e+00> : vector<8x8xf32>
    %111 = tpu.matmul %108, %109, %cst_56 {dimension_numbers = #tpu.dot_dimension_numbers<[1], [1], [0], [0], [0, 0, 1, 0], [], []>} : vector<8x128xf32>, vector<8x128xf32>, vector<8x8xf32> -> vector<8x8xf32>
    %cst_57 = arith.constant dense<0xFF800000> : vector<8xf32>
    %112 = vector.multi_reduction <maximumf>, %111, %cst_57 [1] : vector<8x8xf32> to vector<8xf32>
    %113 = vector.shape_cast %112 : vector<8xf32> to vector<8x1xf32>
    %114 = vector.broadcast %113 : vector<8x1xf32> to vector<8x8xf32>
    %115 = arith.subf %111, %114 : vector<8x8xf32>
    %116 = math.exp %115 : vector<8x8xf32>
    %cst_58 = arith.constant dense<0.000000e+00> : vector<8xf32>
    %117 = vector.multi_reduction <add>, %116, %cst_58 [1] : vector<8x8xf32> to vector<8xf32>
    %118 = vector.shape_cast %117 : vector<8xf32> to vector<8x1xf32>
    %119 = vector.broadcast %118 : vector<8x1xf32> to vector<8x8xf32>
    %120 = arith.divf %116, %119 : vector<8x8xf32>
    %cst_59 = arith.constant dense<0.000000e+00> : vector<8x128xf32>
    %121 = tpu.matmul %120, %110, %cst_59 {dimension_numbers = #tpu.dot_dimension_numbers<[1], [0], [0], [1], [0, 0, 1, 1], [], []>} : vector<8x8xf32>, vector<8x128xf32>, vector<8x128xf32> -> vector<8x128xf32>
    %c128 = arith.constant 128 : index
    %c0_60 = arith.constant 0 : index
    %122 = vector.load %arg15[%c128, %c0_60] : memref<512x320xf32, #tpu.memory_space<vmem>>, vector<128x320xf32>
    %cst_61 = arith.constant dense<0.000000e+00> : vector<8x320xf32>
    %123 = tpu.matmul %121, %122, %cst_61 {dimension_numbers = #tpu.dot_dimension_numbers<[1], [0], [0], [1], [0, 0, 1, 1], [], []>} : vector<8x128xf32>, vector<128x320xf32>, vector<8x320xf32> -> vector<8x320xf32>
    %124 = arith.addf %107, %123 : vector<8x320xf32>
    %125 = vector.extract_strided_slice %89 {offsets = [0, 256], sizes = [8, 128], strides = [1, 1]} : vector<8x1536xf32> to vector<8x128xf32>
    %126 = vector.extract_strided_slice %89 {offsets = [0, 768], sizes = [8, 128], strides = [1, 1]} : vector<8x1536xf32> to vector<8x128xf32>
    %127 = vector.extract_strided_slice %89 {offsets = [0, 1280], sizes = [8, 128], strides = [1, 1]} : vector<8x1536xf32> to vector<8x128xf32>
    %cst_62 = arith.constant dense<0.000000e+00> : vector<8x8xf32>
    %128 = tpu.matmul %125, %126, %cst_62 {dimension_numbers = #tpu.dot_dimension_numbers<[1], [1], [0], [0], [0, 0, 1, 0], [], []>} : vector<8x128xf32>, vector<8x128xf32>, vector<8x8xf32> -> vector<8x8xf32>
    %cst_63 = arith.constant dense<0xFF800000> : vector<8xf32>
    %129 = vector.multi_reduction <maximumf>, %128, %cst_63 [1] : vector<8x8xf32> to vector<8xf32>
    %130 = vector.shape_cast %129 : vector<8xf32> to vector<8x1xf32>
    %131 = vector.broadcast %130 : vector<8x1xf32> to vector<8x8xf32>
    %132 = arith.subf %128, %131 : vector<8x8xf32>
    %133 = math.exp %132 : vector<8x8xf32>
    %cst_64 = arith.constant dense<0.000000e+00> : vector<8xf32>
    %134 = vector.multi_reduction <add>, %133, %cst_64 [1] : vector<8x8xf32> to vector<8xf32>
    %135 = vector.shape_cast %134 : vector<8xf32> to vector<8x1xf32>
    %136 = vector.broadcast %135 : vector<8x1xf32> to vector<8x8xf32>
    %137 = arith.divf %133, %136 : vector<8x8xf32>
    %cst_65 = arith.constant dense<0.000000e+00> : vector<8x128xf32>
    %138 = tpu.matmul %137, %127, %cst_65 {dimension_numbers = #tpu.dot_dimension_numbers<[1], [0], [0], [1], [0, 0, 1, 1], [], []>} : vector<8x8xf32>, vector<8x128xf32>, vector<8x128xf32> -> vector<8x128xf32>
    %c256 = arith.constant 256 : index
    %c0_66 = arith.constant 0 : index
    %139 = vector.load %arg15[%c256, %c0_66] : memref<512x320xf32, #tpu.memory_space<vmem>>, vector<128x320xf32>
    %cst_67 = arith.constant dense<0.000000e+00> : vector<8x320xf32>
    %140 = tpu.matmul %138, %139, %cst_67 {dimension_numbers = #tpu.dot_dimension_numbers<[1], [0], [0], [1], [0, 0, 1, 1], [], []>} : vector<8x128xf32>, vector<128x320xf32>, vector<8x320xf32> -> vector<8x320xf32>
    %141 = arith.addf %124, %140 : vector<8x320xf32>
    %142 = vector.extract_strided_slice %89 {offsets = [0, 384], sizes = [8, 128], strides = [1, 1]} : vector<8x1536xf32> to vector<8x128xf32>
    %143 = vector.extract_strided_slice %89 {offsets = [0, 896], sizes = [8, 128], strides = [1, 1]} : vector<8x1536xf32> to vector<8x128xf32>
    %144 = vector.extract_strided_slice %89 {offsets = [0, 1408], sizes = [8, 128], strides = [1, 1]} : vector<8x1536xf32> to vector<8x128xf32>
    %cst_68 = arith.constant dense<0.000000e+00> : vector<8x8xf32>
    %145 = tpu.matmul %142, %143, %cst_68 {dimension_numbers = #tpu.dot_dimension_numbers<[1], [1], [0], [0], [0, 0, 1, 0], [], []>} : vector<8x128xf32>, vector<8x128xf32>, vector<8x8xf32> -> vector<8x8xf32>
    %cst_69 = arith.constant dense<0xFF800000> : vector<8xf32>
    %146 = vector.multi_reduction <maximumf>, %145, %cst_69 [1] : vector<8x8xf32> to vector<8xf32>
    %147 = vector.shape_cast %146 : vector<8xf32> to vector<8x1xf32>
    %148 = vector.broadcast %147 : vector<8x1xf32> to vector<8x8xf32>
    %149 = arith.subf %145, %148 : vector<8x8xf32>
    %150 = math.exp %149 : vector<8x8xf32>
    %cst_70 = arith.constant dense<0.000000e+00> : vector<8xf32>
    %151 = vector.multi_reduction <add>, %150, %cst_70 [1] : vector<8x8xf32> to vector<8xf32>
    %152 = vector.shape_cast %151 : vector<8xf32> to vector<8x1xf32>
    %153 = vector.broadcast %152 : vector<8x1xf32> to vector<8x8xf32>
    %154 = arith.divf %150, %153 : vector<8x8xf32>
    %cst_71 = arith.constant dense<0.000000e+00> : vector<8x128xf32>
    %155 = tpu.matmul %154, %144, %cst_71 {dimension_numbers = #tpu.dot_dimension_numbers<[1], [0], [0], [1], [0, 0, 1, 1], [], []>} : vector<8x8xf32>, vector<8x128xf32>, vector<8x128xf32> -> vector<8x128xf32>
    %c384 = arith.constant 384 : index
    %c0_72 = arith.constant 0 : index
    %156 = vector.load %arg15[%c384, %c0_72] : memref<512x320xf32, #tpu.memory_space<vmem>>, vector<128x320xf32>
    %cst_73 = arith.constant dense<0.000000e+00> : vector<8x320xf32>
    %157 = tpu.matmul %155, %156, %cst_73 {dimension_numbers = #tpu.dot_dimension_numbers<[1], [0], [0], [1], [0, 0, 1, 1], [], []>} : vector<8x128xf32>, vector<128x320xf32>, vector<8x320xf32> -> vector<8x320xf32>
    %158 = arith.addf %141, %157 : vector<8x320xf32>
    %159 = arith.addf %62, %158 : vector<8x320xf32>
    %c0_74 = arith.constant 0 : index
    %c0_75 = arith.constant 0 : index
    %160 = vector.load %arg16[%c0_74, %c0_75] : memref<1x320xf32, #tpu.memory_space<vmem>>, vector<1x320xf32>
    %161 = vector.broadcast %160 : vector<1x320xf32> to vector<8x320xf32>
    %162 = arith.addf %159, %161 : vector<8x320xf32>
    %c0_76 = arith.constant 0 : index
    %c0_77 = arith.constant 0 : index
    %163 = vector.load %arg17[%c0_76, %c0_77] : memref<1x320xf32, #tpu.memory_space<vmem>>, vector<1x320xf32>
    %c0_78 = arith.constant 0 : index
    %c0_79 = arith.constant 0 : index
    %164 = vector.load %arg18[%c0_78, %c0_79] : memref<1x320xf32, #tpu.memory_space<vmem>>, vector<1x320xf32>
    %cst_80 = arith.constant dense<0.000000e+00> : vector<8xf32>
    %165 = vector.multi_reduction <add>, %162, %cst_80 [1] : vector<8x320xf32> to vector<8xf32>
    %166 = vector.shape_cast %165 : vector<8xf32> to vector<8x1xf32>
    %cst_81 = arith.constant 3.200000e+02 : f32
    %167 = vector.broadcast %cst_81 : f32 to vector<8x1xf32>
    %168 = arith.divf %166, %167 : vector<8x1xf32>
    %169 = vector.broadcast %168 : vector<8x1xf32> to vector<8x320xf32>
    %170 = arith.subf %162, %169 : vector<8x320xf32>
    %171 = arith.mulf %170, %170 : vector<8x320xf32>
    %cst_82 = arith.constant dense<0.000000e+00> : vector<8xf32>
    %172 = vector.multi_reduction <add>, %171, %cst_82 [1] : vector<8x320xf32> to vector<8xf32>
    %173 = vector.shape_cast %172 : vector<8xf32> to vector<8x1xf32>
    %cst_83 = arith.constant 3.200000e+02 : f32
    %174 = vector.broadcast %cst_83 : f32 to vector<8x1xf32>
    %175 = arith.divf %173, %174 : vector<8x1xf32>
    %cst_84 = arith.constant 9.99999974E-6 : f32
    %176 = vector.broadcast %cst_84 : f32 to vector<8x1xf32>
    %177 = arith.addf %175, %176 : vector<8x1xf32>
    %178 = math.rsqrt %177 : vector<8x1xf32>
    %179 = vector.broadcast %178 : vector<8x1xf32> to vector<8x320xf32>
    %180 = arith.mulf %170, %179 : vector<8x320xf32>
    %181 = vector.broadcast %163 : vector<1x320xf32> to vector<8x320xf32>
    %182 = arith.mulf %180, %181 : vector<8x320xf32>
    %183 = vector.broadcast %164 : vector<1x320xf32> to vector<8x320xf32>
    %184 = arith.addf %182, %183 : vector<8x320xf32>
    %c0_85 = arith.constant 0 : index
    %c0_86 = arith.constant 0 : index
    %185 = vector.load %arg19[%c0_85, %c0_86] : memref<320x512xf32, #tpu.memory_space<vmem>>, vector<320x512xf32>
    %cst_87 = arith.constant dense<0.000000e+00> : vector<8x512xf32>
    %186 = tpu.matmul %184, %185, %cst_87 {dimension_numbers = #tpu.dot_dimension_numbers<[1], [0], [0], [1], [0, 0, 1, 1], [], []>} : vector<8x320xf32>, vector<320x512xf32>, vector<8x512xf32> -> vector<8x512xf32>
    %c0_88 = arith.constant 0 : index
    %c0_89 = arith.constant 0 : index
    %187 = vector.load %arg20[%c0_88, %c0_89] : memref<1x512xf32, #tpu.memory_space<vmem>>, vector<1x512xf32>
    %188 = vector.broadcast %187 : vector<1x512xf32> to vector<8x512xf32>
    %189 = arith.addf %186, %188 : vector<8x512xf32>
    %cst_90 = arith.constant 0.000000e+00 : f32
    %190 = vector.broadcast %cst_90 : f32 to vector<8x512xf32>
    %191 = arith.maximumf %189, %190 : vector<8x512xf32>
    %c0_91 = arith.constant 0 : index
    %c0_92 = arith.constant 0 : index
    %192 = vector.load %arg21[%c0_91, %c0_92] : memref<512x320xf32, #tpu.memory_space<vmem>>, vector<512x320xf32>
    %cst_93 = arith.constant dense<0.000000e+00> : vector<8x320xf32>
    %193 = tpu.matmul %191, %192, %cst_93 {dimension_numbers = #tpu.dot_dimension_numbers<[1], [0], [0], [1], [0, 0, 1, 1], [], []>} : vector<8x512xf32>, vector<512x320xf32>, vector<8x320xf32> -> vector<8x320xf32>
    %194 = arith.addf %162, %193 : vector<8x320xf32>
    %c0_94 = arith.constant 0 : index
    %c0_95 = arith.constant 0 : index
    %195 = vector.load %arg22[%c0_94, %c0_95] : memref<1x320xf32, #tpu.memory_space<vmem>>, vector<1x320xf32>
    %196 = vector.broadcast %195 : vector<1x320xf32> to vector<8x320xf32>
    %197 = arith.addf %194, %196 : vector<8x320xf32>
    %c0_96 = arith.constant 0 : index
    %c0_97 = arith.constant 0 : index
    %198 = vector.load %arg23[%c0_96, %c0_97] : memref<320x128xf32, #tpu.memory_space<vmem>>, vector<320x128xf32>
    %cst_98 = arith.constant dense<0.000000e+00> : vector<8x128xf32>
    %199 = tpu.matmul %197, %198, %cst_98 {dimension_numbers = #tpu.dot_dimension_numbers<[1], [0], [0], [1], [0, 0, 1, 1], [], []>} : vector<8x320xf32>, vector<320x128xf32>, vector<8x128xf32> -> vector<8x128xf32>
    %c0_99 = arith.constant 0 : index
    %c0_100 = arith.constant 0 : index
    %200 = vector.load %arg24[%c0_99, %c0_100] : memref<1x128xf32, #tpu.memory_space<vmem>>, vector<1x128xf32>
    %201 = vector.broadcast %200 : vector<1x128xf32> to vector<8x128xf32>
    %202 = arith.addf %199, %201 : vector<8x128xf32>
    %c0_101 = arith.constant 0 : index
    %c0_102 = arith.constant 0 : index
    %203 = vector.load %arg25[%c0_101, %c0_102] : memref<1x128xf32, #tpu.memory_space<vmem>>, vector<1x128xf32>
    %c0_103 = arith.constant 0 : index
    %c0_104 = arith.constant 0 : index
    %204 = vector.load %arg26[%c0_103, %c0_104] : memref<1x128xf32, #tpu.memory_space<vmem>>, vector<1x128xf32>
    %cst_105 = arith.constant dense<0.000000e+00> : vector<8xf32>
    %205 = vector.multi_reduction <add>, %202, %cst_105 [1] : vector<8x128xf32> to vector<8xf32>
    %206 = vector.shape_cast %205 : vector<8xf32> to vector<8x1xf32>
    %cst_106 = arith.constant 1.280000e+02 : f32
    %207 = vector.broadcast %cst_106 : f32 to vector<8x1xf32>
    %208 = arith.divf %206, %207 : vector<8x1xf32>
    %209 = vector.broadcast %208 : vector<8x1xf32> to vector<8x128xf32>
    %210 = arith.subf %202, %209 : vector<8x128xf32>
    %211 = arith.mulf %210, %210 : vector<8x128xf32>
    %cst_107 = arith.constant dense<0.000000e+00> : vector<8xf32>
    %212 = vector.multi_reduction <add>, %211, %cst_107 [1] : vector<8x128xf32> to vector<8xf32>
    %213 = vector.shape_cast %212 : vector<8xf32> to vector<8x1xf32>
    %cst_108 = arith.constant 1.280000e+02 : f32
    %214 = vector.broadcast %cst_108 : f32 to vector<8x1xf32>
    %215 = arith.divf %213, %214 : vector<8x1xf32>
    %cst_109 = arith.constant 9.99999974E-6 : f32
    %216 = vector.broadcast %cst_109 : f32 to vector<8x1xf32>
    %217 = arith.addf %215, %216 : vector<8x1xf32>
    %218 = math.rsqrt %217 : vector<8x1xf32>
    %219 = vector.broadcast %218 : vector<8x1xf32> to vector<8x128xf32>
    %220 = arith.mulf %210, %219 : vector<8x128xf32>
    %221 = vector.broadcast %203 : vector<1x128xf32> to vector<8x128xf32>
    %222 = arith.mulf %220, %221 : vector<8x128xf32>
    %223 = vector.broadcast %204 : vector<1x128xf32> to vector<8x128xf32>
    %224 = arith.addf %222, %223 : vector<8x128xf32>
    %cst_110 = arith.constant 0.000000e+00 : f32
    %225 = vector.broadcast %cst_110 : f32 to vector<8x128xf32>
    %226 = arith.maximumf %224, %225 : vector<8x128xf32>
    %c0_111 = arith.constant 0 : index
    %c0_112 = arith.constant 0 : index
    %227 = vector.load %arg27[%c0_111, %c0_112] : memref<128x128xf32, #tpu.memory_space<vmem>>, vector<128x128xf32>
    %cst_113 = arith.constant dense<0.000000e+00> : vector<8x128xf32>
    %228 = tpu.matmul %226, %227, %cst_113 {dimension_numbers = #tpu.dot_dimension_numbers<[1], [0], [0], [1], [0, 0, 1, 1], [], []>} : vector<8x128xf32>, vector<128x128xf32>, vector<8x128xf32> -> vector<8x128xf32>
    %c0_114 = arith.constant 0 : index
    %c0_115 = arith.constant 0 : index
    %229 = vector.load %arg28[%c0_114, %c0_115] : memref<1x128xf32, #tpu.memory_space<vmem>>, vector<1x128xf32>
    %230 = vector.broadcast %229 : vector<1x128xf32> to vector<8x128xf32>
    %231 = arith.addf %228, %230 : vector<8x128xf32>
    %c0_116 = arith.constant 0 : index
    %c0_117 = arith.constant 0 : index
    %c0_118 = arith.constant 0 : index
    %232 = vector.load %arg29[%c0_116, %c0_117, %c0_118] : memref<1x8x128xf32, #tpu.memory_space<vmem>>, vector<1x8x128xf32>
    %233 = vector.shape_cast %232 : vector<1x8x128xf32> to vector<8x128xf32>
    %234 = vector.shape_cast %231 : vector<8x128xf32> to vector<1x8x128xf32>
    tpu.vector_store %arg29[%c0_116, %c0_117, %c0_118], %234 {strides = array<i32>} : memref<1x8x128xf32, #tpu.memory_space<vmem>>, vector<1x8x128xf32>,
    return
  }
  func.func @transform_0(%arg0: i32) -> (i32, i32, i32) {
    %c0_i32 = arith.constant 0 : i32
    %c0_i32_0 = arith.constant 0 : i32
    %c0_i32_1 = arith.constant 0 : i32
    return %arg0, %c0_i32, %c0_i32_0 : i32, i32, i32
  }
  func.func @transform_1(%arg0: i32) -> (i32, i32, i32) {
    %c0_i32 = arith.constant 0 : i32
    %c0_i32_0 = arith.constant 0 : i32
    %c0_i32_1 = arith.constant 0 : i32
    return %arg0, %c0_i32, %c0_i32_0 : i32, i32, i32
  }
  func.func @transform_2(%arg0: i32) -> (i32, i32) {
    %c0_i32 = arith.constant 0 : i32
    %c0_i32_0 = arith.constant 0 : i32
    %c0_i32_1 = arith.constant 0 : i32
    return %c0_i32, %c0_i32_0 : i32, i32
  }
  func.func @transform_3(%arg0: i32) -> (i32, i32) {
    %c0_i32 = arith.constant 0 : i32
    %c0_i32_0 = arith.constant 0 : i32
    %c0_i32_1 = arith.constant 0 : i32
    return %c0_i32, %c0_i32_0 : i32, i32
  }
  func.func @transform_4(%arg0: i32) -> (i32, i32) {
    %c0_i32 = arith.constant 0 : i32
    %c0_i32_0 = arith.constant 0 : i32
    %c0_i32_1 = arith.constant 0 : i32
    return %c0_i32, %c0_i32_0 : i32, i32
  }
  func.func @transform_5(%arg0: i32) -> (i32, i32) {
    %c0_i32 = arith.constant 0 : i32
    %c0_i32_0 = arith.constant 0 : i32
    %c0_i32_1 = arith.constant 0 : i32
    return %c0_i32, %c0_i32_0 : i32, i32
  }
  func.func @transform_6(%arg0: i32) -> (i32, i32) {
    %c0_i32 = arith.constant 0 : i32
    %c0_i32_0 = arith.constant 0 : i32
    %c0_i32_1 = arith.constant 0 : i32
    return %c0_i32, %c0_i32_0 : i32, i32
  }
  func.func @transform_7(%arg0: i32) -> (i32, i32) {
    %c0_i32 = arith.constant 0 : i32
    %c0_i32_0 = arith.constant 0 : i32
    %c0_i32_1 = arith.constant 0 : i32
    return %c0_i32, %c0_i32_0 : i32, i32
  }
  func.func @transform_8(%arg0: i32) -> (i32, i32) {
    %c0_i32 = arith.constant 0 : i32
    %c0_i32_0 = arith.constant 0 : i32
    %c0_i32_1 = arith.constant 0 : i32
    return %c0_i32, %c0_i32_0 : i32, i32
  }
  func.func @transform_9(%arg0: i32) -> (i32, i32) {
    %c0_i32 = arith.constant 0 : i32
    %c0_i32_0 = arith.constant 0 : i32
    %c0_i32_1 = arith.constant 0 : i32
    return %c0_i32, %c0_i32_0 : i32, i32
  }
  func.func @transform_10(%arg0: i32) -> (i32, i32) {
    %c0_i32 = arith.constant 0 : i32
    %c0_i32_0 = arith.constant 0 : i32
    %c0_i32_1 = arith.constant 0 : i32
    return %c0_i32, %c0_i32_0 : i32, i32
  }
  func.func @transform_11(%arg0: i32) -> (i32, i32) {
    %c0_i32 = arith.constant 0 : i32
    %c0_i32_0 = arith.constant 0 : i32
    %c0_i32_1 = arith.constant 0 : i32
    return %c0_i32, %c0_i32_0 : i32, i32
  }
  func.func @transform_12(%arg0: i32) -> (i32, i32) {
    %c0_i32 = arith.constant 0 : i32
    %c0_i32_0 = arith.constant 0 : i32
    %c0_i32_1 = arith.constant 0 : i32
    return %c0_i32, %c0_i32_0 : i32, i32
  }
  func.func @transform_13(%arg0: i32) -> (i32, i32) {
    %c0_i32 = arith.constant 0 : i32
    %c0_i32_0 = arith.constant 0 : i32
    %c0_i32_1 = arith.constant 0 : i32
    return %c0_i32, %c0_i32_0 : i32, i32
  }
  func.func @transform_14(%arg0: i32) -> (i32, i32) {
    %c0_i32 = arith.constant 0 : i32
    %c0_i32_0 = arith.constant 0 : i32
    %c0_i32_1 = arith.constant 0 : i32
    return %c0_i32, %c0_i32_0 : i32, i32
  }
  func.func @transform_15(%arg0: i32) -> (i32, i32) {
    %c0_i32 = arith.constant 0 : i32
    %c0_i32_0 = arith.constant 0 : i32
    %c0_i32_1 = arith.constant 0 : i32
    return %c0_i32, %c0_i32_0 : i32, i32
  }
  func.func @transform_16(%arg0: i32) -> (i32, i32) {
    %c0_i32 = arith.constant 0 : i32
    %c0_i32_0 = arith.constant 0 : i32
    %c0_i32_1 = arith.constant 0 : i32
    return %c0_i32, %c0_i32_0 : i32, i32
  }
  func.func @transform_17(%arg0: i32) -> (i32, i32) {
    %c0_i32 = arith.constant 0 : i32
    %c0_i32_0 = arith.constant 0 : i32
    %c0_i32_1 = arith.constant 0 : i32
    return %c0_i32, %c0_i32_0 : i32, i32
  }
  func.func @transform_18(%arg0: i32) -> (i32, i32) {
    %c0_i32 = arith.constant 0 : i32
    %c0_i32_0 = arith.constant 0 : i32
    %c0_i32_1 = arith.constant 0 : i32
    return %c0_i32, %c0_i32_0 : i32, i32
  }
  func.func @transform_19(%arg0: i32) -> (i32, i32) {
    %c0_i32 = arith.constant 0 : i32
    %c0_i32_0 = arith.constant 0 : i32
    %c0_i32_1 = arith.constant 0 : i32
    return %c0_i32, %c0_i32_0 : i32, i32
  }
  func.func @transform_20(%arg0: i32) -> (i32, i32) {
    %c0_i32 = arith.constant 0 : i32
    %c0_i32_0 = arith.constant 0 : i32
    %c0_i32_1 = arith.constant 0 : i32
    return %c0_i32, %c0_i32_0 : i32, i32
  }
  func.func @transform_21(%arg0: i32) -> (i32, i32) {
    %c0_i32 = arith.constant 0 : i32
    %c0_i32_0 = arith.constant 0 : i32
    %c0_i32_1 = arith.constant 0 : i32
    return %c0_i32, %c0_i32_0 : i32, i32
  }
  func.func @transform_22(%arg0: i32) -> (i32, i32) {
    %c0_i32 = arith.constant 0 : i32
    %c0_i32_0 = arith.constant 0 : i32
    %c0_i32_1 = arith.constant 0 : i32
    return %c0_i32, %c0_i32_0 : i32, i32
  }
  func.func @transform_23(%arg0: i32) -> (i32, i32) {
    %c0_i32 = arith.constant 0 : i32
    %c0_i32_0 = arith.constant 0 : i32
    %c0_i32_1 = arith.constant 0 : i32
    return %c0_i32, %c0_i32_0 : i32, i32
  }
  func.func @transform_24(%arg0: i32) -> (i32, i32) {
    %c0_i32 = arith.constant 0 : i32
    %c0_i32_0 = arith.constant 0 : i32
    %c0_i32_1 = arith.constant 0 : i32
    return %c0_i32, %c0_i32_0 : i32, i32
  }
  func.func @transform_25(%arg0: i32) -> (i32, i32) {
    %c0_i32 = arith.constant 0 : i32
    %c0_i32_0 = arith.constant 0 : i32
    %c0_i32_1 = arith.constant 0 : i32
    return %c0_i32, %c0_i32_0 : i32, i32
  }
  func.func @transform_26(%arg0: i32) -> (i32, i32) {
    %c0_i32 = arith.constant 0 : i32
    %c0_i32_0 = arith.constant 0 : i32
    %c0_i32_1 = arith.constant 0 : i32
    return %c0_i32, %c0_i32_0 : i32, i32
  }
  func.func @transform_27(%arg0: i32) -> (i32, i32) {
    %c0_i32 = arith.constant 0 : i32
    %c0_i32_0 = arith.constant 0 : i32
    %c0_i32_1 = arith.constant 0 : i32
    return %c0_i32, %c0_i32_0 : i32, i32
  }
  func.func @transform_28(%arg0: i32) -> (i32, i32, i32) {
    %c0_i32 = arith.constant 0 : i32
    %c0_i32_0 = arith.constant 0 : i32
    %c0_i32_1 = arith.constant 0 : i32
    return %arg0, %c0_i32, %c0_i32_0 : i32, i32, i32
  }
}

</mosaic_0001>

<bundles_post_ra>
// kernel: av_summarizer_forward.4
= control target key start
LH: loop header
LB: loop body
LE: loop exit
PB: predicated region body
PF: predicated region fallthrough
CT: control target
= control target key end

     0   :  { %v654_v0 = vmov 0.0   ;;  %s677_s12 = smov 0   ;;  %s1092_s0 = inlined_call_operand.vmem [shape: bf16[8,2,1024], index: 0, kind: input, shape index: {}]   ;;  %s1093_s1 = inlined_call_operand.vmem [shape: f32[128,512], index: 1, kind: input, shape index: {}]   ;;  %s1094_s2 = inlined_call_operand.vmem [shape: f32[128,512], index: 2, kind: input, shape index: {}]   ;;  %s1095_s3 = inlined_call_operand.vmem [shape: f32[8,2,256], index: 3, kind: output, shape index: {}]  }
   0x1   :  { %14 = vst [vmem:[#allocation2] sm:$0x3] %v654_v0  ;;  %15 = vst [vmem:[#allocation3] sm:$0x3] %v654_v0 }
   0x2   :  { %16 = vst [vmem:[#allocation4] sm:$0x3] %v654_v0  ;;  %17 = vst [vmem:[#allocation5] sm:$0x3] %v654_v0 }
   0x3 LB: > { %v91_v1 = vld [vmem:[%s1093_s1 + $0x1e8] sm:$0xff]  ;;  %v93_v2 = vld [vmem:[%s1093_s1 + $0x1f8] sm:$0xff]  ;;  %v90_v3 = vld [vmem:[%s1093_s1 + $0x1e0] sm:$0xff]  ;;  %s589_s8 = sshll.u32 %s652_s12, 3  ;;  %s24_s13 = ssub.s32 7, %s652_s12  ;;  %s652_s12 = sphi %s677_s12, %s23_s12  }
   0x4   : > { %94 = vmatprep.subr.mxu0 %v91_v1  ;;  %165 = vmatprep.subr.mxu1 %v93_v2  ;;  %v92_v4 = vld [vmem:[%s1093_s1 + $0x1f0] sm:$0xff]  ;;  %v87_v5 = vld [vmem:[%s1093_s1 + $0x1c8] sm:$0xff]  ;;  %v89_v6 = vld [vmem:[%s1093_s1 + $0x1d8] sm:$0xff]  ;;  %v655_v2 = vmov 0.0   ;;  %s26_s11 = scalar_lea.vmem %s1092_s0, %s589_s8  ;;  %s590_s14 = sshll.u32 %s24_s13, 3 }
   0x5   : > { %95 = vmatpush1.msra.mxu0 %v90_v3  ;;  %166 = vmatpush1.msra.mxu1 %v92_v4  ;;  %v86_v7 = vld [vmem:[%s1093_s1 + $0x1c0] sm:$0xff]  ;;  %v88_v8 = vld [vmem:[%s1093_s1 + $0x1d0] sm:$0xff]  ;;  %v83_v9 = vld [vmem:[%s1093_s1 + $0x1a8] sm:$0xff]  ;;  %s260_s17 = scalar_lea.vmem %s1092_s0, %s590_s14  ;;  %s601_s18 = sshll.u32 %s652_s12, 2 }
   0x6   : > { %96 = vmatprep.subr.mxu0 %v87_v5  ;;  %167 = vmatprep.subr.mxu1 %v89_v6  ;;  %v85_v10 = vld [vmem:[%s1093_s1 + $0x1b8] sm:$0xff]  ;;  %v82_v11 = vld [vmem:[%s1093_s1 + $0x1a0] sm:$0xff]  ;;  %v84_v12 = vld [vmem:[%s1093_s1 + $0x1b0] sm:$0xff]  ;;  %s566_s21 = scalar_lea.vmem %s1095_s3, %s601_s18  ;;  %s602_s22 = sshll.u32 %s24_s13, 2 }
   0x7   : > { %97 = vmatpush1.msra.mxu0 %v86_v7  ;;  %168 = vmatpush1.msra.mxu1 %v88_v8  ;;  %v79_v13 = vld [vmem:[%s1093_s1 + $0x188] sm:$0xff]  ;;  %v81_v14 = vld [vmem:[%s1093_s1 + $0x198] sm:$0xff]  ;;  %v78_v15 = vld [vmem:[%s1093_s1 + $0x180] sm:$0xff]  ;;  %s570_s25 = scalar_lea.vmem %s1095_s3, %s602_s22  ;;  %s23_s12 = sadd.s32 1, %s652_s12  }
   0x8   : > { %98 = vmatprep.subr.mxu0 %v83_v9  ;;  %169 = vmatprep.subr.mxu1 %v85_v10  ;;  %v80_v16 = vld [vmem:[%s1093_s1 + $0x190] sm:$0xff]  ;;  %v75_v17 = vld [vmem:[%s1093_s1 + $0x168] sm:$0xff]  ;;  %v77_v18 = vld [vmem:[%s1093_s1 + $0x178] sm:$0xff]  ;;  %p20_p0 = scmp.ge.s32.totalorder %s23_s12, 8  }
   0x9   : > { %99 = vmatpush1.msra.mxu0 %v82_v11  ;;  %170 = vmatpush1.msra.mxu1 %v84_v12  ;;  %v74_v19 = vld [vmem:[%s1093_s1 + $0x160] sm:$0xff]  ;;  %v76_v20 = vld [vmem:[%s1093_s1 + $0x170] sm:$0xff]  ;;  %v71_v21 = vld [vmem:[%s1093_s1 + $0x148] sm:$0xff] }
   0xa   : > { %100 = vmatprep.subr.mxu0 %v79_v13  ;;  %171 = vmatprep.subr.mxu1 %v81_v14  ;;  %v73_v22 = vld [vmem:[%s1093_s1 + $0x158] sm:$0xff]  ;;  %v70_v23 = vld [vmem:[%s1093_s1 + $0x140] sm:$0xff]  ;;  %v72_v24 = vld [vmem:[%s1093_s1 + $0x150] sm:$0xff] }
   0xb   : > { %101 = vmatpush1.msra.mxu0 %v78_v15  ;;  %172 = vmatpush1.msra.mxu1 %v80_v16  ;;  %v67_v25 = vld [vmem:[%s1093_s1 + $0x128] sm:$0xff]  ;;  %v69_v26 = vld [vmem:[%s1093_s1 + $0x138] sm:$0xff]  ;;  %v66_v27 = vld [vmem:[%s1093_s1 + $0x120] sm:$0xff] }
   0xc   : > { %102 = vmatprep.subr.mxu0 %v75_v17  ;;  %173 = vmatprep.subr.mxu1 %v77_v18  ;;  %v68_v28 = vld [vmem:[%s1093_s1 + $0x130] sm:$0xff]  ;;  %v63_v29 = vld [vmem:[%s1093_s1 + $0x108] sm:$0xff]  ;;  %v65_v30 = vld [vmem:[%s1093_s1 + $0x118] sm:$0xff] }
   0xd   : > { %103 = vmatpush1.msra.mxu0 %v74_v19  ;;  %174 = vmatpush1.msra.mxu1 %v76_v20  ;;  %v62_v31 = vld [vmem:[%s1093_s1 + $0x100] sm:$0xff]  ;;  %v64_v32 = vld [vmem:[%s1093_s1 + $0x110] sm:$0xff]  ;;  %v59_v33 = vld [vmem:[%s1093_s1 + $0xe8] sm:$0xff] }
   0xe   : > { %104 = vmatprep.subr.mxu0 %v71_v21  ;;  %175 = vmatprep.subr.mxu1 %v73_v22  ;;  %v61_v34 = vld [vmem:[%s1093_s1 + $0xf8] sm:$0xff]  ;;  %v58_v35 = vld [vmem:[%s1093_s1 + $0xe0] sm:$0xff]  ;;  %v60_v36 = vld [vmem:[%s1093_s1 + $0xf0] sm:$0xff] }
   0xf   : > { %105 = vmatpush1.msra.mxu0 %v70_v23  ;;  %176 = vmatpush1.msra.mxu1 %v72_v24  ;;  %v55_v37 = vld [vmem:[%s1093_s1 + $0xc8] sm:$0xff]  ;;  %v57_v38 = vld [vmem:[%s1093_s1 + $0xd8] sm:$0xff]  ;;  %v54_v39 = vld [vmem:[%s1093_s1 + $0xc0] sm:$0xff] }
  0x10   : > { %106 = vmatprep.subr.mxu0 %v67_v25  ;;  %177 = vmatprep.subr.mxu1 %v69_v26  ;;  %v56_v40 = vld [vmem:[%s1093_s1 + $0xd0] sm:$0xff]  ;;  %v51_v41 = vld [vmem:[%s1093_s1 + $0xa8] sm:$0xff]  ;;  %v53_v42 = vld [vmem:[%s1093_s1 + $0xb8] sm:$0xff] }
  0x11   : > { %107 = vmatpush1.msra.mxu0 %v66_v27  ;;  %178 = vmatpush1.msra.mxu1 %v68_v28  ;;  %v50_v43 = vld [vmem:[%s1093_s1 + $0xa0] sm:$0xff]  ;;  %v52_v44 = vld [vmem:[%s1093_s1 + $0xb0] sm:$0xff]  ;;  %v47_v45 = vld [vmem:[%s1093_s1 + $0x88] sm:$0xff] }
  0x12   : > { %108 = vmatprep.subr.mxu0 %v63_v29  ;;  %179 = vmatprep.subr.mxu1 %v65_v30  ;;  %v49_v46 = vld [vmem:[%s1093_s1 + $0x98] sm:$0xff]  ;;  %v46_v47 = vld [vmem:[%s1093_s1 + $0x80] sm:$0xff]  ;;  %v48_v48 = vld [vmem:[%s1093_s1 + $0x90] sm:$0xff] }
  0x13   : > { %109 = vmatpush1.msra.mxu0 %v62_v31  ;;  %180 = vmatpush1.msra.mxu1 %v64_v32  ;;  %v43_v49 = vld [vmem:[%s1093_s1 + $0x68] sm:$0xff]  ;;  %v45_v50 = vld [vmem:[%s1093_s1 + $0x78] sm:$0xff]  ;;  %v42_v51 = vld [vmem:[%s1093_s1 + $0x60] sm:$0xff] }
  0x14   : > { %110 = vmatprep.subr.mxu0 %v59_v33  ;;  %181 = vmatprep.subr.mxu1 %v61_v34  ;;  %v44_v52 = vld [vmem:[%s1093_s1 + $0x70] sm:$0xff]  ;;  %v39_v53 = vld [vmem:[%s1093_s1 + $0x48] sm:$0xff]  ;;  %v41_v54 = vld [vmem:[%s1093_s1 + $0x58] sm:$0xff] }
  0x15   : > { %111 = vmatpush1.msra.mxu0 %v58_v35  ;;  %182 = vmatpush1.msra.mxu1 %v60_v36  ;;  %v38_v55 = vld [vmem:[%s1093_s1 + $0x40] sm:$0xff]  ;;  %v40_v56 = vld [vmem:[%s1093_s1 + $0x50] sm:$0xff]  ;;  %v35_v57 = vld [vmem:[%s1093_s1 + $0x28] sm:$0xff] }
  0x16   : > { %112 = vmatprep.subr.mxu0 %v55_v37  ;;  %183 = vmatprep.subr.mxu1 %v57_v38  ;;  %v37_v58 = vld [vmem:[%s1093_s1 + $0x38] sm:$0xff]  ;;  %v34_v59 = vld [vmem:[%s1093_s1 + $0x20] sm:$0xff]  ;;  %v36_v60 = vld [vmem:[%s1093_s1 + $0x30] sm:$0xff] }
  0x17   : > { %113 = vmatpush1.msra.mxu0 %v54_v39  ;;  %184 = vmatpush1.msra.mxu1 %v56_v40  ;;  %v31_v61 = vld [vmem:[%s1093_s1 + $0x8] sm:$0xff]  ;;  %v33_v62 = vld [vmem:[%s1093_s1 + $0x18] sm:$0xff]  ;;  %v30_v63 = vld [vmem:[%s1093_s1] sm:$0xff] }
  0x18   : > { %114 = vmatprep.subr.mxu0 %v51_v41  ;;  %185 = vmatprep.subr.mxu1 %v53_v42  ;;  %v32_v0 = vld [vmem:[%s1093_s1 + $0x10] sm:$0xff]  ;;  %v29_v1 = vld [vmem:[#allocation2] sm:$0x3]  ;;  %v328_v3 = vld [vmem:[%s1094_s2 + $0x1e8] sm:$0xff] }
  0x19   : > { %115 = vmatpush1.msra.mxu0 %v50_v43  ;;  %186 = vmatpush1.msra.mxu1 %v52_v44  ;;  %v330_v4 = vld [vmem:[%s1094_s2 + $0x1f8] sm:$0xff]  ;;  %v327_v5 = vld [vmem:[%s1094_s2 + $0x1e0] sm:$0xff]  ;;  %v329_v6 = vld [vmem:[%s1094_s2 + $0x1f0] sm:$0xff] }
  0x1a   : > { %116 = vmatprep.subr.mxu0 %v47_v45  ;;  %187 = vmatprep.subr.mxu1 %v49_v46  ;;  %v324_v7 = vld [vmem:[%s1094_s2 + $0x1c8] sm:$0xff]  ;;  %v326_v8 = vld [vmem:[%s1094_s2 + $0x1d8] sm:$0xff]  ;;  %v323_v9 = vld [vmem:[%s1094_s2 + $0x1c0] sm:$0xff] }
  0x1b   : > { %117 = vmatpush1.msra.mxu0 %v46_v47  ;;  %188 = vmatpush1.msra.mxu1 %v48_v48  ;;  %v325_v10 = vld [vmem:[%s1094_s2 + $0x1d0] sm:$0xff]  ;;  %v320_v11 = vld [vmem:[%s1094_s2 + $0x1a8] sm:$0xff]  ;;  %v322_v12 = vld [vmem:[%s1094_s2 + $0x1b8] sm:$0xff] }
  0x1c   : > { %118 = vmatprep.subr.mxu0 %v43_v49  ;;  %189 = vmatprep.subr.mxu1 %v45_v50  ;;  %v319_v13 = vld [vmem:[%s1094_s2 + $0x1a0] sm:$0xff]  ;;  %v321_v14 = vld [vmem:[%s1094_s2 + $0x1b0] sm:$0xff]  ;;  %v316_v15 = vld [vmem:[%s1094_s2 + $0x188] sm:$0xff] }
  0x1d   : > { %119 = vmatpush1.msra.mxu0 %v42_v51  ;;  %190 = vmatpush1.msra.mxu1 %v44_v52  ;;  %v318_v16 = vld [vmem:[%s1094_s2 + $0x198] sm:$0xff]  ;;  %v315_v17 = vld [vmem:[%s1094_s2 + $0x180] sm:$0xff]  ;;  %v317_v18 = vld [vmem:[%s1094_s2 + $0x190] sm:$0xff] }
  0x1e   : > { %120 = vmatprep.subr.mxu0 %v39_v53  ;;  %191 = vmatprep.subr.mxu1 %v41_v54  ;;  %v312_v19 = vld [vmem:[%s1094_s2 + $0x168] sm:$0xff]  ;;  %v314_v20 = vld [vmem:[%s1094_s2 + $0x178] sm:$0xff]  ;;  %v311_v21 = vld [vmem:[%s1094_s2 + $0x160] sm:$0xff] }
  0x1f   : > { %121 = vmatpush1.msra.mxu0 %v38_v55  ;;  %192 = vmatpush1.msra.mxu1 %v40_v56  ;;  %v313_v22 = vld [vmem:[%s1094_s2 + $0x170] sm:$0xff]  ;;  %v308_v23 = vld [vmem:[%s1094_s2 + $0x148] sm:$0xff]  ;;  %v310_v24 = vld [vmem:[%s1094_s2 + $0x158] sm:$0xff] }
  0x20   : > { %122 = vmatprep.subr.mxu0 %v35_v57  ;;  %193 = vmatprep.subr.mxu1 %v37_v58  ;;  %v307_v25 = vld [vmem:[%s1094_s2 + $0x140] sm:$0xff]  ;;  %v309_v26 = vld [vmem:[%s1094_s2 + $0x150] sm:$0xff]  ;;  %v304_v27 = vld [vmem:[%s1094_s2 + $0x128] sm:$0xff] }
  0x21   : > { %123 = vmatpush1.msra.mxu0 %v34_v59  ;;  %194 = vmatpush1.msra.mxu1 %v36_v60  ;;  %v306_v28 = vld [vmem:[%s1094_s2 + $0x138] sm:$0xff]  ;;  %v303_v29 = vld [vmem:[%s1094_s2 + $0x120] sm:$0xff]  ;;  %v305_v30 = vld [vmem:[%s1094_s2 + $0x130] sm:$0xff] }
  0x22   : > { %124 = vmatprep.subr.mxu0 %v31_v61  ;;  %195 = vmatprep.subr.mxu1 %v33_v62  ;;  %v300_v31 = vld [vmem:[%s1094_s2 + $0x108] sm:$0xff]  ;;  %v302_v32 = vld [vmem:[%s1094_s2 + $0x118] sm:$0xff]  ;;  %v299_v33 = vld [vmem:[%s1094_s2 + $0x100] sm:$0xff] }
  0x23   : > { %125 = vmatpush1.msra.mxu0 %v30_v63  ;;  %158 = vmatprep.mubr.f32.mxu0 %v655_v2  ;;  %v301_v34 = vld [vmem:[%s1094_s2 + $0x110] sm:$0xff]  ;;  %v296_v35 = vld [vmem:[%s1094_s2 + $0xe8] sm:$0xff]  ;;  %v298_v36 = vld [vmem:[%s1094_s2 + $0xf8] sm:$0xff] }
  0x24   : > { %196 = vmatpush1.msra.mxu1 %v32_v0  ;;  %229 = vmatprep.mubr.f32.mxu1 %v655_v2  ;;  %v295_v37 = vld [vmem:[%s1094_s2 + $0xe0] sm:$0xff]  ;;  %v297_v38 = vld [vmem:[%s1094_s2 + $0xf0] sm:$0xff]  ;;  %v292_v39 = vld [vmem:[%s1094_s2 + $0xc8] sm:$0xff] }
  0x25   : > { %159 = vmatmul.mubr.f32.vlgmr.msra.gmra.mxu0 %v29_v1  ;;  %230 = vmatmul.mubr.f32.vlgmr.msra.gmra.mxu1 %v29_v1  ;;  %v294_v40 = vld [vmem:[%s1094_s2 + $0xd8] sm:$0xff]  ;;  %v291_v41 = vld [vmem:[%s1094_s2 + $0xc0] sm:$0xff]  ;;  %v293_v42 = vld [vmem:[%s1094_s2 + $0xd0] sm:$0xff] }
  0x26   : > { %331 = vmatprep.subr.mxu0 %v328_v3  ;;  %402 = vmatprep.subr.mxu1 %v330_v4  ;;  %v288_v43 = vld [vmem:[%s1094_s2 + $0xa8] sm:$0xff]  ;;  %v290_v44 = vld [vmem:[%s1094_s2 + $0xb8] sm:$0xff]  ;;  %v287_v45 = vld [vmem:[%s1094_s2 + $0xa0] sm:$0xff] }
  0x27   : > { %332 = vmatpush1.msra.mxu0 %v327_v5  ;;  %403 = vmatpush1.msra.mxu1 %v329_v6  ;;  %v289_v46 = vld [vmem:[%s1094_s2 + $0xb0] sm:$0xff]  ;;  %v284_v47 = vld [vmem:[%s1094_s2 + $0x88] sm:$0xff]  ;;  %v286_v48 = vld [vmem:[%s1094_s2 + $0x98] sm:$0xff]  ;;  %v656_v5 = vmov 1983009808  }
  0x28   : > { %333 = vmatprep.subr.mxu0 %v324_v7  ;;  %404 = vmatprep.subr.mxu1 %v326_v8  ;;  %v283_v49 = vld [vmem:[%s1094_s2 + $0x80] sm:$0xff]  ;;  %v285_v50 = vld [vmem:[%s1094_s2 + $0x90] sm:$0xff]  ;;  %v280_v51 = vld [vmem:[%s1094_s2 + $0x68] sm:$0xff]  ;;  %v243_v6 = vunpack.c.l.s4 %v656_v5  ;;  %v245_v7 = vlaneseq }
  0x29   : > { %334 = vmatpush1.msra.mxu0 %v323_v9  ;;  %405 = vmatpush1.msra.mxu1 %v325_v10  ;;  %v282_v52 = vld [vmem:[%s1094_s2 + $0x78] sm:$0xff]  ;;  %v279_v53 = vld [vmem:[%s1094_s2 + $0x60] sm:$0xff]  ;;  %v281_v54 = vld [vmem:[%s1094_s2 + $0x70] sm:$0xff] }
  0x2a   : > { %335 = vmatprep.subr.mxu0 %v320_v11  ;;  %406 = vmatprep.subr.mxu1 %v322_v12  ;;  %v276_v55 = vld [vmem:[%s1094_s2 + $0x48] sm:$0xff]  ;;  %v278_v56 = vld [vmem:[%s1094_s2 + $0x58] sm:$0xff]  ;;  %v275_v57 = vld [vmem:[%s1094_s2 + $0x40] sm:$0xff]  ;;  %v244_v8 = vunpack.c.0.s8 %v243_v6  ;;  %v246_v9 = vshrl.u32 %v245_v7, 7 }
  0x2b   : > { %336 = vmatpush1.msra.mxu0 %v319_v13  ;;  %407 = vmatpush1.msra.mxu1 %v321_v14  ;;  %v277_v58 = vld [vmem:[%s1094_s2 + $0x50] sm:$0xff]  ;;  %v272_v59 = vld [vmem:[%s1094_s2 + $0x28] sm:$0xff]  ;;  %v274_v60 = vld [vmem:[%s1094_s2 + $0x38] sm:$0xff] }
  0x2c   : > { %337 = vmatprep.subr.mxu0 %v316_v15  ;;  %408 = vmatprep.subr.mxu1 %v318_v16  ;;  %v271_v61 = vld [vmem:[%s1094_s2 + $0x20] sm:$0xff]  ;;  %v273_v62 = vld [vmem:[%s1094_s2 + $0x30] sm:$0xff]  ;;  %v268_v63 = vld [vmem:[%s1094_s2 + $0x8] sm:$0xff]  ;;  %v247_v12 = vsub.s32 %v244_v8, %v246_v9 }
  0x2d   : > { %338 = vmatpush1.msra.mxu0 %v315_v17  ;;  %409 = vmatpush1.msra.mxu1 %v317_v18  ;;  %v270_v0 = vld [vmem:[%s1094_s2 + $0x18] sm:$0xff]  ;;  %v267_v1 = vld [vmem:[%s1094_s2] sm:$0xff]  ;;  %v269_v3 = vld [vmem:[%s1094_s2 + $0x10] sm:$0xff] }
  0x2e   : > { %339 = vmatprep.subr.mxu0 %v312_v19  ;;  %410 = vmatprep.subr.mxu1 %v314_v20  ;;  %v266_v4 = vld [vmem:[#allocation4] sm:$0x3]  ;;  %v27_v14 = vld [vmem:[%s26_s11] sm:$0xf]  ;;  %v528_v6 = vld [vmem:[#allocation5] sm:$0x3] }
  0x2f   : > { %340 = vmatpush1.msra.mxu0 %v311_v21  ;;  %411 = vmatpush1.msra.mxu1 %v313_v22  ;;  %v28_v18 = vunpack.c.l.bf16 %v27_v14 }
  0x30   : > { %341 = vmatprep.subr.mxu0 %v308_v23  ;;  %412 = vmatprep.subr.mxu1 %v310_v24 }
  0x31   : > { %342 = vmatpush1.msra.mxu0 %v307_v25  ;;  %413 = vmatpush1.msra.mxu1 %v309_v26 }
  0x32   : > { %343 = vmatprep.subr.mxu0 %v304_v27  ;;  %414 = vmatprep.subr.mxu1 %v306_v28 }
  0x33   : > { %344 = vmatpush1.msra.mxu0 %v303_v29  ;;  %415 = vmatpush1.msra.mxu1 %v305_v30 }
  0x34   : > { %345 = vmatprep.subr.mxu0 %v300_v31  ;;  %416 = vmatprep.subr.mxu1 %v302_v32  ;;  %v261_v32 = vld [vmem:[%s260_s17] sm:$0xff] }
  0x35   : > { %346 = vmatpush1.msra.mxu0 %v299_v33  ;;  %417 = vmatpush1.msra.mxu1 %v301_v34 }
  0x36   : > { %347 = vmatprep.subr.mxu0 %v296_v35  ;;  %418 = vmatprep.subr.mxu1 %v298_v36  ;;  %v263_v35 = vrot.slane %v261_v32, 4 }
  0x37   : > { %348 = vmatpush1.msra.mxu0 %v295_v37  ;;  %419 = vmatpush1.msra.mxu1 %v297_v38 }
  0x38   : > { %349 = vmatprep.subr.mxu0 %v292_v39  ;;  %420 = vmatprep.subr.mxu1 %v294_v40 }
  0x39   : > { %350 = vmatpush1.msra.mxu0 %v291_v41  ;;  %421 = vmatpush1.msra.mxu1 %v293_v42  ;;  %v265_v41 = vunpack.c.l.bf16 %v263_v35 }
  0x3a   : > { %351 = vmatprep.subr.mxu0 %v288_v43  ;;  %422 = vmatprep.subr.mxu1 %v290_v44 }
  0x3b   : > { %352 = vmatpush1.msra.mxu0 %v287_v45  ;;  %423 = vmatpush1.msra.mxu1 %v289_v46  ;;  %v496_v46 = vld [vmem:[#allocation3] sm:$0x3] }
  0x3c   : > { %353 = vmatprep.subr.mxu0 %v284_v47  ;;  %424 = vmatprep.subr.mxu1 %v286_v48 }
  0x3d   : > { %354 = vmatpush1.msra.mxu0 %v283_v49  ;;  %425 = vmatpush1.msra.mxu1 %v285_v50 }
  0x3e   : > { %355 = vmatprep.subr.mxu0 %v280_v51  ;;  %426 = vmatprep.subr.mxu1 %v282_v52 }
  0x3f   : > { %356 = vmatpush1.msra.mxu0 %v279_v53  ;;  %427 = vmatpush1.msra.mxu1 %v281_v54 }
  0x40   : > { %357 = vmatprep.subr.mxu0 %v276_v55  ;;  %428 = vmatprep.subr.mxu1 %v278_v56 }
  0x41   : > { %358 = vmatpush1.msra.mxu0 %v275_v57  ;;  %429 = vmatpush1.msra.mxu1 %v277_v58 }
  0x42   : > { %359 = vmatprep.subr.mxu0 %v272_v59  ;;  %430 = vmatprep.subr.mxu1 %v274_v60 }
  0x43   : > { %360 = vmatpush1.msra.mxu0 %v271_v61  ;;  %431 = vmatpush1.msra.mxu1 %v273_v62 }
  0x44   : > { %361 = vmatprep.subr.mxu0 %v268_v63  ;;  %432 = vmatprep.subr.mxu1 %v270_v0 }
  0x45   : > { %362 = vmatpush1.msra.mxu0 %v267_v1  ;;  %395 = vmatprep.mubr.f32.mxu0 %v655_v2 }
  0x46   : > { %433 = vmatpush1.msra.mxu1 %v269_v3  ;;  %466 = vmatprep.mubr.f32.mxu1 %v655_v2 }
  0x47   : > { %396 = vmatmul.mubr.f32.vlgmr.msra.gmra.mxu0 %v266_v4  ;;  %467 = vmatmul.mubr.f32.vlgmr.msra.gmra.mxu1 %v266_v4 }
  0xe5   : > { %v160_v10 = vpop.f32.mrf.mxu0  ;;  %v231_v11 = vpop.f32.mrf.mxu1 }
  0xe7   : > { %v162_v13 = vpop.f32.mrf.mxu0  ;;  %v233_v15 = vpop.f32.mrf.mxu1 }
  0xe8   : > { %v240_v2 = vcombine.low %v160_v10, %v162_v13  ;;  %v241_v16 = vcombine.low %v231_v11, %v233_v15 }
  0xea   : > { %v248_v17 = vrot.slane %v240_v2, %v247_v12  ;;  %v255_v19 = vrot.slane %v241_v16, %v247_v12 }
  0xec   : > { %v256_v20 = vcombine.low %v248_v17, %v255_v19 }
  0xee   : > { %v258_v21 = vadd.f32 %v256_v20, %v28_v18 }
  0xf0   : > { %v591_v22 = vmul.f32 -1.442695, %v258_v21  ;;  %v504_v23 = vrot.slane %v258_v21, 2  ;;  %v515_v25 = vrot.slane %v258_v21, 6  ;;  %v512_v28 = vrot.slane %v258_v21, 4 }
  0xf2   : > { %614 = vpow2.f32 %v591_v22  ;;  %v592_v24 = vmul.f32 -1.442695, %v504_v23  ;;  %v593_v26 = vmul.f32 -1.442695, %v515_v25 }
  0xf4   : > { %616 = vpow2.f32 %v592_v24 }
  0xf5   : > { %618 = vpow2.f32 %v593_v26 }
  0xff   : > { %v615_v27 = vpop.eup %614 }
 0x100   : > { %v500_v29 = vadd.f32 1.0, %v615_v27 }
 0x101   : > { %v617_v30 = vpop.eup %616 }
 0x102   : > { %620 = vrcp.f32 %v500_v29  ;;  %v509_v31 = vadd.f32 1.0, %v617_v30  ;;  %v619_v43 = vpop.eup %618 }
 0x103   : > { %622 = vtanh.f32 %v512_v28  ;;  %v520_v50 = vadd.f32 1.0, %v619_v43 }
 0x104   : > { %624 = vrcp.f32 %v509_v31 }
 0x107   : > { %v397_v33 = vpop.f32.mrf.mxu0  ;;  %v468_v34 = vpop.f32.mrf.mxu1 }
 0x109   : > { %v399_v36 = vpop.f32.mrf.mxu0  ;;  %v470_v37 = vpop.f32.mrf.mxu1 }
 0x10a   : > { %v477_v38 = vcombine.low %v397_v33, %v399_v36  ;;  %v478_v39 = vcombine.low %v468_v34, %v470_v37 }
 0x10c   : > { %v485_v40 = vrot.slane %v477_v38, %v247_v12  ;;  %v492_v42 = vrot.slane %v478_v39, %v247_v12 }
 0x10e   : > { %v493_v44 = vcombine.low %v485_v40, %v492_v42 }
 0x10f   : > { %v621_v45 = vpop.eup %620 }
 0x110   : > { %v623_v47 = vpop.eup %622  ;;  %v495_v48 = vadd.f32 %v493_v44, %v265_v41 }
 0x111   : > { %v625_v49 = vpop.eup %624  ;;  %v524_v52 = vmul.f32 %v623_v47, %v621_v45 }
 0x112   : > { %v523_v51 = vmul.f32 %v625_v49, %v496_v46  ;;  %v594_v53 = vmul.f32 -1.442695, %v495_v48  ;;  %v536_v54 = vrot.slane %v495_v48, 2  ;;  %v547_v57 = vrot.slane %v495_v48, 6 }
 0x113   : > { %v544_v62 = vrot.slane %v495_v48, 4 }
 0x114   : > { %v525_v55 = vadd.f32 %v524_v52, %v523_v51  ;;  %626 = vpow2.f32 %v594_v53  ;;  %v595_v56 = vmul.f32 -1.442695, %v536_v54  ;;  %v596_v58 = vmul.f32 -1.442695, %v547_v57 }
 0x115   : > { %628 = vrcp.f32 %v520_v50 }
 0x116   : > { %630 = vtanh.f32 %v525_v55  ;;  %561 = vst [vmem:[#allocation3] sm:$0x3] %v525_v55 }
 0x117   : > { %632 = vpow2.f32 %v595_v56 }
 0x118   : > { %634 = vpow2.f32 %v596_v58 }
 0x121   : > { %v627_v59 = vpop.eup %626 }
 0x122   : > { %v629_v60 = vpop.eup %628  ;;  %v532_v61 = vadd.f32 1.0, %v627_v59 }
 0x123   : > { %v631_v63 = vpop.eup %630 }
 0x124   : > { %v633_v0 = vpop.eup %632  ;;  %v527_v1 = vmul.f32 %v631_v63, %v629_v60  ;;  %636 = vrcp.f32 %v532_v61 }
 0x125   : > { %v541_v3 = vadd.f32 1.0, %v633_v0  ;;  %638 = vtanh.f32 %v544_v62  ;;  %v635_v4 = vpop.eup %634 }
 0x126   : > { %560 = vst [vmem:[#allocation2] sm:$0x3] %v527_v1  ;;  %567 = vst [vmem:[%s566_s21] sm:$0x3] %v527_v1  ;;  %v552_v9 = vadd.f32 1.0, %v635_v4 }
 0x127   : > { %640 = vrcp.f32 %v541_v3 }
 0x128   : > { %642 = vrcp.f32 %v552_v9 }
 0x131   : > { %v637_v5 = vpop.eup %636 }
 0x132   : > { %v639_v7 = vpop.eup %638 }
 0x133   : > { %v556_v11 = vmul.f32 %v639_v7, %v637_v5 }
 0x134   : > { %v641_v8 = vpop.eup %640 }
 0x135   : > { %v555_v10 = vmul.f32 %v641_v8, %v528_v6  ;;  %v643_v13 = vpop.eup %642 }
 0x137   : > { %v557_v12 = vadd.f32 %v556_v11, %v555_v10 }
 0x139   : > { %644 = vtanh.f32 %v557_v12  ;;  %563 = vst [vmem:[#allocation5] sm:$0x3] %v557_v12 }
 0x145   :  { %22 = sbr.rel (!%p20_p0) target bundleno = 3 (0x3), region = 43 }
 0x146   : > { %v645_v14 = vpop.eup %644 }
 0x147   : > { %v559_v15 = vmul.f32 %v645_v14, %v643_v13 }
 0x149   : > { %562 = vst [vmem:[#allocation4] sm:$0x3] %v559_v15  ;;  %571 = vst [vmem:[%s570_s25 + $0x2] sm:$0x3] %v559_v15 }

// kernel: av_summarizer_forward.3
= control target key start
LH: loop header
LB: loop body
LE: loop exit
PB: predicated region body
PF: predicated region fallthrough
CT: control target
= control target key end

     0   :  { %12 = vsyncpa [#allocation3], 0  ;;  %s1716_s0 = inlined_call_operand.hbm [shape: f32[16,256], index: 0, kind: input, shape index: {}]   ;;  %s1717_s1 = inlined_call_operand.hbm [shape: f32[256,512], index: 1, kind: input, shape index: {}]   ;;  %s1718_s2 = inlined_call_operand.hbm [shape: f32[1,512], index: 2, kind: input, shape index: {}]   ;;  %s1719_s3 = inlined_call_operand.hbm [shape: f32[512,256], index: 3, kind: input, shape index: {}]   ;;  %s1720_s4 = inlined_call_operand.hbm [shape: f32[1,256], index: 4, kind: input, shape index: {}]   ;;  %s1721_s5 = inlined_call_operand.hbm [shape: f32[256,1024], index: 5, kind: input, shape index: {}]   ;;  %s1722_s6 = inlined_call_operand.hbm [shape: f32[1,1024], index: 6, kind: input, shape index: {}]   ;;  %s1723_s7 = inlined_call_operand.vmem [shape: bf16[16,1024], index: 7, kind: output, shape index: {}]  }
   0x1   :  { %13 = vsyncpa [#allocation5], 0 }
   0x2   :  { %14 = vsyncpa [#allocation8], 0 }
   0x3   :  { %15 = vsyncpa [#allocation11], 0  ;;  %s1572_s24 = smov [#allocation4]  }
   0x4   :  { %s33_s25 = sshll.u32 %s1572_s24, 4  ;;  %s34_s25 = int_to_ptr.vmem [resolvable:$true] %s33_s25 }
   0x5   :  { %s1432_s26 = scalar_lea.vmem %s34_s25, 16384  ;;  %p1437_p1 = scmp.lt.s32.totalorder %s34_s25, %s34_s25 }
   0x6   :  { %p1433_p0 = scmp.ne.s32.totalorder %s34_s25, %s1432_s26  ;;  %p1438_p2 = scmp.lt.s32.totalorder %s1432_s26, %s1432_s26 }
   0x8   :  { %p1439_p3 = por %p1438_p2, %p1437_p1 }
   0xa   :  { %p1440_p4 = pnand %p1439_p3, %p1433_p0 }
   0xc   :  { %1443 = shalt.err (!%p1440_p4)
}
   0xd   :  { %s1573_s27 = smov 512   ;;  %s1574_s28 = smov 32  }
   0xe   :  { %39 = dma.hbm_to_vmem [thread:$0]  %s1717_s1, 16384, %s34_s25, [#allocation5], %s1573_s27, %s1573_s27, %s1574_s28  }
   0xf   :  { %s1575_s8 = smov [#allocation7]   ;;  %s1576_s10 = smov [#allocation10]  }
  0x10   :  { %s55_s9 = sshll.u32 %s1575_s8, 4  ;;  %s77_s11 = sshll.u32 %s1576_s10, 4  ;;  %s56_s9 = int_to_ptr.vmem [resolvable:$true] %s55_s9  ;;  %s78_s11 = int_to_ptr.vmem [resolvable:$true] %s77_s11 }
  0x11   :  { %s1452_s12 = scalar_lea.vmem %s56_s9, 16384  ;;  %p1457_p6 = scmp.lt.s32.totalorder %s56_s9, %s56_s9 }
  0x12   :  { %p1453_p5 = scmp.ne.s32.totalorder %s56_s9, %s1452_s12  ;;  %p1458_p7 = scmp.lt.s32.totalorder %s1452_s12, %s1452_s12 }
  0x14   :  { %p1459_p8 = por %p1458_p7, %p1457_p6 }
  0x16   :  { %p1460_p9 = pnand %p1459_p8, %p1453_p5 }
  0x18   :  { %1463 = shalt.err (!%p1460_p9)
}
  0x19   :  { %s1577_s13 = smov 256   ;;  %s1578_s14 = smov 16  }
  0x1a   :  { %61 = dma.hbm_to_vmem [thread:$0]  %s1719_s3, 16384, %s56_s9, [#allocation8], %s1577_s13, %s1577_s13, %s1578_s14  }
  0x1b   :  { %s1472_s1 = scalar_lea.vmem %s78_s11, 32768  ;;  %p1477_p11 = scmp.lt.s32.totalorder %s78_s11, %s78_s11 }
  0x1c   :  { %p1473_p10 = scmp.ne.s32.totalorder %s78_s11, %s1472_s1  ;;  %p1478_p12 = scmp.lt.s32.totalorder %s1472_s1, %s1472_s1 }
  0x1e   :  { %p1479_p13 = por %p1478_p12, %p1477_p11 }
  0x20   :  { %p1480_p0 = pnand %p1479_p13, %p1473_p10 }
  0x22   :  { %1483 = shalt.err (!%p1480_p0)
}
  0x23   :  { %s1579_s17 = smov 1024   ;;  %s1580_s18 = smov 64  }
  0x24   :  { %83 = dma.hbm_to_vmem [thread:$0]  %s1721_s5, 32768, %s78_s11, [#allocation11], %s1579_s17, %s1579_s17, %s1580_s18  }
  0x25   :  { %s1581_s21 = smov [#allocation2]   ;;  %s1582_s23 = smov [#allocation6]  }
  0x26   :  { %s21_s22 = sshll.u32 %s1581_s21, 4  ;;  %s46_s24 = sshll.u32 %s1582_s23, 4  ;;  %s22_s22 = int_to_ptr.vmem [resolvable:$true] %s21_s22  ;;  %s47_s24 = int_to_ptr.vmem [resolvable:$true] %s46_s24 }
  0x27   :  { %s1492_s3 = scalar_lea.vmem %s22_s22, 512  ;;  %p1497_p2 = scmp.lt.s32.totalorder %s22_s22, %s22_s22 }
  0x28   :  { %p1493_p1 = scmp.ne.s32.totalorder %s22_s22, %s1492_s3  ;;  %p1498_p3 = scmp.lt.s32.totalorder %s1492_s3, %s1492_s3 }
  0x2a   :  { %p1499_p4 = por %p1498_p3, %p1497_p2 }
  0x2c   :  { %p1500_p5 = pnand %p1499_p4, %p1493_p1 }
  0x2e   :  { %1503 = shalt.err (!%p1500_p5)
}
  0x2f   :  { %27 = dma.hbm_to_vmem [thread:$0]  %s1716_s0, 512, %s22_s22, [#allocation3], %s1577_s13, %s1577_s13, %s1578_s14  }
  0x30   :  { %s1512_s27 = scalar_lea.vmem %s47_s24, 64  ;;  %p1517_p7 = scmp.lt.s32.totalorder %s47_s24, %s47_s24 }
  0x31   :  { %p1513_p6 = scmp.ne.s32.totalorder %s47_s24, %s1512_s27  ;;  %p1518_p8 = scmp.lt.s32.totalorder %s1512_s27, %s1512_s27 }
  0x33   :  { %p1519_p9 = por %p1518_p8, %p1517_p7 }
  0x35   :  { %p1520_p10 = pnand %p1519_p9, %p1513_p6 }
  0x37   :  { %1523 = shalt.err (!%p1520_p10)
}
  0x38   :  { %49 = dma.hbm_to_vmem [thread:$0]  %s1718_s2, 64, %s47_s24, [#allocation5]  }
  0x39   :  { %s1583_s29 = smov [#allocation9]   ;;  %s1584_s8 = smov [#allocation12]  }
  0x3a   :  { %s68_s30 = sshll.u32 %s1583_s29, 4  ;;  %s90_s9 = sshll.u32 %s1584_s8, 4  ;;  %s69_s30 = int_to_ptr.vmem [resolvable:$true] %s68_s30  ;;  %s91_s9 = int_to_ptr.vmem [resolvable:$true] %s90_s9 }
  0x3b   :  { %s1532_s10 = scalar_lea.vmem %s69_s30, 32  ;;  %p1537_p12 = scmp.lt.s32.totalorder %s69_s30, %s69_s30 }
  0x3c   :  { %p1533_p11 = scmp.ne.s32.totalorder %s69_s30, %s1532_s10  ;;  %p1538_p13 = scmp.lt.s32.totalorder %s1532_s10, %s1532_s10 }
  0x3e   :  { %p1539_p0 = por %p1538_p13, %p1537_p12 }
  0x40   :  { %p1540_p1 = pnand %p1539_p0, %p1533_p11 }
  0x42   :  { %1543 = shalt.err (!%p1540_p1)
}
  0x43   :  { %71 = dma.hbm_to_vmem [thread:$0]  %s1720_s4, 32, %s69_s30, [#allocation8]  }
  0x44   :  { %s1552_s12 = scalar_lea.vmem %s91_s9, 128  ;;  %p1557_p3 = scmp.lt.s32.totalorder %s91_s9, %s91_s9 }
  0x45   :  { %p1553_p2 = scmp.ne.s32.totalorder %s91_s9, %s1552_s12  ;;  %p1558_p4 = scmp.lt.s32.totalorder %s1552_s12, %s1552_s12 }
  0x47   :  { %p1559_p5 = por %p1558_p4, %p1557_p3 }
  0x49   :  { %p1560_p6 = pnand %p1559_p5, %p1553_p2 }
  0x4b   :  { %1563 = shalt.err (!%p1560_p6)
}
  0x4c   :  { %93 = dma.hbm_to_vmem [thread:$0]  %s1722_s6, 128, %s91_s9, [#allocation11]  }
  0x4d   :  { %1564 = dma.done.wait [#allocation3], 512  }
  0x4e   :  { %1565 = vsyncadd [#allocation3], 4294966784 }
  0x4f   :  { %1566 = dma.done.wait [#allocation5], 16448  }
  0x50   :  { %1567 = vsyncadd [#allocation5], 4294950848 }
  0x51   :  { %1568 = dma.done.wait [#allocation8], 16416  }
  0x52   :  { %1569 = vsyncadd [#allocation8], 4294950880 }
  0x53   :  { %1570 = dma.done.wait [#allocation11], 32896  }
  0x54   :  { %1571 = vsyncadd [#allocation11], 4294934400  ;;  %v180_v0 = vld [vmem:[#allocation4 + $0x1e8] sm:$0xff]  ;;  %v182_v1 = vld [vmem:[#allocation4 + $0x1f8] sm:$0xff] }
  0x55   :  { %v179_v2 = vld [vmem:[#allocation4 + $0x1e0] sm:$0xff]  ;;  %269 = vmatprep.subr.mxu0 %v180_v0  ;;  %346 = vmatprep.subr.mxu1 %v182_v1  ;;  %v181_v3 = vld [vmem:[#allocation4 + $0x1f0] sm:$0xff]  ;;  %v176_v4 = vld [vmem:[#allocation4 + $0x1c8] sm:$0xff] }
  0x56   :  { %v178_v5 = vld [vmem:[#allocation4 + $0x1d8] sm:$0xff]  ;;  %270 = vmatpush1.msra.mxu0 %v179_v2  ;;  %347 = vmatpush1.msra.mxu1 %v181_v3  ;;  %v175_v6 = vld [vmem:[#allocation4 + $0x1c0] sm:$0xff]  ;;  %v177_v7 = vld [vmem:[#allocation4 + $0x1d0] sm:$0xff] }
  0x57   :  { %v172_v8 = vld [vmem:[#allocation4 + $0x1a8] sm:$0xff]  ;;  %271 = vmatprep.subr.mxu0 %v176_v4  ;;  %348 = vmatprep.subr.mxu1 %v178_v5  ;;  %v174_v9 = vld [vmem:[#allocation4 + $0x1b8] sm:$0xff]  ;;  %v171_v10 = vld [vmem:[#allocation4 + $0x1a0] sm:$0xff] }
  0x58   :  { %v173_v11 = vld [vmem:[#allocation4 + $0x1b0] sm:$0xff]  ;;  %272 = vmatpush1.msra.mxu0 %v175_v6  ;;  %349 = vmatpush1.msra.mxu1 %v177_v7  ;;  %v168_v12 = vld [vmem:[#allocation4 + $0x188] sm:$0xff]  ;;  %v170_v13 = vld [vmem:[#allocation4 + $0x198] sm:$0xff] }
  0x59   :  { %273 = vmatprep.subr.mxu0 %v172_v8  ;;  %350 = vmatprep.subr.mxu1 %v174_v9  ;;  %v167_v14 = vld [vmem:[#allocation4 + $0x180] sm:$0xff]  ;;  %v169_v15 = vld [vmem:[#allocation4 + $0x190] sm:$0xff]  ;;  %v164_v16 = vld [vmem:[#allocation4 + $0x168] sm:$0xff] }
  0x5a   :  { %274 = vmatpush1.msra.mxu0 %v171_v10  ;;  %351 = vmatpush1.msra.mxu1 %v173_v11  ;;  %v166_v17 = vld [vmem:[#allocation4 + $0x178] sm:$0xff]  ;;  %v163_v18 = vld [vmem:[#allocation4 + $0x160] sm:$0xff]  ;;  %v165_v19 = vld [vmem:[#allocation4 + $0x170] sm:$0xff] }
  0x5b   :  { %275 = vmatprep.subr.mxu0 %v168_v12  ;;  %352 = vmatprep.subr.mxu1 %v170_v13  ;;  %v160_v20 = vld [vmem:[#allocation4 + $0x148] sm:$0xff]  ;;  %v162_v21 = vld [vmem:[#allocation4 + $0x158] sm:$0xff]  ;;  %v159_v22 = vld [vmem:[#allocation4 + $0x140] sm:$0xff] }
  0x5c   :  { %276 = vmatpush1.msra.mxu0 %v167_v14  ;;  %353 = vmatpush1.msra.mxu1 %v169_v15  ;;  %v161_v23 = vld [vmem:[#allocation4 + $0x150] sm:$0xff]  ;;  %v156_v24 = vld [vmem:[#allocation4 + $0x128] sm:$0xff]  ;;  %v158_v25 = vld [vmem:[#allocation4 + $0x138] sm:$0xff] }
  0x5d   :  { %277 = vmatprep.subr.mxu0 %v164_v16  ;;  %354 = vmatprep.subr.mxu1 %v166_v17  ;;  %v155_v26 = vld [vmem:[#allocation4 + $0x120] sm:$0xff]  ;;  %v157_v27 = vld [vmem:[#allocation4 + $0x130] sm:$0xff]  ;;  %v152_v28 = vld [vmem:[#allocation4 + $0x108] sm:$0xff] }
  0x5e   :  { %278 = vmatpush1.msra.mxu0 %v163_v18  ;;  %355 = vmatpush1.msra.mxu1 %v165_v19  ;;  %v154_v29 = vld [vmem:[#allocation4 + $0x118] sm:$0xff]  ;;  %v151_v30 = vld [vmem:[#allocation4 + $0x100] sm:$0xff]  ;;  %v153_v31 = vld [vmem:[#allocation4 + $0x110] sm:$0xff] }
  0x5f   :  { %279 = vmatprep.subr.mxu0 %v160_v20  ;;  %356 = vmatprep.subr.mxu1 %v162_v21  ;;  %v148_v32 = vld [vmem:[#allocation4 + $0xe8] sm:$0xff]  ;;  %v150_v33 = vld [vmem:[#allocation4 + $0xf8] sm:$0xff]  ;;  %v147_v34 = vld [vmem:[#allocation4 + $0xe0] sm:$0xff] }
  0x60   :  { %280 = vmatpush1.msra.mxu0 %v159_v22  ;;  %357 = vmatpush1.msra.mxu1 %v161_v23  ;;  %v149_v35 = vld [vmem:[#allocation4 + $0xf0] sm:$0xff]  ;;  %v144_v36 = vld [vmem:[#allocation4 + $0xc8] sm:$0xff]  ;;  %v146_v37 = vld [vmem:[#allocation4 + $0xd8] sm:$0xff] }
  0x61   :  { %281 = vmatprep.subr.mxu0 %v156_v24  ;;  %358 = vmatprep.subr.mxu1 %v158_v25  ;;  %v143_v38 = vld [vmem:[#allocation4 + $0xc0] sm:$0xff]  ;;  %v145_v39 = vld [vmem:[#allocation4 + $0xd0] sm:$0xff]  ;;  %v140_v40 = vld [vmem:[#allocation4 + $0xa8] sm:$0xff] }
  0x62   :  { %282 = vmatpush1.msra.mxu0 %v155_v26  ;;  %359 = vmatpush1.msra.mxu1 %v157_v27  ;;  %v142_v41 = vld [vmem:[#allocation4 + $0xb8] sm:$0xff]  ;;  %v139_v42 = vld [vmem:[#allocation4 + $0xa0] sm:$0xff]  ;;  %v141_v43 = vld [vmem:[#allocation4 + $0xb0] sm:$0xff] }
  0x63   :  { %283 = vmatprep.subr.mxu0 %v152_v28  ;;  %360 = vmatprep.subr.mxu1 %v154_v29  ;;  %v136_v44 = vld [vmem:[#allocation4 + $0x88] sm:$0xff]  ;;  %v138_v45 = vld [vmem:[#allocation4 + $0x98] sm:$0xff]  ;;  %v135_v46 = vld [vmem:[#allocation4 + $0x80] sm:$0xff] }
  0x64   :  { %284 = vmatpush1.msra.mxu0 %v151_v30  ;;  %361 = vmatpush1.msra.mxu1 %v153_v31  ;;  %v137_v47 = vld [vmem:[#allocation4 + $0x90] sm:$0xff]  ;;  %v132_v48 = vld [vmem:[#allocation4 + $0x68] sm:$0xff]  ;;  %v134_v49 = vld [vmem:[#allocation4 + $0x78] sm:$0xff] }
  0x65   :  { %285 = vmatprep.subr.mxu0 %v148_v32  ;;  %362 = vmatprep.subr.mxu1 %v150_v33  ;;  %v131_v50 = vld [vmem:[#allocation4 + $0x60] sm:$0xff]  ;;  %v133_v51 = vld [vmem:[#allocation4 + $0x70] sm:$0xff]  ;;  %v128_v52 = vld [vmem:[#allocation4 + $0x48] sm:$0xff] }
  0x66   :  { %286 = vmatpush1.msra.mxu0 %v147_v34  ;;  %363 = vmatpush1.msra.mxu1 %v149_v35  ;;  %v130_v53 = vld [vmem:[#allocation4 + $0x58] sm:$0xff]  ;;  %v127_v54 = vld [vmem:[#allocation4 + $0x40] sm:$0xff]  ;;  %v129_v55 = vld [vmem:[#allocation4 + $0x50] sm:$0xff] }
  0x67   :  { %287 = vmatprep.subr.mxu0 %v144_v36  ;;  %364 = vmatprep.subr.mxu1 %v146_v37  ;;  %v124_v56 = vld [vmem:[#allocation4 + $0x28] sm:$0xff]  ;;  %v126_v57 = vld [vmem:[#allocation4 + $0x38] sm:$0xff]  ;;  %v123_v58 = vld [vmem:[#allocation4 + $0x20] sm:$0xff] }
  0x68   :  { %288 = vmatpush1.msra.mxu0 %v143_v38  ;;  %365 = vmatpush1.msra.mxu1 %v145_v39  ;;  %v125_v59 = vld [vmem:[#allocation4 + $0x30] sm:$0xff]  ;;  %v120_v60 = vld [vmem:[#allocation4 + $0x8] sm:$0xff]  ;;  %v122_v61 = vld [vmem:[#allocation4 + $0x18] sm:$0xff] }
  0x69   :  { %289 = vmatprep.subr.mxu0 %v140_v40  ;;  %366 = vmatprep.subr.mxu1 %v142_v41  ;;  %v119_v62 = vld [vmem:[#allocation4] sm:$0xff]  ;;  %v121_v63 = vld [vmem:[#allocation4 + $0x10] sm:$0xff]  ;;  %v244_v0 = vld [vmem:[#allocation4 + $0x3e8] sm:$0xff] }
  0x6a   :  { %290 = vmatpush1.msra.mxu0 %v139_v42  ;;  %367 = vmatpush1.msra.mxu1 %v141_v43  ;;  %v246_v1 = vld [vmem:[#allocation4 + $0x3f8] sm:$0xff]  ;;  %v243_v2 = vld [vmem:[#allocation4 + $0x3e0] sm:$0xff]  ;;  %v245_v3 = vld [vmem:[#allocation4 + $0x3f0] sm:$0xff] }
  0x6b   :  { %291 = vmatprep.subr.mxu0 %v136_v44  ;;  %368 = vmatprep.subr.mxu1 %v138_v45  ;;  %v240_v4 = vld [vmem:[#allocation4 + $0x3c8] sm:$0xff]  ;;  %v242_v5 = vld [vmem:[#allocation4 + $0x3d8] sm:$0xff]  ;;  %v239_v6 = vld [vmem:[#allocation4 + $0x3c0] sm:$0xff] }
  0x6c   :  { %292 = vmatpush1.msra.mxu0 %v135_v46  ;;  %369 = vmatpush1.msra.mxu1 %v137_v47  ;;  %v241_v7 = vld [vmem:[#allocation4 + $0x3d0] sm:$0xff]  ;;  %v236_v8 = vld [vmem:[#allocation4 + $0x3a8] sm:$0xff]  ;;  %v238_v9 = vld [vmem:[#allocation4 + $0x3b8] sm:$0xff] }
  0x6d   :  { %293 = vmatprep.subr.mxu0 %v132_v48  ;;  %370 = vmatprep.subr.mxu1 %v134_v49  ;;  %v235_v10 = vld [vmem:[#allocation4 + $0x3a0] sm:$0xff]  ;;  %v237_v11 = vld [vmem:[#allocation4 + $0x3b0] sm:$0xff]  ;;  %v232_v12 = vld [vmem:[#allocation4 + $0x388] sm:$0xff] }
  0x6e   :  { %294 = vmatpush1.msra.mxu0 %v131_v50  ;;  %371 = vmatpush1.msra.mxu1 %v133_v51  ;;  %v234_v13 = vld [vmem:[#allocation4 + $0x398] sm:$0xff]  ;;  %v231_v14 = vld [vmem:[#allocation4 + $0x380] sm:$0xff]  ;;  %v233_v15 = vld [vmem:[#allocation4 + $0x390] sm:$0xff] }
  0x6f   :  { %295 = vmatprep.subr.mxu0 %v128_v52  ;;  %372 = vmatprep.subr.mxu1 %v130_v53  ;;  %v228_v16 = vld [vmem:[#allocation4 + $0x368] sm:$0xff]  ;;  %v230_v17 = vld [vmem:[#allocation4 + $0x378] sm:$0xff]  ;;  %v227_v18 = vld [vmem:[#allocation4 + $0x360] sm:$0xff] }
  0x70   :  { %296 = vmatpush1.msra.mxu0 %v127_v54  ;;  %373 = vmatpush1.msra.mxu1 %v129_v55  ;;  %v229_v19 = vld [vmem:[#allocation4 + $0x370] sm:$0xff]  ;;  %v224_v20 = vld [vmem:[#allocation4 + $0x348] sm:$0xff]  ;;  %v226_v21 = vld [vmem:[#allocation4 + $0x358] sm:$0xff] }
  0x71   :  { %297 = vmatprep.subr.mxu0 %v124_v56  ;;  %374 = vmatprep.subr.mxu1 %v126_v57  ;;  %v223_v22 = vld [vmem:[#allocation4 + $0x340] sm:$0xff]  ;;  %v225_v23 = vld [vmem:[#allocation4 + $0x350] sm:$0xff]  ;;  %v220_v24 = vld [vmem:[#allocation4 + $0x328] sm:$0xff] }
  0x72   :  { %298 = vmatpush1.msra.mxu0 %v123_v58  ;;  %375 = vmatpush1.msra.mxu1 %v125_v59  ;;  %v222_v25 = vld [vmem:[#allocation4 + $0x338] sm:$0xff]  ;;  %v219_v26 = vld [vmem:[#allocation4 + $0x320] sm:$0xff]  ;;  %v221_v27 = vld [vmem:[#allocation4 + $0x330] sm:$0xff] }
  0x73   :  { %299 = vmatprep.subr.mxu0 %v120_v60  ;;  %376 = vmatprep.subr.mxu1 %v122_v61  ;;  %v216_v28 = vld [vmem:[#allocation4 + $0x308] sm:$0xff]  ;;  %v218_v29 = vld [vmem:[#allocation4 + $0x318] sm:$0xff]  ;;  %v215_v30 = vld [vmem:[#allocation4 + $0x300] sm:$0xff] }
  0x74   :  { %300 = vmatpush1.msra.mxu0 %v119_v62  ;;  %377 = vmatpush1.msra.mxu1 %v121_v63  ;;  %v217_v31 = vld [vmem:[#allocation4 + $0x310] sm:$0xff]  ;;  %v212_v32 = vld [vmem:[#allocation4 + $0x2e8] sm:$0xff]  ;;  %v214_v33 = vld [vmem:[#allocation4 + $0x2f8] sm:$0xff] }
  0x75   :  { %301 = vmatprep.subr.mxu0 %v244_v0  ;;  %378 = vmatprep.subr.mxu1 %v246_v1  ;;  %v211_v34 = vld [vmem:[#allocation4 + $0x2e0] sm:$0xff]  ;;  %v213_v35 = vld [vmem:[#allocation4 + $0x2f0] sm:$0xff]  ;;  %v208_v36 = vld [vmem:[#allocation4 + $0x2c8] sm:$0xff] }
  0x76   :  { %302 = vmatpush2.msra.mxu0 %v243_v2  ;;  %379 = vmatpush2.msra.mxu1 %v245_v3  ;;  %v210_v37 = vld [vmem:[#allocation4 + $0x2d8] sm:$0xff]  ;;  %v207_v38 = vld [vmem:[#allocation4 + $0x2c0] sm:$0xff]  ;;  %v209_v39 = vld [vmem:[#allocation4 + $0x2d0] sm:$0xff] }
  0x77   :  { %303 = vmatprep.subr.mxu0 %v240_v4  ;;  %380 = vmatprep.subr.mxu1 %v242_v5  ;;  %v204_v40 = vld [vmem:[#allocation4 + $0x2a8] sm:$0xff]  ;;  %v206_v41 = vld [vmem:[#allocation4 + $0x2b8] sm:$0xff]  ;;  %v203_v42 = vld [vmem:[#allocation4 + $0x2a0] sm:$0xff] }
  0x78   :  { %304 = vmatpush2.msra.mxu0 %v239_v6  ;;  %381 = vmatpush2.msra.mxu1 %v241_v7  ;;  %v205_v43 = vld [vmem:[#allocation4 + $0x2b0] sm:$0xff]  ;;  %v200_v44 = vld [vmem:[#allocation4 + $0x288] sm:$0xff]  ;;  %v202_v45 = vld [vmem:[#allocation4 + $0x298] sm:$0xff] }
  0x79   :  { %305 = vmatprep.subr.mxu0 %v236_v8  ;;  %382 = vmatprep.subr.mxu1 %v238_v9  ;;  %v199_v46 = vld [vmem:[#allocation4 + $0x280] sm:$0xff]  ;;  %v201_v47 = vld [vmem:[#allocation4 + $0x290] sm:$0xff]  ;;  %v196_v48 = vld [vmem:[#allocation4 + $0x268] sm:$0xff] }
  0x7a   :  { %306 = vmatpush2.msra.mxu0 %v235_v10  ;;  %383 = vmatpush2.msra.mxu1 %v237_v11  ;;  %v198_v49 = vld [vmem:[#allocation4 + $0x278] sm:$0xff]  ;;  %v195_v50 = vld [vmem:[#allocation4 + $0x260] sm:$0xff]  ;;  %v197_v51 = vld [vmem:[#allocation4 + $0x270] sm:$0xff] }
  0x7b   :  { %307 = vmatprep.subr.mxu0 %v232_v12  ;;  %384 = vmatprep.subr.mxu1 %v234_v13  ;;  %v192_v52 = vld [vmem:[#allocation4 + $0x248] sm:$0xff]  ;;  %v194_v53 = vld [vmem:[#allocation4 + $0x258] sm:$0xff]  ;;  %v191_v54 = vld [vmem:[#allocation4 + $0x240] sm:$0xff] }
  0x7c   :  { %308 = vmatpush2.msra.mxu0 %v231_v14  ;;  %385 = vmatpush2.msra.mxu1 %v233_v15  ;;  %v193_v55 = vld [vmem:[#allocation4 + $0x250] sm:$0xff]  ;;  %v188_v56 = vld [vmem:[#allocation4 + $0x228] sm:$0xff]  ;;  %v190_v57 = vld [vmem:[#allocation4 + $0x238] sm:$0xff] }
  0x7d   :  { %309 = vmatprep.subr.mxu0 %v228_v16  ;;  %386 = vmatprep.subr.mxu1 %v230_v17  ;;  %v187_v58 = vld [vmem:[#allocation4 + $0x220] sm:$0xff]  ;;  %v189_v59 = vld [vmem:[#allocation4 + $0x230] sm:$0xff]  ;;  %v184_v60 = vld [vmem:[#allocation4 + $0x208] sm:$0xff] }
  0x7e   :  { %310 = vmatpush2.msra.mxu0 %v227_v18  ;;  %387 = vmatpush2.msra.mxu1 %v229_v19  ;;  %v186_v61 = vld [vmem:[#allocation4 + $0x218] sm:$0xff]  ;;  %v183_v62 = vld [vmem:[#allocation4 + $0x200] sm:$0xff]  ;;  %v116_v63 = vld [vmem:[#allocation2 + $0x8] sm:$0xff] }
  0x7f   :  { %311 = vmatprep.subr.mxu0 %v224_v20  ;;  %388 = vmatprep.subr.mxu1 %v226_v21  ;;  %v185_v0 = vld [vmem:[#allocation4 + $0x210] sm:$0xff]  ;;  %v115_v1 = vld [vmem:[#allocation2] sm:$0xff]  ;;  %v118_v2 = vld [vmem:[#allocation2 + $0x18] sm:$0xff] }
  0x80   :  { %312 = vmatpush2.msra.mxu0 %v223_v22  ;;  %389 = vmatpush2.msra.mxu1 %v225_v23  ;;  %v462_v3 = vld [vmem:[#allocation7 + $0xf8] sm:$0xff]  ;;  %v461_v5 = vld [vmem:[#allocation7 + $0xf0] sm:$0xff]  ;;  %v460_v8 = vld [vmem:[#allocation7 + $0xe8] sm:$0xff] }
  0x81   :  { %313 = vmatprep.subr.mxu0 %v220_v24  ;;  %390 = vmatprep.subr.mxu1 %v222_v25  ;;  %v526_v4 = vld [vmem:[#allocation7 + $0x2f8] sm:$0xff]  ;;  %v525_v6 = vld [vmem:[#allocation7 + $0x2f0] sm:$0xff]  ;;  %v524_v9 = vld [vmem:[#allocation7 + $0x2e8] sm:$0xff] }
  0x82   :  { %314 = vmatpush2.msra.mxu0 %v219_v26  ;;  %391 = vmatpush2.msra.mxu1 %v221_v27  ;;  %v117_v7 = vld [vmem:[#allocation2 + $0x10] sm:$0xff]  ;;  %v459_v10 = vld [vmem:[#allocation7 + $0xe0] sm:$0xff]  ;;  %v458_v12 = vld [vmem:[#allocation7 + $0xd8] sm:$0xff] }
  0x83   :  { %315 = vmatprep.subr.mxu0 %v216_v28  ;;  %392 = vmatprep.subr.mxu1 %v218_v29  ;;  %v523_v11 = vld [vmem:[#allocation7 + $0x2e0] sm:$0xff]  ;;  %v522_v13 = vld [vmem:[#allocation7 + $0x2d8] sm:$0xff]  ;;  %v457_v14 = vld [vmem:[#allocation7 + $0xd0] sm:$0xff] }
  0x84   :  { %316 = vmatpush2.msra.mxu0 %v215_v30  ;;  %393 = vmatpush2.msra.mxu1 %v217_v31  ;;  %v521_v15 = vld [vmem:[#allocation7 + $0x2d0] sm:$0xff]  ;;  %v456_v16 = vld [vmem:[#allocation7 + $0xc8] sm:$0xff]  ;;  %v455_v18 = vld [vmem:[#allocation7 + $0xc0] sm:$0xff] }
  0x85   :  { %317 = vmatprep.subr.mxu0 %v212_v32  ;;  %394 = vmatprep.subr.mxu1 %v214_v33  ;;  %v520_v17 = vld [vmem:[#allocation7 + $0x2c8] sm:$0xff]  ;;  %v519_v19 = vld [vmem:[#allocation7 + $0x2c0] sm:$0xff]  ;;  %v454_v20 = vld [vmem:[#allocation7 + $0xb8] sm:$0xff] }
  0x86   :  { %318 = vmatpush2.msra.mxu0 %v211_v34  ;;  %395 = vmatpush2.msra.mxu1 %v213_v35  ;;  %v518_v21 = vld [vmem:[#allocation7 + $0x2b8] sm:$0xff]  ;;  %v453_v22 = vld [vmem:[#allocation7 + $0xb0] sm:$0xff]  ;;  %v452_v24 = vld [vmem:[#allocation7 + $0xa8] sm:$0xff] }
  0x87   :  { %319 = vmatprep.subr.mxu0 %v208_v36  ;;  %396 = vmatprep.subr.mxu1 %v210_v37  ;;  %v517_v23 = vld [vmem:[#allocation7 + $0x2b0] sm:$0xff]  ;;  %v516_v25 = vld [vmem:[#allocation7 + $0x2a8] sm:$0xff]  ;;  %v451_v26 = vld [vmem:[#allocation7 + $0xa0] sm:$0xff] }
  0x88   :  { %320 = vmatpush2.msra.mxu0 %v207_v38  ;;  %397 = vmatpush2.msra.mxu1 %v209_v39  ;;  %v515_v27 = vld [vmem:[#allocation7 + $0x2a0] sm:$0xff]  ;;  %v450_v28 = vld [vmem:[#allocation7 + $0x98] sm:$0xff]  ;;  %v449_v30 = vld [vmem:[#allocation7 + $0x90] sm:$0xff] }
  0x89   :  { %321 = vmatprep.subr.mxu0 %v204_v40  ;;  %398 = vmatprep.subr.mxu1 %v206_v41  ;;  %v514_v29 = vld [vmem:[#allocation7 + $0x298] sm:$0xff]  ;;  %v513_v31 = vld [vmem:[#allocation7 + $0x290] sm:$0xff]  ;;  %v448_v32 = vld [vmem:[#allocation7 + $0x88] sm:$0xff] }
  0x8a   :  { %322 = vmatpush2.msra.mxu0 %v203_v42  ;;  %399 = vmatpush2.msra.mxu1 %v205_v43  ;;  %v512_v33 = vld [vmem:[#allocation7 + $0x288] sm:$0xff]  ;;  %v447_v34 = vld [vmem:[#allocation7 + $0x80] sm:$0xff]  ;;  %v446_v36 = vld [vmem:[#allocation7 + $0x78] sm:$0xff] }
  0x8b   :  { %323 = vmatprep.subr.mxu0 %v200_v44  ;;  %400 = vmatprep.subr.mxu1 %v202_v45  ;;  %v511_v35 = vld [vmem:[#allocation7 + $0x280] sm:$0xff]  ;;  %v510_v37 = vld [vmem:[#allocation7 + $0x278] sm:$0xff]  ;;  %v445_v38 = vld [vmem:[#allocation7 + $0x70] sm:$0xff] }
  0x8c   :  { %324 = vmatpush2.msra.mxu0 %v199_v46  ;;  %401 = vmatpush2.msra.mxu1 %v201_v47  ;;  %v509_v39 = vld [vmem:[#allocation7 + $0x270] sm:$0xff]  ;;  %v444_v40 = vld [vmem:[#allocation7 + $0x68] sm:$0xff]  ;;  %v443_v42 = vld [vmem:[#allocation7 + $0x60] sm:$0xff] }
  0x8d   :  { %325 = vmatprep.subr.mxu0 %v196_v48  ;;  %402 = vmatprep.subr.mxu1 %v198_v49  ;;  %v508_v41 = vld [vmem:[#allocation7 + $0x268] sm:$0xff]  ;;  %v507_v43 = vld [vmem:[#allocation7 + $0x260] sm:$0xff]  ;;  %v442_v44 = vld [vmem:[#allocation7 + $0x58] sm:$0xff] }
  0x8e   :  { %326 = vmatpush2.msra.mxu0 %v195_v50  ;;  %403 = vmatpush2.msra.mxu1 %v197_v51  ;;  %v506_v45 = vld [vmem:[#allocation7 + $0x258] sm:$0xff]  ;;  %v441_v46 = vld [vmem:[#allocation7 + $0x50] sm:$0xff]  ;;  %v440_v48 = vld [vmem:[#allocation7 + $0x48] sm:$0xff] }
  0x8f   :  { %327 = vmatprep.subr.mxu0 %v192_v52  ;;  %404 = vmatprep.subr.mxu1 %v194_v53  ;;  %v505_v47 = vld [vmem:[#allocation7 + $0x250] sm:$0xff]  ;;  %v504_v49 = vld [vmem:[#allocation7 + $0x248] sm:$0xff]  ;;  %v439_v50 = vld [vmem:[#allocation7 + $0x40] sm:$0xff] }
  0x90   :  { %328 = vmatpush2.msra.mxu0 %v191_v54  ;;  %405 = vmatpush2.msra.mxu1 %v193_v55  ;;  %v503_v51 = vld [vmem:[#allocation7 + $0x240] sm:$0xff]  ;;  %v438_v52 = vld [vmem:[#allocation7 + $0x38] sm:$0xff]  ;;  %v437_v54 = vld [vmem:[#allocation7 + $0x30] sm:$0xff] }
  0x91   :  { %329 = vmatprep.subr.mxu0 %v188_v56  ;;  %406 = vmatprep.subr.mxu1 %v190_v57  ;;  %v502_v53 = vld [vmem:[#allocation7 + $0x238] sm:$0xff]  ;;  %v501_v55 = vld [vmem:[#allocation7 + $0x230] sm:$0xff]  ;;  %v436_v56 = vld [vmem:[#allocation7 + $0x28] sm:$0xff] }
  0x92   :  { %330 = vmatpush2.msra.mxu0 %v187_v58  ;;  %407 = vmatpush2.msra.mxu1 %v189_v59  ;;  %v500_v57 = vld [vmem:[#allocation7 + $0x228] sm:$0xff]  ;;  %v435_v58 = vld [vmem:[#allocation7 + $0x20] sm:$0xff] }
  0x93   :  { %331 = vmatprep.subr.mxu0 %v184_v60  ;;  %408 = vmatprep.subr.mxu1 %v186_v61  ;;  %v499_v59 = vld [vmem:[#allocation7 + $0x220] sm:$0xff]  ;;  %v434_v60 = vld [vmem:[#allocation7 + $0x18] sm:$0xff] }
  0x94   :  { %332 = vmatpush2.msra.mxu0 %v183_v62  ;;  %333 = vmatprep.mubr.f32.mxu0 %v116_v63  ;;  %v498_v61 = vld [vmem:[#allocation7 + $0x218] sm:$0xff]  ;;  %v433_v62 = vld [vmem:[#allocation7 + $0x10] sm:$0xff] }
  0x95   :  { %409 = vmatpush2.msra.mxu1 %v185_v0  ;;  %410 = vmatprep.mubr.f32.mxu1 %v116_v63  ;;  %v497_v63 = vld [vmem:[#allocation7 + $0x210] sm:$0xff]  ;;  %v432_v0 = vld [vmem:[#allocation7 + $0x8] sm:$0xff] }
  0x96   :  { %334 = vmatmul.mubr.f32.vlgmr.msra.gmra.mxu0 %v115_v1  ;;  %411 = vmatmul.mubr.f32.vlgmr.msra.gmra.mxu1 %v115_v1  ;;  %v496_v1 = vld [vmem:[#allocation7 + $0x208] sm:$0xff] }
  0x97   :  { %339 = vmatprep.mubr.f32.mxu0 %v118_v2  ;;  %416 = vmatprep.mubr.f32.mxu1 %v118_v2  ;;  %v431_v2 = vld [vmem:[#allocation7] sm:$0xff] }
  0x98   :  { %571 = vmatprep.subr.mxu0 %v462_v3  ;;  %648 = vmatprep.subr.mxu1 %v526_v4  ;;  %v495_v3 = vld [vmem:[#allocation7 + $0x200] sm:$0xff]  ;;  %v494_v4 = vld [vmem:[#allocation7 + $0x1f8] sm:$0xff] }
  0x99   :  { %572 = vmatpush1.msra.mxu0 %v461_v5  ;;  %649 = vmatpush1.msra.mxu1 %v525_v6  ;;  %v558_v5 = vld [vmem:[#allocation7 + $0x3f8] sm:$0xff]  ;;  %v493_v6 = vld [vmem:[#allocation7 + $0x1f0] sm:$0xff] }
  0x9a   :  { %340 = vmatmul.mubr.f32.gmra.mxu0 %v117_v7  ;;  %417 = vmatmul.mubr.f32.gmra.mxu1 %v117_v7  ;;  %v557_v7 = vld [vmem:[#allocation7 + $0x3f0] sm:$0xff] }
  0x9b   :  { %573 = vmatprep.subr.mxu0 %v460_v8  ;;  %650 = vmatprep.subr.mxu1 %v524_v9  ;;  %v492_v8 = vld [vmem:[#allocation7 + $0x1e8] sm:$0xff] }
  0x9c   :  { %574 = vmatpush1.msra.mxu0 %v459_v10  ;;  %651 = vmatpush1.msra.mxu1 %v523_v11  ;;  %v556_v9 = vld [vmem:[#allocation7 + $0x3e8] sm:$0xff]  ;;  %v491_v10 = vld [vmem:[#allocation7 + $0x1e0] sm:$0xff] }
  0x9d   :  { %575 = vmatprep.subr.mxu0 %v458_v12  ;;  %652 = vmatprep.subr.mxu1 %v522_v13  ;;  %v555_v11 = vld [vmem:[#allocation7 + $0x3e0] sm:$0xff]  ;;  %v490_v12 = vld [vmem:[#allocation7 + $0x1d8] sm:$0xff] }
  0x9e   :  { %576 = vmatpush1.msra.mxu0 %v457_v14  ;;  %653 = vmatpush1.msra.mxu1 %v521_v15  ;;  %v554_v13 = vld [vmem:[#allocation7 + $0x3d8] sm:$0xff]  ;;  %v489_v14 = vld [vmem:[#allocation7 + $0x1d0] sm:$0xff] }
  0x9f   :  { %577 = vmatprep.subr.mxu0 %v456_v16  ;;  %654 = vmatprep.subr.mxu1 %v520_v17  ;;  %v553_v15 = vld [vmem:[#allocation7 + $0x3d0] sm:$0xff]  ;;  %v488_v16 = vld [vmem:[#allocation7 + $0x1c8] sm:$0xff] }
  0xa0   :  { %578 = vmatpush1.msra.mxu0 %v455_v18  ;;  %655 = vmatpush1.msra.mxu1 %v519_v19  ;;  %v552_v17 = vld [vmem:[#allocation7 + $0x3c8] sm:$0xff]  ;;  %v487_v18 = vld [vmem:[#allocation7 + $0x1c0] sm:$0xff] }
  0xa1   :  { %579 = vmatprep.subr.mxu0 %v454_v20  ;;  %656 = vmatprep.subr.mxu1 %v518_v21  ;;  %v551_v19 = vld [vmem:[#allocation7 + $0x3c0] sm:$0xff]  ;;  %v486_v20 = vld [vmem:[#allocation7 + $0x1b8] sm:$0xff] }
  0xa2   :  { %580 = vmatpush1.msra.mxu0 %v453_v22  ;;  %657 = vmatpush1.msra.mxu1 %v517_v23  ;;  %v550_v21 = vld [vmem:[#allocation7 + $0x3b8] sm:$0xff]  ;;  %v485_v22 = vld [vmem:[#allocation7 + $0x1b0] sm:$0xff] }
  0xa3   :  { %581 = vmatprep.subr.mxu0 %v452_v24  ;;  %658 = vmatprep.subr.mxu1 %v516_v25  ;;  %v549_v23 = vld [vmem:[#allocation7 + $0x3b0] sm:$0xff]  ;;  %v484_v24 = vld [vmem:[#allocation7 + $0x1a8] sm:$0xff] }
  0xa4   :  { %582 = vmatpush1.msra.mxu0 %v451_v26  ;;  %659 = vmatpush1.msra.mxu1 %v515_v27  ;;  %v548_v25 = vld [vmem:[#allocation7 + $0x3a8] sm:$0xff]  ;;  %v483_v26 = vld [vmem:[#allocation7 + $0x1a0] sm:$0xff] }
  0xa5   :  { %583 = vmatprep.subr.mxu0 %v450_v28  ;;  %660 = vmatprep.subr.mxu1 %v514_v29  ;;  %v547_v27 = vld [vmem:[#allocation7 + $0x3a0] sm:$0xff]  ;;  %v482_v28 = vld [vmem:[#allocation7 + $0x198] sm:$0xff] }
  0xa6   :  { %584 = vmatpush1.msra.mxu0 %v449_v30  ;;  %661 = vmatpush1.msra.mxu1 %v513_v31  ;;  %v546_v29 = vld [vmem:[#allocation7 + $0x398] sm:$0xff]  ;;  %v481_v30 = vld [vmem:[#allocation7 + $0x190] sm:$0xff] }
  0xa7   :  { %585 = vmatprep.subr.mxu0 %v448_v32  ;;  %662 = vmatprep.subr.mxu1 %v512_v33  ;;  %v545_v31 = vld [vmem:[#allocation7 + $0x390] sm:$0xff]  ;;  %v480_v32 = vld [vmem:[#allocation7 + $0x188] sm:$0xff] }
  0xa8   :  { %586 = vmatpush1.msra.mxu0 %v447_v34  ;;  %663 = vmatpush1.msra.mxu1 %v511_v35  ;;  %v544_v33 = vld [vmem:[#allocation7 + $0x388] sm:$0xff]  ;;  %v479_v34 = vld [vmem:[#allocation7 + $0x180] sm:$0xff] }
  0xa9   :  { %587 = vmatprep.subr.mxu0 %v446_v36  ;;  %664 = vmatprep.subr.mxu1 %v510_v37  ;;  %v543_v35 = vld [vmem:[#allocation7 + $0x380] sm:$0xff]  ;;  %v478_v36 = vld [vmem:[#allocation7 + $0x178] sm:$0xff] }
  0xaa   :  { %588 = vmatpush1.msra.mxu0 %v445_v38  ;;  %665 = vmatpush1.msra.mxu1 %v509_v39  ;;  %v542_v37 = vld [vmem:[#allocation7 + $0x378] sm:$0xff]  ;;  %v477_v38 = vld [vmem:[#allocation7 + $0x170] sm:$0xff] }
  0xab   :  { %589 = vmatprep.subr.mxu0 %v444_v40  ;;  %666 = vmatprep.subr.mxu1 %v508_v41  ;;  %v541_v39 = vld [vmem:[#allocation7 + $0x370] sm:$0xff]  ;;  %v476_v40 = vld [vmem:[#allocation7 + $0x168] sm:$0xff] }
  0xac   :  { %590 = vmatpush1.msra.mxu0 %v443_v42  ;;  %667 = vmatpush1.msra.mxu1 %v507_v43  ;;  %v540_v41 = vld [vmem:[#allocation7 + $0x368] sm:$0xff]  ;;  %v475_v42 = vld [vmem:[#allocation7 + $0x160] sm:$0xff] }
  0xad   :  { %591 = vmatprep.subr.mxu0 %v442_v44  ;;  %668 = vmatprep.subr.mxu1 %v506_v45  ;;  %v539_v43 = vld [vmem:[#allocation7 + $0x360] sm:$0xff]  ;;  %v474_v44 = vld [vmem:[#allocation7 + $0x158] sm:$0xff] }
  0xae   :  { %592 = vmatpush1.msra.mxu0 %v441_v46  ;;  %669 = vmatpush1.msra.mxu1 %v505_v47  ;;  %v538_v45 = vld [vmem:[#allocation7 + $0x358] sm:$0xff]  ;;  %v473_v46 = vld [vmem:[#allocation7 + $0x150] sm:$0xff] }
  0xaf   :  { %593 = vmatprep.subr.mxu0 %v440_v48  ;;  %670 = vmatprep.subr.mxu1 %v504_v49  ;;  %v537_v47 = vld [vmem:[#allocation7 + $0x350] sm:$0xff]  ;;  %v472_v48 = vld [vmem:[#allocation7 + $0x148] sm:$0xff] }
  0xb0   :  { %594 = vmatpush1.msra.mxu0 %v439_v50  ;;  %671 = vmatpush1.msra.mxu1 %v503_v51  ;;  %v536_v49 = vld [vmem:[#allocation7 + $0x348] sm:$0xff]  ;;  %v471_v50 = vld [vmem:[#allocation7 + $0x140] sm:$0xff] }
  0xb1   :  { %595 = vmatprep.subr.mxu0 %v438_v52  ;;  %672 = vmatprep.subr.mxu1 %v502_v53  ;;  %v535_v51 = vld [vmem:[#allocation7 + $0x340] sm:$0xff]  ;;  %v470_v52 = vld [vmem:[#allocation7 + $0x138] sm:$0xff] }
  0xb2   :  { %596 = vmatpush1.msra.mxu0 %v437_v54  ;;  %673 = vmatpush1.msra.mxu1 %v501_v55  ;;  %v534_v53 = vld [vmem:[#allocation7 + $0x338] sm:$0xff]  ;;  %v469_v54 = vld [vmem:[#allocation7 + $0x130] sm:$0xff] }
  0xb3   :  { %597 = vmatprep.subr.mxu0 %v436_v56  ;;  %674 = vmatprep.subr.mxu1 %v500_v57  ;;  %v533_v55 = vld [vmem:[#allocation7 + $0x330] sm:$0xff]  ;;  %v468_v56 = vld [vmem:[#allocation7 + $0x128] sm:$0xff] }
  0xb4   :  { %598 = vmatpush1.msra.mxu0 %v435_v58  ;;  %675 = vmatpush1.msra.mxu1 %v499_v59  ;;  %v532_v57 = vld [vmem:[#allocation7 + $0x328] sm:$0xff]  ;;  %v467_v58 = vld [vmem:[#allocation7 + $0x120] sm:$0xff] }
  0xb5   :  { %599 = vmatprep.subr.mxu0 %v434_v60  ;;  %676 = vmatprep.subr.mxu1 %v498_v61  ;;  %v531_v59 = vld [vmem:[#allocation7 + $0x320] sm:$0xff]  ;;  %v466_v60 = vld [vmem:[#allocation7 + $0x118] sm:$0xff] }
  0xb6   :  { %600 = vmatpush1.msra.mxu0 %v433_v62  ;;  %677 = vmatpush1.msra.mxu1 %v497_v63  ;;  %v530_v61 = vld [vmem:[#allocation7 + $0x318] sm:$0xff]  ;;  %v465_v62 = vld [vmem:[#allocation7 + $0x110] sm:$0xff] }
  0xb7   :  { %601 = vmatprep.subr.mxu0 %v432_v0  ;;  %678 = vmatprep.subr.mxu1 %v496_v1  ;;  %v529_v63 = vld [vmem:[#allocation7 + $0x310] sm:$0xff]  ;;  %v464_v0 = vld [vmem:[#allocation7 + $0x108] sm:$0xff] }
  0xb8   :  { %602 = vmatpush1.msra.mxu0 %v431_v2  ;;  %679 = vmatpush1.msra.mxu1 %v495_v3  ;;  %v528_v1 = vld [vmem:[#allocation7 + $0x308] sm:$0xff]  ;;  %v463_v2 = vld [vmem:[#allocation7 + $0x100] sm:$0xff] }
  0xb9   :  { %603 = vmatprep.subr.mxu0 %v494_v4  ;;  %680 = vmatprep.subr.mxu1 %v558_v5  ;;  %v527_v3 = vld [vmem:[#allocation7 + $0x300] sm:$0xff]  ;;  %v846_v4 = vld [vmem:[#allocation10 + $0x3c8] sm:$0xff] }
  0xba   :  { %604 = vmatpush2.msra.mxu0 %v493_v6  ;;  %681 = vmatpush2.msra.mxu1 %v557_v7  ;;  %v848_v5 = vld [vmem:[#allocation10 + $0x3d8] sm:$0xff]  ;;  %v249_v6 = vlaneseq }
  0xbb   :  { %605 = vmatprep.subr.mxu0 %v492_v8  ;;  %682 = vmatprep.subr.mxu1 %v556_v9 }
  0xbc   :  { %606 = vmatpush2.msra.mxu0 %v491_v10  ;;  %683 = vmatpush2.msra.mxu1 %v555_v11  ;;  %v1646_v7 = vshrl.u32 %v249_v6, 7  ;;  %v247_v10 = vld [vmem:[#allocation6] sm:$0xf]  ;;  %v791_v6 = vld [vmem:[#allocation10 + $0x210] sm:$0xff] }
  0xbd   :  { %607 = vmatprep.subr.mxu0 %v490_v12  ;;  %684 = vmatprep.subr.mxu1 %v554_v13 }
  0xbe   :  { %608 = vmatpush2.msra.mxu0 %v489_v14  ;;  %685 = vmatpush2.msra.mxu1 %v553_v15  ;;  %v259_v8 = vsub.s32 2, %v1646_v7  ;;  %v1650_v9 = vsub.s32 0, %v1646_v7  ;;  %v1653_v11 = vsub.s32 1, %v1646_v7  ;;  %v263_v12 = vsub.s32 3, %v1646_v7 }
  0xbf   :  { %609 = vmatprep.subr.mxu0 %v488_v16  ;;  %686 = vmatprep.subr.mxu1 %v552_v17 }
  0xc0   :  { %610 = vmatpush2.msra.mxu0 %v487_v18  ;;  %687 = vmatpush2.msra.mxu1 %v551_v19  ;;  %v260_v13 = vrot.slane %v247_v10, %v259_v8  ;;  %v252_v14 = vrot.slane %v247_v10, %v1650_v9  ;;  %v256_v15 = vrot.slane %v247_v10, %v1653_v11 }
  0xc1   :  { %611 = vmatprep.subr.mxu0 %v486_v20  ;;  %688 = vmatprep.subr.mxu1 %v550_v21  ;;  %v264_v16 = vrot.slane %v247_v10, %v263_v12  ;;  %v782_v10 = vld [vmem:[#allocation10 + $0x1c8] sm:$0xff] }
  0xc2   :  { %612 = vmatpush2.msra.mxu0 %v485_v22  ;;  %689 = vmatpush2.msra.mxu1 %v549_v23 }
  0xc3   :  { %613 = vmatprep.subr.mxu0 %v484_v24  ;;  %690 = vmatprep.subr.mxu1 %v548_v25 }
  0xc4   :  { %614 = vmatpush2.msra.mxu0 %v483_v26  ;;  %691 = vmatpush2.msra.mxu1 %v547_v27 }
  0xc5   :  { %615 = vmatprep.subr.mxu0 %v482_v28  ;;  %692 = vmatprep.subr.mxu1 %v546_v29 }
  0xc6   :  { %616 = vmatpush2.msra.mxu0 %v481_v30  ;;  %693 = vmatpush2.msra.mxu1 %v545_v31 }
  0xc7   :  { %617 = vmatprep.subr.mxu0 %v480_v32  ;;  %694 = vmatprep.subr.mxu1 %v544_v33 }
  0xc8   :  { %618 = vmatpush2.msra.mxu0 %v479_v34  ;;  %695 = vmatpush2.msra.mxu1 %v543_v35  ;;  %v845_v35 = vld [vmem:[#allocation10 + $0x3c0] sm:$0xff] }
  0xc9   :  { %619 = vmatprep.subr.mxu0 %v478_v36  ;;  %696 = vmatprep.subr.mxu1 %v542_v37  ;;  %v847_v36 = vld [vmem:[#allocation10 + $0x3d0] sm:$0xff] }
  0xca   :  { %620 = vmatpush2.msra.mxu0 %v477_v38  ;;  %697 = vmatpush2.msra.mxu1 %v541_v39  ;;  %v838_v39 = vld [vmem:[#allocation10 + $0x388] sm:$0xff] }
  0xcb   :  { %621 = vmatprep.subr.mxu0 %v476_v40  ;;  %698 = vmatprep.subr.mxu1 %v540_v41  ;;  %v840_v40 = vld [vmem:[#allocation10 + $0x398] sm:$0xff] }
  0xcc   :  { %622 = vmatpush2.msra.mxu0 %v475_v42  ;;  %699 = vmatpush2.msra.mxu1 %v539_v43 }
  0xcd   :  { %623 = vmatprep.subr.mxu0 %v474_v44  ;;  %700 = vmatprep.subr.mxu1 %v538_v45  ;;  %v837_v45 = vld [vmem:[#allocation10 + $0x380] sm:$0xff] }
  0xce   :  { %624 = vmatpush2.msra.mxu0 %v473_v46  ;;  %701 = vmatpush2.msra.mxu1 %v537_v47  ;;  %v839_v46 = vld [vmem:[#allocation10 + $0x390] sm:$0xff]  ;;  %v830_v47 = vld [vmem:[#allocation10 + $0x348] sm:$0xff] }
  0xcf   :  { %625 = vmatprep.subr.mxu0 %v472_v48  ;;  %702 = vmatprep.subr.mxu1 %v536_v49  ;;  %v832_v48 = vld [vmem:[#allocation10 + $0x358] sm:$0xff]  ;;  %v829_v49 = vld [vmem:[#allocation10 + $0x340] sm:$0xff] }
  0xd0   :  { %626 = vmatpush2.msra.mxu0 %v471_v50  ;;  %703 = vmatpush2.msra.mxu1 %v535_v51  ;;  %v831_v50 = vld [vmem:[#allocation10 + $0x350] sm:$0xff]  ;;  %v822_v51 = vld [vmem:[#allocation10 + $0x308] sm:$0xff] }
  0xd1   :  { %627 = vmatprep.subr.mxu0 %v470_v52  ;;  %704 = vmatprep.subr.mxu1 %v534_v53  ;;  %v824_v52 = vld [vmem:[#allocation10 + $0x318] sm:$0xff]  ;;  %v821_v53 = vld [vmem:[#allocation10 + $0x300] sm:$0xff] }
  0xd2   :  { %628 = vmatpush2.msra.mxu0 %v469_v54  ;;  %705 = vmatpush2.msra.mxu1 %v533_v55  ;;  %v823_v54 = vld [vmem:[#allocation10 + $0x310] sm:$0xff]  ;;  %v814_v55 = vld [vmem:[#allocation10 + $0x2c8] sm:$0xff] }
  0xd3   :  { %629 = vmatprep.subr.mxu0 %v468_v56  ;;  %706 = vmatprep.subr.mxu1 %v532_v57  ;;  %v816_v56 = vld [vmem:[#allocation10 + $0x2d8] sm:$0xff]  ;;  %v813_v57 = vld [vmem:[#allocation10 + $0x2c0] sm:$0xff] }
  0xd4   :  { %630 = vmatpush2.msra.mxu0 %v467_v58  ;;  %707 = vmatpush2.msra.mxu1 %v531_v59  ;;  %v815_v58 = vld [vmem:[#allocation10 + $0x2d0] sm:$0xff]  ;;  %v806_v59 = vld [vmem:[#allocation10 + $0x288] sm:$0xff] }
  0xd5   :  { %631 = vmatprep.subr.mxu0 %v466_v60  ;;  %708 = vmatprep.subr.mxu1 %v530_v61  ;;  %v808_v60 = vld [vmem:[#allocation10 + $0x298] sm:$0xff]  ;;  %v805_v61 = vld [vmem:[#allocation10 + $0x280] sm:$0xff] }
  0xd6   :  { %632 = vmatpush2.msra.mxu0 %v465_v62  ;;  %709 = vmatpush2.msra.mxu1 %v529_v63  ;;  %v807_v62 = vld [vmem:[#allocation10 + $0x290] sm:$0xff]  ;;  %v798_v63 = vld [vmem:[#allocation10 + $0x248] sm:$0xff] }
  0xd7   :  { %633 = vmatprep.subr.mxu0 %v464_v0  ;;  %710 = vmatprep.subr.mxu1 %v528_v1  ;;  %v800_v0 = vld [vmem:[#allocation10 + $0x258] sm:$0xff]  ;;  %v797_v1 = vld [vmem:[#allocation10 + $0x240] sm:$0xff] }
  0xd8   :  { %634 = vmatpush2.msra.mxu0 %v463_v2  ;;  %711 = vmatpush2.msra.mxu1 %v527_v3  ;;  %v799_v2 = vld [vmem:[#allocation10 + $0x250] sm:$0xff]  ;;  %v790_v3 = vld [vmem:[#allocation10 + $0x208] sm:$0xff] }
  0xd9   :  { %1023 = vmatprep.subr.mxu0 %v846_v4  ;;  %1100 = vmatprep.subr.mxu1 %v848_v5  ;;  %v792_v4 = vld [vmem:[#allocation10 + $0x218] sm:$0xff]  ;;  %v789_v5 = vld [vmem:[#allocation10 + $0x200] sm:$0xff] }
 0x156   :  { %v335_v17 = vpop.f32.mrf.mxu0  ;;  %v412_v18 = vpop.f32.mrf.mxu1 }
 0x157   :  { %v413_v19 = vadd.f32 %v412_v18, %v260_v13  ;;  %v336_v20 = vadd.f32 %v335_v17, %v252_v14  ;;  %v776_v17 = vld [vmem:[#allocation10 + $0x198] sm:$0xff]  ;;  %v773_v18 = vld [vmem:[#allocation10 + $0x180] sm:$0xff] }
 0x158   :  { %v337_v21 = vpop.f32.mrf.mxu0  ;;  %v414_v22 = vpop.f32.mrf.mxu1 }
 0x159   :  { %v338_v23 = vadd.f32 %v337_v21, %v256_v15  ;;  %v415_v24 = vadd.f32 %v414_v22, %v264_v16  ;;  %v425_v25 = vmax.f32 %v413_v19, 0.0  ;;  %v423_v32 = vmax.f32 %v336_v20, 0.0  ;;  %v775_v19 = vld [vmem:[#allocation10 + $0x190] sm:$0xff]  ;;  %v766_v20 = vld [vmem:[#allocation10 + $0x148] sm:$0xff]  ;;  %v768_v21 = vld [vmem:[#allocation10 + $0x158] sm:$0xff] }
 0x15a   :  { %v341_v26 = vpop.f32.mrf.mxu0  ;;  %v418_v27 = vpop.f32.mrf.mxu1  ;;  %v765_v22 = vld [vmem:[#allocation10 + $0x140] sm:$0xff] }
 0x15b   :  { %v424_v28 = vmax.f32 %v338_v23, 0.0  ;;  %v426_v29 = vmax.f32 %v415_v24, 0.0  ;;  %v342_v30 = vadd.f32 %v341_v26, %v252_v14  ;;  %v419_v31 = vadd.f32 %v418_v27, %v260_v13  ;;  %v784_v13 = vld [vmem:[#allocation10 + $0x1d8] sm:$0xff]  ;;  %v781_v14 = vld [vmem:[#allocation10 + $0x1c0] sm:$0xff]  ;;  %v767_v23 = vld [vmem:[#allocation10 + $0x150] sm:$0xff] }
 0x15c   :  { %v343_v33 = vpop.f32.mrf.mxu0  ;;  %v420_v34 = vpop.f32.mrf.mxu1  ;;  %v758_v24 = vld [vmem:[#allocation10 + $0x108] sm:$0xff]  ;;  %v757_v26 = vld [vmem:[#allocation10 + $0x100] sm:$0xff]  ;;  %v759_v27 = vld [vmem:[#allocation10 + $0x110] sm:$0xff] }
 0x15d   :  { %v344_v37 = vadd.f32 %v343_v33, %v256_v15  ;;  %635 = vmatprep.mubr.f32.mxu0 %v424_v28  ;;  %712 = vmatprep.mubr.f32.mxu1 %v426_v29  ;;  %v421_v38 = vadd.f32 %v420_v34, %v264_v16  ;;  %v427_v41 = vmax.f32 %v342_v30, 0.0  ;;  %v429_v42 = vmax.f32 %v419_v31, 0.0  ;;  %v783_v15 = vld [vmem:[#allocation10 + $0x1d0] sm:$0xff]  ;;  %v774_v16 = vld [vmem:[#allocation10 + $0x188] sm:$0xff]  ;;  %v752_v29 = vld [vmem:[#allocation10 + $0xd8] sm:$0xff] }
 0x15e   :  { %636 = vmatmul.mubr.f32.vlgmr.msra.gmra.mxu0 %v423_v32  ;;  %713 = vmatmul.mubr.f32.vlgmr.msra.gmra.mxu1 %v425_v25  ;;  %v760_v25 = vld [vmem:[#allocation10 + $0x118] sm:$0xff]  ;;  %v750_v28 = vld [vmem:[#allocation10 + $0xc8] sm:$0xff]  ;;  %v749_v30 = vld [vmem:[#allocation10 + $0xc0] sm:$0xff] }
 0x15f   :  { %v428_v43 = vmax.f32 %v344_v37, 0.0  ;;  %v430_v44 = vmax.f32 %v421_v38, 0.0  ;;  %1024 = vmatpush1.msra.mxu0 %v845_v35  ;;  %1101 = vmatpush1.msra.mxu1 %v847_v36  ;;  %v751_v31 = vld [vmem:[#allocation10 + $0xd0] sm:$0xff]  ;;  %v742_v32 = vld [vmem:[#allocation10 + $0x88] sm:$0xff]  ;;  %v744_v33 = vld [vmem:[#allocation10 + $0x98] sm:$0xff] }
 0x160   :  { %1025 = vmatprep.subr.mxu0 %v838_v39  ;;  %1102 = vmatprep.subr.mxu1 %v840_v40  ;;  %v741_v34 = vld [vmem:[#allocation10 + $0x80] sm:$0xff]  ;;  %v743_v35 = vld [vmem:[#allocation10 + $0x90] sm:$0xff]  ;;  %v734_v36 = vld [vmem:[#allocation10 + $0x48] sm:$0xff] }
 0x161   :  { %641 = vmatprep.mubr.f32.mxu0 %v428_v43  ;;  %718 = vmatprep.mubr.f32.mxu1 %v430_v44  ;;  %v736_v37 = vld [vmem:[#allocation10 + $0x58] sm:$0xff]  ;;  %v733_v38 = vld [vmem:[#allocation10 + $0x40] sm:$0xff]  ;;  %v735_v39 = vld [vmem:[#allocation10 + $0x50] sm:$0xff] }
 0x162   :  { %642 = vmatmul.mubr.f32.gmra.mxu0 %v427_v41  ;;  %719 = vmatmul.mubr.f32.gmra.mxu1 %v429_v42  ;;  %v726_v40 = vld [vmem:[#allocation10 + $0x8] sm:$0xff]  ;;  %v728_v41 = vld [vmem:[#allocation10 + $0x18] sm:$0xff]  ;;  %v725_v42 = vld [vmem:[#allocation10] sm:$0xff] }
 0x163   :  { %1026 = vmatpush1.msra.mxu0 %v837_v45  ;;  %1103 = vmatpush1.msra.mxu1 %v839_v46  ;;  %v727_v43 = vld [vmem:[#allocation10 + $0x10] sm:$0xff]  ;;  %v974_v44 = vld [vmem:[#allocation10 + $0x7c8] sm:$0xff]  ;;  %v976_v45 = vld [vmem:[#allocation10 + $0x7d8] sm:$0xff] }
 0x164   :  { %1027 = vmatprep.subr.mxu0 %v830_v47  ;;  %1104 = vmatprep.subr.mxu1 %v832_v48  ;;  %v973_v46 = vld [vmem:[#allocation10 + $0x7c0] sm:$0xff]  ;;  %v975_v47 = vld [vmem:[#allocation10 + $0x7d0] sm:$0xff]  ;;  %v966_v48 = vld [vmem:[#allocation10 + $0x788] sm:$0xff] }
 0x165   :  { %1028 = vmatpush1.msra.mxu0 %v829_v49  ;;  %1105 = vmatpush1.msra.mxu1 %v831_v50  ;;  %v968_v49 = vld [vmem:[#allocation10 + $0x798] sm:$0xff]  ;;  %v965_v50 = vld [vmem:[#allocation10 + $0x780] sm:$0xff] }
 0x166   :  { %1029 = vmatprep.subr.mxu0 %v822_v51  ;;  %1106 = vmatprep.subr.mxu1 %v824_v52  ;;  %v967_v51 = vld [vmem:[#allocation10 + $0x790] sm:$0xff]  ;;  %v958_v52 = vld [vmem:[#allocation10 + $0x748] sm:$0xff] }
 0x167   :  { %1030 = vmatpush1.msra.mxu0 %v821_v53  ;;  %1107 = vmatpush1.msra.mxu1 %v823_v54  ;;  %v960_v53 = vld [vmem:[#allocation10 + $0x758] sm:$0xff]  ;;  %v957_v54 = vld [vmem:[#allocation10 + $0x740] sm:$0xff] }
 0x168   :  { %1031 = vmatprep.subr.mxu0 %v814_v55  ;;  %1108 = vmatprep.subr.mxu1 %v816_v56  ;;  %v959_v55 = vld [vmem:[#allocation10 + $0x750] sm:$0xff]  ;;  %v950_v56 = vld [vmem:[#allocation10 + $0x708] sm:$0xff] }
 0x169   :  { %1032 = vmatpush1.msra.mxu0 %v813_v57  ;;  %1109 = vmatpush1.msra.mxu1 %v815_v58  ;;  %v952_v57 = vld [vmem:[#allocation10 + $0x718] sm:$0xff]  ;;  %v949_v58 = vld [vmem:[#allocation10 + $0x700] sm:$0xff] }
 0x16a   :  { %1033 = vmatprep.subr.mxu0 %v806_v59  ;;  %1110 = vmatprep.subr.mxu1 %v808_v60  ;;  %v951_v59 = vld [vmem:[#allocation10 + $0x710] sm:$0xff]  ;;  %v942_v60 = vld [vmem:[#allocation10 + $0x6c8] sm:$0xff] }
 0x16b   :  { %1034 = vmatpush1.msra.mxu0 %v805_v61  ;;  %1111 = vmatpush1.msra.mxu1 %v807_v62  ;;  %v944_v61 = vld [vmem:[#allocation10 + $0x6d8] sm:$0xff]  ;;  %v941_v62 = vld [vmem:[#allocation10 + $0x6c0] sm:$0xff] }
 0x16c   :  { %1035 = vmatprep.subr.mxu0 %v798_v63  ;;  %1112 = vmatprep.subr.mxu1 %v800_v0  ;;  %v943_v63 = vld [vmem:[#allocation10 + $0x6d0] sm:$0xff]  ;;  %v934_v0 = vld [vmem:[#allocation10 + $0x688] sm:$0xff] }
 0x16d   :  { %1036 = vmatpush1.msra.mxu0 %v797_v1  ;;  %1113 = vmatpush1.msra.mxu1 %v799_v2  ;;  %v936_v1 = vld [vmem:[#allocation10 + $0x698] sm:$0xff]  ;;  %v933_v2 = vld [vmem:[#allocation10 + $0x680] sm:$0xff] }
 0x16e   :  { %1037 = vmatprep.subr.mxu0 %v790_v3  ;;  %1114 = vmatprep.subr.mxu1 %v792_v4  ;;  %v935_v3 = vld [vmem:[#allocation10 + $0x690] sm:$0xff]  ;;  %v926_v4 = vld [vmem:[#allocation10 + $0x648] sm:$0xff] }
 0x16f   :  { %1038 = vmatpush1.msra.mxu0 %v789_v5  ;;  %1115 = vmatpush1.msra.mxu1 %v791_v6  ;;  %v928_v5 = vld [vmem:[#allocation10 + $0x658] sm:$0xff]  ;;  %v925_v6 = vld [vmem:[#allocation10 + $0x640] sm:$0xff] }
 0x170   :  { %1039 = vmatprep.subr.mxu0 %v782_v10  ;;  %1116 = vmatprep.subr.mxu1 %v784_v13  ;;  %v927_v10 = vld [vmem:[#allocation10 + $0x650] sm:$0xff]  ;;  %v918_v13 = vld [vmem:[#allocation10 + $0x608] sm:$0xff] }
 0x171   :  { %1040 = vmatpush1.msra.mxu0 %v781_v14  ;;  %1117 = vmatpush1.msra.mxu1 %v783_v15  ;;  %v920_v14 = vld [vmem:[#allocation10 + $0x618] sm:$0xff]  ;;  %v917_v15 = vld [vmem:[#allocation10 + $0x600] sm:$0xff] }
 0x172   :  { %1041 = vmatprep.subr.mxu0 %v774_v16  ;;  %1118 = vmatprep.subr.mxu1 %v776_v17  ;;  %v919_v16 = vld [vmem:[#allocation10 + $0x610] sm:$0xff]  ;;  %v910_v17 = vld [vmem:[#allocation10 + $0x5c8] sm:$0xff] }
 0x173   :  { %1042 = vmatpush1.msra.mxu0 %v773_v18  ;;  %1119 = vmatpush1.msra.mxu1 %v775_v19  ;;  %v912_v18 = vld [vmem:[#allocation10 + $0x5d8] sm:$0xff]  ;;  %v909_v19 = vld [vmem:[#allocation10 + $0x5c0] sm:$0xff] }
 0x174   :  { %1043 = vmatprep.subr.mxu0 %v766_v20  ;;  %1120 = vmatprep.subr.mxu1 %v768_v21  ;;  %v911_v20 = vld [vmem:[#allocation10 + $0x5d0] sm:$0xff]  ;;  %v902_v21 = vld [vmem:[#allocation10 + $0x588] sm:$0xff] }
 0x175   :  { %1044 = vmatpush1.msra.mxu0 %v765_v22  ;;  %1121 = vmatpush1.msra.mxu1 %v767_v23  ;;  %v904_v22 = vld [vmem:[#allocation10 + $0x598] sm:$0xff]  ;;  %v901_v23 = vld [vmem:[#allocation10 + $0x580] sm:$0xff] }
 0x176   :  { %1045 = vmatprep.subr.mxu0 %v758_v24  ;;  %1122 = vmatprep.subr.mxu1 %v760_v25  ;;  %v903_v24 = vld [vmem:[#allocation10 + $0x590] sm:$0xff]  ;;  %v894_v25 = vld [vmem:[#allocation10 + $0x548] sm:$0xff] }
 0x177   :  { %1046 = vmatpush1.msra.mxu0 %v757_v26  ;;  %1123 = vmatpush1.msra.mxu1 %v759_v27  ;;  %v896_v26 = vld [vmem:[#allocation10 + $0x558] sm:$0xff]  ;;  %v893_v27 = vld [vmem:[#allocation10 + $0x540] sm:$0xff] }
 0x178   :  { %1047 = vmatprep.subr.mxu0 %v750_v28  ;;  %1124 = vmatprep.subr.mxu1 %v752_v29  ;;  %v895_v28 = vld [vmem:[#allocation10 + $0x550] sm:$0xff]  ;;  %v886_v29 = vld [vmem:[#allocation10 + $0x508] sm:$0xff] }
 0x179   :  { %1048 = vmatpush1.msra.mxu0 %v749_v30  ;;  %1125 = vmatpush1.msra.mxu1 %v751_v31  ;;  %v888_v30 = vld [vmem:[#allocation10 + $0x518] sm:$0xff]  ;;  %v885_v31 = vld [vmem:[#allocation10 + $0x500] sm:$0xff] }
 0x17a   :  { %1049 = vmatprep.subr.mxu0 %v742_v32  ;;  %1126 = vmatprep.subr.mxu1 %v744_v33  ;;  %v887_v32 = vld [vmem:[#allocation10 + $0x510] sm:$0xff]  ;;  %v878_v33 = vld [vmem:[#allocation10 + $0x4c8] sm:$0xff] }
 0x17b   :  { %1050 = vmatpush1.msra.mxu0 %v741_v34  ;;  %1127 = vmatpush1.msra.mxu1 %v743_v35  ;;  %v880_v34 = vld [vmem:[#allocation10 + $0x4d8] sm:$0xff]  ;;  %v877_v35 = vld [vmem:[#allocation10 + $0x4c0] sm:$0xff] }
 0x17c   :  { %1051 = vmatprep.subr.mxu0 %v734_v36  ;;  %1128 = vmatprep.subr.mxu1 %v736_v37  ;;  %v879_v36 = vld [vmem:[#allocation10 + $0x4d0] sm:$0xff]  ;;  %v870_v37 = vld [vmem:[#allocation10 + $0x488] sm:$0xff] }
 0x17d   :  { %1052 = vmatpush1.msra.mxu0 %v733_v38  ;;  %1129 = vmatpush1.msra.mxu1 %v735_v39  ;;  %v872_v38 = vld [vmem:[#allocation10 + $0x498] sm:$0xff]  ;;  %v869_v39 = vld [vmem:[#allocation10 + $0x480] sm:$0xff] }
 0x17e   :  { %1053 = vmatprep.subr.mxu0 %v726_v40  ;;  %1130 = vmatprep.subr.mxu1 %v728_v41  ;;  %v871_v40 = vld [vmem:[#allocation10 + $0x490] sm:$0xff]  ;;  %v862_v41 = vld [vmem:[#allocation10 + $0x448] sm:$0xff] }
 0x17f   :  { %1054 = vmatpush1.msra.mxu0 %v725_v42  ;;  %1131 = vmatpush1.msra.mxu1 %v727_v43  ;;  %v864_v42 = vld [vmem:[#allocation10 + $0x458] sm:$0xff]  ;;  %v861_v43 = vld [vmem:[#allocation10 + $0x440] sm:$0xff] }
 0x180   :  { %1055 = vmatprep.subr.mxu0 %v974_v44  ;;  %1132 = vmatprep.subr.mxu1 %v976_v45  ;;  %v863_v44 = vld [vmem:[#allocation10 + $0x450] sm:$0xff]  ;;  %v854_v45 = vld [vmem:[#allocation10 + $0x408] sm:$0xff] }
 0x181   :  { %1056 = vmatpush2.msra.mxu0 %v973_v46  ;;  %1133 = vmatpush2.msra.mxu1 %v975_v47  ;;  %v856_v46 = vld [vmem:[#allocation10 + $0x418] sm:$0xff]  ;;  %v853_v47 = vld [vmem:[#allocation10 + $0x400] sm:$0xff] }
 0x182   :  { %1057 = vmatprep.subr.mxu0 %v966_v48  ;;  %1134 = vmatprep.subr.mxu1 %v968_v49  ;;  %v855_v48 = vld [vmem:[#allocation10 + $0x410] sm:$0xff]  ;;  %v850_v49 = vld [vmem:[#allocation10 + $0x3e8] sm:$0xff] }
 0x183   :  { %1058 = vmatpush2.msra.mxu0 %v965_v50  ;;  %1135 = vmatpush2.msra.mxu1 %v967_v51  ;;  %v852_v50 = vld [vmem:[#allocation10 + $0x3f8] sm:$0xff] }
 0x184   :  { %1059 = vmatprep.subr.mxu0 %v958_v52  ;;  %1136 = vmatprep.subr.mxu1 %v960_v53  ;;  %v559_v51 = vld [vmem:[#allocation9] sm:$0x3] }
 0x185   :  { %1060 = vmatpush2.msra.mxu0 %v957_v54  ;;  %1137 = vmatpush2.msra.mxu1 %v959_v55  ;;  %v564_v52 = vrot.slane %v559_v51, %v1650_v9  ;;  %v568_v53 = vrot.slane %v559_v51, %v1653_v11  ;;  %v769_v51 = vld [vmem:[#allocation10 + $0x160] sm:$0xff] }
 0x186   :  { %1061 = vmatprep.subr.mxu0 %v950_v56  ;;  %1138 = vmatprep.subr.mxu1 %v952_v57 }
 0x187   :  { %1062 = vmatpush2.msra.mxu0 %v949_v58  ;;  %1139 = vmatpush2.msra.mxu1 %v951_v59 }
 0x188   :  { %1063 = vmatprep.subr.mxu0 %v942_v60  ;;  %1140 = vmatprep.subr.mxu1 %v944_v61 }
 0x189   :  { %1064 = vmatpush2.msra.mxu0 %v941_v62  ;;  %1141 = vmatpush2.msra.mxu1 %v943_v63 }
 0x18a   :  { %1065 = vmatprep.subr.mxu0 %v934_v0  ;;  %1142 = vmatprep.subr.mxu1 %v936_v1 }
 0x18b   :  { %1066 = vmatpush2.msra.mxu0 %v933_v2  ;;  %1143 = vmatpush2.msra.mxu1 %v935_v3  ;;  %v849_v3 = vld [vmem:[#allocation10 + $0x3e0] sm:$0xff] }
 0x18c   :  { %1067 = vmatprep.subr.mxu0 %v926_v4  ;;  %1144 = vmatprep.subr.mxu1 %v928_v5  ;;  %v851_v4 = vld [vmem:[#allocation10 + $0x3f0] sm:$0xff] }
 0x18d   :  { %1068 = vmatpush2.msra.mxu0 %v925_v6  ;;  %1145 = vmatpush2.msra.mxu1 %v927_v10  ;;  %v842_v6 = vld [vmem:[#allocation10 + $0x3a8] sm:$0xff]  ;;  %v844_v10 = vld [vmem:[#allocation10 + $0x3b8] sm:$0xff] }
 0x18e   :  { %1069 = vmatprep.subr.mxu0 %v918_v13  ;;  %1146 = vmatprep.subr.mxu1 %v920_v14  ;;  %v841_v13 = vld [vmem:[#allocation10 + $0x3a0] sm:$0xff]  ;;  %v843_v14 = vld [vmem:[#allocation10 + $0x3b0] sm:$0xff] }
 0x18f   :  { %1070 = vmatpush2.msra.mxu0 %v917_v15  ;;  %1147 = vmatpush2.msra.mxu1 %v919_v16 }
 0x190   :  { %1071 = vmatprep.subr.mxu0 %v910_v17  ;;  %1148 = vmatprep.subr.mxu1 %v912_v18  ;;  %v834_v17 = vld [vmem:[#allocation10 + $0x368] sm:$0xff]  ;;  %v836_v18 = vld [vmem:[#allocation10 + $0x378] sm:$0xff] }
 0x191   :  { %1072 = vmatpush2.msra.mxu0 %v909_v19  ;;  %1149 = vmatpush2.msra.mxu1 %v911_v20  ;;  %v833_v19 = vld [vmem:[#allocation10 + $0x360] sm:$0xff]  ;;  %v835_v20 = vld [vmem:[#allocation10 + $0x370] sm:$0xff] }
 0x192   :  { %1073 = vmatprep.subr.mxu0 %v902_v21  ;;  %1150 = vmatprep.subr.mxu1 %v904_v22  ;;  %v826_v21 = vld [vmem:[#allocation10 + $0x328] sm:$0xff]  ;;  %v828_v22 = vld [vmem:[#allocation10 + $0x338] sm:$0xff] }
 0x193   :  { %1074 = vmatpush2.msra.mxu0 %v901_v23  ;;  %1151 = vmatpush2.msra.mxu1 %v903_v24  ;;  %v825_v23 = vld [vmem:[#allocation10 + $0x320] sm:$0xff]  ;;  %v827_v24 = vld [vmem:[#allocation10 + $0x330] sm:$0xff] }
 0x194   :  { %1075 = vmatprep.subr.mxu0 %v894_v25  ;;  %1152 = vmatprep.subr.mxu1 %v896_v26  ;;  %v818_v25 = vld [vmem:[#allocation10 + $0x2e8] sm:$0xff]  ;;  %v820_v26 = vld [vmem:[#allocation10 + $0x2f8] sm:$0xff] }
 0x195   :  { %1076 = vmatpush2.msra.mxu0 %v893_v27  ;;  %1153 = vmatpush2.msra.mxu1 %v895_v28  ;;  %v817_v27 = vld [vmem:[#allocation10 + $0x2e0] sm:$0xff]  ;;  %v819_v28 = vld [vmem:[#allocation10 + $0x2f0] sm:$0xff] }
 0x196   :  { %1077 = vmatprep.subr.mxu0 %v886_v29  ;;  %1154 = vmatprep.subr.mxu1 %v888_v30  ;;  %v810_v29 = vld [vmem:[#allocation10 + $0x2a8] sm:$0xff]  ;;  %v812_v30 = vld [vmem:[#allocation10 + $0x2b8] sm:$0xff] }
 0x197   :  { %1078 = vmatpush2.msra.mxu0 %v885_v31  ;;  %1155 = vmatpush2.msra.mxu1 %v887_v32  ;;  %v809_v31 = vld [vmem:[#allocation10 + $0x2a0] sm:$0xff]  ;;  %v811_v32 = vld [vmem:[#allocation10 + $0x2b0] sm:$0xff] }
 0x198   :  { %1079 = vmatprep.subr.mxu0 %v878_v33  ;;  %1156 = vmatprep.subr.mxu1 %v880_v34  ;;  %v802_v33 = vld [vmem:[#allocation10 + $0x268] sm:$0xff]  ;;  %v804_v34 = vld [vmem:[#allocation10 + $0x278] sm:$0xff] }
 0x199   :  { %1080 = vmatpush2.msra.mxu0 %v877_v35  ;;  %1157 = vmatpush2.msra.mxu1 %v879_v36  ;;  %v801_v35 = vld [vmem:[#allocation10 + $0x260] sm:$0xff]  ;;  %v803_v36 = vld [vmem:[#allocation10 + $0x270] sm:$0xff] }
 0x19a   :  { %1081 = vmatprep.subr.mxu0 %v870_v37  ;;  %1158 = vmatprep.subr.mxu1 %v872_v38  ;;  %v794_v37 = vld [vmem:[#allocation10 + $0x228] sm:$0xff]  ;;  %v796_v38 = vld [vmem:[#allocation10 + $0x238] sm:$0xff] }
 0x19b   :  { %1082 = vmatpush2.msra.mxu0 %v869_v39  ;;  %1159 = vmatpush2.msra.mxu1 %v871_v40  ;;  %v793_v39 = vld [vmem:[#allocation10 + $0x220] sm:$0xff]  ;;  %v795_v40 = vld [vmem:[#allocation10 + $0x230] sm:$0xff] }
 0x19c   :  { %1083 = vmatprep.subr.mxu0 %v862_v41  ;;  %1160 = vmatprep.subr.mxu1 %v864_v42  ;;  %v786_v41 = vld [vmem:[#allocation10 + $0x1e8] sm:$0xff]  ;;  %v788_v42 = vld [vmem:[#allocation10 + $0x1f8] sm:$0xff] }
 0x19d   :  { %1084 = vmatpush2.msra.mxu0 %v861_v43  ;;  %1161 = vmatpush2.msra.mxu1 %v863_v44  ;;  %v785_v43 = vld [vmem:[#allocation10 + $0x1e0] sm:$0xff]  ;;  %v787_v44 = vld [vmem:[#allocation10 + $0x1f0] sm:$0xff] }
 0x19e   :  { %1085 = vmatprep.subr.mxu0 %v854_v45  ;;  %1162 = vmatprep.subr.mxu1 %v856_v46  ;;  %v778_v45 = vld [vmem:[#allocation10 + $0x1a8] sm:$0xff]  ;;  %v780_v46 = vld [vmem:[#allocation10 + $0x1b8] sm:$0xff] }
 0x19f   :  { %1086 = vmatpush2.msra.mxu0 %v853_v47  ;;  %1163 = vmatpush2.msra.mxu1 %v855_v48  ;;  %v777_v47 = vld [vmem:[#allocation10 + $0x1a0] sm:$0xff]  ;;  %v779_v48 = vld [vmem:[#allocation10 + $0x1b0] sm:$0xff] }
 0x1a0   :  { %1177 = vmatprep.subr.mxu0 %v850_v49  ;;  %1254 = vmatprep.subr.mxu1 %v852_v50  ;;  %v770_v49 = vld [vmem:[#allocation10 + $0x168] sm:$0xff]  ;;  %v772_v50 = vld [vmem:[#allocation10 + $0x178] sm:$0xff] }
 0x21e   :  { %v637_v54 = vpop.f32.mrf.mxu0  ;;  %v714_v55 = vpop.f32.mrf.mxu1 }
 0x21f   :  { %v638_v56 = vadd.f32 %v637_v54, %v564_v52  ;;  %v764_v54 = vld [vmem:[#allocation10 + $0x138] sm:$0xff] }
 0x220   :  { %v639_v57 = vpop.f32.mrf.mxu0  ;;  %v716_v58 = vpop.f32.mrf.mxu1 }
 0x221   :  { %v640_v59 = vadd.f32 %v639_v57, %v568_v53  ;;  %v1664_v63 = vadd.f32 %v714_v55, %v638_v56  ;;  %v761_v55 = vld [vmem:[#allocation10 + $0x120] sm:$0xff]  ;;  %v763_v56 = vld [vmem:[#allocation10 + $0x130] sm:$0xff]  ;;  %v754_v57 = vld [vmem:[#allocation10 + $0xe8] sm:$0xff] }
 0x222   :  { %v643_v60 = vpop.f32.mrf.mxu0  ;;  %v720_v61 = vpop.f32.mrf.mxu1 }
 0x223   :  { %v717_v62 = vadd.f32 %v716_v58, %v640_v59  ;;  %v644_v0 = vadd.f32 %v643_v60, %v564_v52  ;;  %v771_v52 = vld [vmem:[#allocation10 + $0x170] sm:$0xff]  ;;  %v756_v58 = vld [vmem:[#allocation10 + $0xf8] sm:$0xff]  ;;  %v753_v59 = vld [vmem:[#allocation10 + $0xe0] sm:$0xff] }
 0x224   :  { %v645_v1 = vpop.f32.mrf.mxu0  ;;  %v722_v2 = vpop.f32.mrf.mxu1  ;;  %v755_v60 = vld [vmem:[#allocation10 + $0xf0] sm:$0xff] }
 0x225   :  { %v646_v5 = vadd.f32 %v645_v1, %v568_v53  ;;  %1087 = vmatprep.mubr.f32.mxu0 %v717_v62  ;;  %1164 = vmatprep.mubr.f32.mxu1 %v717_v62  ;;  %v1670_v16 = vadd.f32 %v720_v61, %v644_v0  ;;  %v762_v53 = vld [vmem:[#allocation10 + $0x128] sm:$0xff]  ;;  %v745_v0 = vld [vmem:[#allocation10 + $0xa0] sm:$0xff]  ;;  %v747_v1 = vld [vmem:[#allocation10 + $0xb0] sm:$0xff] }
 0x226   :  { %1088 = vmatmul.mubr.f32.vlgmr.msra.gmra.mxu0 %v1664_v63  ;;  %1165 = vmatmul.mubr.f32.vlgmr.msra.gmra.mxu1 %v1664_v63  ;;  %v746_v61 = vld [vmem:[#allocation10 + $0xa8] sm:$0xff] }
 0x227   :  { %v1668_v15 = vadd.f32 %v722_v2, %v646_v5  ;;  %1178 = vmatpush1.msra.mxu0 %v849_v3  ;;  %1255 = vmatpush1.msra.mxu1 %v851_v4  ;;  %v738_v2 = vld [vmem:[#allocation10 + $0x68] sm:$0xff]  ;;  %v740_v3 = vld [vmem:[#allocation10 + $0x78] sm:$0xff]  ;;  %v737_v4 = vld [vmem:[#allocation10 + $0x60] sm:$0xff] }
 0x228   :  { %1179 = vmatprep.subr.mxu0 %v842_v6  ;;  %1256 = vmatprep.subr.mxu1 %v844_v10  ;;  %v739_v5 = vld [vmem:[#allocation10 + $0x70] sm:$0xff]  ;;  %v730_v6 = vld [vmem:[#allocation10 + $0x28] sm:$0xff]  ;;  %v732_v10 = vld [vmem:[#allocation10 + $0x38] sm:$0xff] }
 0x229   :  { %1180 = vmatpush1.msra.mxu0 %v841_v13  ;;  %1257 = vmatpush1.msra.mxu1 %v843_v14  ;;  %v729_v13 = vld [vmem:[#allocation10 + $0x20] sm:$0xff]  ;;  %v731_v14 = vld [vmem:[#allocation10 + $0x30] sm:$0xff] }
 0x22a   :  { %1093 = vmatprep.mubr.f32.mxu0 %v1668_v15  ;;  %1170 = vmatprep.mubr.f32.mxu1 %v1668_v15 }
 0x22b   :  { %1181 = vmatprep.subr.mxu0 %v834_v17  ;;  %1258 = vmatprep.subr.mxu1 %v836_v18  ;;  %v978_v17 = vld [vmem:[#allocation10 + $0x7e8] sm:$0xff]  ;;  %v980_v18 = vld [vmem:[#allocation10 + $0x7f8] sm:$0xff] }
 0x22c   :  { %1094 = vmatmul.mubr.f32.gmra.mxu0 %v1670_v16  ;;  %1171 = vmatmul.mubr.f32.gmra.mxu1 %v1670_v16 }
 0x22d   :  { %1182 = vmatpush1.msra.mxu0 %v833_v19  ;;  %1259 = vmatpush1.msra.mxu1 %v835_v20  ;;  %v977_v19 = vld [vmem:[#allocation10 + $0x7e0] sm:$0xff]  ;;  %v979_v20 = vld [vmem:[#allocation10 + $0x7f0] sm:$0xff] }
 0x22e   :  { %1183 = vmatprep.subr.mxu0 %v826_v21  ;;  %1241 = vmatprep.mubr.f32.mxu0 %v717_v62  ;;  %v970_v21 = vld [vmem:[#allocation10 + $0x7a8] sm:$0xff] }
 0x22f   :  { %1260 = vmatprep.subr.mxu1 %v828_v22  ;;  %1318 = vmatprep.mubr.f32.mxu1 %v717_v62  ;;  %v748_v62 = vld [vmem:[#allocation10 + $0xb8] sm:$0xff] }
 0x230   :  { %1184 = vmatpush1.msra.mxu0 %v825_v23  ;;  %1261 = vmatpush1.msra.mxu1 %v827_v24  ;;  %v972_v22 = vld [vmem:[#allocation10 + $0x7b8] sm:$0xff]  ;;  %v969_v23 = vld [vmem:[#allocation10 + $0x7a0] sm:$0xff]  ;;  %v971_v24 = vld [vmem:[#allocation10 + $0x7b0] sm:$0xff] }
 0x231   :  { %1185 = vmatprep.subr.mxu0 %v818_v25  ;;  %1262 = vmatprep.subr.mxu1 %v820_v26  ;;  %v962_v25 = vld [vmem:[#allocation10 + $0x768] sm:$0xff]  ;;  %v964_v26 = vld [vmem:[#allocation10 + $0x778] sm:$0xff] }
 0x232   :  { %1186 = vmatpush1.msra.mxu0 %v817_v27  ;;  %1263 = vmatpush1.msra.mxu1 %v819_v28  ;;  %v961_v27 = vld [vmem:[#allocation10 + $0x760] sm:$0xff]  ;;  %v963_v28 = vld [vmem:[#allocation10 + $0x770] sm:$0xff] }
 0x233   :  { %1187 = vmatprep.subr.mxu0 %v810_v29  ;;  %1264 = vmatprep.subr.mxu1 %v812_v30  ;;  %v954_v29 = vld [vmem:[#allocation10 + $0x728] sm:$0xff]  ;;  %v956_v30 = vld [vmem:[#allocation10 + $0x738] sm:$0xff] }
 0x234   :  { %1188 = vmatpush1.msra.mxu0 %v809_v31  ;;  %1265 = vmatpush1.msra.mxu1 %v811_v32  ;;  %v953_v31 = vld [vmem:[#allocation10 + $0x720] sm:$0xff]  ;;  %v955_v32 = vld [vmem:[#allocation10 + $0x730] sm:$0xff] }
 0x235   :  { %1189 = vmatprep.subr.mxu0 %v802_v33  ;;  %1266 = vmatprep.subr.mxu1 %v804_v34  ;;  %v946_v33 = vld [vmem:[#allocation10 + $0x6e8] sm:$0xff]  ;;  %v948_v34 = vld [vmem:[#allocation10 + $0x6f8] sm:$0xff] }
 0x236   :  { %1190 = vmatpush1.msra.mxu0 %v801_v35  ;;  %1267 = vmatpush1.msra.mxu1 %v803_v36  ;;  %v945_v35 = vld [vmem:[#allocation10 + $0x6e0] sm:$0xff]  ;;  %v947_v36 = vld [vmem:[#allocation10 + $0x6f0] sm:$0xff] }
 0x237   :  { %1191 = vmatprep.subr.mxu0 %v794_v37  ;;  %1268 = vmatprep.subr.mxu1 %v796_v38  ;;  %v938_v37 = vld [vmem:[#allocation10 + $0x6a8] sm:$0xff]  ;;  %v940_v38 = vld [vmem:[#allocation10 + $0x6b8] sm:$0xff] }
 0x238   :  { %1192 = vmatpush1.msra.mxu0 %v793_v39  ;;  %1269 = vmatpush1.msra.mxu1 %v795_v40  ;;  %v937_v39 = vld [vmem:[#allocation10 + $0x6a0] sm:$0xff]  ;;  %v939_v40 = vld [vmem:[#allocation10 + $0x6b0] sm:$0xff] }
 0x239   :  { %1193 = vmatprep.subr.mxu0 %v786_v41  ;;  %1270 = vmatprep.subr.mxu1 %v788_v42  ;;  %v930_v41 = vld [vmem:[#allocation10 + $0x668] sm:$0xff]  ;;  %v932_v42 = vld [vmem:[#allocation10 + $0x678] sm:$0xff] }
 0x23a   :  { %1194 = vmatpush1.msra.mxu0 %v785_v43  ;;  %1271 = vmatpush1.msra.mxu1 %v787_v44  ;;  %v929_v43 = vld [vmem:[#allocation10 + $0x660] sm:$0xff]  ;;  %v931_v44 = vld [vmem:[#allocation10 + $0x670] sm:$0xff] }
 0x23b   :  { %1195 = vmatprep.subr.mxu0 %v778_v45  ;;  %1272 = vmatprep.subr.mxu1 %v780_v46  ;;  %v922_v45 = vld [vmem:[#allocation10 + $0x628] sm:$0xff]  ;;  %v924_v46 = vld [vmem:[#allocation10 + $0x638] sm:$0xff] }
 0x23c   :  { %1196 = vmatpush1.msra.mxu0 %v777_v47  ;;  %1273 = vmatpush1.msra.mxu1 %v779_v48  ;;  %v921_v47 = vld [vmem:[#allocation10 + $0x620] sm:$0xff]  ;;  %v923_v48 = vld [vmem:[#allocation10 + $0x630] sm:$0xff] }
 0x23d   :  { %1197 = vmatprep.subr.mxu0 %v770_v49  ;;  %1274 = vmatprep.subr.mxu1 %v772_v50  ;;  %v914_v49 = vld [vmem:[#allocation10 + $0x5e8] sm:$0xff]  ;;  %v916_v50 = vld [vmem:[#allocation10 + $0x5f8] sm:$0xff] }
 0x23e   :  { %1198 = vmatpush1.msra.mxu0 %v769_v51  ;;  %1275 = vmatpush1.msra.mxu1 %v771_v52  ;;  %v913_v51 = vld [vmem:[#allocation10 + $0x5e0] sm:$0xff]  ;;  %v915_v52 = vld [vmem:[#allocation10 + $0x5f0] sm:$0xff] }
 0x23f   :  { %1199 = vmatprep.subr.mxu0 %v762_v53  ;;  %1276 = vmatprep.subr.mxu1 %v764_v54  ;;  %v906_v53 = vld [vmem:[#allocation10 + $0x5a8] sm:$0xff]  ;;  %v908_v54 = vld [vmem:[#allocation10 + $0x5b8] sm:$0xff] }
 0x240   :  { %1200 = vmatpush1.msra.mxu0 %v761_v55  ;;  %1277 = vmatpush1.msra.mxu1 %v763_v56  ;;  %v905_v55 = vld [vmem:[#allocation10 + $0x5a0] sm:$0xff]  ;;  %v907_v56 = vld [vmem:[#allocation10 + $0x5b0] sm:$0xff] }
 0x241   :  { %1201 = vmatprep.subr.mxu0 %v754_v57  ;;  %1278 = vmatprep.subr.mxu1 %v756_v58  ;;  %v898_v57 = vld [vmem:[#allocation10 + $0x568] sm:$0xff]  ;;  %v900_v58 = vld [vmem:[#allocation10 + $0x578] sm:$0xff] }
 0x242   :  { %1202 = vmatpush1.msra.mxu0 %v753_v59  ;;  %1279 = vmatpush1.msra.mxu1 %v755_v60  ;;  %v897_v59 = vld [vmem:[#allocation10 + $0x560] sm:$0xff]  ;;  %v899_v60 = vld [vmem:[#allocation10 + $0x570] sm:$0xff] }
 0x243   :  { %1203 = vmatprep.subr.mxu0 %v746_v61  ;;  %1280 = vmatprep.subr.mxu1 %v748_v62  ;;  %v890_v61 = vld [vmem:[#allocation10 + $0x528] sm:$0xff]  ;;  %v892_v62 = vld [vmem:[#allocation10 + $0x538] sm:$0xff] }
 0x244   :  { %1204 = vmatpush1.msra.mxu0 %v745_v0  ;;  %1281 = vmatpush1.msra.mxu1 %v747_v1  ;;  %v889_v0 = vld [vmem:[#allocation10 + $0x520] sm:$0xff]  ;;  %v891_v1 = vld [vmem:[#allocation10 + $0x530] sm:$0xff] }
 0x245   :  { %1205 = vmatprep.subr.mxu0 %v738_v2  ;;  %1282 = vmatprep.subr.mxu1 %v740_v3  ;;  %v882_v2 = vld [vmem:[#allocation10 + $0x4e8] sm:$0xff]  ;;  %v884_v3 = vld [vmem:[#allocation10 + $0x4f8] sm:$0xff] }
 0x246   :  { %1206 = vmatpush1.msra.mxu0 %v737_v4  ;;  %1283 = vmatpush1.msra.mxu1 %v739_v5  ;;  %v881_v4 = vld [vmem:[#allocation10 + $0x4e0] sm:$0xff]  ;;  %v883_v5 = vld [vmem:[#allocation10 + $0x4f0] sm:$0xff] }
 0x247   :  { %1207 = vmatprep.subr.mxu0 %v730_v6  ;;  %1284 = vmatprep.subr.mxu1 %v732_v10  ;;  %v874_v6 = vld [vmem:[#allocation10 + $0x4a8] sm:$0xff]  ;;  %v876_v10 = vld [vmem:[#allocation10 + $0x4b8] sm:$0xff] }
 0x248   :  { %1208 = vmatpush1.msra.mxu0 %v729_v13  ;;  %1285 = vmatpush1.msra.mxu1 %v731_v14  ;;  %v873_v13 = vld [vmem:[#allocation10 + $0x4a0] sm:$0xff]  ;;  %v875_v14 = vld [vmem:[#allocation10 + $0x4b0] sm:$0xff] }
 0x249   :  { %1209 = vmatprep.subr.mxu0 %v978_v17  ;;  %1286 = vmatprep.subr.mxu1 %v980_v18  ;;  %v866_v17 = vld [vmem:[#allocation10 + $0x468] sm:$0xff]  ;;  %v868_v18 = vld [vmem:[#allocation10 + $0x478] sm:$0xff] }
 0x24a   :  { %1210 = vmatpush2.msra.mxu0 %v977_v19  ;;  %1287 = vmatpush2.msra.mxu1 %v979_v20  ;;  %v865_v19 = vld [vmem:[#allocation10 + $0x460] sm:$0xff]  ;;  %v867_v20 = vld [vmem:[#allocation10 + $0x470] sm:$0xff] }
 0x24b   :  { %1211 = vmatprep.subr.mxu0 %v970_v21  ;;  %1288 = vmatprep.subr.mxu1 %v972_v22  ;;  %v858_v21 = vld [vmem:[#allocation10 + $0x428] sm:$0xff]  ;;  %v860_v22 = vld [vmem:[#allocation10 + $0x438] sm:$0xff] }
 0x24c   :  { %1212 = vmatpush2.msra.mxu0 %v969_v23  ;;  %1289 = vmatpush2.msra.mxu1 %v971_v24  ;;  %v857_v23 = vld [vmem:[#allocation10 + $0x420] sm:$0xff]  ;;  %v859_v24 = vld [vmem:[#allocation10 + $0x430] sm:$0xff] }
 0x24d   :  { %1213 = vmatprep.subr.mxu0 %v962_v25  ;;  %1290 = vmatprep.subr.mxu1 %v964_v26  ;;  %v981_v25 = vld [vmem:[#allocation12] sm:$0xff] }
 0x24e   :  { %1214 = vmatpush2.msra.mxu0 %v961_v27  ;;  %1291 = vmatpush2.msra.mxu1 %v963_v28  ;;  %v986_v26 = vrot.slane %v981_v25, %v1650_v9  ;;  %v994_v27 = vrot.slane %v981_v25, %v259_v8  ;;  %v990_v28 = vrot.slane %v981_v25, %v1653_v11 }
 0x24f   :  { %1215 = vmatprep.subr.mxu0 %v954_v29  ;;  %1292 = vmatprep.subr.mxu1 %v956_v30  ;;  %v998_v29 = vrot.slane %v981_v25, %v263_v12 }
 0x250   :  { %1216 = vmatpush2.msra.mxu0 %v953_v31  ;;  %1293 = vmatpush2.msra.mxu1 %v955_v32 }
 0x251   :  { %1217 = vmatprep.subr.mxu0 %v946_v33  ;;  %1294 = vmatprep.subr.mxu1 %v948_v34 }
 0x252   :  { %1218 = vmatpush2.msra.mxu0 %v945_v35  ;;  %1295 = vmatpush2.msra.mxu1 %v947_v36 }
 0x253   :  { %1219 = vmatprep.subr.mxu0 %v938_v37  ;;  %1296 = vmatprep.subr.mxu1 %v940_v38 }
 0x254   :  { %1220 = vmatpush2.msra.mxu0 %v937_v39  ;;  %1297 = vmatpush2.msra.mxu1 %v939_v40 }
 0x255   :  { %1221 = vmatprep.subr.mxu0 %v930_v41  ;;  %1298 = vmatprep.subr.mxu1 %v932_v42 }
 0x256   :  { %1222 = vmatpush2.msra.mxu0 %v929_v43  ;;  %1299 = vmatpush2.msra.mxu1 %v931_v44  ;;  %v1001_v43 = vsub.s32 4, %v1646_v7  ;;  %v1009_v44 = vsub.s32 6, %v1646_v7 }
 0x257   :  { %1223 = vmatprep.subr.mxu0 %v922_v45  ;;  %1300 = vmatprep.subr.mxu1 %v924_v46  ;;  %v1005_v45 = vsub.s32 5, %v1646_v7  ;;  %v1013_v46 = vsub.s32 7, %v1646_v7 }
 0x258   :  { %1224 = vmatpush2.msra.mxu0 %v921_v47  ;;  %1301 = vmatpush2.msra.mxu1 %v923_v48  ;;  %v1002_v47 = vrot.slane %v981_v25, %v1001_v43  ;;  %v1010_v48 = vrot.slane %v981_v25, %v1009_v44 }
 0x259   :  { %1225 = vmatprep.subr.mxu0 %v914_v49  ;;  %1302 = vmatprep.subr.mxu1 %v916_v50  ;;  %v1006_v49 = vrot.slane %v981_v25, %v1005_v45  ;;  %v1014_v50 = vrot.slane %v981_v25, %v1013_v46 }
 0x25a   :  { %1226 = vmatpush2.msra.mxu0 %v913_v51  ;;  %1303 = vmatpush2.msra.mxu1 %v915_v52 }
 0x25b   :  { %1227 = vmatprep.subr.mxu0 %v906_v53  ;;  %1304 = vmatprep.subr.mxu1 %v908_v54 }
 0x25c   :  { %1228 = vmatpush2.msra.mxu0 %v905_v55  ;;  %1305 = vmatpush2.msra.mxu1 %v907_v56 }
 0x25d   :  { %1229 = vmatprep.subr.mxu0 %v898_v57  ;;  %1306 = vmatprep.subr.mxu1 %v900_v58 }
 0x25e   :  { %1230 = vmatpush2.msra.mxu0 %v897_v59  ;;  %1307 = vmatpush2.msra.mxu1 %v899_v60 }
 0x25f   :  { %1231 = vmatprep.subr.mxu0 %v890_v61  ;;  %1308 = vmatprep.subr.mxu1 %v892_v62 }
 0x260   :  { %1232 = vmatpush2.msra.mxu0 %v889_v0  ;;  %1309 = vmatpush2.msra.mxu1 %v891_v1 }
 0x261   :  { %1233 = vmatprep.subr.mxu0 %v882_v2  ;;  %1310 = vmatprep.subr.mxu1 %v884_v3 }
 0x262   :  { %1234 = vmatpush2.msra.mxu0 %v881_v4  ;;  %1311 = vmatpush2.msra.mxu1 %v883_v5 }
 0x263   :  { %1235 = vmatprep.subr.mxu0 %v874_v6  ;;  %1312 = vmatprep.subr.mxu1 %v876_v10 }
 0x264   :  { %1236 = vmatpush2.msra.mxu0 %v873_v13  ;;  %1313 = vmatpush2.msra.mxu1 %v875_v14 }
 0x265   :  { %1237 = vmatprep.subr.mxu0 %v866_v17  ;;  %1314 = vmatprep.subr.mxu1 %v868_v18 }
 0x266   :  { %1238 = vmatpush2.msra.mxu0 %v865_v19  ;;  %1315 = vmatpush2.msra.mxu1 %v867_v20 }
 0x267   :  { %1239 = vmatprep.subr.mxu0 %v858_v21  ;;  %1316 = vmatprep.subr.mxu1 %v860_v22 }
 0x268   :  { %1240 = vmatpush2.msra.mxu0 %v857_v23  ;;  %1317 = vmatpush2.msra.mxu1 %v859_v24 }
 0x269   :  { %1242 = vmatmul.mubr.f32.vlgmr.msra.gmra.mxu0 %v1664_v63  ;;  %1319 = vmatmul.mubr.f32.vlgmr.msra.gmra.mxu1 %v1664_v63 }
 0x26a   :  { %1247 = vmatprep.mubr.f32.mxu0 %v1668_v15  ;;  %1324 = vmatprep.mubr.f32.mxu1 %v1668_v15 }
 0x26d   :  { %1248 = vmatmul.mubr.f32.gmra.mxu0 %v1670_v16  ;;  %1325 = vmatmul.mubr.f32.gmra.mxu1 %v1670_v16 }
 0x2e6   :  { %v1089_v63 = vpop.f32.mrf.mxu0  ;;  %v1166_v30 = vpop.f32.mrf.mxu1 }
 0x2e7   :  { %v1090_v15 = vadd.f32 %v1089_v63, %v986_v26  ;;  %v1167_v33 = vadd.f32 %v1166_v30, %v994_v27 }
 0x2e8   :  { %v1091_v31 = vpop.f32.mrf.mxu0  ;;  %v1168_v32 = vpop.f32.mrf.mxu1 }
 0x2e9   :  { %v1092_v34 = vadd.f32 %v1091_v31, %v990_v28  ;;  %v1169_v35 = vadd.f32 %v1168_v32, %v998_v29 }
 0x2eb   :  { %v1403_v16 = vpack.c.bf16 %v1092_v34, %v1090_v15  ;;  %v1404_v36 = vpack.c.bf16 %v1169_v35, %v1167_v33 }
 0x2ec   :  { %v1095_v37 = vpop.f32.mrf.mxu0  ;;  %v1172_v9 = vpop.f32.mrf.mxu1 }
 0x2ed   :  { %1379 = vst [vmem:[%s1723_s7] sm:$0xff] %v1403_v16  ;;  %1380 = vst [vmem:[%s1723_s7 + $0x8] sm:$0xff] %v1404_v36  ;;  %v1096_v8 = vadd.f32 %v1095_v37, %v986_v26  ;;  %v1173_v11 = vadd.f32 %v1172_v9, %v994_v27 }
 0x2ee   :  { %v1097_v12 = vpop.f32.mrf.mxu0  ;;  %v1174_v38 = vpop.f32.mrf.mxu1 }
 0x2ef   :  { %v1098_v39 = vadd.f32 %v1097_v12, %v990_v28  ;;  %v1175_v40 = vadd.f32 %v1174_v38, %v998_v29 }
 0x2f1   :  { %v1407_v41 = vpack.c.bf16 %v1098_v39, %v1096_v8  ;;  %v1408_v42 = vpack.c.bf16 %v1175_v40, %v1173_v11 }
 0x2f3   :  { %1383 = vst [vmem:[%s1723_s7 + $0x20] sm:$0xff] %v1407_v41  ;;  %1384 = vst [vmem:[%s1723_s7 + $0x28] sm:$0xff] %v1408_v42 }
 0x329   :  { %v1243_v51 = vpop.f32.mrf.mxu0  ;;  %v1320_v52 = vpop.f32.mrf.mxu1 }
 0x32a   :  { %v1244_v55 = vadd.f32 %v1243_v51, %v1002_v47  ;;  %v1321_v56 = vadd.f32 %v1320_v52, %v1010_v48 }
 0x32b   :  { %v1245_v53 = vpop.f32.mrf.mxu0  ;;  %v1322_v54 = vpop.f32.mrf.mxu1 }
 0x32c   :  { %v1246_v57 = vadd.f32 %v1245_v53, %v1006_v49  ;;  %v1323_v58 = vadd.f32 %v1322_v54, %v1014_v50 }
 0x32d   :  { %v1249_v59 = vpop.f32.mrf.mxu0  ;;  %v1326_v60 = vpop.f32.mrf.mxu1 }
 0x32e   :  { %v1405_v61 = vpack.c.bf16 %v1246_v57, %v1244_v55  ;;  %v1406_v62 = vpack.c.bf16 %v1323_v58, %v1321_v56  ;;  %v1250_v7 = vadd.f32 %v1249_v59, %v1002_v47  ;;  %v1327_v2 = vadd.f32 %v1326_v60, %v1010_v48 }
 0x32f   :  { %v1251_v0 = vpop.f32.mrf.mxu0  ;;  %v1328_v1 = vpop.f32.mrf.mxu1 }
 0x330   :  { %1381 = vst [vmem:[%s1723_s7 + $0x10] sm:$0xff] %v1405_v61  ;;  %1382 = vst [vmem:[%s1723_s7 + $0x18] sm:$0xff] %v1406_v62  ;;  %v1252_v3 = vadd.f32 %v1251_v0, %v1006_v49  ;;  %v1329_v4 = vadd.f32 %v1328_v1, %v1014_v50 }
 0x332   :  { %v1409_v5 = vpack.c.bf16 %v1252_v3, %v1250_v7  ;;  %v1410_v6 = vpack.c.bf16 %v1329_v4, %v1327_v2 }
 0x334   :  { %1385 = vst [vmem:[%s1723_s7 + $0x30] sm:$0xff] %v1409_v5  ;;  %1386 = vst [vmem:[%s1723_s7 + $0x38] sm:$0xff] %v1410_v6 }
 0x335   :  { %1391 = vsyncpa [#allocation3], 1 }
 0x336   :  { %1392 = vsyncpa [#allocation5], 1 }
 0x337   :  { %1393 = vsyncpa [#allocation8], 1 }
 0x338   :  { %1394 = vsyncpa [#allocation11], 1 }

// kernel: av_summarizer_forward.5
= control target key start
LH: loop header
LB: loop body
LE: loop exit
PB: predicated region body
PF: predicated region fallthrough
CT: control target
= control target key end

     0   :  { %s9960_s0 = inlined_call_operand.vmem [shape: f32[2,8,256], index: 0, kind: input, shape index: {}]   ;;  %s9961_s1 = inlined_call_operand.vmem [shape: f32[2,8,64], index: 1, kind: input, shape index: {}]   ;;  %s9962_s2 = inlined_call_operand.vmem [shape: f32[64,128], index: 2, kind: input, shape index: {}]   ;;  %s9963_s3 = inlined_call_operand.vmem [shape: f32[1,128], index: 3, kind: input, shape index: {}]   ;;  %s9964_s4 = inlined_call_operand.vmem [shape: f32[1,128], index: 4, kind: input, shape index: {}]   ;;  %s9965_s5 = inlined_call_operand.vmem [shape: f32[1,128], index: 5, kind: input, shape index: {}]   ;;  %s9966_s6 = inlined_call_operand.vmem [shape: f32[128,64], index: 6, kind: input, shape index: {}]   ;;  %s9967_s7 = inlined_call_operand.vmem [shape: f32[1,64], index: 7, kind: input, shape index: {}]   ;;  %s9968_s8 = inlined_call_operand.vmem [shape: f32[1,64], index: 8, kind: input, shape index: {}]   ;;  %s9969_s9 = inlined_call_operand.vmem [shape: f32[1,64], index: 9, kind: input, shape index: {}]   ;;  %s9970_s10 = inlined_call_operand.vmem [shape: f32[1,320], index: 10, kind: input, shape index: {}]   ;;  %s9971_s11 = inlined_call_operand.vmem [shape: f32[1,320], index: 11, kind: input, shape index: {}]   ;;  %s9972_s12 = inlined_call_operand.vmem [shape: f32[320,1536], index: 12, kind: input, shape index: {}]   ;;  %s9973_s13 = inlined_call_operand.vmem [shape: f32[1,1536], index: 13, kind: input, shape index: {}]   ;;  %s9974_s14 = inlined_call_operand.vmem [shape: f32[512,320], index: 14, kind: input, shape index: {}]   ;;  %s9975_s15 = inlined_call_operand.vmem [shape: f32[1,320], index: 15, kind: input, shape index: {}]   ;;  %s9976_s16 = inlined_call_operand.vmem [shape: f32[1,320], index: 16, kind: input, shape index: {}]   ;;  %s9977_s17 = inlined_call_operand.vmem [shape: f32[1,320], index: 17, kind: input, shape index: {}]   ;;  %s9978_s18 = inlined_call_operand.vmem [shape: f32[320,512], index: 18, kind: input, shape index: {}]   ;;  %s9979_s19 = inlined_call_operand.vmem [shape: f32[1,512], index: 19, kind: input, shape index: {}]   ;;  %s9980_s20 = inlined_call_operand.vmem [shape: f32[512,320], index: 20, kind: input, shape index: {}]   ;;  %s9981_s21 = inlined_call_operand.vmem [shape: f32[1,320], index: 21, kind: input, shape index: {}]   ;;  %s9982_s22 = inlined_call_operand.vmem [shape: f32[320,128], index: 22, kind: input, shape index: {}]   ;;  %s9983_s23 = inlined_call_operand.vmem [shape: f32[1,128], index: 23, kind: input, shape index: {}]   ;;  %s9984_s24 = inlined_call_operand.vmem [shape: f32[1,128], index: 24, kind: input, shape index: {}]   ;;  %s9985_s25 = inlined_call_operand.vmem [shape: f32[1,128], index: 25, kind: input, shape index: {}]   ;;  %s9986_s26 = inlined_call_operand.vmem [shape: f32[128,128], index: 26, kind: input, shape index: {}]   ;;  %s9987_s27 = inlined_call_operand.vmem [shape: f32[1,128], index: 27, kind: input, shape index: {}]   ;;  %s9988_s28 = inlined_call_operand.vmem [shape: f32[2,8,128], index: 28, kind: output, shape index: {}]  }
   0x1   :  { %9995 = sst [smem:[#allocation2_spill]] %s9960_s0 }
   0x2   :  { %9996 = sst [smem:[#allocation3_spill]] %s9961_s1 }
   0x3   :  { %9997 = sst [smem:[#allocation4_spill]] %s9962_s2 }
   0x4   :  { %9998 = sst [smem:[#allocation5_spill]] %s9963_s3 }
   0x5   :  { %9999 = sst [smem:[#allocation6_spill]] %s9964_s4 }
   0x6   :  { %10000 = sst [smem:[#allocation7_spill]] %s9965_s5 }
   0x7   :  { %10001 = sst [smem:[#allocation8_spill]] %s9966_s6 }
   0x8   :  { %10002 = sst [smem:[#allocation9_spill]] %s9967_s7 }
   0x9   :  { %10003 = sst [smem:[#allocation10_spill]] %s9968_s8  ;;  %s6139_s8 = smov 0  }
   0xa   :  { %10004 = sst [smem:[#allocation11_spill]] %s9969_s9 }
   0xb   :  { %10005 = sst [smem:[#allocation12_spill]] %s9970_s10 }
   0xc   :  { %10006 = sst [smem:[#allocation13_spill]] %s9971_s11 }
   0xd   :  { %10007 = sst [smem:[#allocation14_spill]] %s9972_s12 }
   0xe LB: > { %s5381_s5 = sadd.s32 4294967295, %s5990_s8   ;;  %p5385_p0 = scmp.ge.s32.totalorder %s5990_s8, 1  ;;  %s5990_s8 = sphi %s6139_s8, %s38_s8  }
   0xf   : > { %p771_p1 = scmp.lt.s32.totalorder %s5990_s8, 3 }
  0x11   : > { %p772_p2 = pnand %p5385_p0, %p771_p1 }
  0x12   : > { %s10008_s3 = sld [smem:[#allocation4_spill]] (!%p772_p2)  ;;  %p848_p3 = scmp.lt.s32.totalorder (!%p772_p2), %s5381_s5, 1 }
  0x13   : > { %775 = sbr.rel (%p772_p2) target bundleno = 6007 (0x1777), region = 132  ;;  %s10009_s11 = sld [smem:[#allocation3_spill]] (!%p772_p2) }
  0x14   : > { %s10010_s9 = sld [smem:[#allocation5_spill]] (!%p772_p2) }
  0x15   : > { %s10011_s10 = sld [smem:[#allocation8_spill]] (!%p772_p2) }
  0x16   : > { %s10013_s12 = sld [smem:[#allocation7_spill]] (!%p772_p2) }
  0x17   : > { %s10014_s30 = sld [smem:[#allocation9_spill]] (!%p772_p2) }
  0x18   : > { %v869_v0 = vld [vmem:[%s10008_s3 + $0x38] sm:$0xff]  ;;  %v5992_v1 = vmov 0.0   ;;  %v868_v2 = vld [vmem:[%s10008_s3 + $0x30] sm:$0xff]  ;;  %vm5993_vm0 = vmmov 0   ;;  %v867_v3 = vld [vmem:[%s10008_s3 + $0x28] sm:$0xff]  ;;  %s10023_s5 = smov (!%p848_p3, %s5381_s5), 1 }
  0x19   : > { %5658 = vmatprep.subr.mxu0 %v5992_v1  ;;  %5674 = vmatprep.mubr.msk.f32.mxu0 %vm5993_vm0, %v5992_v1  ;;  %v866_v4 = vld [vmem:[%s10008_s3 + $0x20] sm:$0xff]  ;;  %v865_v5 = vld [vmem:[%s10008_s3 + $0x18] sm:$0xff]  ;;  %s9992_s1 = sshll.u32 %s10023_s5, 3  ;;  %v864_v6 = vld [vmem:[%s10008_s3 + $0x10] sm:$0xff]  ;;  %vm877_vm1 = vcmask 523264   ;;  %s5416_s6 = sshll.u32 %s10023_s5, 4 }
  0x1a   : > { %5659 = vmatpush3.msra.mxu0 %v869_v0  ;;  %5677 = vmatprep.subr.mxu1 %v5992_v1  ;;  %v863_v7 = vld [vmem:[%s10008_s3 + $0x8] sm:$0xff]  ;;  %s856_s29 = scalar_lea.vmem %s10009_s11, %s9992_s1  ;;  %v862_v8 = vld [vmem:[%s10008_s3] sm:$0xff]  ;;  %s10016_s4 = sld [smem:[#allocation10_spill]]  ;;  %vm2639_vm2 = vcmask 64512  }
  0x1b   : > { %5660 = vmatprep.subr.mxu0 %v5992_v1  ;;  %5709 = vmatprep.mubr.msk.f32.mxu1 %vm5993_vm0, %v5992_v1  ;;  %v861_v9 = vld [vmem:[%s856_s29] sm:$0xff]  ;;  %v995_v14 = vld [vmem:[%s10011_s10 + $0x78] sm:$0xff]  ;;  %v994_v15 = vld [vmem:[%s10011_s10 + $0x70] sm:$0xff]  ;;  %s10012_s29 = sld [smem:[#allocation6_spill]]  ;;  %s10021_s7 = sshll.u32 %s10023_s5, 3 }
  0x1c   : > { %5661 = vmatpush3.msra.mxu0 %v868_v2  ;;  %v5390_v10 = vld [vmem:[%s10010_s9] ss:$0 sm:$0xff]  ;;  %5678 = vmatpush3.msra.mxu1 %v995_v14  ;;  %v993_v16 = vld [vmem:[%s10011_s10 + $0x68] sm:$0xff]  ;;  %v991_v22 = vld [vmem:[%s10011_s10 + $0x58] sm:$0xff]  ;;  %s10017_s1 = sld [smem:[#allocation11_spill]]  ;;  %s860_s9 = scalar_lea.vmem %s9988_s28, %s10021_s7 }
  0x1d   : > { %5662 = vmatprep.subr.mxu0 %v5992_v1  ;;  %5679 = vmatprep.subr.mxu1 %v5992_v1  ;;  %v992_v21 = vld [vmem:[%s10011_s10 + $0x60] sm:$0xff]  ;;  %v990_v23 = vld [vmem:[%s10011_s10 + $0x50] sm:$0xff]  ;;  %v989_v24 = vld [vmem:[%s10011_s10 + $0x48] sm:$0xff]  ;;  %s10018_s11 = sld [smem:[#allocation14_spill]] }
  0x1e   : > { %5663 = vmatpush3.msra.mxu0 %v867_v3  ;;  %5680 = vmatpush3.msra.mxu1 %v994_v15  ;;  %v988_v25 = vld [vmem:[%s10011_s10 + $0x40] sm:$0xff]  ;;  %v987_v26 = vld [vmem:[%s10011_s10 + $0x38] sm:$0xff]  ;;  %v986_v27 = vld [vmem:[%s10011_s10 + $0x30] sm:$0xff] }
  0x1f   : > { %5664 = vmatprep.subr.mxu0 %v5992_v1  ;;  %5681 = vmatprep.subr.mxu1 %v5992_v1  ;;  %v985_v28 = vld [vmem:[%s10011_s10 + $0x28] sm:$0xff]  ;;  %v984_v29 = vld [vmem:[%s10011_s10 + $0x20] sm:$0xff]  ;;  %v983_v30 = vld [vmem:[%s10011_s10 + $0x18] sm:$0xff] }
  0x20   : > { %5665 = vmatpush3.msra.mxu0 %v866_v4  ;;  %5682 = vmatpush3.msra.mxu1 %v993_v16  ;;  %v982_v31 = vld [vmem:[%s10011_s10 + $0x10] sm:$0xff]  ;;  %v981_v32 = vld [vmem:[%s10011_s10 + $0x8] sm:$0xff]  ;;  %v980_v33 = vld [vmem:[%s10011_s10] sm:$0xff] }
  0x21   : > { %5666 = vmatprep.subr.mxu0 %v5992_v1  ;;  %5683 = vmatprep.subr.mxu1 %v5992_v1  ;;  %v5392_v38 = vld [vmem:[%s10012_s29] ss:$0 sm:$0xff]  ;;  %s10015_s29 = sld [smem:[#allocation2_spill]] }
  0x22   : > { %5667 = vmatpush3.msra.mxu0 %v865_v5  ;;  %5684 = vmatpush3.msra.mxu1 %v992_v21  ;;  %v5393_v40 = vld [vmem:[%s10013_s12] ss:$0 sm:$0xff] }
  0x23   : > { %5668 = vmatprep.subr.mxu0 %v5992_v1  ;;  %5685 = vmatprep.subr.mxu1 %v5992_v1  ;;  %v5394_v44 = vld [vmem:[%s10014_s30] ss:$0 sm:$0xff]  ;;  %v1303_v14 = vld [vmem:[%s10018_s11 + $0x428] sm:$0xff]  ;;  %s10019_s30 = sld [smem:[#allocation12_spill]] }
  0x24   : > { %5669 = vmatpush3.msra.mxu0 %v864_v6  ;;  %5686 = vmatpush3.msra.mxu1 %v991_v22  ;;  %v5395_v58 = vld [vmem:[%s10016_s4] ss:$0 sm:$0xff]  ;;  %v1351_v6 = vld [vmem:[%s10018_s11 + $0x5a8] sm:$0xff] }
  0x25   : > { %5670 = vmatprep.subr.mxu0 %v5992_v1  ;;  %5687 = vmatprep.subr.mxu1 %v5992_v1  ;;  %v5396_v60 = vld [vmem:[%s10017_s1] ss:$0 sm:$0xff]  ;;  %v1291_v16 = vld [vmem:[%s10018_s11 + $0x3c8] sm:$0xff]  ;;  %s10020_s1 = sld [smem:[#allocation13_spill]] }
  0x26   : > { %5671 = vmatpush3.msra.mxu0 %v863_v7  ;;  %5688 = vmatpush3.msra.mxu1 %v990_v23  ;;  %v1350_v7 = vld [vmem:[%s10018_s11 + $0x5a0] sm:$0xff]  ;;  %v1255_v22 = vld [vmem:[%s10018_s11 + $0x2a8] sm:$0xff] }
  0x27   : > { %5672 = vmatprep.subr.mxu0 %v5992_v1  ;;  %5689 = vmatprep.subr.mxu1 %v5992_v1  ;;  %s6275_s2 = scalar_lea.vmem %s10015_s29, %s5416_s6  ;;  %v1302_v15 = vld [vmem:[%s10018_s11 + $0x420] sm:$0xff] }
  0x28   : > { %5673 = vmatpush3.msra.mxu0 %v862_v8  ;;  %5690 = vmatpush3.msra.mxu1 %v989_v24  ;;  %v6284_v62 = vld [vmem:[%s6275_s2] sm:$0xff]  ;;  %v6287_v63 = vld [vmem:[%s6275_s2 + $0x8] sm:$0xff] }
  0x29   : > { %5675 = vmatmul.mubr.msk.f32.vlgmr.msra.gmra.mxu0 %vm877_vm1, %v861_v9  ;;  %5691 = vmatprep.subr.mxu1 %v5992_v1  ;;  %v1108_v2 = vadd.f32 %v6287_v63, %v6284_v62  ;;  %v1339_v8 = vld [vmem:[%s10018_s11 + $0x548] sm:$0xff]  ;;  %v1338_v9 = vld [vmem:[%s10018_s11 + $0x540] sm:$0xff] }
  0x2a   : > { %5692 = vmatpush3.msra.mxu1 %v988_v25  ;;  %1717 = vmatprep.subr.mxu0 %v1351_v6  ;;  %v1266_v21 = vld [vmem:[%s10018_s11 + $0x300] sm:$0xff]  ;;  %v1243_v24 = vld [vmem:[%s10018_s11 + $0x248] sm:$0xff] }
  0x2b   : > { %5693 = vmatprep.subr.mxu1 %v5992_v1  ;;  %1718 = vmatpush1.msra.mxu0 %v1350_v7  ;;  %v1254_v23 = vld [vmem:[%s10018_s11 + $0x2a0] sm:$0xff]  ;;  %v1627_v7 = vld [vmem:[%s10018_s11 + $0xe48] sm:$0xff] }
  0x2c   : > { %5694 = vmatpush3.msra.mxu1 %v987_v26  ;;  %1719 = vmatprep.subr.mxu0 %v1339_v8  ;;  %v1242_v25 = vld [vmem:[%s10018_s11 + $0x240] sm:$0xff]  ;;  %v1231_v26 = vld [vmem:[%s10018_s11 + $0x1e8] sm:$0xff] }
  0x2d   : > { %5695 = vmatprep.subr.mxu1 %v5992_v1  ;;  %1720 = vmatpush1.msra.mxu0 %v1338_v9  ;;  %v1446_v6 = vld [vmem:[%s10018_s11 + $0x8a0] sm:$0xff]  ;;  %v1435_v8 = vld [vmem:[%s10018_s11 + $0x848] sm:$0xff] }
  0x2e   : > { %5696 = vmatpush3.msra.mxu1 %v986_v27  ;;  %v1230_v27 = vld [vmem:[%s10018_s11 + $0x1e0] sm:$0xff] }
  0x2f   : > { %5697 = vmatprep.subr.mxu1 %v5992_v1  ;;  %v1626_v9 = vld [vmem:[%s10018_s11 + $0xe40] sm:$0xff] }
  0x30   : > { %5698 = vmatpush3.msra.mxu1 %v985_v28  ;;  %v1219_v28 = vld [vmem:[%s10018_s11 + $0x188] sm:$0xff] }
  0x31   : > { %5699 = vmatprep.subr.mxu1 %v5992_v1 }
  0x32   : > { %5700 = vmatpush3.msra.mxu1 %v984_v29  ;;  %v1218_v29 = vld [vmem:[%s10018_s11 + $0x180] sm:$0xff] }
  0x33   : > { %5701 = vmatprep.subr.mxu1 %v5992_v1 }
  0x34   : > { %5702 = vmatpush3.msra.mxu1 %v983_v30  ;;  %v1207_v30 = vld [vmem:[%s10018_s11 + $0x128] sm:$0xff] }
  0x35   : > { %5703 = vmatprep.subr.mxu1 %v5992_v1 }
  0x36   : > { %5704 = vmatpush3.msra.mxu1 %v982_v31  ;;  %v1206_v31 = vld [vmem:[%s10018_s11 + $0x120] sm:$0xff] }
  0x37   : > { %5705 = vmatprep.subr.mxu1 %v5992_v1 }
  0x38   : > { %5706 = vmatpush3.msra.mxu1 %v981_v32  ;;  %v1195_v32 = vld [vmem:[%s10018_s11 + $0xc8] sm:$0xff] }
  0x39   : > { %5707 = vmatprep.subr.mxu1 %v5992_v1 }
  0x3a   : > { %5708 = vmatpush3.msra.mxu1 %v980_v33  ;;  %v1194_v33 = vld [vmem:[%s10018_s11 + $0xc0] sm:$0xff] }
  0xe9   : > { %v947_v11 = vpop.f32.mrf.mxu0 }
  0xea   : > { %v948_v12 = vadd.f32 %v5390_v10, %v947_v11  ;;  %v1327_v10 = vld [vmem:[%s10018_s11 + $0x4e8] sm:$0xff]  ;;  %v1326_v11 = vld [vmem:[%s10018_s11 + $0x4e0] sm:$0xff] }
  0xeb   : > { %v5676_v13 = vpop.f32.mrf.mxu0  ;;  %1721 = vmatprep.subr.mxu0 %v1327_v10  ;;  %v1615_v10 = vld [vmem:[%s10018_s11 + $0xde8] sm:$0xff] }
  0xec   : > { %953 = vadd.xlane.f32.xlu0 %v948_v12  ;;  %v1314_v13 = vld [vmem:[%s10018_s11 + $0x480] sm:$0xff]  ;;  %1722 = vmatpush1.msra.mxu0 %v1326_v11 }
  0xed   : > { %v1434_v11 = vld [vmem:[%s10018_s11 + $0x840] sm:$0xff] }
 0x175   : > { %v954_v17 = vpop.xlane.xlu0 %953 }
 0x176   : > { %v956_v18 = vmul.f32 0.0078125, %v954_v17  ;;  %v1290_v17 = vld [vmem:[%s10018_s11 + $0x3c0] sm:$0xff] }
 0x178   : > { %v957_v19 = vsub.f32 %v948_v12, %v956_v18  ;;  %v1315_v12 = vld [vmem:[%s10018_s11 + $0x488] sm:$0xff] }
 0x179   : > { %1723 = vmatprep.subr.mxu0 %v1315_v12  ;;  %v1279_v18 = vld [vmem:[%s10018_s11 + $0x368] sm:$0xff]  ;;  %v1614_v12 = vld [vmem:[%s10018_s11 + $0xde0] sm:$0xff] }
 0x17a   : > { %v958_v20 = vmul.f32 %v957_v19, %v957_v19  ;;  %1724 = vmatpush1.msra.mxu0 %v1314_v13  ;;  %v1423_v13 = vld [vmem:[%s10018_s11 + $0x7e8] sm:$0xff] }
 0x17b   : > { %1725 = vmatprep.subr.mxu0 %v1303_v14  ;;  %v1603_v14 = vld [vmem:[%s10018_s11 + $0xd88] sm:$0xff] }
 0x17c   : > { %959 = vadd.xlane.f32.xlu0 %v958_v20  ;;  %1726 = vmatpush1.msra.mxu0 %v1302_v15  ;;  %v1267_v20 = vld [vmem:[%s10018_s11 + $0x308] sm:$0xff]  ;;  %v1422_v15 = vld [vmem:[%s10018_s11 + $0x7e0] sm:$0xff] }
 0x17d   : > { %1727 = vmatprep.subr.mxu0 %v1291_v16  ;;  %v1602_v16 = vld [vmem:[%s10018_s11 + $0xd80] sm:$0xff] }
 0x17e   : > { %1728 = vmatpush1.msra.mxu0 %v1290_v17  ;;  %v1411_v17 = vld [vmem:[%s10018_s11 + $0x788] sm:$0xff] }
 0x17f   : > { %1729 = vmatprep.subr.mxu0 %v1279_v18  ;;  %v1591_v18 = vld [vmem:[%s10018_s11 + $0xd28] sm:$0xff] }
 0x205   : > { %v960_v34 = vpop.xlane.xlu0 %959 }
 0x206   : > { %v961_v35 = vmul.f32 0.0078125, %v960_v34  ;;  %v1183_v34 = vld [vmem:[%s10018_s11 + $0x68] sm:$0xff] }
 0x208   : > { %v962_v36 = vadd.f32 1e-05, %v961_v35  ;;  %v1182_v35 = vld [vmem:[%s10018_s11 + $0x60] sm:$0xff] }
 0x20a   : > { %5956 = vrsqrt.f32 %v962_v36  ;;  %v1171_v36 = vld [vmem:[%s10018_s11 + $0x8] sm:$0xff] }
 0x217   : > { %v5957_v37 = vpop.eup %5956 }
 0x218   : > { %v964_v39 = vmul.f32 %v5957_v37, %v957_v19  ;;  %v1278_v19 = vld [vmem:[%s10018_s11 + $0x360] sm:$0xff] }
 0x219   : > { %1730 = vmatpush1.msra.mxu0 %v1278_v19  ;;  %v1170_v37 = vld [vmem:[%s10018_s11] sm:$0xff] }
 0x21a   : > { %v971_v41 = vmul.f32 %v5392_v38, %v964_v39  ;;  %1731 = vmatprep.subr.mxu0 %v1267_v20  ;;  %v1543_v38 = vld [vmem:[%s10018_s11 + $0xba8] sm:$0xff]  ;;  %v1542_v39 = vld [vmem:[%s10018_s11 + $0xba0] sm:$0xff] }
 0x21b   : > { %1732 = vmatpush1.msra.mxu0 %v1266_v21  ;;  %v1410_v19 = vld [vmem:[%s10018_s11 + $0x780] sm:$0xff]  ;;  %v1399_v21 = vld [vmem:[%s10018_s11 + $0x728] sm:$0xff] }
 0x21c   : > { %v978_v42 = vadd.f32 %v5393_v40, %v971_v41  ;;  %1733 = vmatprep.subr.mxu0 %v1255_v22  ;;  %v1531_v40 = vld [vmem:[%s10018_s11 + $0xb48] sm:$0xff]  ;;  %v1530_v41 = vld [vmem:[%s10018_s11 + $0xb40] sm:$0xff] }
 0x21d   : > { %1734 = vmatpush1.msra.mxu0 %v1254_v23  ;;  %v1590_v20 = vld [vmem:[%s10018_s11 + $0xd20] sm:$0xff]  ;;  %v1579_v22 = vld [vmem:[%s10018_s11 + $0xcc8] sm:$0xff] }
 0x21e   : > { %v979_v43 = vmax.f32 %v978_v42, 0.0  ;;  %1735 = vmatprep.subr.mxu0 %v1243_v24  ;;  %v1519_v42 = vld [vmem:[%s10018_s11 + $0xae8] sm:$0xff]  ;;  %v1398_v23 = vld [vmem:[%s10018_s11 + $0x720] sm:$0xff] }
 0x21f   : > { %1736 = vmatpush1.msra.mxu0 %v1242_v25  ;;  %v1578_v24 = vld [vmem:[%s10018_s11 + $0xcc0] sm:$0xff]  ;;  %v1387_v25 = vld [vmem:[%s10018_s11 + $0x6c8] sm:$0xff] }
 0x220   : > { %5710 = vmatmul.mubr.f32.vlgmr.msra.gmra.mxu1 %v979_v43  ;;  %1737 = vmatprep.subr.mxu0 %v1231_v26  ;;  %v1518_v43 = vld [vmem:[%s10018_s11 + $0xae0] sm:$0xff]  ;;  %v1567_v26 = vld [vmem:[%s10018_s11 + $0xc68] sm:$0xff] }
 0x221   : > { %1852 = vmatprep.mubr.f32.mxu1 %v5992_v1  ;;  %1738 = vmatpush1.msra.mxu0 %v1230_v27  ;;  %v1386_v27 = vld [vmem:[%s10018_s11 + $0x6c0] sm:$0xff] }
 0x222   : > { %1739 = vmatprep.subr.mxu0 %v1219_v28  ;;  %v1566_v28 = vld [vmem:[%s10018_s11 + $0xc60] sm:$0xff] }
 0x223   : > { %1740 = vmatpush1.msra.mxu0 %v1218_v29  ;;  %v1375_v29 = vld [vmem:[%s10018_s11 + $0x668] sm:$0xff] }
 0x224   : > { %1741 = vmatprep.subr.mxu0 %v1207_v30  ;;  %v1555_v30 = vld [vmem:[%s10018_s11 + $0xc08] sm:$0xff] }
 0x225   : > { %1742 = vmatpush1.msra.mxu0 %v1206_v31  ;;  %v1374_v31 = vld [vmem:[%s10018_s11 + $0x660] sm:$0xff] }
 0x226   : > { %1743 = vmatprep.subr.mxu0 %v1195_v32  ;;  %v1554_v32 = vld [vmem:[%s10018_s11 + $0xc00] sm:$0xff] }
 0x227   : > { %1744 = vmatpush1.msra.mxu0 %v1194_v33  ;;  %v1363_v33 = vld [vmem:[%s10018_s11 + $0x608] sm:$0xff] }
 0x228   : > { %1745 = vmatprep.subr.mxu0 %v1183_v34  ;;  %v1353_v34 = vld [vmem:[%s10018_s11 + $0x5b8] sm:$0xff] }
 0x229   : > { %1746 = vmatpush1.msra.mxu0 %v1182_v35  ;;  %v1362_v35 = vld [vmem:[%s10018_s11 + $0x600] sm:$0xff] }
 0x22a   : > { %1747 = vmatprep.subr.mxu0 %v1171_v36  ;;  %v1641_v36 = vld [vmem:[%s10018_s11 + $0xeb8] sm:$0xff] }
 0x22b   : > { %1748 = vmatpush1.msra.mxu0 %v1170_v37 }
 0x22c   : > { %1749 = vmatprep.subr.mxu0 %v1543_v38 }
 0x22d   : > { %1750 = vmatpush2.msra.mxu0 %v1542_v39 }
 0x22e   : > { %1751 = vmatprep.subr.mxu0 %v1531_v40  ;;  %v1133_v40 = vlaneseq }
 0x22f   : > { %1752 = vmatpush2.msra.mxu0 %v1530_v41 }
 0x230   : > { %1753 = vmatprep.subr.mxu0 %v1519_v42  ;;  %v6557_v41 = vshrl.u32 %v1133_v40, 7  ;;  %v1232_v40 = vld [vmem:[%s10018_s11 + $0x1f0] sm:$0xff] }
 0x231   : > { %1754 = vmatpush2.msra.mxu0 %v1518_v43 }
 0x232   : > { %v6560_v42 = vsub.s32 1, %v6557_v41  ;;  %v6563_v43 = vsub.s32 2, %v6557_v41 }
 0x2e0   : > { %v1069_v45 = vpop.f32.mrf.mxu1 }
 0x2e1   : > { %v1070_v46 = vadd.f32 %v5394_v44, %v1069_v45  ;;  %v1507_v44 = vld [vmem:[%s10018_s11 + $0xa88] sm:$0xff]  ;;  %v1506_v45 = vld [vmem:[%s10018_s11 + $0xa80] sm:$0xff] }
 0x2e2   : > { %v5711_v47 = vpop.f32.mrf.mxu1  ;;  %1755 = vmatprep.subr.mxu0 %v1507_v44  ;;  %v6566_v44 = vsub.s32 0, %v6557_v41 }
 0x2e3   : > { %v1075_v48 = vsel %vm877_vm1, %v1070_v46, 0.0  ;;  %1756 = vmatpush2.msra.mxu0 %v1506_v45  ;;  %v1106_v45 = vld [vmem:[%s10019_s30] sm:$0x7] }
 0x2e4   : > { %1076 = vadd.xlane.f32.xlu1 %v1075_v48 }
 0x36d   : > { %v1077_v49 = vpop.xlane.xlu1 %1076 }
 0x36e   : > { %v1079_v50 = vmul.f32 0.015625, %v1077_v49 }
 0x370   : > { %v1080_v51 = vsub.f32 %v1070_v46, %v1079_v50 }
 0x372   : > { %v1081_v52 = vmul.f32 %v1080_v51, %v1080_v51 }
 0x374   : > { %v1082_v53 = vsel %vm877_vm1, %v1081_v52, 0.0 }
 0x375   : > { %1083 = vadd.xlane.f32.xlu1 %v1082_v53 }
 0x3fe   : > { %v1084_v54 = vpop.xlane.xlu1 %1083 }
 0x3ff   : > { %v1085_v55 = vmul.f32 0.015625, %v1084_v54 }
 0x401   : > { %v1086_v56 = vadd.f32 1e-05, %v1085_v55 }
 0x403   : > { %5958 = vrsqrt.f32 %v1086_v56 }
 0x410   : > { %v5959_v57 = vpop.eup %5958 }
 0x411   : > { %v1088_v59 = vmul.f32 %v5959_v57, %v1080_v51  ;;  %v1495_v57 = vld [vmem:[%s10018_s11 + $0xa28] sm:$0xff] }
 0x412   : > { %1757 = vmatprep.subr.mxu0 %v1495_v57 }
 0x413   : > { %v1095_v61 = vmul.f32 %v5395_v58, %v1088_v59  ;;  %v1494_v58 = vld [vmem:[%s10018_s11 + $0xa20] sm:$0xff]  ;;  %v1483_v59 = vld [vmem:[%s10018_s11 + $0x9c8] sm:$0xff] }
 0x414   : > { %1758 = vmatpush2.msra.mxu0 %v1494_v58 }
 0x415   : > { %v1102_v0 = vadd.f32 %v5396_v60, %v1095_v61  ;;  %1759 = vmatprep.subr.mxu0 %v1483_v59  ;;  %v1482_v60 = vld [vmem:[%s10018_s11 + $0x9c0] sm:$0xff]  ;;  %v1471_v61 = vld [vmem:[%s10018_s11 + $0x968] sm:$0xff] }
 0x416   : > { %1760 = vmatpush2.msra.mxu0 %v1482_v60 }
 0x417   : > { %v6291_v3 = vmax.f32 %v1102_v0, 0.0  ;;  %1761 = vmatprep.subr.mxu0 %v1471_v61  ;;  %v1458_v0 = vld [vmem:[%s10018_s11 + $0x900] sm:$0xff] }
 0x419   : > { %v1109_v4 = vsel %vm877_vm1, %v6291_v3, 0.0 }
 0x41a   : > { %v1110_v5 = vadd.f32 %v1109_v4, %v1108_v2  ;;  %v1639_v2 = vld [vmem:[%s10018_s11 + $0xea8] sm:$0xff] }
 0x41b   : > { %v1447_v4 = vld [vmem:[%s10018_s11 + $0x8a8] sm:$0xff]  ;;  %1804 = vmatprep.subr.mxu1 %v1639_v2  ;;  %v1352_v2 = vld [vmem:[%s10018_s11 + $0x5b0] sm:$0xff] }
 0x41c   : > { %1111 = vadd.xlane.f32.xlu0 %v1110_v5  ;;  %v1638_v5 = vld [vmem:[%s10018_s11 + $0xea0] sm:$0xff] }
 0x41d   : > { %1805 = vmatpush1.msra.mxu1 %v1638_v5  ;;  %v1629_v5 = vld [vmem:[%s10018_s11 + $0xe58] sm:$0xff] }
 0x41e   : > { %1806 = vmatprep.subr.mxu1 %v1627_v7  ;;  %v1628_v7 = vld [vmem:[%s10018_s11 + $0xe50] sm:$0xff] }
 0x41f   : > { %1807 = vmatpush1.msra.mxu1 %v1626_v9  ;;  %v1617_v9 = vld [vmem:[%s10018_s11 + $0xdf8] sm:$0xff] }
 0x420   : > { %1808 = vmatprep.subr.mxu1 %v1615_v10  ;;  %v1317_v10 = vld [vmem:[%s10018_s11 + $0x498] sm:$0xff] }
 0x421   : > { %1809 = vmatpush1.msra.mxu1 %v1614_v12  ;;  %v1316_v12 = vld [vmem:[%s10018_s11 + $0x490] sm:$0xff] }
 0x422   : > { %1810 = vmatprep.subr.mxu1 %v1603_v14  ;;  %v1305_v14 = vld [vmem:[%s10018_s11 + $0x438] sm:$0xff] }
 0x423   : > { %1811 = vmatpush1.msra.mxu1 %v1602_v16  ;;  %v1304_v16 = vld [vmem:[%s10018_s11 + $0x430] sm:$0xff] }
 0x424   : > { %1812 = vmatprep.subr.mxu1 %v1591_v18  ;;  %v1293_v18 = vld [vmem:[%s10018_s11 + $0x3d8] sm:$0xff] }
 0x425   : > { %1813 = vmatpush1.msra.mxu1 %v1590_v20  ;;  %v1292_v20 = vld [vmem:[%s10018_s11 + $0x3d0] sm:$0xff] }
 0x426   : > { %1814 = vmatprep.subr.mxu1 %v1579_v22  ;;  %v1281_v22 = vld [vmem:[%s10018_s11 + $0x378] sm:$0xff] }
 0x427   : > { %1815 = vmatpush1.msra.mxu1 %v1578_v24  ;;  %v1280_v24 = vld [vmem:[%s10018_s11 + $0x370] sm:$0xff] }
 0x428   : > { %1816 = vmatprep.subr.mxu1 %v1567_v26  ;;  %v1269_v26 = vld [vmem:[%s10018_s11 + $0x318] sm:$0xff] }
 0x429   : > { %1817 = vmatpush1.msra.mxu1 %v1566_v28  ;;  %v1268_v28 = vld [vmem:[%s10018_s11 + $0x310] sm:$0xff] }
 0x42a   : > { %1818 = vmatprep.subr.mxu1 %v1555_v30  ;;  %v1257_v30 = vld [vmem:[%s10018_s11 + $0x2b8] sm:$0xff] }
 0x42b   : > { %1819 = vmatpush1.msra.mxu1 %v1554_v32  ;;  %v1256_v32 = vld [vmem:[%s10018_s11 + $0x2b0] sm:$0xff] }
 0x42c   : > { %1859 = vmatprep.subr.mxu1 %v1353_v34  ;;  %v1245_v34 = vld [vmem:[%s10018_s11 + $0x258] sm:$0xff] }
 0x4a5   : > { %v1112_v46 = vpop.xlane.xlu0 %1111 }
 0x4a6   : > { %v1114_v47 = vmul.f32 0.003125, %v1112_v46  ;;  %v1107_v46 = vld [vmem:[%s10020_s1] sm:$0x7] }
 0x4a7   : > { %v1155_v59 = vrot.slane %v1107_v46, %v6566_v44 }
 0x4a8   : > { %v6416_v48 = vsub.f32 %v6284_v62, %v1114_v47  ;;  %v6419_v49 = vsub.f32 %v6287_v63, %v1114_v47  ;;  %v6422_v50 = vsub.f32 %v6291_v3, %v1114_v47  ;;  %v1470_v62 = vld [vmem:[%s10018_s11 + $0x960] sm:$0xff]  ;;  %v1459_v63 = vld [vmem:[%s10018_s11 + $0x908] sm:$0xff]  ;;  %v1140_v47 = vrot.slane %v1106_v45, %v6560_v42 }
 0x4a9   : > { %1762 = vmatpush2.msra.mxu0 %v1470_v62 }
 0x4aa   : > { %v1118_v51 = vmul.f32 %v6416_v48, %v6416_v48  ;;  %v1119_v52 = vmul.f32 %v6419_v49, %v6419_v49  ;;  %v1120_v53 = vmul.f32 %v6422_v50, %v6422_v50  ;;  %1763 = vmatprep.subr.mxu0 %v1459_v63 }
 0x4ab   : > { %1764 = vmatpush2.msra.mxu0 %v1458_v0 }
 0x4ac   : > { %v1121_v54 = vadd.f32 %v1119_v52, %v1118_v51  ;;  %v1122_v55 = vsel %vm877_vm1, %v1120_v53, 0.0  ;;  %1765 = vmatprep.subr.mxu0 %v1447_v4  ;;  %v1144_v51 = vrot.slane %v1106_v45, %v6563_v43  ;;  %v1136_v52 = vrot.slane %v1106_v45, %v6566_v44  ;;  %v1331_v45 = vld [vmem:[%s10018_s11 + $0x508] sm:$0xff] }
 0x4ad   : > { %1766 = vmatpush2.msra.mxu0 %v1446_v6  ;;  %v1329_v6 = vld [vmem:[%s10018_s11 + $0x4f8] sm:$0xff] }
 0x4ae   : > { %v1123_v56 = vadd.f32 %v1122_v55, %v1121_v54  ;;  %1767 = vmatprep.subr.mxu0 %v1435_v8  ;;  %v1159_v54 = vrot.slane %v1107_v46, %v6560_v42  ;;  %v1163_v55 = vrot.slane %v1107_v46, %v6563_v43  ;;  %v1328_v8 = vld [vmem:[%s10018_s11 + $0x4f0] sm:$0xff]  ;;  %v1221_v46 = vld [vmem:[%s10018_s11 + $0x198] sm:$0xff] }
 0x4af   : > { %1768 = vmatpush2.msra.mxu0 %v1434_v11  ;;  %v1616_v11 = vld [vmem:[%s10018_s11 + $0xdf0] sm:$0xff] }
 0x4b0   : > { %1124 = vadd.xlane.f32.xlu1 %v1123_v56  ;;  %1769 = vmatprep.subr.mxu0 %v1423_v13  ;;  %v1605_v13 = vld [vmem:[%s10018_s11 + $0xd98] sm:$0xff] }
 0x4b1   : > { %1770 = vmatpush2.msra.mxu0 %v1422_v15  ;;  %v1604_v15 = vld [vmem:[%s10018_s11 + $0xd90] sm:$0xff] }
 0x4b2   : > { %1771 = vmatprep.subr.mxu0 %v1411_v17  ;;  %v1593_v17 = vld [vmem:[%s10018_s11 + $0xd38] sm:$0xff] }
 0x4b3   : > { %1772 = vmatpush2.msra.mxu0 %v1410_v19  ;;  %v1592_v19 = vld [vmem:[%s10018_s11 + $0xd30] sm:$0xff] }
 0x4b4   : > { %1773 = vmatprep.subr.mxu0 %v1399_v21  ;;  %v1581_v21 = vld [vmem:[%s10018_s11 + $0xcd8] sm:$0xff] }
 0x4b5   : > { %1774 = vmatpush2.msra.mxu0 %v1398_v23  ;;  %v1580_v23 = vld [vmem:[%s10018_s11 + $0xcd0] sm:$0xff] }
 0x4b6   : > { %1775 = vmatprep.subr.mxu0 %v1387_v25  ;;  %v1569_v25 = vld [vmem:[%s10018_s11 + $0xc78] sm:$0xff] }
 0x4b7   : > { %1776 = vmatpush2.msra.mxu0 %v1386_v27  ;;  %v1568_v27 = vld [vmem:[%s10018_s11 + $0xc70] sm:$0xff] }
 0x4b8   : > { %1777 = vmatprep.subr.mxu0 %v1375_v29  ;;  %v1557_v29 = vld [vmem:[%s10018_s11 + $0xc18] sm:$0xff] }
 0x4b9   : > { %1778 = vmatpush2.msra.mxu0 %v1374_v31  ;;  %v1556_v31 = vld [vmem:[%s10018_s11 + $0xc10] sm:$0xff] }
 0x4ba   : > { %1779 = vmatprep.subr.mxu0 %v1363_v33  ;;  %v1355_v33 = vld [vmem:[%s10018_s11 + $0x5c8] sm:$0xff] }
 0x4bb   : > { %1780 = vmatpush2.msra.mxu0 %v1362_v35  ;;  %v1354_v35 = vld [vmem:[%s10018_s11 + $0x5c0] sm:$0xff] }
 0x4bc   : > { %1946 = vmatprep.subr.mxu0 %v1641_v36  ;;  %v1244_v36 = vld [vmem:[%s10018_s11 + $0x250] sm:$0xff] }
 0x539   : > { %v1125_v37 = vpop.xlane.xlu1 %1124 }
 0x53a   : > { %v1126_v38 = vmul.f32 0.003125, %v1125_v37  ;;  %v1343_v37 = vld [vmem:[%s10018_s11 + $0x568] sm:$0xff] }
 0x53c   : > { %v1127_v39 = vadd.f32 1e-05, %v1126_v38  ;;  %v1233_v38 = vld [vmem:[%s10018_s11 + $0x1f8] sm:$0xff] }
 0x53e   : > { %5960 = vrsqrt.f32 %v1127_v39  ;;  %v1342_v39 = vld [vmem:[%s10018_s11 + $0x560] sm:$0xff] }
 0x54b   : > { %v5961_v53 = vpop.eup %5960 }
 0x54c   : > { %v1130_v56 = vmul.f32 %v5961_v53, %v6419_v49  ;;  %v1131_v57 = vmul.f32 %v5961_v53, %v6422_v50  ;;  %v1129_v58 = vmul.f32 %v5961_v53, %v6416_v48  ;;  %v1341_v49 = vld [vmem:[%s10018_s11 + $0x558] sm:$0xff]  ;;  %v1640_v48 = vld [vmem:[%s10018_s11 + $0xeb0] sm:$0xff] }
 0x54d   : > { %v1340_v50 = vld [vmem:[%s10018_s11 + $0x550] sm:$0xff]  ;;  %v1209_v53 = vld [vmem:[%s10018_s11 + $0x138] sm:$0xff] }
 0x54e   : > { %v1149_v60 = vmul.f32 %v1140_v47, %v1130_v56  ;;  %v1150_v61 = vmul.f32 %v1144_v51, %v1131_v57  ;;  %v1148_v62 = vmul.f32 %v1136_v52, %v1129_v58  ;;  %v1330_v47 = vld [vmem:[%s10018_s11 + $0x500] sm:$0xff]  ;;  %v1220_v51 = vld [vmem:[%s10018_s11 + $0x190] sm:$0xff]  ;;  %v1319_v52 = vld [vmem:[%s10018_s11 + $0x4a8] sm:$0xff] }
 0x54f   : > { %v1307_v56 = vld [vmem:[%s10018_s11 + $0x448] sm:$0xff]  ;;  %v1197_v57 = vld [vmem:[%s10018_s11 + $0xd8] sm:$0xff]  ;;  %v1306_v58 = vld [vmem:[%s10018_s11 + $0x440] sm:$0xff] }
 0x550   : > { %v6583_v63 = vadd.f32 %v1159_v54, %v1149_v60  ;;  %v6585_v0 = vadd.f32 %v1163_v55, %v1150_v61  ;;  %v6590_v4 = vadd.f32 %v1155_v59, %v1148_v62  ;;  %v1318_v54 = vld [vmem:[%s10018_s11 + $0x4a0] sm:$0xff]  ;;  %v1208_v55 = vld [vmem:[%s10018_s11 + $0x130] sm:$0xff]  ;;  %v1295_v60 = vld [vmem:[%s10018_s11 + $0x3e8] sm:$0xff] }
 0x551   : > { %v1196_v59 = vld [vmem:[%s10018_s11 + $0xd0] sm:$0xff]  ;;  %v1185_v61 = vld [vmem:[%s10018_s11 + $0x78] sm:$0xff]  ;;  %v1294_v62 = vld [vmem:[%s10018_s11 + $0x3e0] sm:$0xff] }
 0x552   : > { %1781 = vmatprep.mubr.f32.mxu0 %v6583_v63  ;;  %5397 = vmatmul.mubr.msk.f32.vlgmr.msra.gmra.mxu1 %vm877_vm1, %v6585_v0 }
 0x553   : > { %1860 = vmatpush1.msra.mxu1 %v1352_v2  ;;  %1782 = vmatmul.mubr.f32.vlgmr.msra.gmra.mxu0 %v6590_v4  ;;  %v1184_v2 = vld [vmem:[%s10018_s11 + $0x70] sm:$0xff] }
 0x554   : > { %1861 = vmatprep.subr.mxu1 %v1341_v49  ;;  %1923 = vmatprep.mubr.f32.mxu1 %v6583_v63  ;;  %v1283_v49 = vld [vmem:[%s10018_s11 + $0x388] sm:$0xff] }
 0x555   : > { %1947 = vmatpush1.msra.mxu0 %v1640_v48  ;;  %1862 = vmatpush1.msra.mxu1 %v1340_v50  ;;  %v1173_v48 = vld [vmem:[%s10018_s11 + $0x18] sm:$0xff]  ;;  %v1282_v50 = vld [vmem:[%s10018_s11 + $0x380] sm:$0xff] }
 0x556   : > { %1948 = vmatprep.subr.mxu0 %v1629_v5  ;;  %1863 = vmatprep.subr.mxu1 %v1329_v6  ;;  %v1172_v5 = vld [vmem:[%s10018_s11 + $0x10] sm:$0xff]  ;;  %v1271_v6 = vld [vmem:[%s10018_s11 + $0x328] sm:$0xff] }
 0x557   : > { %1949 = vmatpush1.msra.mxu0 %v1628_v7  ;;  %1864 = vmatpush1.msra.mxu1 %v1328_v8  ;;  %v1545_v7 = vld [vmem:[%s10018_s11 + $0xbb8] sm:$0xff]  ;;  %v1270_v8 = vld [vmem:[%s10018_s11 + $0x320] sm:$0xff] }
 0x558   : > { %1950 = vmatprep.subr.mxu0 %v1617_v9  ;;  %1865 = vmatprep.subr.mxu1 %v1317_v10  ;;  %v1544_v9 = vld [vmem:[%s10018_s11 + $0xbb0] sm:$0xff]  ;;  %v1259_v10 = vld [vmem:[%s10018_s11 + $0x2c8] sm:$0xff] }
 0x559   : > { %1951 = vmatpush1.msra.mxu0 %v1616_v11  ;;  %1866 = vmatpush1.msra.mxu1 %v1316_v12  ;;  %v1533_v11 = vld [vmem:[%s10018_s11 + $0xb58] sm:$0xff]  ;;  %v1258_v12 = vld [vmem:[%s10018_s11 + $0x2c0] sm:$0xff] }
 0x55a   : > { %1952 = vmatprep.subr.mxu0 %v1605_v13  ;;  %1867 = vmatprep.subr.mxu1 %v1305_v14  ;;  %v1532_v13 = vld [vmem:[%s10018_s11 + $0xb50] sm:$0xff]  ;;  %v1247_v14 = vld [vmem:[%s10018_s11 + $0x268] sm:$0xff] }
 0x55b   : > { %1953 = vmatpush1.msra.mxu0 %v1604_v15  ;;  %1868 = vmatpush1.msra.mxu1 %v1304_v16  ;;  %v1521_v15 = vld [vmem:[%s10018_s11 + $0xaf8] sm:$0xff]  ;;  %v1246_v16 = vld [vmem:[%s10018_s11 + $0x260] sm:$0xff] }
 0x55c   : > { %1954 = vmatprep.subr.mxu0 %v1593_v17  ;;  %1869 = vmatprep.subr.mxu1 %v1293_v18  ;;  %v1520_v17 = vld [vmem:[%s10018_s11 + $0xaf0] sm:$0xff]  ;;  %v1235_v18 = vld [vmem:[%s10018_s11 + $0x208] sm:$0xff] }
 0x55d   : > { %1955 = vmatpush1.msra.mxu0 %v1592_v19  ;;  %1870 = vmatpush1.msra.mxu1 %v1292_v20  ;;  %v1509_v19 = vld [vmem:[%s10018_s11 + $0xa98] sm:$0xff]  ;;  %v1234_v20 = vld [vmem:[%s10018_s11 + $0x200] sm:$0xff] }
 0x55e   : > { %1956 = vmatprep.subr.mxu0 %v1581_v21  ;;  %1871 = vmatprep.subr.mxu1 %v1281_v22  ;;  %v1508_v21 = vld [vmem:[%s10018_s11 + $0xa90] sm:$0xff]  ;;  %v1223_v22 = vld [vmem:[%s10018_s11 + $0x1a8] sm:$0xff] }
 0x55f   : > { %1957 = vmatpush1.msra.mxu0 %v1580_v23  ;;  %1872 = vmatpush1.msra.mxu1 %v1280_v24  ;;  %v1497_v23 = vld [vmem:[%s10018_s11 + $0xa38] sm:$0xff]  ;;  %v1222_v24 = vld [vmem:[%s10018_s11 + $0x1a0] sm:$0xff] }
 0x560   : > { %1958 = vmatprep.subr.mxu0 %v1569_v25  ;;  %1873 = vmatprep.subr.mxu1 %v1269_v26  ;;  %v1496_v25 = vld [vmem:[%s10018_s11 + $0xa30] sm:$0xff]  ;;  %v1211_v26 = vld [vmem:[%s10018_s11 + $0x148] sm:$0xff] }
 0x561   : > { %1959 = vmatpush1.msra.mxu0 %v1568_v27  ;;  %1874 = vmatpush1.msra.mxu1 %v1268_v28  ;;  %v1485_v27 = vld [vmem:[%s10018_s11 + $0x9d8] sm:$0xff]  ;;  %v1210_v28 = vld [vmem:[%s10018_s11 + $0x140] sm:$0xff] }
 0x562   : > { %1960 = vmatprep.subr.mxu0 %v1557_v29  ;;  %1875 = vmatprep.subr.mxu1 %v1257_v30  ;;  %v1484_v29 = vld [vmem:[%s10018_s11 + $0x9d0] sm:$0xff]  ;;  %v1199_v30 = vld [vmem:[%s10018_s11 + $0xe8] sm:$0xff] }
 0x563   : > { %1961 = vmatpush1.msra.mxu0 %v1556_v31  ;;  %1994 = vmatprep.mubr.f32.mxu0 %v5992_v1  ;;  %v1473_v31 = vld [vmem:[%s10018_s11 + $0x978] sm:$0xff] }
 0x564   : > { %1876 = vmatpush1.msra.mxu1 %v1256_v32  ;;  %5398 = vmatmul.mubr.msk.f32.vlgmr.msra.gmra.mxu0 %vm877_vm1, %v6585_v0  ;;  %v1198_v32 = vld [vmem:[%s10018_s11 + $0xe0] sm:$0xff] }
 0x565   : > { %2001 = vmatprep.subr.mxu0 %v1355_v33  ;;  %1877 = vmatprep.subr.mxu1 %v1245_v34  ;;  %v1472_v33 = vld [vmem:[%s10018_s11 + $0x970] sm:$0xff]  ;;  %v1187_v34 = vld [vmem:[%s10018_s11 + $0x88] sm:$0xff] }
 0x566   : > { %2002 = vmatpush1.msra.mxu0 %v1354_v35  ;;  %2065 = vmatprep.mubr.f32.mxu0 %v6583_v63  ;;  %v1461_v35 = vld [vmem:[%s10018_s11 + $0x918] sm:$0xff] }
 0x567   : > { %1878 = vmatpush1.msra.mxu1 %v1244_v36  ;;  %2003 = vmatprep.subr.mxu0 %v1343_v37  ;;  %v1186_v36 = vld [vmem:[%s10018_s11 + $0x80] sm:$0xff]  ;;  %v1460_v37 = vld [vmem:[%s10018_s11 + $0x910] sm:$0xff] }
 0x568   : > { %1879 = vmatprep.subr.mxu1 %v1233_v38  ;;  %2004 = vmatpush1.msra.mxu0 %v1342_v39  ;;  %v1175_v38 = vld [vmem:[%s10018_s11 + $0x28] sm:$0xff]  ;;  %v1449_v39 = vld [vmem:[%s10018_s11 + $0x8b8] sm:$0xff] }
 0x569   : > { %1880 = vmatpush1.msra.mxu1 %v1232_v40  ;;  %2005 = vmatprep.subr.mxu0 %v1331_v45  ;;  %v1174_v40 = vld [vmem:[%s10018_s11 + $0x20] sm:$0xff]  ;;  %v1448_v45 = vld [vmem:[%s10018_s11 + $0x8b0] sm:$0xff] }
 0x56a   : > { %1881 = vmatprep.subr.mxu1 %v1221_v46  ;;  %2006 = vmatpush1.msra.mxu0 %v1330_v47  ;;  %v1547_v46 = vld [vmem:[%s10018_s11 + $0xbc8] sm:$0xff]  ;;  %v1437_v47 = vld [vmem:[%s10018_s11 + $0x858] sm:$0xff] }
 0x56b   : > { %1882 = vmatpush1.msra.mxu1 %v1220_v51  ;;  %2007 = vmatprep.subr.mxu0 %v1319_v52  ;;  %v1546_v51 = vld [vmem:[%s10018_s11 + $0xbc0] sm:$0xff]  ;;  %v1436_v52 = vld [vmem:[%s10018_s11 + $0x850] sm:$0xff] }
 0x56c   : > { %1883 = vmatprep.subr.mxu1 %v1209_v53  ;;  %2008 = vmatpush1.msra.mxu0 %v1318_v54  ;;  %v1535_v53 = vld [vmem:[%s10018_s11 + $0xb68] sm:$0xff]  ;;  %v1425_v54 = vld [vmem:[%s10018_s11 + $0x7f8] sm:$0xff] }
 0x56d   : > { %1884 = vmatpush1.msra.mxu1 %v1208_v55  ;;  %2009 = vmatprep.subr.mxu0 %v1307_v56  ;;  %v1534_v55 = vld [vmem:[%s10018_s11 + $0xb60] sm:$0xff]  ;;  %v1424_v56 = vld [vmem:[%s10018_s11 + $0x7f0] sm:$0xff] }
 0x56e   : > { %1885 = vmatprep.subr.mxu1 %v1197_v57  ;;  %2010 = vmatpush1.msra.mxu0 %v1306_v58  ;;  %v1523_v57 = vld [vmem:[%s10018_s11 + $0xb08] sm:$0xff]  ;;  %v1413_v58 = vld [vmem:[%s10018_s11 + $0x798] sm:$0xff] }
 0x56f   : > { %1886 = vmatpush1.msra.mxu1 %v1196_v59  ;;  %2011 = vmatprep.subr.mxu0 %v1295_v60  ;;  %v1522_v59 = vld [vmem:[%s10018_s11 + $0xb00] sm:$0xff]  ;;  %v1412_v60 = vld [vmem:[%s10018_s11 + $0x790] sm:$0xff] }
 0x570   : > { %1887 = vmatprep.subr.mxu1 %v1185_v61  ;;  %2012 = vmatpush1.msra.mxu0 %v1294_v62  ;;  %v1511_v61 = vld [vmem:[%s10018_s11 + $0xaa8] sm:$0xff]  ;;  %v1401_v62 = vld [vmem:[%s10018_s11 + $0x738] sm:$0xff] }
 0x571   : > { %1888 = vmatpush1.msra.mxu1 %v1184_v2  ;;  %2013 = vmatprep.subr.mxu0 %v1283_v49  ;;  %v1510_v2 = vld [vmem:[%s10018_s11 + $0xaa0] sm:$0xff]  ;;  %v1400_v49 = vld [vmem:[%s10018_s11 + $0x730] sm:$0xff] }
 0x572   : > { %1889 = vmatprep.subr.mxu1 %v1173_v48  ;;  %2014 = vmatpush1.msra.mxu0 %v1282_v50  ;;  %v1499_v48 = vld [vmem:[%s10018_s11 + $0xa48] sm:$0xff]  ;;  %v1389_v50 = vld [vmem:[%s10018_s11 + $0x6d8] sm:$0xff] }
 0x573   : > { %1890 = vmatpush1.msra.mxu1 %v1172_v5  ;;  %2015 = vmatprep.subr.mxu0 %v1271_v6  ;;  %v1498_v5 = vld [vmem:[%s10018_s11 + $0xa40] sm:$0xff]  ;;  %v1388_v6 = vld [vmem:[%s10018_s11 + $0x6d0] sm:$0xff] }
 0x574   : > { %1891 = vmatprep.subr.mxu1 %v1545_v7  ;;  %2016 = vmatpush1.msra.mxu0 %v1270_v8  ;;  %v1487_v7 = vld [vmem:[%s10018_s11 + $0x9e8] sm:$0xff]  ;;  %v1377_v8 = vld [vmem:[%s10018_s11 + $0x678] sm:$0xff] }
 0x575   : > { %1892 = vmatpush2.msra.mxu1 %v1544_v9  ;;  %2017 = vmatprep.subr.mxu0 %v1259_v10  ;;  %v1486_v9 = vld [vmem:[%s10018_s11 + $0x9e0] sm:$0xff]  ;;  %v1376_v10 = vld [vmem:[%s10018_s11 + $0x670] sm:$0xff] }
 0x576   : > { %1893 = vmatprep.subr.mxu1 %v1533_v11  ;;  %2018 = vmatpush1.msra.mxu0 %v1258_v12  ;;  %v1475_v11 = vld [vmem:[%s10018_s11 + $0x988] sm:$0xff]  ;;  %v1365_v12 = vld [vmem:[%s10018_s11 + $0x618] sm:$0xff] }
 0x577   : > { %1894 = vmatpush2.msra.mxu1 %v1532_v13  ;;  %2019 = vmatprep.subr.mxu0 %v1247_v14  ;;  %v1474_v13 = vld [vmem:[%s10018_s11 + $0x980] sm:$0xff]  ;;  %v1364_v14 = vld [vmem:[%s10018_s11 + $0x610] sm:$0xff] }
 0x578   : > { %1895 = vmatprep.subr.mxu1 %v1521_v15  ;;  %2020 = vmatpush1.msra.mxu0 %v1246_v16  ;;  %v1463_v15 = vld [vmem:[%s10018_s11 + $0x928] sm:$0xff]  ;;  %v1462_v16 = vld [vmem:[%s10018_s11 + $0x920] sm:$0xff] }
 0x579   : > { %1896 = vmatpush2.msra.mxu1 %v1520_v17  ;;  %2021 = vmatprep.subr.mxu0 %v1235_v18  ;;  %v1643_v17 = vld [vmem:[%s10018_s11 + $0xec8] sm:$0xff] }
 0x57a   : > { %1897 = vmatprep.subr.mxu1 %v1509_v19  ;;  %2022 = vmatpush1.msra.mxu0 %v1234_v20  ;;  %v1451_v18 = vld [vmem:[%s10018_s11 + $0x8c8] sm:$0xff]  ;;  %v1642_v19 = vld [vmem:[%s10018_s11 + $0xec0] sm:$0xff] }
 0x57b   : > { %1898 = vmatpush2.msra.mxu1 %v1508_v21  ;;  %2023 = vmatprep.subr.mxu0 %v1223_v22  ;;  %v1450_v20 = vld [vmem:[%s10018_s11 + $0x8c0] sm:$0xff]  ;;  %v1631_v21 = vld [vmem:[%s10018_s11 + $0xe68] sm:$0xff] }
 0x57c   : > { %1899 = vmatprep.subr.mxu1 %v1497_v23  ;;  %2024 = vmatpush1.msra.mxu0 %v1222_v24  ;;  %v1439_v22 = vld [vmem:[%s10018_s11 + $0x868] sm:$0xff]  ;;  %v1630_v23 = vld [vmem:[%s10018_s11 + $0xe60] sm:$0xff] }
 0x57d   : > { %1900 = vmatpush2.msra.mxu1 %v1496_v25  ;;  %2025 = vmatprep.subr.mxu0 %v1211_v26  ;;  %v1438_v24 = vld [vmem:[%s10018_s11 + $0x860] sm:$0xff]  ;;  %v1619_v25 = vld [vmem:[%s10018_s11 + $0xe08] sm:$0xff] }
 0x57e   : > { %1901 = vmatprep.subr.mxu1 %v1485_v27  ;;  %2026 = vmatpush1.msra.mxu0 %v1210_v28  ;;  %v1427_v26 = vld [vmem:[%s10018_s11 + $0x808] sm:$0xff]  ;;  %v1618_v27 = vld [vmem:[%s10018_s11 + $0xe00] sm:$0xff] }
 0x57f   : > { %1902 = vmatpush2.msra.mxu1 %v1484_v29  ;;  %2027 = vmatprep.subr.mxu0 %v1199_v30  ;;  %v1426_v28 = vld [vmem:[%s10018_s11 + $0x800] sm:$0xff]  ;;  %v1607_v29 = vld [vmem:[%s10018_s11 + $0xda8] sm:$0xff] }
 0x580   : > { %1903 = vmatprep.subr.mxu1 %v1473_v31  ;;  %2028 = vmatpush1.msra.mxu0 %v1198_v32  ;;  %v1415_v30 = vld [vmem:[%s10018_s11 + $0x7a8] sm:$0xff]  ;;  %v1606_v31 = vld [vmem:[%s10018_s11 + $0xda0] sm:$0xff] }
 0x581   : > { %1904 = vmatpush2.msra.mxu1 %v1472_v33  ;;  %2029 = vmatprep.subr.mxu0 %v1187_v34  ;;  %v1414_v32 = vld [vmem:[%s10018_s11 + $0x7a0] sm:$0xff]  ;;  %v1595_v33 = vld [vmem:[%s10018_s11 + $0xd48] sm:$0xff] }
 0x582   : > { %1905 = vmatprep.subr.mxu1 %v1461_v35  ;;  %2030 = vmatpush1.msra.mxu0 %v1186_v36  ;;  %v1403_v34 = vld [vmem:[%s10018_s11 + $0x748] sm:$0xff]  ;;  %v1594_v35 = vld [vmem:[%s10018_s11 + $0xd40] sm:$0xff] }
 0x583   : > { %1906 = vmatpush2.msra.mxu1 %v1460_v37  ;;  %2031 = vmatprep.subr.mxu0 %v1175_v38  ;;  %v1402_v36 = vld [vmem:[%s10018_s11 + $0x740] sm:$0xff]  ;;  %v1583_v37 = vld [vmem:[%s10018_s11 + $0xce8] sm:$0xff] }
 0x584   : > { %1907 = vmatprep.subr.mxu1 %v1449_v39  ;;  %2032 = vmatpush1.msra.mxu0 %v1174_v40  ;;  %v1391_v38 = vld [vmem:[%s10018_s11 + $0x6e8] sm:$0xff]  ;;  %v1582_v39 = vld [vmem:[%s10018_s11 + $0xce0] sm:$0xff] }
 0x585   : > { %1908 = vmatpush2.msra.mxu1 %v1448_v45  ;;  %2033 = vmatprep.subr.mxu0 %v1547_v46  ;;  %v1390_v40 = vld [vmem:[%s10018_s11 + $0x6e0] sm:$0xff]  ;;  %v1571_v45 = vld [vmem:[%s10018_s11 + $0xc88] sm:$0xff] }
 0x586   : > { %1909 = vmatprep.subr.mxu1 %v1437_v47  ;;  %2034 = vmatpush2.msra.mxu0 %v1546_v51  ;;  %v1379_v46 = vld [vmem:[%s10018_s11 + $0x688] sm:$0xff]  ;;  %v1570_v47 = vld [vmem:[%s10018_s11 + $0xc80] sm:$0xff] }
 0x587   : > { %1910 = vmatpush2.msra.mxu1 %v1436_v52  ;;  %2035 = vmatprep.subr.mxu0 %v1535_v53  ;;  %v1378_v51 = vld [vmem:[%s10018_s11 + $0x680] sm:$0xff]  ;;  %v1559_v52 = vld [vmem:[%s10018_s11 + $0xc28] sm:$0xff] }
 0x588   : > { %1911 = vmatprep.subr.mxu1 %v1425_v54  ;;  %2036 = vmatpush2.msra.mxu0 %v1534_v55  ;;  %v1367_v53 = vld [vmem:[%s10018_s11 + $0x628] sm:$0xff]  ;;  %v1558_v54 = vld [vmem:[%s10018_s11 + $0xc20] sm:$0xff] }
 0x589   : > { %1912 = vmatpush2.msra.mxu1 %v1424_v56  ;;  %2037 = vmatprep.subr.mxu0 %v1523_v57  ;;  %v1366_v55 = vld [vmem:[%s10018_s11 + $0x620] sm:$0xff]  ;;  %v1357_v56 = vld [vmem:[%s10018_s11 + $0x5d8] sm:$0xff]  ;;  %v1356_v57 = vld [vmem:[%s10018_s11 + $0x5d0] sm:$0xff] }
 0x58a   : > { %1913 = vmatprep.subr.mxu1 %v1413_v58  ;;  %2038 = vmatpush2.msra.mxu0 %v1522_v59  ;;  %v1645_v58 = vld [vmem:[%s10018_s11 + $0xed8] sm:$0xff] }
 0x58b   : > { %1914 = vmatpush2.msra.mxu1 %v1412_v60  ;;  %2039 = vmatprep.subr.mxu0 %v1511_v61  ;;  %v1345_v59 = vld [vmem:[%s10018_s11 + $0x578] sm:$0xff]  ;;  %v1644_v60 = vld [vmem:[%s10018_s11 + $0xed0] sm:$0xff] }
 0x58c   : > { %1915 = vmatprep.subr.mxu1 %v1401_v62  ;;  %2040 = vmatpush2.msra.mxu0 %v1510_v2  ;;  %v1344_v61 = vld [vmem:[%s10018_s11 + $0x570] sm:$0xff]  ;;  %v1633_v62 = vld [vmem:[%s10018_s11 + $0xe78] sm:$0xff] }
 0x58d   : > { %1916 = vmatpush2.msra.mxu1 %v1400_v49  ;;  %2041 = vmatprep.subr.mxu0 %v1499_v48  ;;  %v1333_v2 = vld [vmem:[%s10018_s11 + $0x518] sm:$0xff]  ;;  %v1632_v49 = vld [vmem:[%s10018_s11 + $0xe70] sm:$0xff] }
 0x58e   : > { %1917 = vmatprep.subr.mxu1 %v1389_v50  ;;  %2042 = vmatpush2.msra.mxu0 %v1498_v5  ;;  %v1332_v48 = vld [vmem:[%s10018_s11 + $0x510] sm:$0xff]  ;;  %v1621_v50 = vld [vmem:[%s10018_s11 + $0xe18] sm:$0xff] }
 0x58f   : > { %1918 = vmatpush2.msra.mxu1 %v1388_v6  ;;  %2043 = vmatprep.subr.mxu0 %v1487_v7  ;;  %v1321_v5 = vld [vmem:[%s10018_s11 + $0x4b8] sm:$0xff]  ;;  %v1620_v6 = vld [vmem:[%s10018_s11 + $0xe10] sm:$0xff] }
 0x590   : > { %1919 = vmatprep.subr.mxu1 %v1377_v8  ;;  %2044 = vmatpush2.msra.mxu0 %v1486_v9  ;;  %v1320_v7 = vld [vmem:[%s10018_s11 + $0x4b0] sm:$0xff]  ;;  %v1609_v8 = vld [vmem:[%s10018_s11 + $0xdb8] sm:$0xff] }
 0x591   : > { %1920 = vmatpush2.msra.mxu1 %v1376_v10  ;;  %2045 = vmatprep.subr.mxu0 %v1475_v11  ;;  %v1309_v9 = vld [vmem:[%s10018_s11 + $0x458] sm:$0xff]  ;;  %v1608_v10 = vld [vmem:[%s10018_s11 + $0xdb0] sm:$0xff] }
 0x592   : > { %1921 = vmatprep.subr.mxu1 %v1365_v12  ;;  %2046 = vmatpush2.msra.mxu0 %v1474_v13  ;;  %v1308_v11 = vld [vmem:[%s10018_s11 + $0x450] sm:$0xff]  ;;  %v1597_v12 = vld [vmem:[%s10018_s11 + $0xd58] sm:$0xff] }
 0x593   : > { %1922 = vmatpush2.msra.mxu1 %v1364_v14  ;;  %2047 = vmatprep.subr.mxu0 %v1463_v15  ;;  %v1297_v13 = vld [vmem:[%s10018_s11 + $0x3f8] sm:$0xff]  ;;  %v1596_v14 = vld [vmem:[%s10018_s11 + $0xd50] sm:$0xff] }
 0x594   : > { %1924 = vmatmul.mubr.f32.vlgmr.msra.gmra.mxu1 %v6590_v4  ;;  %2048 = vmatpush2.msra.mxu0 %v1462_v16  ;;  %v1296_v15 = vld [vmem:[%s10018_s11 + $0x3f0] sm:$0xff]  ;;  %v1585_v16 = vld [vmem:[%s10018_s11 + $0xcf8] sm:$0xff] }
 0x595   : > { %2088 = vmatprep.subr.mxu1 %v1643_v17  ;;  %2049 = vmatprep.subr.mxu0 %v1451_v18  ;;  %v1285_v17 = vld [vmem:[%s10018_s11 + $0x398] sm:$0xff]  ;;  %v1584_v18 = vld [vmem:[%s10018_s11 + $0xcf0] sm:$0xff] }
 0x596   : > { %2089 = vmatpush1.msra.mxu1 %v1642_v19  ;;  %2050 = vmatpush2.msra.mxu0 %v1450_v20  ;;  %v1284_v19 = vld [vmem:[%s10018_s11 + $0x390] sm:$0xff]  ;;  %v1573_v20 = vld [vmem:[%s10018_s11 + $0xc98] sm:$0xff] }
 0x597   : > { %2090 = vmatprep.subr.mxu1 %v1631_v21  ;;  %2051 = vmatprep.subr.mxu0 %v1439_v22  ;;  %v1273_v21 = vld [vmem:[%s10018_s11 + $0x338] sm:$0xff]  ;;  %v1572_v22 = vld [vmem:[%s10018_s11 + $0xc90] sm:$0xff] }
 0x598   : > { %2091 = vmatpush1.msra.mxu1 %v1630_v23  ;;  %2052 = vmatpush2.msra.mxu0 %v1438_v24  ;;  %v1272_v23 = vld [vmem:[%s10018_s11 + $0x330] sm:$0xff]  ;;  %v1561_v24 = vld [vmem:[%s10018_s11 + $0xc38] sm:$0xff] }
 0x599   : > { %2092 = vmatprep.subr.mxu1 %v1619_v25  ;;  %2053 = vmatprep.subr.mxu0 %v1427_v26  ;;  %v1261_v25 = vld [vmem:[%s10018_s11 + $0x2d8] sm:$0xff]  ;;  %v1560_v26 = vld [vmem:[%s10018_s11 + $0xc30] sm:$0xff] }
 0x59a   : > { %2093 = vmatpush1.msra.mxu1 %v1618_v27  ;;  %2054 = vmatpush2.msra.mxu0 %v1426_v28  ;;  %v1260_v27 = vld [vmem:[%s10018_s11 + $0x2d0] sm:$0xff]  ;;  %v1359_v28 = vld [vmem:[%s10018_s11 + $0x5e8] sm:$0xff] }
 0x59b   : > { %2094 = vmatprep.subr.mxu1 %v1607_v29  ;;  %2055 = vmatprep.subr.mxu0 %v1415_v30  ;;  %v1249_v29 = vld [vmem:[%s10018_s11 + $0x278] sm:$0xff]  ;;  %v1358_v30 = vld [vmem:[%s10018_s11 + $0x5e0] sm:$0xff] }
 0x59c   : > { %2095 = vmatpush1.msra.mxu1 %v1606_v31  ;;  %2056 = vmatpush2.msra.mxu0 %v1414_v32  ;;  %v1248_v31 = vld [vmem:[%s10018_s11 + $0x270] sm:$0xff]  ;;  %v1347_v32 = vld [vmem:[%s10018_s11 + $0x588] sm:$0xff] }
 0x59d   : > { %2096 = vmatprep.subr.mxu1 %v1595_v33  ;;  %2057 = vmatprep.subr.mxu0 %v1403_v34  ;;  %v1237_v33 = vld [vmem:[%s10018_s11 + $0x218] sm:$0xff]  ;;  %v1346_v34 = vld [vmem:[%s10018_s11 + $0x580] sm:$0xff] }
 0x59e   : > { %2097 = vmatpush1.msra.mxu1 %v1594_v35  ;;  %2058 = vmatpush2.msra.mxu0 %v1402_v36  ;;  %v1236_v35 = vld [vmem:[%s10018_s11 + $0x210] sm:$0xff]  ;;  %v1335_v36 = vld [vmem:[%s10018_s11 + $0x528] sm:$0xff] }
 0x59f   : > { %2098 = vmatprep.subr.mxu1 %v1583_v37  ;;  %2059 = vmatprep.subr.mxu0 %v1391_v38  ;;  %v1225_v37 = vld [vmem:[%s10018_s11 + $0x1b8] sm:$0xff]  ;;  %v1334_v38 = vld [vmem:[%s10018_s11 + $0x520] sm:$0xff] }
 0x5a0   : > { %2099 = vmatpush1.msra.mxu1 %v1582_v39  ;;  %2060 = vmatpush2.msra.mxu0 %v1390_v40  ;;  %v1224_v39 = vld [vmem:[%s10018_s11 + $0x1b0] sm:$0xff]  ;;  %v1323_v40 = vld [vmem:[%s10018_s11 + $0x4c8] sm:$0xff] }
 0x5a1   : > { %2100 = vmatprep.subr.mxu1 %v1571_v45  ;;  %2061 = vmatprep.subr.mxu0 %v1379_v46  ;;  %v1213_v45 = vld [vmem:[%s10018_s11 + $0x158] sm:$0xff]  ;;  %v1322_v46 = vld [vmem:[%s10018_s11 + $0x4c0] sm:$0xff] }
 0x5a2   : > { %2101 = vmatpush1.msra.mxu1 %v1570_v47  ;;  %2062 = vmatpush2.msra.mxu0 %v1378_v51  ;;  %v1212_v47 = vld [vmem:[%s10018_s11 + $0x150] sm:$0xff]  ;;  %v1311_v51 = vld [vmem:[%s10018_s11 + $0x468] sm:$0xff] }
 0x5a3   : > { %2102 = vmatprep.subr.mxu1 %v1559_v52  ;;  %2063 = vmatprep.subr.mxu0 %v1367_v53  ;;  %v1201_v52 = vld [vmem:[%s10018_s11 + $0xf8] sm:$0xff]  ;;  %v1310_v53 = vld [vmem:[%s10018_s11 + $0x460] sm:$0xff] }
 0x5a4   : > { %2103 = vmatpush1.msra.mxu1 %v1558_v54  ;;  %2136 = vmatprep.mubr.f32.mxu1 %v5992_v1  ;;  %v1200_v54 = vld [vmem:[%s10018_s11 + $0xf0] sm:$0xff] }
 0x5a5   : > { %2064 = vmatpush2.msra.mxu0 %v1366_v55  ;;  %5399 = vmatmul.mubr.msk.f32.vlgmr.msra.gmra.mxu1 %vm877_vm1, %v6585_v0  ;;  %v1299_v55 = vld [vmem:[%s10018_s11 + $0x408] sm:$0xff] }
 0x5a6   : > { %2143 = vmatprep.subr.mxu1 %v1357_v56  ;;  %2066 = vmatmul.mubr.f32.vlgmr.msra.gmra.mxu0 %v6590_v4  ;;  %v1189_v56 = vld [vmem:[%s10018_s11 + $0x98] sm:$0xff] }
 0x5a7   : > { %2144 = vmatpush1.msra.mxu1 %v1356_v57  ;;  %2207 = vmatprep.mubr.f32.mxu1 %v6583_v63  ;;  %v1298_v57 = vld [vmem:[%s10018_s11 + $0x400] sm:$0xff] }
 0x5a8   : > { %2230 = vmatprep.subr.mxu0 %v1645_v58  ;;  %2145 = vmatprep.subr.mxu1 %v1345_v59  ;;  %v1188_v58 = vld [vmem:[%s10018_s11 + $0x90] sm:$0xff]  ;;  %v1287_v59 = vld [vmem:[%s10018_s11 + $0x3a8] sm:$0xff] }
 0x5a9   : > { %2231 = vmatpush1.msra.mxu0 %v1644_v60  ;;  %2146 = vmatpush1.msra.mxu1 %v1344_v61  ;;  %v1177_v60 = vld [vmem:[%s10018_s11 + $0x38] sm:$0xff]  ;;  %v1286_v61 = vld [vmem:[%s10018_s11 + $0x3a0] sm:$0xff] }
 0x5aa   : > { %2232 = vmatprep.subr.mxu0 %v1633_v62  ;;  %2147 = vmatprep.subr.mxu1 %v1333_v2  ;;  %v1176_v62 = vld [vmem:[%s10018_s11 + $0x30] sm:$0xff]  ;;  %v1275_v2 = vld [vmem:[%s10018_s11 + $0x348] sm:$0xff] }
 0x5ab   : > { %2233 = vmatpush1.msra.mxu0 %v1632_v49  ;;  %2148 = vmatpush1.msra.mxu1 %v1332_v48  ;;  %v1549_v49 = vld [vmem:[%s10018_s11 + $0xbd8] sm:$0xff]  ;;  %v1274_v48 = vld [vmem:[%s10018_s11 + $0x340] sm:$0xff] }
 0x5ac   : > { %2234 = vmatprep.subr.mxu0 %v1621_v50  ;;  %2149 = vmatprep.subr.mxu1 %v1321_v5  ;;  %v1548_v50 = vld [vmem:[%s10018_s11 + $0xbd0] sm:$0xff]  ;;  %v1263_v5 = vld [vmem:[%s10018_s11 + $0x2e8] sm:$0xff] }
 0x5ad   : > { %2235 = vmatpush1.msra.mxu0 %v1620_v6  ;;  %2150 = vmatpush1.msra.mxu1 %v1320_v7  ;;  %v1537_v6 = vld [vmem:[%s10018_s11 + $0xb78] sm:$0xff]  ;;  %v1262_v7 = vld [vmem:[%s10018_s11 + $0x2e0] sm:$0xff] }
 0x5ae   : > { %2236 = vmatprep.subr.mxu0 %v1609_v8  ;;  %2151 = vmatprep.subr.mxu1 %v1309_v9  ;;  %v1536_v8 = vld [vmem:[%s10018_s11 + $0xb70] sm:$0xff]  ;;  %v1251_v9 = vld [vmem:[%s10018_s11 + $0x288] sm:$0xff] }
 0x5af   : > { %2237 = vmatpush1.msra.mxu0 %v1608_v10  ;;  %2152 = vmatpush1.msra.mxu1 %v1308_v11  ;;  %v1525_v10 = vld [vmem:[%s10018_s11 + $0xb18] sm:$0xff]  ;;  %v1250_v11 = vld [vmem:[%s10018_s11 + $0x280] sm:$0xff] }
 0x5b0   : > { %2238 = vmatprep.subr.mxu0 %v1597_v12  ;;  %2153 = vmatprep.subr.mxu1 %v1297_v13  ;;  %v1524_v12 = vld [vmem:[%s10018_s11 + $0xb10] sm:$0xff]  ;;  %v1239_v13 = vld [vmem:[%s10018_s11 + $0x228] sm:$0xff] }
 0x5b1   : > { %2239 = vmatpush1.msra.mxu0 %v1596_v14  ;;  %2154 = vmatpush1.msra.mxu1 %v1296_v15  ;;  %v1513_v14 = vld [vmem:[%s10018_s11 + $0xab8] sm:$0xff]  ;;  %v1238_v15 = vld [vmem:[%s10018_s11 + $0x220] sm:$0xff] }
 0x5b2   : > { %2240 = vmatprep.subr.mxu0 %v1585_v16  ;;  %2155 = vmatprep.subr.mxu1 %v1285_v17  ;;  %v1512_v16 = vld [vmem:[%s10018_s11 + $0xab0] sm:$0xff]  ;;  %v1227_v17 = vld [vmem:[%s10018_s11 + $0x1c8] sm:$0xff] }
 0x5b3   : > { %2241 = vmatpush1.msra.mxu0 %v1584_v18  ;;  %2156 = vmatpush1.msra.mxu1 %v1284_v19  ;;  %v1501_v18 = vld [vmem:[%s10018_s11 + $0xa58] sm:$0xff]  ;;  %v1226_v19 = vld [vmem:[%s10018_s11 + $0x1c0] sm:$0xff] }
 0x5b4   : > { %2242 = vmatprep.subr.mxu0 %v1573_v20  ;;  %2157 = vmatprep.subr.mxu1 %v1273_v21  ;;  %v1500_v20 = vld [vmem:[%s10018_s11 + $0xa50] sm:$0xff]  ;;  %v1215_v21 = vld [vmem:[%s10018_s11 + $0x168] sm:$0xff] }
 0x5b5   : > { %2243 = vmatpush1.msra.mxu0 %v1572_v22  ;;  %2158 = vmatpush1.msra.mxu1 %v1272_v23  ;;  %v1489_v22 = vld [vmem:[%s10018_s11 + $0x9f8] sm:$0xff]  ;;  %v1214_v23 = vld [vmem:[%s10018_s11 + $0x160] sm:$0xff] }
 0x5b6   : > { %2244 = vmatprep.subr.mxu0 %v1561_v24  ;;  %2159 = vmatprep.subr.mxu1 %v1261_v25  ;;  %v1488_v24 = vld [vmem:[%s10018_s11 + $0x9f0] sm:$0xff]  ;;  %v1203_v25 = vld [vmem:[%s10018_s11 + $0x108] sm:$0xff] }
 0x5b7   : > { %2245 = vmatpush1.msra.mxu0 %v1560_v26  ;;  %2278 = vmatprep.mubr.f32.mxu0 %v5992_v1  ;;  %v1477_v26 = vld [vmem:[%s10018_s11 + $0x998] sm:$0xff] }
 0x5b8   : > { %2160 = vmatpush1.msra.mxu1 %v1260_v27  ;;  %5400 = vmatmul.mubr.msk.f32.vlgmr.msra.gmra.mxu0 %vm877_vm1, %v6585_v0  ;;  %v1202_v27 = vld [vmem:[%s10018_s11 + $0x100] sm:$0xff] }
 0x5b9   : > { %2285 = vmatprep.subr.mxu0 %v1359_v28  ;;  %2161 = vmatprep.subr.mxu1 %v1249_v29  ;;  %v1476_v28 = vld [vmem:[%s10018_s11 + $0x990] sm:$0xff]  ;;  %v1191_v29 = vld [vmem:[%s10018_s11 + $0xa8] sm:$0xff] }
 0x5ba   : > { %2286 = vmatpush1.msra.mxu0 %v1358_v30  ;;  %2349 = vmatprep.mubr.f32.mxu0 %v6583_v63  ;;  %v1465_v30 = vld [vmem:[%s10018_s11 + $0x938] sm:$0xff] }
 0x5bb   : > { %2162 = vmatpush1.msra.mxu1 %v1248_v31  ;;  %2287 = vmatprep.subr.mxu0 %v1347_v32  ;;  %v1190_v31 = vld [vmem:[%s10018_s11 + $0xa0] sm:$0xff]  ;;  %v1464_v32 = vld [vmem:[%s10018_s11 + $0x930] sm:$0xff] }
 0x5bc   : > { %2163 = vmatprep.subr.mxu1 %v1237_v33  ;;  %2288 = vmatpush1.msra.mxu0 %v1346_v34  ;;  %v1179_v33 = vld [vmem:[%s10018_s11 + $0x48] sm:$0xff]  ;;  %v1453_v34 = vld [vmem:[%s10018_s11 + $0x8d8] sm:$0xff] }
 0x5bd   : > { %2164 = vmatpush1.msra.mxu1 %v1236_v35  ;;  %2289 = vmatprep.subr.mxu0 %v1335_v36  ;;  %v1178_v35 = vld [vmem:[%s10018_s11 + $0x40] sm:$0xff]  ;;  %v1452_v36 = vld [vmem:[%s10018_s11 + $0x8d0] sm:$0xff] }
 0x5be   : > { %2165 = vmatprep.subr.mxu1 %v1225_v37  ;;  %2290 = vmatpush1.msra.mxu0 %v1334_v38  ;;  %v1551_v37 = vld [vmem:[%s10018_s11 + $0xbe8] sm:$0xff]  ;;  %v1441_v38 = vld [vmem:[%s10018_s11 + $0x878] sm:$0xff] }
 0x5bf   : > { %2166 = vmatpush1.msra.mxu1 %v1224_v39  ;;  %2291 = vmatprep.subr.mxu0 %v1323_v40  ;;  %v1550_v39 = vld [vmem:[%s10018_s11 + $0xbe0] sm:$0xff]  ;;  %v1440_v40 = vld [vmem:[%s10018_s11 + $0x870] sm:$0xff] }
 0x5c0   : > { %2167 = vmatprep.subr.mxu1 %v1213_v45  ;;  %2292 = vmatpush1.msra.mxu0 %v1322_v46  ;;  %v1539_v45 = vld [vmem:[%s10018_s11 + $0xb88] sm:$0xff]  ;;  %v1429_v46 = vld [vmem:[%s10018_s11 + $0x818] sm:$0xff] }
 0x5c1   : > { %2168 = vmatpush1.msra.mxu1 %v1212_v47  ;;  %2293 = vmatprep.subr.mxu0 %v1311_v51  ;;  %v1538_v47 = vld [vmem:[%s10018_s11 + $0xb80] sm:$0xff]  ;;  %v1428_v51 = vld [vmem:[%s10018_s11 + $0x810] sm:$0xff] }
 0x5c2   : > { %2169 = vmatprep.subr.mxu1 %v1201_v52  ;;  %2294 = vmatpush1.msra.mxu0 %v1310_v53  ;;  %v1527_v52 = vld [vmem:[%s10018_s11 + $0xb28] sm:$0xff]  ;;  %v1417_v53 = vld [vmem:[%s10018_s11 + $0x7b8] sm:$0xff] }
 0x5c3   : > { %2170 = vmatpush1.msra.mxu1 %v1200_v54  ;;  %2295 = vmatprep.subr.mxu0 %v1299_v55  ;;  %v1526_v54 = vld [vmem:[%s10018_s11 + $0xb20] sm:$0xff]  ;;  %v1416_v55 = vld [vmem:[%s10018_s11 + $0x7b0] sm:$0xff] }
 0x5c4   : > { %2171 = vmatprep.subr.mxu1 %v1189_v56  ;;  %2296 = vmatpush1.msra.mxu0 %v1298_v57  ;;  %v1515_v56 = vld [vmem:[%s10018_s11 + $0xac8] sm:$0xff]  ;;  %v1405_v57 = vld [vmem:[%s10018_s11 + $0x758] sm:$0xff] }
 0x5c5   : > { %2172 = vmatpush1.msra.mxu1 %v1188_v58  ;;  %2297 = vmatprep.subr.mxu0 %v1287_v59  ;;  %v1514_v58 = vld [vmem:[%s10018_s11 + $0xac0] sm:$0xff]  ;;  %v1404_v59 = vld [vmem:[%s10018_s11 + $0x750] sm:$0xff] }
 0x5c6   : > { %2173 = vmatprep.subr.mxu1 %v1177_v60  ;;  %2298 = vmatpush1.msra.mxu0 %v1286_v61  ;;  %v1503_v60 = vld [vmem:[%s10018_s11 + $0xa68] sm:$0xff]  ;;  %v1393_v61 = vld [vmem:[%s10018_s11 + $0x6f8] sm:$0xff] }
 0x5c7   : > { %2174 = vmatpush1.msra.mxu1 %v1176_v62  ;;  %2299 = vmatprep.subr.mxu0 %v1275_v2  ;;  %v1502_v62 = vld [vmem:[%s10018_s11 + $0xa60] sm:$0xff]  ;;  %v1392_v2 = vld [vmem:[%s10018_s11 + $0x6f0] sm:$0xff] }
 0x5c8   : > { %2175 = vmatprep.subr.mxu1 %v1549_v49  ;;  %2300 = vmatpush1.msra.mxu0 %v1274_v48  ;;  %v1491_v49 = vld [vmem:[%s10018_s11 + $0xa08] sm:$0xff]  ;;  %v1381_v48 = vld [vmem:[%s10018_s11 + $0x698] sm:$0xff] }
 0x5c9   : > { %2176 = vmatpush2.msra.mxu1 %v1548_v50  ;;  %2301 = vmatprep.subr.mxu0 %v1263_v5  ;;  %v1490_v50 = vld [vmem:[%s10018_s11 + $0xa00] sm:$0xff]  ;;  %v1380_v5 = vld [vmem:[%s10018_s11 + $0x690] sm:$0xff] }
 0x5ca   : > { %2177 = vmatprep.subr.mxu1 %v1537_v6  ;;  %2302 = vmatpush1.msra.mxu0 %v1262_v7  ;;  %v1479_v6 = vld [vmem:[%s10018_s11 + $0x9a8] sm:$0xff]  ;;  %v1369_v7 = vld [vmem:[%s10018_s11 + $0x638] sm:$0xff] }
 0x5cb   : > { %2178 = vmatpush2.msra.mxu1 %v1536_v8  ;;  %2303 = vmatprep.subr.mxu0 %v1251_v9  ;;  %v1478_v8 = vld [vmem:[%s10018_s11 + $0x9a0] sm:$0xff]  ;;  %v1368_v9 = vld [vmem:[%s10018_s11 + $0x630] sm:$0xff] }
 0x5cc   : > { %2179 = vmatprep.subr.mxu1 %v1525_v10  ;;  %2304 = vmatpush1.msra.mxu0 %v1250_v11  ;;  %v1467_v10 = vld [vmem:[%s10018_s11 + $0x948] sm:$0xff]  ;;  %v1466_v11 = vld [vmem:[%s10018_s11 + $0x940] sm:$0xff] }
 0x5cd   : > { %2180 = vmatpush2.msra.mxu1 %v1524_v12  ;;  %2305 = vmatprep.subr.mxu0 %v1239_v13  ;;  %v1647_v12 = vld [vmem:[%s10018_s11 + $0xee8] sm:$0xff] }
 0x5ce   : > { %2181 = vmatprep.subr.mxu1 %v1513_v14  ;;  %2306 = vmatpush1.msra.mxu0 %v1238_v15  ;;  %v1455_v13 = vld [vmem:[%s10018_s11 + $0x8e8] sm:$0xff]  ;;  %v1646_v14 = vld [vmem:[%s10018_s11 + $0xee0] sm:$0xff] }
 0x5cf   : > { %2182 = vmatpush2.msra.mxu1 %v1512_v16  ;;  %2307 = vmatprep.subr.mxu0 %v1227_v17  ;;  %v1454_v15 = vld [vmem:[%s10018_s11 + $0x8e0] sm:$0xff]  ;;  %v1635_v16 = vld [vmem:[%s10018_s11 + $0xe88] sm:$0xff] }
 0x5d0   : > { %2183 = vmatprep.subr.mxu1 %v1501_v18  ;;  %2308 = vmatpush1.msra.mxu0 %v1226_v19  ;;  %v1443_v17 = vld [vmem:[%s10018_s11 + $0x888] sm:$0xff]  ;;  %v1634_v18 = vld [vmem:[%s10018_s11 + $0xe80] sm:$0xff] }
 0x5d1   : > { %2184 = vmatpush2.msra.mxu1 %v1500_v20  ;;  %2309 = vmatprep.subr.mxu0 %v1215_v21  ;;  %v1442_v19 = vld [vmem:[%s10018_s11 + $0x880] sm:$0xff]  ;;  %v1623_v20 = vld [vmem:[%s10018_s11 + $0xe28] sm:$0xff] }
 0x5d2   : > { %2185 = vmatprep.subr.mxu1 %v1489_v22  ;;  %2310 = vmatpush1.msra.mxu0 %v1214_v23  ;;  %v1431_v21 = vld [vmem:[%s10018_s11 + $0x828] sm:$0xff]  ;;  %v1622_v22 = vld [vmem:[%s10018_s11 + $0xe20] sm:$0xff] }
 0x5d3   : > { %2186 = vmatpush2.msra.mxu1 %v1488_v24  ;;  %2311 = vmatprep.subr.mxu0 %v1203_v25  ;;  %v1430_v23 = vld [vmem:[%s10018_s11 + $0x820] sm:$0xff]  ;;  %v1611_v24 = vld [vmem:[%s10018_s11 + $0xdc8] sm:$0xff] }
 0x5d4   : > { %2187 = vmatprep.subr.mxu1 %v1477_v26  ;;  %2312 = vmatpush1.msra.mxu0 %v1202_v27  ;;  %v1419_v25 = vld [vmem:[%s10018_s11 + $0x7c8] sm:$0xff]  ;;  %v1610_v26 = vld [vmem:[%s10018_s11 + $0xdc0] sm:$0xff] }
 0x5d5   : > { %2188 = vmatpush2.msra.mxu1 %v1476_v28  ;;  %2313 = vmatprep.subr.mxu0 %v1191_v29  ;;  %v1418_v27 = vld [vmem:[%s10018_s11 + $0x7c0] sm:$0xff]  ;;  %v1599_v28 = vld [vmem:[%s10018_s11 + $0xd68] sm:$0xff] }
 0x5d6   : > { %2189 = vmatprep.subr.mxu1 %v1465_v30  ;;  %2314 = vmatpush1.msra.mxu0 %v1190_v31  ;;  %v1407_v29 = vld [vmem:[%s10018_s11 + $0x768] sm:$0xff]  ;;  %v1598_v30 = vld [vmem:[%s10018_s11 + $0xd60] sm:$0xff] }
 0x5d7   : > { %2190 = vmatpush2.msra.mxu1 %v1464_v32  ;;  %2315 = vmatprep.subr.mxu0 %v1179_v33  ;;  %v1406_v31 = vld [vmem:[%s10018_s11 + $0x760] sm:$0xff]  ;;  %v1587_v32 = vld [vmem:[%s10018_s11 + $0xd08] sm:$0xff] }
 0x5d8   : > { %2191 = vmatprep.subr.mxu1 %v1453_v34  ;;  %2316 = vmatpush1.msra.mxu0 %v1178_v35  ;;  %v1395_v33 = vld [vmem:[%s10018_s11 + $0x708] sm:$0xff]  ;;  %v1586_v34 = vld [vmem:[%s10018_s11 + $0xd00] sm:$0xff] }
 0x5d9   : > { %2192 = vmatpush2.msra.mxu1 %v1452_v36  ;;  %2317 = vmatprep.subr.mxu0 %v1551_v37  ;;  %v1394_v35 = vld [vmem:[%s10018_s11 + $0x700] sm:$0xff]  ;;  %v1575_v36 = vld [vmem:[%s10018_s11 + $0xca8] sm:$0xff] }
 0x5da   : > { %2193 = vmatprep.subr.mxu1 %v1441_v38  ;;  %2318 = vmatpush2.msra.mxu0 %v1550_v39  ;;  %v1383_v37 = vld [vmem:[%s10018_s11 + $0x6a8] sm:$0xff]  ;;  %v1574_v38 = vld [vmem:[%s10018_s11 + $0xca0] sm:$0xff] }
 0x5db   : > { %2194 = vmatpush2.msra.mxu1 %v1440_v40  ;;  %2319 = vmatprep.subr.mxu0 %v1539_v45  ;;  %v1382_v39 = vld [vmem:[%s10018_s11 + $0x6a0] sm:$0xff]  ;;  %v1563_v40 = vld [vmem:[%s10018_s11 + $0xc48] sm:$0xff] }
 0x5dc   : > { %2195 = vmatprep.subr.mxu1 %v1429_v46  ;;  %2320 = vmatpush2.msra.mxu0 %v1538_v47  ;;  %v1371_v45 = vld [vmem:[%s10018_s11 + $0x648] sm:$0xff]  ;;  %v1562_v46 = vld [vmem:[%s10018_s11 + $0xc40] sm:$0xff] }
 0x5dd   : > { %2196 = vmatpush2.msra.mxu1 %v1428_v51  ;;  %2321 = vmatprep.subr.mxu0 %v1527_v52  ;;  %v1370_v47 = vld [vmem:[%s10018_s11 + $0x640] sm:$0xff]  ;;  %v1361_v51 = vld [vmem:[%s10018_s11 + $0x5f8] sm:$0xff]  ;;  %v1360_v52 = vld [vmem:[%s10018_s11 + $0x5f0] sm:$0xff] }
 0x5de   : > { %2197 = vmatprep.subr.mxu1 %v1417_v53  ;;  %2322 = vmatpush2.msra.mxu0 %v1526_v54  ;;  %v1649_v53 = vld [vmem:[%s10018_s11 + $0xef8] sm:$0xff] }
 0x5df   : > { %2198 = vmatpush2.msra.mxu1 %v1416_v55  ;;  %2323 = vmatprep.subr.mxu0 %v1515_v56  ;;  %v1349_v54 = vld [vmem:[%s10018_s11 + $0x598] sm:$0xff]  ;;  %v1648_v55 = vld [vmem:[%s10018_s11 + $0xef0] sm:$0xff] }
 0x5e0   : > { %2199 = vmatprep.subr.mxu1 %v1405_v57  ;;  %2324 = vmatpush2.msra.mxu0 %v1514_v58  ;;  %v1348_v56 = vld [vmem:[%s10018_s11 + $0x590] sm:$0xff]  ;;  %v1637_v57 = vld [vmem:[%s10018_s11 + $0xe98] sm:$0xff] }
 0x5e1   : > { %2200 = vmatpush2.msra.mxu1 %v1404_v59  ;;  %2325 = vmatprep.subr.mxu0 %v1503_v60  ;;  %v1337_v58 = vld [vmem:[%s10018_s11 + $0x538] sm:$0xff]  ;;  %v1636_v59 = vld [vmem:[%s10018_s11 + $0xe90] sm:$0xff] }
 0x5e2   : > { %2201 = vmatprep.subr.mxu1 %v1393_v61  ;;  %2326 = vmatpush2.msra.mxu0 %v1502_v62  ;;  %v1336_v60 = vld [vmem:[%s10018_s11 + $0x530] sm:$0xff]  ;;  %v1325_v61 = vld [vmem:[%s10018_s11 + $0x4d8] sm:$0xff] }
 0x5e3   : > { %2202 = vmatpush2.msra.mxu1 %v1392_v2  ;;  %2327 = vmatprep.subr.mxu0 %v1491_v49  ;;  %v1624_v62 = vld [vmem:[%s10018_s11 + $0xe30] sm:$0xff]  ;;  %v1613_v49 = vld [vmem:[%s10018_s11 + $0xdd8] sm:$0xff] }
 0x5e4   : > { %2203 = vmatprep.subr.mxu1 %v1381_v48  ;;  %2328 = vmatpush2.msra.mxu0 %v1490_v50  ;;  %v1324_v2 = vld [vmem:[%s10018_s11 + $0x4d0] sm:$0xff]  ;;  %v1313_v48 = vld [vmem:[%s10018_s11 + $0x478] sm:$0xff] }
 0x5e5   : > { %2204 = vmatpush2.msra.mxu1 %v1380_v5  ;;  %2329 = vmatprep.subr.mxu0 %v1479_v6  ;;  %v1612_v50 = vld [vmem:[%s10018_s11 + $0xdd0] sm:$0xff]  ;;  %v1601_v6 = vld [vmem:[%s10018_s11 + $0xd78] sm:$0xff] }
 0x5e6   : > { %2205 = vmatprep.subr.mxu1 %v1369_v7  ;;  %2330 = vmatpush2.msra.mxu0 %v1478_v8  ;;  %v1312_v5 = vld [vmem:[%s10018_s11 + $0x470] sm:$0xff]  ;;  %v1301_v7 = vld [vmem:[%s10018_s11 + $0x418] sm:$0xff] }
 0x5e7   : > { %2206 = vmatpush2.msra.mxu1 %v1368_v9  ;;  %2331 = vmatprep.subr.mxu0 %v1467_v10  ;;  %v1600_v8 = vld [vmem:[%s10018_s11 + $0xd70] sm:$0xff]  ;;  %v1589_v10 = vld [vmem:[%s10018_s11 + $0xd18] sm:$0xff] }
 0x5e8   : > { %2208 = vmatmul.mubr.f32.vlgmr.msra.gmra.mxu1 %v6590_v4  ;;  %2332 = vmatpush2.msra.mxu0 %v1466_v11  ;;  %v1300_v9 = vld [vmem:[%s10018_s11 + $0x410] sm:$0xff]  ;;  %v1289_v11 = vld [vmem:[%s10018_s11 + $0x3b8] sm:$0xff] }
 0x5e9   : > { %2372 = vmatprep.subr.mxu1 %v1647_v12  ;;  %2333 = vmatprep.subr.mxu0 %v1455_v13  ;;  %v1588_v12 = vld [vmem:[%s10018_s11 + $0xd10] sm:$0xff] }
 0x5ea   : > { %2373 = vmatpush1.msra.mxu1 %v1646_v14  ;;  %2334 = vmatpush2.msra.mxu0 %v1454_v15  ;;  %v1288_v13 = vld [vmem:[%s10018_s11 + $0x3b0] sm:$0xff]  ;;  %v1577_v14 = vld [vmem:[%s10018_s11 + $0xcb8] sm:$0xff] }
 0x5eb   : > { %2374 = vmatprep.subr.mxu1 %v1635_v16  ;;  %2335 = vmatprep.subr.mxu0 %v1443_v17  ;;  %v1277_v15 = vld [vmem:[%s10018_s11 + $0x358] sm:$0xff]  ;;  %v1576_v16 = vld [vmem:[%s10018_s11 + $0xcb0] sm:$0xff] }
 0x5ec   : > { %2375 = vmatpush1.msra.mxu1 %v1634_v18  ;;  %2336 = vmatpush2.msra.mxu0 %v1442_v19  ;;  %v1276_v17 = vld [vmem:[%s10018_s11 + $0x350] sm:$0xff]  ;;  %v1565_v18 = vld [vmem:[%s10018_s11 + $0xc58] sm:$0xff] }
 0x5ed   : > { %2376 = vmatprep.subr.mxu1 %v1623_v20  ;;  %2337 = vmatprep.subr.mxu0 %v1431_v21  ;;  %v1265_v19 = vld [vmem:[%s10018_s11 + $0x2f8] sm:$0xff]  ;;  %v1564_v20 = vld [vmem:[%s10018_s11 + $0xc50] sm:$0xff] }
 0x5ee   : > { %2377 = vmatpush1.msra.mxu1 %v1622_v22  ;;  %2338 = vmatpush2.msra.mxu0 %v1430_v23  ;;  %v1264_v21 = vld [vmem:[%s10018_s11 + $0x2f0] sm:$0xff]  ;;  %v1253_v22 = vld [vmem:[%s10018_s11 + $0x298] sm:$0xff] }
 0x5ef   : > { %2378 = vmatprep.subr.mxu1 %v1611_v24  ;;  %2339 = vmatprep.subr.mxu0 %v1419_v25  ;;  %v1252_v23 = vld [vmem:[%s10018_s11 + $0x290] sm:$0xff]  ;;  %v1241_v24 = vld [vmem:[%s10018_s11 + $0x238] sm:$0xff] }
 0x5f0   : > { %2379 = vmatpush1.msra.mxu1 %v1610_v26  ;;  %2340 = vmatpush2.msra.mxu0 %v1418_v27  ;;  %v1240_v25 = vld [vmem:[%s10018_s11 + $0x230] sm:$0xff]  ;;  %v1229_v26 = vld [vmem:[%s10018_s11 + $0x1d8] sm:$0xff] }
 0x5f1   : > { %2380 = vmatprep.subr.mxu1 %v1599_v28  ;;  %2341 = vmatprep.subr.mxu0 %v1407_v29  ;;  %v1217_v27 = vld [vmem:[%s10018_s11 + $0x178] sm:$0xff]  ;;  %v1216_v28 = vld [vmem:[%s10018_s11 + $0x170] sm:$0xff]  ;;  %v7703_v29 = vld [vmem:[%s9973_s13] sm:$0xff] }
 0x5f2   : > { %2381 = vmatpush1.msra.mxu1 %v1598_v30  ;;  %2342 = vmatpush2.msra.mxu0 %v1406_v31  ;;  %v1205_v30 = vld [vmem:[%s10018_s11 + $0x118] sm:$0xff]  ;;  %v1661_v31 = vrot.slane %v7703_v29, %v6560_v42 }
 0x5f3   : > { %2382 = vmatprep.subr.mxu1 %v1587_v32  ;;  %2343 = vmatprep.subr.mxu0 %v1395_v33  ;;  %v1204_v32 = vld [vmem:[%s10018_s11 + $0x110] sm:$0xff] }
 0x5f4   : > { %2383 = vmatpush1.msra.mxu1 %v1586_v34  ;;  %2344 = vmatpush2.msra.mxu0 %v1394_v35  ;;  %v1193_v35 = vld [vmem:[%s10018_s11 + $0xb8] sm:$0xff] }
 0x5f5   : > { %2384 = vmatprep.subr.mxu1 %v1575_v36  ;;  %2345 = vmatprep.subr.mxu0 %v1383_v37  ;;  %v1192_v36 = vld [vmem:[%s10018_s11 + $0xb0] sm:$0xff] }
 0x5f6   : > { %2385 = vmatpush1.msra.mxu1 %v1574_v38  ;;  %2346 = vmatpush2.msra.mxu0 %v1382_v39  ;;  %v1181_v38 = vld [vmem:[%s10018_s11 + $0x58] sm:$0xff] }
 0x5f7   : > { %2386 = vmatprep.subr.mxu1 %v1563_v40  ;;  %2347 = vmatprep.subr.mxu0 %v1371_v45  ;;  %v1180_v40 = vld [vmem:[%s10018_s11 + $0x50] sm:$0xff] }
 0x5f8   : > { %2387 = vmatpush1.msra.mxu1 %v1562_v46  ;;  %2420 = vmatprep.mubr.f32.mxu1 %v5992_v1  ;;  %v1553_v46 = vld [vmem:[%s10018_s11 + $0xbf8] sm:$0xff] }
 0x5f9   : > { %2348 = vmatpush2.msra.mxu0 %v1370_v47  ;;  %5401 = vmatmul.mubr.msk.f32.vlgmr.msra.gmra.mxu1 %vm877_vm1, %v6585_v0 }
 0x5fa   : > { %2427 = vmatprep.subr.mxu1 %v1361_v51  ;;  %2350 = vmatmul.mubr.f32.vlgmr.msra.gmra.mxu0 %v6590_v4  ;;  %v1552_v51 = vld [vmem:[%s10018_s11 + $0xbf0] sm:$0xff] }
 0x5fb   : > { %2428 = vmatpush1.msra.mxu1 %v1360_v52  ;;  %2491 = vmatprep.mubr.f32.mxu1 %v6583_v63  ;;  %v1625_v63 = vld [vmem:[%s10018_s11 + $0xe38] sm:$0xff] }
 0x5fc   : > { %2514 = vmatprep.subr.mxu0 %v1649_v53  ;;  %2429 = vmatprep.subr.mxu1 %v1349_v54  ;;  %v1541_v52 = vld [vmem:[%s10018_s11 + $0xb98] sm:$0xff]  ;;  %v1540_v53 = vld [vmem:[%s10018_s11 + $0xb90] sm:$0xff] }
 0x5fd   : > { %2515 = vmatpush1.msra.mxu0 %v1648_v55  ;;  %2430 = vmatpush1.msra.mxu1 %v1348_v56  ;;  %v1529_v54 = vld [vmem:[%s10018_s11 + $0xb38] sm:$0xff]  ;;  %v1528_v55 = vld [vmem:[%s10018_s11 + $0xb30] sm:$0xff] }
 0x5fe   : > { %2516 = vmatprep.subr.mxu0 %v1637_v57  ;;  %2431 = vmatprep.subr.mxu1 %v1337_v58  ;;  %v1517_v56 = vld [vmem:[%s10018_s11 + $0xad8] sm:$0xff]  ;;  %v1516_v57 = vld [vmem:[%s10018_s11 + $0xad0] sm:$0xff] }
 0x5ff   : > { %2517 = vmatpush1.msra.mxu0 %v1636_v59  ;;  %2432 = vmatpush1.msra.mxu1 %v1336_v60  ;;  %v1505_v58 = vld [vmem:[%s10018_s11 + $0xa78] sm:$0xff]  ;;  %v1504_v59 = vld [vmem:[%s10018_s11 + $0xa70] sm:$0xff] }
 0x600   : > { %2518 = vmatprep.subr.mxu0 %v1625_v63  ;;  %2433 = vmatprep.subr.mxu1 %v1325_v61  ;;  %v1493_v60 = vld [vmem:[%s10018_s11 + $0xa18] sm:$0xff]  ;;  %v1492_v63 = vld [vmem:[%s10018_s11 + $0xa10] sm:$0xff] }
 0x601   : > { %2519 = vmatpush1.msra.mxu0 %v1624_v62  ;;  %2434 = vmatpush1.msra.mxu1 %v1324_v2  ;;  %v1481_v61 = vld [vmem:[%s10018_s11 + $0x9b8] sm:$0xff]  ;;  %v1480_v62 = vld [vmem:[%s10018_s11 + $0x9b0] sm:$0xff] }
 0x602   : > { %2520 = vmatprep.subr.mxu0 %v1613_v49  ;;  %2435 = vmatprep.subr.mxu1 %v1313_v48  ;;  %v1469_v2 = vld [vmem:[%s10018_s11 + $0x958] sm:$0xff]  ;;  %v1468_v49 = vld [vmem:[%s10018_s11 + $0x950] sm:$0xff] }
 0x603   : > { %2521 = vmatpush1.msra.mxu0 %v1612_v50  ;;  %2436 = vmatpush1.msra.mxu1 %v1312_v5  ;;  %v1457_v48 = vld [vmem:[%s10018_s11 + $0x8f8] sm:$0xff]  ;;  %v1456_v50 = vld [vmem:[%s10018_s11 + $0x8f0] sm:$0xff] }
 0x604   : > { %2522 = vmatprep.subr.mxu0 %v1601_v6  ;;  %2437 = vmatprep.subr.mxu1 %v1301_v7  ;;  %v1445_v5 = vld [vmem:[%s10018_s11 + $0x898] sm:$0xff]  ;;  %v1444_v6 = vld [vmem:[%s10018_s11 + $0x890] sm:$0xff] }
 0x605   : > { %2523 = vmatpush1.msra.mxu0 %v1600_v8  ;;  %2438 = vmatpush1.msra.mxu1 %v1300_v9  ;;  %v1433_v7 = vld [vmem:[%s10018_s11 + $0x838] sm:$0xff]  ;;  %v1432_v8 = vld [vmem:[%s10018_s11 + $0x830] sm:$0xff] }
 0x606   : > { %2524 = vmatprep.subr.mxu0 %v1589_v10  ;;  %2439 = vmatprep.subr.mxu1 %v1289_v11  ;;  %v1421_v9 = vld [vmem:[%s10018_s11 + $0x7d8] sm:$0xff]  ;;  %v1420_v10 = vld [vmem:[%s10018_s11 + $0x7d0] sm:$0xff] }
 0x607   : > { %2525 = vmatpush1.msra.mxu0 %v1588_v12  ;;  %2440 = vmatpush1.msra.mxu1 %v1288_v13  ;;  %v1409_v11 = vld [vmem:[%s10018_s11 + $0x778] sm:$0xff]  ;;  %v1408_v12 = vld [vmem:[%s10018_s11 + $0x770] sm:$0xff] }
 0x608   : > { %2526 = vmatprep.subr.mxu0 %v1577_v14  ;;  %2441 = vmatprep.subr.mxu1 %v1277_v15  ;;  %v1397_v13 = vld [vmem:[%s10018_s11 + $0x718] sm:$0xff]  ;;  %v1396_v14 = vld [vmem:[%s10018_s11 + $0x710] sm:$0xff] }
 0x609   : > { %2527 = vmatpush1.msra.mxu0 %v1576_v16  ;;  %2442 = vmatpush1.msra.mxu1 %v1276_v17  ;;  %v1385_v15 = vld [vmem:[%s10018_s11 + $0x6b8] sm:$0xff]  ;;  %v1384_v16 = vld [vmem:[%s10018_s11 + $0x6b0] sm:$0xff] }
 0x60a   : > { %2528 = vmatprep.subr.mxu0 %v1565_v18  ;;  %2443 = vmatprep.subr.mxu1 %v1265_v19  ;;  %v1373_v17 = vld [vmem:[%s10018_s11 + $0x658] sm:$0xff]  ;;  %v1372_v18 = vld [vmem:[%s10018_s11 + $0x650] sm:$0xff]  ;;  %v7832_v19 = vsub.s32 3, %v6557_v41 }
 0x60b   : > { %2529 = vmatpush1.msra.mxu0 %v1564_v20  ;;  %2562 = vmatprep.mubr.f32.mxu0 %v5992_v1  ;;  %v1665_v20 = vrot.slane %v7703_v29, %v6563_v43 }
 0x60c   : > { %2444 = vmatpush1.msra.mxu1 %v1264_v21  ;;  %5402 = vmatmul.mubr.msk.f32.vlgmr.msra.gmra.mxu0 %vm877_vm1, %v6585_v0  ;;  %v1228_v0 = vld [vmem:[%s10018_s11 + $0x1d0] sm:$0xff]  ;;  %v1669_v21 = vrot.slane %v7703_v29, %v7832_v19 }
 0x60d   : > { %2445 = vmatprep.subr.mxu1 %v1253_v22  ;;  %5712 = vmatprep.subr.mxu0 %v5992_v1 }
 0x60e   : > { %2446 = vmatpush1.msra.mxu1 %v1252_v23  ;;  %5714 = vmatprep.mubr.msk.f32.mxu0 %vm5993_vm0, %v5992_v1 }
 0x60f   : > { %2447 = vmatprep.subr.mxu1 %v1241_v24 }
 0x610   : > { %2448 = vmatpush1.msra.mxu1 %v1240_v25 }
 0x611   : > { %2449 = vmatprep.subr.mxu1 %v1229_v26 }
 0x612   : > { %2450 = vmatpush1.msra.mxu1 %v1228_v0  ;;  %v7713_v33 = vpop.f32.mrf.mxu1 }
 0x613   : > { %2451 = vmatprep.subr.mxu1 %v1217_v27  ;;  %v7715_v34 = vpop.f32.mrf.mxu0 }
 0x614   : > { %2452 = vmatpush1.msra.mxu1 %v1216_v28  ;;  %v1856_v45 = vpop.f32.mrf.mxu1  ;;  %v1672_v28 = vsub.s32 4, %v6557_v41 }
 0x615   : > { %2453 = vmatprep.subr.mxu1 %v1205_v30  ;;  %v1785_v37 = vpop.f32.mrf.mxu0  ;;  %v1676_v30 = vsub.s32 5, %v6557_v41 }
 0x616   : > { %2454 = vmatpush1.msra.mxu1 %v1204_v32  ;;  %v1786_v39 = vadd.f32 %v1785_v37, %v1661_v31  ;;  %v1673_v31 = vrot.slane %v7703_v29, %v1672_v28  ;;  %v1657_v32 = vrot.slane %v7703_v29, %v6566_v44 }
 0x617   : > { %2455 = vmatprep.subr.mxu1 %v1193_v35  ;;  %v1677_v35 = vrot.slane %v7703_v29, %v1676_v30 }
 0x618   : > { %2456 = vmatpush1.msra.mxu1 %v1192_v36  ;;  %v7732_v47 = vadd.f32 %v1856_v45, %v1786_v39  ;;  %v1784_v39 = vadd.f32 %v7715_v34, %v1657_v32 }
 0x619   : > { %2457 = vmatprep.subr.mxu1 %v1181_v38 }
 0x61a   : > { %2458 = vmatpush1.msra.mxu1 %v1180_v40 }
 0x61b   : > { %2459 = vmatprep.subr.mxu1 %v1553_v46 }
 0x61c   : > { %2460 = vmatpush2.msra.mxu1 %v1552_v51 }
 0x61d   : > { %2461 = vmatprep.subr.mxu1 %v1541_v52 }
 0x61e   : > { %2462 = vmatpush2.msra.mxu1 %v1540_v53  ;;  %v1855_v53 = vadd.f32 %v7713_v33, %v1784_v39  ;;  %v2967_v39 = vld [vmem:[%s9974_s14 + $0x2c8] sm:$0xff] }
 0x61f   : > { %2463 = vmatprep.subr.mxu1 %v1529_v54  ;;  %v1680_v54 = vsub.s32 6, %v6557_v41 }
 0x620   : > { %2464 = vmatpush2.msra.mxu1 %v1528_v55  ;;  %v1684_v55 = vsub.s32 7, %v6557_v41 }
 0x621   : > { %2465 = vmatprep.subr.mxu1 %v1517_v56  ;;  %v1681_v34 = vrot.slane %v7703_v29, %v1680_v54  ;;  %v2946_v54 = vld [vmem:[%s9974_s14 + $0x220] sm:$0xff] }
 0x622   : > { %2466 = vmatpush2.msra.mxu1 %v1516_v57  ;;  %v1685_v56 = vrot.slane %v7703_v29, %v1684_v55  ;;  %v2943_v55 = vld [vmem:[%s9974_s14 + $0x208] sm:$0xff] }
 0x623   : > { %2467 = vmatprep.subr.mxu1 %v1505_v58 }
 0x624   : > { %2468 = vmatpush2.msra.mxu1 %v1504_v59  ;;  %v1996_v22 = vpop.f32.mrf.mxu0 }
 0x625   : > { %2469 = vmatprep.subr.mxu1 %v1493_v60 }
 0x626   : > { %2470 = vmatpush2.msra.mxu1 %v1492_v63  ;;  %v1998_v0 = vpop.f32.mrf.mxu0 }
 0x627   : > { %2471 = vmatprep.subr.mxu1 %v1481_v61 }
 0x628   : > { %2472 = vmatpush2.msra.mxu1 %v1480_v62 }
 0x629   : > { %2473 = vmatprep.subr.mxu1 %v1469_v2  ;;  %v7864_v2 = vld [vmem:[%s9973_s13 + $0x8] sm:$0xf] }
 0x62a   : > { %2474 = vmatpush2.msra.mxu1 %v1468_v49  ;;  %v1689_v41 = vrot.slane %v7864_v2, %v6566_v44 }
 0x62b   : > { %2475 = vmatprep.subr.mxu1 %v1457_v48 }
 0x62c   : > { %2476 = vmatpush2.msra.mxu1 %v1456_v50 }
 0x62d   : > { %2477 = vmatprep.subr.mxu1 %v1445_v5 }
 0x62e   : > { %2478 = vmatpush2.msra.mxu1 %v1444_v6 }
 0x62f   : > { %2479 = vmatprep.subr.mxu1 %v1433_v7 }
 0x630   : > { %2480 = vmatpush2.msra.mxu1 %v1432_v8 }
 0x631   : > { %2481 = vmatprep.subr.mxu1 %v1421_v9 }
 0x632   : > { %2482 = vmatpush2.msra.mxu1 %v1420_v10 }
 0x633   : > { %2483 = vmatprep.subr.mxu1 %v1409_v11 }
 0x634   : > { %2484 = vmatpush2.msra.mxu1 %v1408_v12 }
 0x635   : > { %2485 = vmatprep.subr.mxu1 %v1397_v13 }
 0x636   : > { %2486 = vmatpush2.msra.mxu1 %v1396_v14 }
 0x637   : > { %2487 = vmatprep.subr.mxu1 %v1385_v15 }
 0x638   : > { %2488 = vmatpush2.msra.mxu1 %v1384_v16 }
 0x639   : > { %2489 = vmatprep.subr.mxu1 %v1373_v17  ;;  %v1693_v17 = vrot.slane %v7864_v2, %v6560_v42 }
 0x63a   : > { %2490 = vmatpush2.msra.mxu1 %v1372_v18 }
 0x63b   : > { %2492 = vmatmul.mubr.f32.vlgmr.msra.gmra.mxu1 %v6590_v4  ;;  %5732 = vmatprep.subr.mxu1 %v5992_v1 }
 0x63c   : > { %5764 = vmatprep.mubr.msk.f32.mxu1 %vm5993_vm0, %v5992_v1 }
 0x654   : > { %v1925_v23 = vpop.f32.mrf.mxu1 }
 0x655   : > { %v1926_v24 = vadd.f32 %v1925_v23, %v1665_v20 }
 0x656   : > { %v1927_v25 = vpop.f32.mrf.mxu1 }
 0x657   : > { %v7838_v26 = vadd.f32 %v1996_v22, %v1926_v24  ;;  %v1928_v4 = vadd.f32 %v1927_v25, %v1669_v21 }
 0x659   : > { %v7840_v27 = vadd.f32 %v1998_v0, %v1928_v4 }
 0x665   : > { %v2138_v36 = vpop.f32.mrf.mxu1 }
 0x666   : > { %v2067_v37 = vpop.f32.mrf.mxu0 }
 0x667   : > { %v2068_v38 = vadd.f32 %v2067_v37, %v1673_v31  ;;  %v2140_v51 = vpop.f32.mrf.mxu1  ;;  %v2973_v37 = vld [vmem:[%s9974_s14 + $0x2f8] sm:$0xff] }
 0x668   : > { %v2069_v40 = vpop.f32.mrf.mxu0  ;;  %5733 = vmatpush3.msra.mxu1 %v2973_v37  ;;  %v2770_v37 = vld [vmem:[%s9974_s14 + $0x170] sm:$0xff] }
 0x669   : > { %v2139_v45 = vadd.f32 %v2138_v36, %v2068_v38  ;;  %v2070_v46 = vadd.f32 %v2069_v40, %v1677_v35  ;;  %5734 = vmatprep.subr.mxu1 %v5992_v1  ;;  %v2970_v38 = vld [vmem:[%s9974_s14 + $0x2e0] sm:$0xff]  ;;  %v2964_v40 = vld [vmem:[%s9974_s14 + $0x2b0] sm:$0xff] }
 0x66a   : > { %5735 = vmatpush3.msra.mxu1 %v2970_v38  ;;  %v2769_v38 = vld [vmem:[%s9974_s14 + $0x168] sm:$0xff] }
 0x66b   : > { %v2141_v52 = vadd.f32 %v2140_v51, %v2070_v46  ;;  %5713 = vmatpush3.xpose.msra.mxu0 %v2139_v45  ;;  %5736 = vmatprep.subr.mxu1 %v5992_v1  ;;  %v2961_v45 = vld [vmem:[%s9974_s14 + $0x298] sm:$0xff]  ;;  %v2958_v46 = vld [vmem:[%s9974_s14 + $0x280] sm:$0xff]  ;;  %v2955_v51 = vld [vmem:[%s9974_s14 + $0x268] sm:$0xff] }
 0x66c   : > { %5717 = vmatprep.subr.mxu0 %v5992_v1  ;;  %5737 = vmatpush3.msra.mxu1 %v2967_v39  ;;  %v2771_v39 = vld [vmem:[%s9974_s14 + $0x178] sm:$0xff] }
 0x66d   : > { %5738 = vmatprep.subr.mxu1 %v5992_v1 }
 0x66e   : > { %5715 = vmatmul.mubr.f32.vlgmr.msra.gmra.mxu0 %v1855_v53  ;;  %5739 = vmatpush3.msra.mxu1 %v2964_v40  ;;  %v2949_v53 = vld [vmem:[%s9974_s14 + $0x238] sm:$0xff] }
 0x66f   : > { %5719 = vmatprep.mubr.msk.f32.mxu0 %vm5993_vm0, %v5992_v1  ;;  %5740 = vmatprep.subr.mxu1 %v5992_v1 }
 0x670   : > { %5741 = vmatpush3.msra.mxu1 %v2961_v45  ;;  %v2767_v45 = vld [vmem:[%s9974_s14 + $0x158] sm:$0xff] }
 0x671   : > { %5742 = vmatprep.subr.mxu1 %v5992_v1 }
 0x672   : > { %5743 = vmatpush3.msra.mxu1 %v2958_v46  ;;  %v2766_v46 = vld [vmem:[%s9974_s14 + $0x150] sm:$0xff] }
 0x673   : > { %5744 = vmatprep.subr.mxu1 %v5992_v1 }
 0x674   : > { %5745 = vmatpush3.msra.mxu1 %v2955_v51  ;;  %v2768_v51 = vld [vmem:[%s9974_s14 + $0x160] sm:$0xff] }
 0x675   : > { %5746 = vmatprep.subr.mxu1 %v5992_v1 }
 0x678   : > { %v2280_v57 = vpop.f32.mrf.mxu0 }
 0x67a   : > { %v2282_v61 = vpop.f32.mrf.mxu0 }
 0x6a8   : > { %v2209_v58 = vpop.f32.mrf.mxu1 }
 0x6a9   : > { %v2210_v59 = vadd.f32 %v2209_v58, %v1681_v34  ;;  %v2940_v34 = vld [vmem:[%s9974_s14 + $0x1f0] sm:$0xff]  ;;  %v2931_v58 = vld [vmem:[%s9974_s14 + $0x1a8] sm:$0xff] }
 0x6aa   : > { %v2211_v60 = vpop.f32.mrf.mxu1 }
 0x6ab   : > { %v7857_v63 = vadd.f32 %v2280_v57, %v2210_v59  ;;  %v2212_v33 = vadd.f32 %v2211_v60, %v1685_v56  ;;  %v2937_v56 = vld [vmem:[%s9974_s14 + $0x1d8] sm:$0xff]  ;;  %v2934_v57 = vld [vmem:[%s9974_s14 + $0x1c0] sm:$0xff]  ;;  %v2928_v59 = vld [vmem:[%s9974_s14 + $0x190] sm:$0xff] }
 0x6ad   : > { %v7859_v62 = vadd.f32 %v2282_v61, %v2212_v33 }
 0x6b9   : > { %v2422_v48 = vpop.f32.mrf.mxu1 }
 0x6ba   : > { %v2351_v49 = vpop.f32.mrf.mxu0 }
 0x6bb   : > { %v2352_v29 = vadd.f32 %v2351_v49, %v1689_v41  ;;  %v2424_v22 = vpop.f32.mrf.mxu1  ;;  %v2971_v41 = vld [vmem:[%s9974_s14 + $0x2e8] sm:$0xff]  ;;  %v2969_v49 = vld [vmem:[%s9974_s14 + $0x2d8] sm:$0xff] }
 0x6bc   : > { %v2353_v5 = vpop.f32.mrf.mxu0 }
 0x6bd   : > { %v2423_v50 = vadd.f32 %v2422_v48, %v2352_v29  ;;  %v2354_v21 = vadd.f32 %v2353_v5, %v1693_v17  ;;  %v2968_v29 = vld [vmem:[%s9974_s14 + $0x2d0] sm:$0xff]  ;;  %v2966_v48 = vld [vmem:[%s9974_s14 + $0x2c0] sm:$0xff]  ;;  %v2963_v5 = vld [vmem:[%s9974_s14 + $0x2a8] sm:$0xff] }
 0x6be   : > { %v2948_v17 = vld [vmem:[%s9974_s14 + $0x230] sm:$0xff] }
 0x6bf   : > { %5718 = vmatpush3.msra.mxu0 %v2423_v50  ;;  %v2425_v23 = vadd.f32 %v2424_v22, %v2354_v21  ;;  %v2965_v50 = vld [vmem:[%s9974_s14 + $0x2b8] sm:$0xff]  ;;  %v2944_v21 = vld [vmem:[%s9974_s14 + $0x210] sm:$0xff]  ;;  %v2942_v22 = vld [vmem:[%s9974_s14 + $0x200] sm:$0xff] }
 0x6c0   : > { %5722 = vmatprep.subr.mxu0 %v5992_v1 }
 0x6cc   : > { %v7869_v6 = vpop.f32.mrf.mxu0 }
 0x6ce   : > { %v7871_v7 = vpop.f32.mrf.mxu0 }
 0x72e   : > { %v2635_v8 = vpop.f32.mrf.mxu0 }
 0x72f   : > { %v2640_v9 = vsel %vm2639_vm2, %v2635_v8, -inf }
 0x730   : > { %2641 = vmax.xlane.f32.xlu0 %v2640_v9  ;;  %v5716_v10 = vpop.f32.mrf.mxu0  ;;  %v2960_v9 = vld [vmem:[%s9974_s14 + $0x290] sm:$0xff] }
 0x731   : > { %v2959_v10 = vld [vmem:[%s9974_s14 + $0x288] sm:$0xff] }
 0x7b9   : > { %v2642_v11 = vpop.xlane.xlu0 %2641 }
 0x7ba   : > { %v2643_v12 = vsub.f32 %v2635_v8, %v2642_v11  ;;  %v2962_v8 = vld [vmem:[%s9974_s14 + $0x2a0] sm:$0xff]  ;;  %v2957_v11 = vld [vmem:[%s9974_s14 + $0x278] sm:$0xff] }
 0x7bc   : > { %v2644_v13 = vmul.f32 1.442695, %v2643_v12  ;;  %v2956_v12 = vld [vmem:[%s9974_s14 + $0x270] sm:$0xff] }
 0x7be   : > { %5962 = vpow2.f32 %v2644_v13  ;;  %v2954_v13 = vld [vmem:[%s9974_s14 + $0x260] sm:$0xff] }
 0x7cb   : > { %v5963_v14 = vpop.eup %5962 }
 0x7cc   : > { %v2646_v15 = vsel %vm2639_vm2, %v5963_v14, 0.0 }
 0x7cd   : > { %2647 = vadd.xlane.f32.xlu1 %v2646_v15  ;;  %v2951_v15 = vld [vmem:[%s9974_s14 + $0x248] sm:$0xff] }
 0x856   : > { %v2648_v16 = vpop.xlane.xlu1 %2647 }
 0x857   : > { %5964 = vrcp.f32 %v2648_v16  ;;  %v2950_v16 = vld [vmem:[%s9974_s14 + $0x240] sm:$0xff] }
 0x864   : > { %v5965_v18 = vpop.eup %5964 }
 0x865   : > { %v2650_v20 = vmul.f32 %v5965_v18, %v5963_v14  ;;  %v2953_v14 = vld [vmem:[%s9974_s14 + $0x258] sm:$0xff]  ;;  %v2947_v18 = vld [vmem:[%s9974_s14 + $0x228] sm:$0xff] }
 0x867   : > { %5720 = vmatmul.mubr.msk.f32.vlgmr.msra.gmra.mxu0 %vm2639_vm2, %v2650_v20  ;;  %v2945_v20 = vld [vmem:[%s9974_s14 + $0x218] sm:$0xff] }
 0x868   : > { %5723 = vmatpush3.xpose.msra.mxu0 %v2141_v52  ;;  %5724 = vmatprep.mubr.msk.f32.mxu0 %vm5993_vm0, %v5992_v1  ;;  %v2952_v52 = vld [vmem:[%s9974_s14 + $0x250] sm:$0xff] }
 0x869   : > { %5727 = vmatprep.subr.mxu0 %v5992_v1  ;;  %5747 = vmatpush3.msra.mxu1 %v2952_v52 }
 0x86a   : > { %5748 = vmatprep.subr.mxu1 %v5992_v1 }
 0x86b   : > { %5725 = vmatmul.mubr.f32.vlgmr.msra.gmra.mxu0 %v7732_v47  ;;  %v2972_v47 = vld [vmem:[%s9974_s14 + $0x2f0] sm:$0xff]  ;;  %5749 = vmatpush3.msra.mxu1 %v2949_v53  ;;  %v2764_v53 = vld [vmem:[%s9974_s14 + $0x140] sm:$0xff] }
 0x86c   : > { %5728 = vmatpush3.msra.mxu0 %v2425_v23  ;;  %5729 = vmatprep.mubr.msk.f32.mxu0 %vm5993_vm0, %v5992_v1  ;;  %v2941_v23 = vld [vmem:[%s9974_s14 + $0x1f8] sm:$0xff] }
 0x86d   : > { %2974 = vmatprep.subr.mxu0 %v2972_v47  ;;  %5750 = vmatprep.subr.mxu1 %v5992_v1  ;;  %v2926_v47 = vld [vmem:[%s9974_s14 + $0x180] sm:$0xff] }
 0x86e   : > { %5751 = vmatpush3.msra.mxu1 %v2946_v54  ;;  %v2763_v54 = vld [vmem:[%s9974_s14 + $0x138] sm:$0xff] }
 0x86f   : > { %5752 = vmatprep.subr.mxu1 %v5992_v1 }
 0x870   : > { %5753 = vmatpush3.msra.mxu1 %v2943_v55  ;;  %v2765_v55 = vld [vmem:[%s9974_s14 + $0x148] sm:$0xff] }
 0x871   : > { %5754 = vmatprep.subr.mxu1 %v5992_v1 }
 0x872   : > { %5755 = vmatpush3.msra.mxu1 %v2940_v34  ;;  %v2761_v34 = vld [vmem:[%s9974_s14 + $0x128] sm:$0xff] }
 0x873   : > { %5756 = vmatprep.subr.mxu1 %v5992_v1 }
 0x874   : > { %5757 = vmatpush3.msra.mxu1 %v2937_v56  ;;  %v2760_v56 = vld [vmem:[%s9974_s14 + $0x120] sm:$0xff] }
 0x875   : > { %5758 = vmatprep.subr.mxu1 %v5992_v1 }
 0x876   : > { %5759 = vmatpush3.msra.mxu1 %v2934_v57  ;;  %v2762_v57 = vld [vmem:[%s9974_s14 + $0x130] sm:$0xff] }
 0x877   : > { %5760 = vmatprep.subr.mxu1 %v5992_v1 }
 0x878   : > { %5761 = vmatpush3.msra.mxu1 %v2931_v58  ;;  %v2758_v58 = vld [vmem:[%s9974_s14 + $0x110] sm:$0xff] }
 0x879   : > { %5762 = vmatprep.subr.mxu1 %v5992_v1 }
 0x87a   : > { %5763 = vmatpush3.msra.mxu1 %v2928_v59  ;;  %v2757_v59 = vld [vmem:[%s9974_s14 + $0x108] sm:$0xff] }
 0x87b   : > { %5767 = vmatprep.subr.mxu1 %v5992_v1 }
 0x927   : > { %v7884_v24 = vpop.f32.mrf.mxu0 }
 0x929   : > { %v5721_v25 = vpop.f32.mrf.mxu0 }
 0x92a   : > { %v2939_v25 = vld [vmem:[%s9974_s14 + $0x1e8] sm:$0xff] }
 0x92b   : > { %v2838_v4 = vpop.f32.mrf.mxu0 }
 0x92c   : > { %v2842_v0 = vsel %vm2639_vm2, %v2838_v4, -inf }
 0x92d   : > { %2843 = vmax.xlane.f32.xlu0 %v2842_v0  ;;  %v5726_v28 = vpop.f32.mrf.mxu0  ;;  %v2936_v0 = vld [vmem:[%s9974_s14 + $0x1d0] sm:$0xff] }
 0x92e   : > { %v2935_v28 = vld [vmem:[%s9974_s14 + $0x1c8] sm:$0xff] }
 0x9b6   : > { %v2844_v30 = vpop.xlane.xlu0 %2843 }
 0x9b7   : > { %v2845_v31 = vsub.f32 %v2838_v4, %v2844_v30  ;;  %v2938_v4 = vld [vmem:[%s9974_s14 + $0x1e0] sm:$0xff]  ;;  %v2933_v30 = vld [vmem:[%s9974_s14 + $0x1b8] sm:$0xff] }
 0x9b9   : > { %v2846_v32 = vmul.f32 1.442695, %v2845_v31  ;;  %v2932_v31 = vld [vmem:[%s9974_s14 + $0x1b0] sm:$0xff] }
 0x9bb   : > { %5966 = vpow2.f32 %v2846_v32  ;;  %v2930_v32 = vld [vmem:[%s9974_s14 + $0x1a0] sm:$0xff] }
 0x9c8   : > { %v5967_v35 = vpop.eup %5966 }
 0x9c9   : > { %v2848_v36 = vsel %vm2639_vm2, %v5967_v35, 0.0 }
 0x9ca   : > { %2849 = vadd.xlane.f32.xlu1 %v2848_v36  ;;  %v2927_v36 = vld [vmem:[%s9974_s14 + $0x188] sm:$0xff] }
 0xa53   : > { %v2850_v60 = vpop.xlane.xlu1 %2849 }
 0xa54   : > { %5968 = vrcp.f32 %v2850_v60  ;;  %v2759_v60 = vld [vmem:[%s9974_s14 + $0x118] sm:$0xff] }
 0xa61   : > { %v5969_v33 = vpop.eup %5968 }
 0xa62   : > { %v2852_v61 = vmul.f32 %v5969_v33, %v5967_v35  ;;  %v2929_v35 = vld [vmem:[%s9974_s14 + $0x198] sm:$0xff] }
 0xa63   : > { %v2755_v33 = vld [vmem:[%s9974_s14 + $0xf8] sm:$0xff] }
 0xa64   : > { %5730 = vmatmul.mubr.msk.f32.vlgmr.msra.gmra.mxu0 %vm2639_vm2, %v2852_v61  ;;  %v2754_v61 = vld [vmem:[%s9974_s14 + $0xf0] sm:$0xff] }
 0xa65   : > { %2975 = vmatpush1.msra.mxu0 %v2971_v41  ;;  %3038 = vmatprep.mubr.f32.mxu0 %v5992_v1  ;;  %v2756_v41 = vld [vmem:[%s9974_s14 + $0x100] sm:$0xff] }
 0xa66   : > { %2976 = vmatprep.subr.mxu0 %v2969_v49  ;;  %v2752_v49 = vld [vmem:[%s9974_s14 + $0xe0] sm:$0xff] }
 0xa67   : > { %2977 = vmatpush1.msra.mxu0 %v2968_v29  ;;  %v2751_v29 = vld [vmem:[%s9974_s14 + $0xd8] sm:$0xff] }
 0xa68   : > { %2978 = vmatprep.subr.mxu0 %v2966_v48  ;;  %v2753_v48 = vld [vmem:[%s9974_s14 + $0xe8] sm:$0xff] }
 0xa69   : > { %2979 = vmatpush1.msra.mxu0 %v2965_v50  ;;  %v2749_v50 = vld [vmem:[%s9974_s14 + $0xc8] sm:$0xff] }
 0xa6a   : > { %2980 = vmatprep.subr.mxu0 %v2963_v5  ;;  %v2748_v5 = vld [vmem:[%s9974_s14 + $0xc0] sm:$0xff] }
 0xa6b   : > { %2981 = vmatpush1.msra.mxu0 %v2962_v8  ;;  %v2750_v8 = vld [vmem:[%s9974_s14 + $0xd0] sm:$0xff] }
 0xa6c   : > { %2982 = vmatprep.subr.mxu0 %v2960_v9  ;;  %v2746_v9 = vld [vmem:[%s9974_s14 + $0xb0] sm:$0xff] }
 0xa6d   : > { %2983 = vmatpush1.msra.mxu0 %v2959_v10  ;;  %v2745_v10 = vld [vmem:[%s9974_s14 + $0xa8] sm:$0xff] }
 0xa6e   : > { %2984 = vmatprep.subr.mxu0 %v2957_v11  ;;  %v2747_v11 = vld [vmem:[%s9974_s14 + $0xb8] sm:$0xff] }
 0xa6f   : > { %2985 = vmatpush1.msra.mxu0 %v2956_v12  ;;  %v2743_v12 = vld [vmem:[%s9974_s14 + $0x98] sm:$0xff] }
 0xa70   : > { %2986 = vmatprep.subr.mxu0 %v2954_v13  ;;  %v2742_v13 = vld [vmem:[%s9974_s14 + $0x90] sm:$0xff] }
 0xa71   : > { %2987 = vmatpush1.msra.mxu0 %v2953_v14  ;;  %v2744_v14 = vld [vmem:[%s9974_s14 + $0xa0] sm:$0xff] }
 0xa72   : > { %2988 = vmatprep.subr.mxu0 %v2951_v15  ;;  %v2740_v15 = vld [vmem:[%s9974_s14 + $0x80] sm:$0xff] }
 0xa73   : > { %2989 = vmatpush1.msra.mxu0 %v2950_v16  ;;  %v2739_v16 = vld [vmem:[%s9974_s14 + $0x78] sm:$0xff] }
 0xa74   : > { %2990 = vmatprep.subr.mxu0 %v2948_v17  ;;  %v2741_v17 = vld [vmem:[%s9974_s14 + $0x88] sm:$0xff] }
 0xa75   : > { %2991 = vmatpush1.msra.mxu0 %v2947_v18  ;;  %v2737_v18 = vld [vmem:[%s9974_s14 + $0x68] sm:$0xff] }
 0xa76   : > { %2992 = vmatprep.subr.mxu0 %v2945_v20  ;;  %v2736_v20 = vld [vmem:[%s9974_s14 + $0x60] sm:$0xff] }
 0xa77   : > { %2993 = vmatpush1.msra.mxu0 %v2944_v21  ;;  %v2738_v21 = vld [vmem:[%s9974_s14 + $0x70] sm:$0xff] }
 0xa78   : > { %2994 = vmatprep.subr.mxu0 %v2942_v22  ;;  %v2734_v22 = vld [vmem:[%s9974_s14 + $0x50] sm:$0xff] }
 0xa79   : > { %2995 = vmatpush1.msra.mxu0 %v2941_v23  ;;  %v2733_v23 = vld [vmem:[%s9974_s14 + $0x48] sm:$0xff] }
 0xa7a   : > { %2996 = vmatprep.subr.mxu0 %v2939_v25  ;;  %v2735_v25 = vld [vmem:[%s9974_s14 + $0x58] sm:$0xff] }
 0xa7b   : > { %2997 = vmatpush1.msra.mxu0 %v2938_v4  ;;  %v2731_v4 = vld [vmem:[%s9974_s14 + $0x38] sm:$0xff] }
 0xa7c   : > { %2998 = vmatprep.subr.mxu0 %v2936_v0  ;;  %v2730_v0 = vld [vmem:[%s9974_s14 + $0x30] sm:$0xff] }
 0xa7d   : > { %2999 = vmatpush1.msra.mxu0 %v2935_v28  ;;  %v2732_v28 = vld [vmem:[%s9974_s14 + $0x40] sm:$0xff] }
 0xa7e   : > { %3000 = vmatprep.subr.mxu0 %v2933_v30  ;;  %v2728_v30 = vld [vmem:[%s9974_s14 + $0x20] sm:$0xff] }
 0xa7f   : > { %3001 = vmatpush1.msra.mxu0 %v2932_v31  ;;  %v2727_v31 = vld [vmem:[%s9974_s14 + $0x18] sm:$0xff] }
 0xa80   : > { %3002 = vmatprep.subr.mxu0 %v2930_v32  ;;  %v2729_v32 = vld [vmem:[%s9974_s14 + $0x28] sm:$0xff] }
 0xa81   : > { %3003 = vmatpush1.msra.mxu0 %v2929_v35  ;;  %v2725_v35 = vld [vmem:[%s9974_s14 + $0x8] sm:$0xff] }
 0xa82   : > { %3004 = vmatprep.subr.mxu0 %v2927_v36  ;;  %v2724_v36 = vld [vmem:[%s9974_s14] sm:$0xff] }
 0xa83   : > { %3005 = vmatpush1.msra.mxu0 %v2926_v47  ;;  %v1697_v47 = vrot.slane %v7864_v2, %v6563_v43 }
 0xa84   : > { %3115 = vmatprep.subr.mxu0 %v2770_v37  ;;  %v2726_v37 = vld [vmem:[%s9974_s14 + $0x10] sm:$0xff] }
 0xb24   : > { %v2922_v40 = vpop.f32.mrf.mxu0 }
 0xb25   : > { %3039 = vmatmul.mubr.f32.vlgmr.msra.gmra.mxu0 %v2922_v40  ;;  %5765 = vmatmul.mubr.f32.vlgmr.msra.gmra.mxu1 %v2922_v40 }
 0xb26   : > { %3116 = vmatpush1.msra.mxu0 %v2769_v38  ;;  %5768 = vmatpush3.msra.mxu1 %v2771_v39  ;;  %v5731_v52 = vpop.f32.mrf.mxu0  ;;  %v2493_v38 = vpop.f32.mrf.mxu1 }
 0xb27   : > { %3117 = vmatprep.subr.mxu0 %v2767_v45  ;;  %5769 = vmatprep.subr.mxu1 %v5992_v1  ;;  %v2494_v39 = vadd.f32 %v2493_v38, %v1697_v47  ;;  %v3440_v47 = vld [vmem:[%s9974_s14 + $0x3f0] sm:$0xff]  ;;  %v3437_v38 = vld [vmem:[%s9974_s14 + $0x3d8] sm:$0xff] }
 0xb28   : > { %3118 = vmatpush1.msra.mxu0 %v2766_v46  ;;  %5770 = vmatpush3.msra.mxu1 %v2768_v51 }
 0xb29   : > { %3119 = vmatprep.subr.mxu0 %v2764_v53  ;;  %5771 = vmatprep.subr.mxu1 %v5992_v1  ;;  %v2565_v40 = vadd.f32 %v7869_v6, %v2494_v39  ;;  %v3435_v39 = vld [vmem:[%s9974_s14 + $0x3c8] sm:$0xff] }
 0xb2a   : > { %3120 = vmatpush1.msra.mxu0 %v2763_v54  ;;  %5772 = vmatpush3.msra.mxu1 %v2765_v55 }
 0xb2b   : > { %3121 = vmatprep.subr.mxu0 %v2761_v34  ;;  %5773 = vmatprep.subr.mxu1 %v5992_v1 }
 0xb2c   : > { %3122 = vmatpush1.msra.mxu0 %v2760_v56  ;;  %5774 = vmatpush3.msra.mxu1 %v2762_v57 }
 0xb2d   : > { %3123 = vmatprep.subr.mxu0 %v2758_v58  ;;  %5775 = vmatprep.subr.mxu1 %v5992_v1 }
 0xb2e   : > { %3124 = vmatpush1.msra.mxu0 %v2757_v59  ;;  %5776 = vmatpush3.msra.mxu1 %v2759_v60 }
 0xb2f   : > { %3125 = vmatprep.subr.mxu0 %v2755_v33  ;;  %5777 = vmatprep.subr.mxu1 %v5992_v1 }
 0xb30   : > { %3126 = vmatpush1.msra.mxu0 %v2754_v61  ;;  %5778 = vmatpush3.msra.mxu1 %v2756_v41 }
 0xb31   : > { %3127 = vmatprep.subr.mxu0 %v2752_v49  ;;  %5779 = vmatprep.subr.mxu1 %v5992_v1  ;;  %v3456_v49 = vld [vmem:[%s9974_s14 + $0x470] sm:$0xff] }
 0xb32   : > { %3128 = vmatpush1.msra.mxu0 %v2751_v29  ;;  %5780 = vmatpush3.msra.mxu1 %v2753_v48  ;;  %v3457_v29 = vld [vmem:[%s9974_s14 + $0x478] sm:$0xff]  ;;  %v3454_v48 = vld [vmem:[%s9974_s14 + $0x460] sm:$0xff] }
 0xb33   : > { %3129 = vmatprep.subr.mxu0 %v2749_v50  ;;  %5781 = vmatprep.subr.mxu1 %v5992_v1  ;;  %v3451_v50 = vld [vmem:[%s9974_s14 + $0x448] sm:$0xff] }
 0xb34   : > { %3130 = vmatpush1.msra.mxu0 %v2748_v5  ;;  %5782 = vmatpush3.msra.mxu1 %v2750_v8  ;;  %v3448_v5 = vld [vmem:[%s9974_s14 + $0x430] sm:$0xff]  ;;  %v3445_v8 = vld [vmem:[%s9974_s14 + $0x418] sm:$0xff] }
 0xb35   : > { %3131 = vmatprep.subr.mxu0 %v2746_v9  ;;  %5783 = vmatprep.subr.mxu1 %v5992_v1  ;;  %v3442_v9 = vld [vmem:[%s9974_s14 + $0x400] sm:$0xff] }
 0xb36   : > { %3132 = vmatpush1.msra.mxu0 %v2745_v10  ;;  %5784 = vmatpush3.msra.mxu1 %v2747_v11  ;;  %v3439_v10 = vld [vmem:[%s9974_s14 + $0x3e8] sm:$0xff]  ;;  %v3436_v11 = vld [vmem:[%s9974_s14 + $0x3d0] sm:$0xff] }
 0xb37   : > { %3133 = vmatprep.subr.mxu0 %v2743_v12  ;;  %5785 = vmatprep.subr.mxu1 %v5992_v1  ;;  %v3433_v12 = vld [vmem:[%s9974_s14 + $0x3b8] sm:$0xff] }
 0xb38   : > { %3134 = vmatpush1.msra.mxu0 %v2742_v13  ;;  %5786 = vmatpush3.msra.mxu1 %v2744_v14  ;;  %v3430_v13 = vld [vmem:[%s9974_s14 + $0x3a0] sm:$0xff]  ;;  %v3427_v14 = vld [vmem:[%s9974_s14 + $0x388] sm:$0xff] }
 0xb39   : > { %3135 = vmatprep.subr.mxu0 %v2740_v15  ;;  %5787 = vmatprep.subr.mxu1 %v5992_v1  ;;  %v3424_v15 = vld [vmem:[%s9974_s14 + $0x370] sm:$0xff] }
 0xb3a   : > { %3136 = vmatpush1.msra.mxu0 %v2739_v16  ;;  %5788 = vmatpush3.msra.mxu1 %v2741_v17  ;;  %v3421_v16 = vld [vmem:[%s9974_s14 + $0x358] sm:$0xff]  ;;  %v3418_v17 = vld [vmem:[%s9974_s14 + $0x340] sm:$0xff] }
 0xb3b   : > { %3137 = vmatprep.subr.mxu0 %v2737_v18  ;;  %5789 = vmatprep.subr.mxu1 %v5992_v1  ;;  %v3415_v18 = vld [vmem:[%s9974_s14 + $0x328] sm:$0xff] }
 0xb3c   : > { %3138 = vmatpush1.msra.mxu0 %v2736_v20  ;;  %5790 = vmatpush3.msra.mxu1 %v2738_v21 }
 0xb3d   : > { %3139 = vmatprep.subr.mxu0 %v2734_v22  ;;  %5791 = vmatprep.subr.mxu1 %v5992_v1 }
 0xb3e   : > { %3140 = vmatpush1.msra.mxu0 %v2733_v23  ;;  %5792 = vmatpush3.msra.mxu1 %v2735_v25  ;;  %v3455_v23 = vld [vmem:[%s9974_s14 + $0x468] sm:$0xff]  ;;  %v3453_v25 = vld [vmem:[%s9974_s14 + $0x458] sm:$0xff] }
 0xb3f   : > { %3141 = vmatprep.subr.mxu0 %v2731_v4  ;;  %5793 = vmatprep.subr.mxu1 %v5992_v1  ;;  %v3452_v4 = vld [vmem:[%s9974_s14 + $0x450] sm:$0xff] }
 0xb40   : > { %3142 = vmatpush1.msra.mxu0 %v2730_v0  ;;  %5794 = vmatpush3.msra.mxu1 %v2732_v28  ;;  %v3450_v0 = vld [vmem:[%s9974_s14 + $0x440] sm:$0xff]  ;;  %v3449_v28 = vld [vmem:[%s9974_s14 + $0x438] sm:$0xff] }
 0xb41   : > { %3143 = vmatprep.subr.mxu0 %v2728_v30  ;;  %5795 = vmatprep.subr.mxu1 %v5992_v1  ;;  %v3447_v30 = vld [vmem:[%s9974_s14 + $0x428] sm:$0xff] }
 0xb42   : > { %3144 = vmatpush1.msra.mxu0 %v2727_v31  ;;  %5796 = vmatpush3.msra.mxu1 %v2729_v32  ;;  %v3446_v31 = vld [vmem:[%s9974_s14 + $0x420] sm:$0xff]  ;;  %v3444_v32 = vld [vmem:[%s9974_s14 + $0x410] sm:$0xff] }
 0xb43   : > { %3145 = vmatprep.subr.mxu0 %v2725_v35  ;;  %5797 = vmatprep.subr.mxu1 %v5992_v1  ;;  %v3443_v35 = vld [vmem:[%s9974_s14 + $0x408] sm:$0xff] }
 0xb44   : > { %3146 = vmatpush1.msra.mxu0 %v2724_v36  ;;  %3179 = vmatprep.mubr.f32.mxu0 %v5992_v1  ;;  %v3441_v36 = vld [vmem:[%s9974_s14 + $0x3f8] sm:$0xff] }
 0xb45   : > { %5798 = vmatpush3.msra.mxu1 %v2726_v37  ;;  %5799 = vmatprep.mubr.msk.f32.mxu1 %vm5993_vm0, %v5992_v1  ;;  %v3438_v37 = vld [vmem:[%s9974_s14 + $0x3e0] sm:$0xff] }
 0xb46   : > { %3180 = vmatmul.mubr.f32.vlgmr.msra.gmra.mxu0 %v7884_v24  ;;  %5800 = vmatmul.mubr.f32.vlgmr.msra.gmra.mxu1 %v7884_v24  ;;  %v8228_v24 = vpop.f32.mrf.mxu1 }
 0xb47   : > { %5802 = vmatprep.subr.mxu0 %v5992_v1  ;;  %5804 = vmatprep.mubr.msk.f32.mxu0 %vm5993_vm0, %v5992_v1 }
 0xb48   : > { %5803 = vmatpush3.xpose.msra.mxu0 %v7857_v63  ;;  %5812 = vmatprep.subr.mxu1 %v5992_v1 }
 0xb49   : > { %5807 = vmatprep.subr.mxu0 %v5992_v1  ;;  %5844 = vmatprep.mubr.msk.f32.mxu1 %vm5993_vm0, %v5992_v1 }
 0xb4a   : > { %5813 = vmatpush3.msra.mxu1 %v3457_v29  ;;  %v1701_v29 = vrot.slane %v7864_v2, %v7832_v19 }
 0xb4b   : > { %5805 = vmatmul.mubr.f32.vlgmr.msra.gmra.mxu0 %v7838_v26  ;;  %5814 = vmatprep.subr.mxu1 %v5992_v1 }
 0xb4c   : > { %5808 = vmatpush3.msra.mxu0 %v2565_v40  ;;  %5809 = vmatprep.mubr.msk.f32.mxu0 %vm5993_vm0, %v5992_v1  ;;  %v3434_v40 = vld [vmem:[%s9974_s14 + $0x3c0] sm:$0xff] }
 0xb4d   : > { %3458 = vmatprep.subr.mxu0 %v3456_v49  ;;  %5815 = vmatpush3.msra.mxu1 %v3454_v48  ;;  %v3412_v49 = vld [vmem:[%s9974_s14 + $0x310] sm:$0xff]  ;;  %v2496_v48 = vadd.f32 %v8228_v24, %v1701_v29  ;;  %v3772_v29 = vld [vmem:[%s9974_s14 + $0x500] sm:$0xff] }
 0xb4e   : > { %5816 = vmatprep.subr.mxu1 %v5992_v1 }
 0xb4f   : > { %5817 = vmatpush3.msra.mxu1 %v3451_v50 }
 0xb50   : > { %5818 = vmatprep.subr.mxu1 %v5992_v1 }
 0xb51   : > { %5819 = vmatpush3.msra.mxu1 %v3448_v5 }
 0xb52   : > { %5820 = vmatprep.subr.mxu1 %v5992_v1 }
 0xb53   : > { %5821 = vmatpush3.msra.mxu1 %v3445_v8  ;;  %v2567_v8 = vadd.f32 %v7871_v7, %v2496_v48  ;;  %v3771_v48 = vld [vmem:[%s9974_s14 + $0x4f8] sm:$0xff] }
 0xb54   : > { %5822 = vmatprep.subr.mxu1 %v5992_v1 }
 0xb55   : > { %5823 = vmatpush3.msra.mxu1 %v3442_v9 }
 0xb56   : > { %5824 = vmatprep.subr.mxu1 %v5992_v1 }
 0xb57   : > { %5825 = vmatpush3.msra.mxu1 %v3439_v10 }
 0xb58   : > { %5826 = vmatprep.subr.mxu1 %v5992_v1 }
 0xb59   : > { %5827 = vmatpush3.msra.mxu1 %v3436_v11 }
 0xb5a   : > { %5828 = vmatprep.subr.mxu1 %v5992_v1 }
 0xb5b   : > { %5829 = vmatpush3.msra.mxu1 %v3433_v12 }
 0xb5c   : > { %5830 = vmatprep.subr.mxu1 %v5992_v1 }
 0xb5d   : > { %5831 = vmatpush3.msra.mxu1 %v3430_v13 }
 0xb5e   : > { %5832 = vmatprep.subr.mxu1 %v5992_v1 }
 0xb5f   : > { %5833 = vmatpush3.msra.mxu1 %v3427_v14 }
 0xb60   : > { %5834 = vmatprep.subr.mxu1 %v5992_v1 }
 0xb61   : > { %5835 = vmatpush3.msra.mxu1 %v3424_v15 }
 0xb62   : > { %5836 = vmatprep.subr.mxu1 %v5992_v1 }
 0xb63   : > { %5837 = vmatpush3.msra.mxu1 %v3421_v16 }
 0xb64   : > { %5838 = vmatprep.subr.mxu1 %v5992_v1 }
 0xb65   : > { %5839 = vmatpush3.msra.mxu1 %v3418_v17 }
 0xb66   : > { %5840 = vmatprep.subr.mxu1 %v5992_v1 }
 0xb67   : > { %5841 = vmatpush3.msra.mxu1 %v3415_v18  ;;  %v3800_v18 = vld [vmem:[%s9974_s14 + $0x5e0] sm:$0xff] }
 0xb68   : > { %5842 = vmatprep.subr.mxu1 %v5992_v1 }
 0xb69   : > { %5843 = vmatpush3.msra.mxu1 %v3412_v49  ;;  %v3774_v49 = vld [vmem:[%s9974_s14 + $0x510] sm:$0xff] }
 0xb6a   : > { %5857 = vmatprep.subr.mxu1 %v5992_v1 }
 0xbe5   : > { %v3111_v45 = vpop.f32.mrf.mxu1  ;;  %v3040_v63 = vpop.f32.mrf.mxu0 }
 0xbe7   : > { %v5766_v46 = vpop.f32.mrf.mxu1  ;;  %v3042_v51 = vpop.f32.mrf.mxu0 }
 0xbe8   : > { %v3431_v46 = vld [vmem:[%s9974_s14 + $0x3a8] sm:$0xff] }
 0xc06   : > { %v3181_v52 = vpop.f32.mrf.mxu0  ;;  %v3252_v53 = vpop.f32.mrf.mxu1 }
 0xc07   : > { %v8230_v54 = vadd.f32 %v3181_v52, %v3040_v63  ;;  %v8232_v55 = vadd.f32 %v3252_v53, %v3111_v45  ;;  %v3432_v45 = vld [vmem:[%s9974_s14 + $0x3b0] sm:$0xff]  ;;  %v3429_v63 = vld [vmem:[%s9974_s14 + $0x398] sm:$0xff]  ;;  %v3426_v52 = vld [vmem:[%s9974_s14 + $0x380] sm:$0xff] }
 0xc08   : > { %v3183_v34 = vpop.f32.mrf.mxu0  ;;  %v5801_v6 = vpop.f32.mrf.mxu1  ;;  %v3425_v53 = vld [vmem:[%s9974_s14 + $0x378] sm:$0xff] }
 0xc09   : > { %v8234_v56 = vadd.f32 %v3183_v34, %v3042_v51  ;;  %v3428_v51 = vld [vmem:[%s9974_s14 + $0x390] sm:$0xff]  ;;  %v3423_v34 = vld [vmem:[%s9974_s14 + $0x368] sm:$0xff]  ;;  %v3422_v6 = vld [vmem:[%s9974_s14 + $0x360] sm:$0xff] }
 0xc0b   : > { %v3322_v26 = vpop.f32.mrf.mxu0 }
 0xc0c   : > { %v3326_v57 = vsel %vm2639_vm2, %v3322_v26, -inf }
 0xc0d   : > { %3327 = vmax.xlane.f32.xlu0 %v3326_v57  ;;  %v5806_v58 = vpop.f32.mrf.mxu0  ;;  %v3419_v57 = vld [vmem:[%s9974_s14 + $0x348] sm:$0xff] }
 0xc0e   : > { %v3417_v58 = vld [vmem:[%s9974_s14 + $0x338] sm:$0xff] }
 0xc96   : > { %v3328_v59 = vpop.xlane.xlu0 %3327 }
 0xc97   : > { %v3329_v60 = vsub.f32 %v3322_v26, %v3328_v59  ;;  %v3420_v26 = vld [vmem:[%s9974_s14 + $0x350] sm:$0xff] }
 0xc98   : > { %v3416_v59 = vld [vmem:[%s9974_s14 + $0x330] sm:$0xff] }
 0xc99   : > { %v3330_v33 = vmul.f32 1.442695, %v3329_v60  ;;  %v3414_v60 = vld [vmem:[%s9974_s14 + $0x320] sm:$0xff] }
 0xc9b   : > { %5970 = vpow2.f32 %v3330_v33  ;;  %v3413_v33 = vld [vmem:[%s9974_s14 + $0x318] sm:$0xff] }
 0xca8   : > { %v5971_v61 = vpop.eup %5970 }
 0xca9   : > { %v3332_v41 = vsel %vm2639_vm2, %v5971_v61, 0.0 }
 0xcaa   : > { %3333 = vadd.xlane.f32.xlu1 %v3332_v41  ;;  %v3410_v41 = vld [vmem:[%s9974_s14 + $0x300] sm:$0xff] }
 0xd33   : > { %v3334_v20 = vpop.xlane.xlu1 %3333 }
 0xd34   : > { %5972 = vrcp.f32 %v3334_v20  ;;  %v3797_v20 = vld [vmem:[%s9974_s14 + $0x5c8] sm:$0xff] }
 0xd41   : > { %v5973_v21 = vpop.eup %5972 }
 0xd42   : > { %v3336_v22 = vmul.f32 %v5973_v21, %v5971_v61  ;;  %v3411_v61 = vld [vmem:[%s9974_s14 + $0x308] sm:$0xff]  ;;  %v3794_v21 = vld [vmem:[%s9974_s14 + $0x5b0] sm:$0xff] }
 0xd44   : > { %5810 = vmatmul.mubr.msk.f32.vlgmr.msra.gmra.mxu0 %vm2639_vm2, %v3336_v22  ;;  %v3791_v22 = vld [vmem:[%s9974_s14 + $0x598] sm:$0xff] }
 0xd45   : > { %3459 = vmatpush1.msra.mxu0 %v3455_v23  ;;  %3522 = vmatprep.mubr.f32.mxu0 %v5992_v1  ;;  %v3788_v23 = vld [vmem:[%s9974_s14 + $0x580] sm:$0xff] }
 0xd46   : > { %3460 = vmatprep.subr.mxu0 %v3453_v25  ;;  %v3785_v25 = vld [vmem:[%s9974_s14 + $0x568] sm:$0xff] }
 0xd47   : > { %3461 = vmatpush1.msra.mxu0 %v3452_v4  ;;  %v3782_v4 = vld [vmem:[%s9974_s14 + $0x550] sm:$0xff] }
 0xd48   : > { %3462 = vmatprep.subr.mxu0 %v3450_v0  ;;  %v3779_v0 = vld [vmem:[%s9974_s14 + $0x538] sm:$0xff] }
 0xd49   : > { %3463 = vmatpush1.msra.mxu0 %v3449_v28  ;;  %v3776_v28 = vld [vmem:[%s9974_s14 + $0x520] sm:$0xff] }
 0xd4a   : > { %3464 = vmatprep.subr.mxu0 %v3447_v30  ;;  %v3773_v30 = vld [vmem:[%s9974_s14 + $0x508] sm:$0xff] }
 0xd4b   : > { %3465 = vmatpush1.msra.mxu0 %v3446_v31  ;;  %v3770_v31 = vld [vmem:[%s9974_s14 + $0x4f0] sm:$0xff] }
 0xd4c   : > { %3466 = vmatprep.subr.mxu0 %v3444_v32  ;;  %v3767_v32 = vld [vmem:[%s9974_s14 + $0x4d8] sm:$0xff] }
 0xd4d   : > { %3467 = vmatpush1.msra.mxu0 %v3443_v35  ;;  %v3764_v35 = vld [vmem:[%s9974_s14 + $0x4c0] sm:$0xff] }
 0xd4e   : > { %3468 = vmatprep.subr.mxu0 %v3441_v36  ;;  %v3761_v36 = vld [vmem:[%s9974_s14 + $0x4a8] sm:$0xff] }
 0xd4f   : > { %3469 = vmatpush1.msra.mxu0 %v3440_v47 }
 0xd50   : > { %3470 = vmatprep.subr.mxu0 %v3438_v37 }
 0xd51   : > { %3471 = vmatpush1.msra.mxu0 %v3437_v38 }
 0xd52   : > { %3472 = vmatprep.subr.mxu0 %v3435_v39  ;;  %v3801_v39 = vld [vmem:[%s9974_s14 + $0x5e8] sm:$0xff] }
 0xd53   : > { %3473 = vmatpush1.msra.mxu0 %v3434_v40  ;;  %v3799_v40 = vld [vmem:[%s9974_s14 + $0x5d8] sm:$0xff] }
 0xd54   : > { %3474 = vmatprep.subr.mxu0 %v3432_v45  ;;  %v3798_v45 = vld [vmem:[%s9974_s14 + $0x5d0] sm:$0xff] }
 0xd55   : > { %3475 = vmatpush1.msra.mxu0 %v3431_v46  ;;  %v3796_v46 = vld [vmem:[%s9974_s14 + $0x5c0] sm:$0xff] }
 0xd56   : > { %3476 = vmatprep.subr.mxu0 %v3429_v63  ;;  %v3795_v63 = vld [vmem:[%s9974_s14 + $0x5b8] sm:$0xff] }
 0xd57   : > { %3477 = vmatpush1.msra.mxu0 %v3428_v51  ;;  %v3793_v51 = vld [vmem:[%s9974_s14 + $0x5a8] sm:$0xff] }
 0xd58   : > { %3478 = vmatprep.subr.mxu0 %v3426_v52  ;;  %v3792_v52 = vld [vmem:[%s9974_s14 + $0x5a0] sm:$0xff] }
 0xd59   : > { %3479 = vmatpush1.msra.mxu0 %v3425_v53  ;;  %v3790_v53 = vld [vmem:[%s9974_s14 + $0x590] sm:$0xff] }
 0xd5a   : > { %3480 = vmatprep.subr.mxu0 %v3423_v34  ;;  %v3789_v34 = vld [vmem:[%s9974_s14 + $0x588] sm:$0xff] }
 0xd5b   : > { %3481 = vmatpush1.msra.mxu0 %v3422_v6  ;;  %v3787_v6 = vld [vmem:[%s9974_s14 + $0x578] sm:$0xff] }
 0xd5c   : > { %3482 = vmatprep.subr.mxu0 %v3420_v26  ;;  %v3786_v26 = vld [vmem:[%s9974_s14 + $0x570] sm:$0xff] }
 0xd5d   : > { %3483 = vmatpush1.msra.mxu0 %v3419_v57  ;;  %v3784_v57 = vld [vmem:[%s9974_s14 + $0x560] sm:$0xff] }
 0xd5e   : > { %3484 = vmatprep.subr.mxu0 %v3417_v58  ;;  %v3783_v58 = vld [vmem:[%s9974_s14 + $0x558] sm:$0xff] }
 0xd5f   : > { %3485 = vmatpush1.msra.mxu0 %v3416_v59  ;;  %v3781_v59 = vld [vmem:[%s9974_s14 + $0x548] sm:$0xff] }
 0xd60   : > { %3486 = vmatprep.subr.mxu0 %v3414_v60  ;;  %v3780_v60 = vld [vmem:[%s9974_s14 + $0x540] sm:$0xff] }
 0xd61   : > { %3487 = vmatpush1.msra.mxu0 %v3413_v33  ;;  %v3778_v33 = vld [vmem:[%s9974_s14 + $0x530] sm:$0xff] }
 0xd62   : > { %3488 = vmatprep.subr.mxu0 %v3411_v61  ;;  %v3777_v61 = vld [vmem:[%s9974_s14 + $0x528] sm:$0xff] }
 0xd63   : > { %3489 = vmatpush1.msra.mxu0 %v3410_v41  ;;  %v3775_v41 = vld [vmem:[%s9974_s14 + $0x518] sm:$0xff] }
 0xd64   : > { %5847 = vmatprep.subr.mxu0 %v5992_v1 }
 0xe04   : > { %v3406_v50 = vpop.f32.mrf.mxu0 }
 0xe05   : > { %3523 = vmatmul.mubr.f32.vlgmr.msra.gmra.mxu0 %v3406_v50  ;;  %5845 = vmatmul.mubr.f32.vlgmr.msra.gmra.mxu1 %v3406_v50  ;;  %v3769_v50 = vld [vmem:[%s9974_s14 + $0x4e8] sm:$0xff] }
 0xe06   : > { %5848 = vmatpush3.xpose.msra.mxu0 %v7859_v62  ;;  %v5811_v5 = vpop.f32.mrf.mxu0  ;;  %5849 = vmatprep.mubr.msk.f32.mxu0 %vm5993_vm0, %v5992_v1 }
 0xe07   : > { %5852 = vmatprep.subr.mxu0 %v5992_v1  ;;  %5889 = vmatprep.mubr.msk.f32.mxu1 %vm5993_vm0, %v5992_v1  ;;  %v3768_v5 = vld [vmem:[%s9974_s14 + $0x4e0] sm:$0xff] }
 0xe09   : > { %5850 = vmatmul.mubr.f32.vlgmr.msra.gmra.mxu0 %v7840_v27 }
 0xe0a   : > { %5853 = vmatpush3.msra.mxu0 %v2567_v8  ;;  %5854 = vmatprep.mubr.msk.f32.mxu0 %vm5993_vm0, %v5992_v1  ;;  %v3766_v8 = vld [vmem:[%s9974_s14 + $0x4d0] sm:$0xff] }
 0xec5   : > { %v3524_v2 = vpop.f32.mrf.mxu0  ;;  %v3595_v24 = vpop.f32.mrf.mxu1 }
 0xec6   : > { %v8415_v62 = vadd.f32 %v3524_v2, %v8230_v54  ;;  %v8418_v9 = vadd.f32 %v3595_v24, %v8232_v55  ;;  %v3802_v55 = vld [vmem:[%s9974_s14 + $0x5f0] sm:$0xff]  ;;  %v3765_v2 = vld [vmem:[%s9974_s14 + $0x4c8] sm:$0xff]  ;;  %v3763_v24 = vld [vmem:[%s9974_s14 + $0x4b8] sm:$0xff] }
 0xec7   : > { %v3526_v10 = vpop.f32.mrf.mxu0  ;;  %v5846_v11 = vpop.f32.mrf.mxu1  ;;  %3804 = vmatprep.subr.mxu0 %v3802_v55 }
 0xec8   : > { %v8421_v12 = vadd.f32 %v3526_v10, %v8234_v56  ;;  %v3803_v56 = vld [vmem:[%s9974_s14 + $0x5f8] sm:$0xff]  ;;  %v3762_v10 = vld [vmem:[%s9974_s14 + $0x4b0] sm:$0xff]  ;;  %v3760_v11 = vld [vmem:[%s9974_s14 + $0x4a0] sm:$0xff] }
 0xec9   : > { %v3668_v7 = vpop.f32.mrf.mxu0  ;;  %5858 = vmatpush3.msra.mxu1 %v3803_v56 }
 0xeca   : > { %v3672_v27 = vsel %vm2639_vm2, %v3668_v7, -inf  ;;  %5859 = vmatprep.subr.mxu1 %v5992_v1 }
 0xecb   : > { %3673 = vmax.xlane.f32.xlu0 %v3672_v27  ;;  %v5851_v13 = vpop.f32.mrf.mxu0  ;;  %5860 = vmatpush3.msra.mxu1 %v3800_v18  ;;  %v3757_v27 = vld [vmem:[%s9974_s14 + $0x488] sm:$0xff] }
 0xecc   : > { %5861 = vmatprep.subr.mxu1 %v5992_v1  ;;  %v3756_v13 = vld [vmem:[%s9974_s14 + $0x480] sm:$0xff] }
 0xecd   : > { %5862 = vmatpush3.msra.mxu1 %v3797_v20 }
 0xece   : > { %5863 = vmatprep.subr.mxu1 %v5992_v1 }
 0xecf   : > { %5864 = vmatpush3.msra.mxu1 %v3794_v21 }
 0xed0   : > { %5865 = vmatprep.subr.mxu1 %v5992_v1 }
 0xed1   : > { %5866 = vmatpush3.msra.mxu1 %v3791_v22 }
 0xed2   : > { %5867 = vmatprep.subr.mxu1 %v5992_v1 }
 0xed3   : > { %5868 = vmatpush3.msra.mxu1 %v3788_v23 }
 0xed4   : > { %5869 = vmatprep.subr.mxu1 %v5992_v1 }
 0xed5   : > { %5870 = vmatpush3.msra.mxu1 %v3785_v25  ;;  %v5982_v25 = vld [vmem:[%s6275_s2] sm:$0xff] }
 0xed6   : > { %5871 = vmatprep.subr.mxu1 %v5992_v1 }
 0xed7   : > { %5872 = vmatpush3.msra.mxu1 %v3782_v4 }
 0xed8   : > { %5873 = vmatprep.subr.mxu1 %v5992_v1 }
 0xed9   : > { %5874 = vmatpush3.msra.mxu1 %v3779_v0 }
 0xeda   : > { %5875 = vmatprep.subr.mxu1 %v5992_v1 }
 0xedb   : > { %5876 = vmatpush3.msra.mxu1 %v3776_v28 }
 0xedc   : > { %5877 = vmatprep.subr.mxu1 %v5992_v1 }
 0xedd   : > { %5878 = vmatpush3.msra.mxu1 %v3773_v30 }
 0xede   : > { %5879 = vmatprep.subr.mxu1 %v5992_v1 }
 0xedf   : > { %5880 = vmatpush3.msra.mxu1 %v3770_v31  ;;  %v5983_v31 = vld [vmem:[%s6275_s2 + $0x8] sm:$0xff] }
 0xee0   : > { %5881 = vmatprep.subr.mxu1 %v5992_v1 }
 0xee1   : > { %5882 = vmatpush3.msra.mxu1 %v3767_v32 }
 0xee2   : > { %5883 = vmatprep.subr.mxu1 %v5992_v1 }
 0xee3   : > { %5884 = vmatpush3.msra.mxu1 %v3764_v35 }
 0xee4   : > { %5885 = vmatprep.subr.mxu1 %v5992_v1 }
 0xee5   : > { %5886 = vmatpush3.msra.mxu1 %v3761_v36 }
 0xee6   : > { %5887 = vmatprep.subr.mxu1 %v5992_v1 }
 0xf54   : > { %v3674_v14 = vpop.xlane.xlu0 %3673 }
 0xf55   : > { %v3675_v15 = vsub.f32 %v3668_v7, %v3674_v14  ;;  %v3759_v7 = vld [vmem:[%s9974_s14 + $0x498] sm:$0xff]  ;;  %v3758_v14 = vld [vmem:[%s9974_s14 + $0x490] sm:$0xff] }
 0xf56   : > { %5888 = vmatpush3.msra.mxu1 %v3758_v14  ;;  %v4155_v14 = vld [vmem:[%s9978_s18 + $0x3c8] sm:$0xff] }
 0xf57   : > { %v3676_v16 = vmul.f32 1.442695, %v3675_v15 }
 0xf59   : > { %5974 = vpow2.f32 %v3676_v16 }
 0xf66   : > { %v5975_v17 = vpop.eup %5974 }
 0xf67   : > { %v3678_v54 = vsel %vm2639_vm2, %v5975_v17, 0.0 }
 0xf68   : > { %3679 = vadd.xlane.f32.xlu1 %v3678_v54 }
 0xff1   : > { %v3680_v47 = vpop.xlane.xlu1 %3679 }
 0xff2   : > { %5976 = vrcp.f32 %v3680_v47 }
 0xfff   : > { %v5977_v37 = vpop.eup %5976 }
0x1000   : > { %v3682_v38 = vmul.f32 %v5977_v37, %v5975_v17  ;;  %v3951_v17 = vld [vmem:[%s9975_s15] sm:$0x7] }
0x1001   : > { %v3956_v20 = vrot.slane %v3951_v17, %v6566_v44  ;;  %v3964_v21 = vrot.slane %v3951_v17, %v6563_v43  ;;  %v3960_v30 = vrot.slane %v3951_v17, %v6560_v42  ;;  %v4150_v17 = vld [vmem:[%s9978_s18 + $0x3a0] sm:$0xff] }
0x1002   : > { %5855 = vmatmul.mubr.msk.f32.vlgmr.msra.gmra.mxu0 %vm2639_vm2, %v3682_v38  ;;  %v4091_v38 = vld [vmem:[%s9978_s18 + $0x1c8] sm:$0xff] }
0x1003   : > { %3805 = vmatpush1.msra.mxu0 %v3801_v39  ;;  %3868 = vmatprep.mubr.f32.mxu0 %v5992_v1  ;;  %v4090_v39 = vld [vmem:[%s9978_s18 + $0x1c0] sm:$0xff] }
0x1004   : > { %3806 = vmatprep.subr.mxu0 %v3799_v40  ;;  %v4087_v40 = vld [vmem:[%s9978_s18 + $0x1a8] sm:$0xff] }
0x1005   : > { %3807 = vmatpush1.msra.mxu0 %v3798_v45  ;;  %v4086_v45 = vld [vmem:[%s9978_s18 + $0x1a0] sm:$0xff] }
0x1006   : > { %3808 = vmatprep.subr.mxu0 %v3796_v46  ;;  %v4083_v46 = vld [vmem:[%s9978_s18 + $0x188] sm:$0xff] }
0x1007   : > { %3809 = vmatpush1.msra.mxu0 %v3795_v63  ;;  %v4082_v63 = vld [vmem:[%s9978_s18 + $0x180] sm:$0xff] }
0x1008   : > { %3810 = vmatprep.subr.mxu0 %v3793_v51  ;;  %v4079_v51 = vld [vmem:[%s9978_s18 + $0x168] sm:$0xff] }
0x1009   : > { %3811 = vmatpush1.msra.mxu0 %v3792_v52  ;;  %v4078_v52 = vld [vmem:[%s9978_s18 + $0x160] sm:$0xff] }
0x100a   : > { %3812 = vmatprep.subr.mxu0 %v3790_v53  ;;  %v4075_v53 = vld [vmem:[%s9978_s18 + $0x148] sm:$0xff] }
0x100b   : > { %3813 = vmatpush1.msra.mxu0 %v3789_v34  ;;  %v4074_v34 = vld [vmem:[%s9978_s18 + $0x140] sm:$0xff] }
0x100c   : > { %3814 = vmatprep.subr.mxu0 %v3787_v6  ;;  %v4071_v6 = vld [vmem:[%s9978_s18 + $0x128] sm:$0xff] }
0x100d   : > { %3815 = vmatpush1.msra.mxu0 %v3786_v26  ;;  %v4070_v26 = vld [vmem:[%s9978_s18 + $0x120] sm:$0xff] }
0x100e   : > { %3816 = vmatprep.subr.mxu0 %v3784_v57  ;;  %v4067_v57 = vld [vmem:[%s9978_s18 + $0x108] sm:$0xff] }
0x100f   : > { %3817 = vmatpush1.msra.mxu0 %v3783_v58  ;;  %v4066_v58 = vld [vmem:[%s9978_s18 + $0x100] sm:$0xff] }
0x1010   : > { %3818 = vmatprep.subr.mxu0 %v3781_v59  ;;  %v4063_v59 = vld [vmem:[%s9978_s18 + $0xe8] sm:$0xff] }
0x1011   : > { %3819 = vmatpush1.msra.mxu0 %v3780_v60  ;;  %v4062_v60 = vld [vmem:[%s9978_s18 + $0xe0] sm:$0xff] }
0x1012   : > { %3820 = vmatprep.subr.mxu0 %v3778_v33  ;;  %v4059_v33 = vld [vmem:[%s9978_s18 + $0xc8] sm:$0xff] }
0x1013   : > { %3821 = vmatpush1.msra.mxu0 %v3777_v61  ;;  %v4058_v61 = vld [vmem:[%s9978_s18 + $0xc0] sm:$0xff] }
0x1014   : > { %3822 = vmatprep.subr.mxu0 %v3775_v41  ;;  %v4055_v41 = vld [vmem:[%s9978_s18 + $0xa8] sm:$0xff] }
0x1015   : > { %3823 = vmatpush1.msra.mxu0 %v3774_v49  ;;  %v4054_v49 = vld [vmem:[%s9978_s18 + $0xa0] sm:$0xff] }
0x1016   : > { %3824 = vmatprep.subr.mxu0 %v3772_v29  ;;  %v4051_v29 = vld [vmem:[%s9978_s18 + $0x88] sm:$0xff] }
0x1017   : > { %3825 = vmatpush1.msra.mxu0 %v3771_v48  ;;  %v4050_v48 = vld [vmem:[%s9978_s18 + $0x80] sm:$0xff] }
0x1018   : > { %3826 = vmatprep.subr.mxu0 %v3769_v50  ;;  %v4047_v50 = vld [vmem:[%s9978_s18 + $0x68] sm:$0xff] }
0x1019   : > { %3827 = vmatpush1.msra.mxu0 %v3768_v5  ;;  %v4046_v5 = vld [vmem:[%s9978_s18 + $0x60] sm:$0xff] }
0x101a   : > { %3828 = vmatprep.subr.mxu0 %v3766_v8  ;;  %v4043_v8 = vld [vmem:[%s9978_s18 + $0x48] sm:$0xff] }
0x101b   : > { %3829 = vmatpush1.msra.mxu0 %v3765_v2  ;;  %v4042_v2 = vld [vmem:[%s9978_s18 + $0x40] sm:$0xff] }
0x101c   : > { %3830 = vmatprep.subr.mxu0 %v3763_v24  ;;  %v4039_v24 = vld [vmem:[%s9978_s18 + $0x28] sm:$0xff] }
0x101d   : > { %3831 = vmatpush1.msra.mxu0 %v3762_v10  ;;  %v4038_v10 = vld [vmem:[%s9978_s18 + $0x20] sm:$0xff] }
0x101e   : > { %3832 = vmatprep.subr.mxu0 %v3760_v11  ;;  %v4035_v11 = vld [vmem:[%s9978_s18 + $0x8] sm:$0xff] }
0x101f   : > { %3833 = vmatpush1.msra.mxu0 %v3759_v7  ;;  %v4034_v7 = vld [vmem:[%s9978_s18] sm:$0xff] }
0x1020   : > { %3834 = vmatprep.subr.mxu0 %v3757_v27  ;;  %v4159_v27 = vld [vmem:[%s9978_s18 + $0x3e8] sm:$0xff] }
0x1021   : > { %3835 = vmatpush1.msra.mxu0 %v3756_v13  ;;  %v4158_v13 = vld [vmem:[%s9978_s18 + $0x3e0] sm:$0xff] }
0x10c2   : > { %v3752_v15 = vpop.f32.mrf.mxu0 }
0x10c3   : > { %3869 = vmatmul.mubr.f32.vlgmr.msra.gmra.mxu0 %v3752_v15  ;;  %5890 = vmatmul.mubr.f32.vlgmr.msra.gmra.mxu1 %v3752_v15  ;;  %v4154_v15 = vld [vmem:[%s9978_s18 + $0x3c0] sm:$0xff] }
0x10c4   : > { %v5856_v16 = vpop.f32.mrf.mxu0  ;;  %4354 = vmatprep.mubr.f32.mxu1 %v5992_v1 }
0x10c5   : > { %v4151_v16 = vld [vmem:[%s9978_s18 + $0x3a8] sm:$0xff] }
0x1183   : > { %v3870_v54 = vpop.f32.mrf.mxu0  ;;  %v3941_v55 = vpop.f32.mrf.mxu1 }
0x1184   : > { %v3945_v56 = vadd.f32 %v3870_v54, %v8415_v62  ;;  %v3947_v18 = vadd.f32 %v3941_v55, %v8418_v9  ;;  %v4147_v54 = vld [vmem:[%s9978_s18 + $0x388] sm:$0xff]  ;;  %v4146_v55 = vld [vmem:[%s9978_s18 + $0x380] sm:$0xff] }
0x1185   : > { %v3872_v22 = vpop.f32.mrf.mxu0  ;;  %v5891_v23 = vpop.f32.mrf.mxu1 }
0x1186   : > { %v3948_v4 = vadd.f32 %v5982_v25, %v3945_v56  ;;  %v3950_v0 = vadd.f32 %v3947_v18, %v6291_v3  ;;  %v3946_v28 = vadd.f32 %v3872_v22, %v8421_v12  ;;  %v4095_v3 = vld [vmem:[%s9978_s18 + $0x1e8] sm:$0xff]  ;;  %v4094_v12 = vld [vmem:[%s9978_s18 + $0x1e0] sm:$0xff] }
0x1187   : > { %4219 = vmatprep.subr.mxu0 %v4095_v3  ;;  %v4134_v3 = vld [vmem:[%s9978_s18 + $0x320] sm:$0xff] }
0x1188   : > { %v3949_v32 = vadd.f32 %v5983_v31, %v3946_v28  ;;  %v8599_v35 = vadd.f32 %v3964_v21, %v3950_v0  ;;  %v8601_v62 = vadd.f32 %v3956_v20, %v3948_v4  ;;  %4220 = vmatpush1.msra.mxu0 %v4094_v12  ;;  %v4143_v31 = vld [vmem:[%s9978_s18 + $0x368] sm:$0xff] }
0x1189   : > { %4221 = vmatprep.subr.mxu0 %v4091_v38  ;;  %v4131_v12 = vld [vmem:[%s9978_s18 + $0x308] sm:$0xff] }
0x118a   : > { %v8603_v9 = vadd.f32 %v3960_v30, %v3949_v32  ;;  %v3974_v47 = vsel %vm877_vm1, %v8599_v35, 0.0  ;;  %4222 = vmatpush1.msra.mxu0 %v4090_v39  ;;  %v4142_v32 = vld [vmem:[%s9978_s18 + $0x360] sm:$0xff]  ;;  %v4191_v38 = vld [vmem:[%s9978_s18 + $0x4e8] sm:$0xff] }
0x118b   : > { %4223 = vmatprep.subr.mxu0 %v4087_v40  ;;  %v4190_v39 = vld [vmem:[%s9978_s18 + $0x4e0] sm:$0xff]  ;;  %4306 = vmatprep.subr.mxu1 %v4191_v38 }
0x118c   : > { %v3973_v36 = vadd.f32 %v8603_v9, %v8601_v62  ;;  %4224 = vmatpush1.msra.mxu0 %v4086_v45  ;;  %v4130_v40 = vld [vmem:[%s9978_s18 + $0x300] sm:$0xff]  ;;  %v4187_v45 = vld [vmem:[%s9978_s18 + $0x4c8] sm:$0xff]  ;;  %4307 = vmatpush1.msra.mxu1 %v4190_v39 }
0x118d   : > { %4225 = vmatprep.subr.mxu0 %v4083_v46  ;;  %v4127_v46 = vld [vmem:[%s9978_s18 + $0x2e8] sm:$0xff]  ;;  %4308 = vmatprep.subr.mxu1 %v4187_v45 }
0x118e   : > { %v3975_v37 = vadd.f32 %v3974_v47, %v3973_v36  ;;  %4226 = vmatpush1.msra.mxu0 %v4082_v63  ;;  %v4139_v36 = vld [vmem:[%s9978_s18 + $0x348] sm:$0xff]  ;;  %v4138_v47 = vld [vmem:[%s9978_s18 + $0x340] sm:$0xff] }
0x118f   : > { %4227 = vmatprep.subr.mxu0 %v4079_v51  ;;  %v4186_v63 = vld [vmem:[%s9978_s18 + $0x4c0] sm:$0xff]  ;;  %v4183_v51 = vld [vmem:[%s9978_s18 + $0x4a8] sm:$0xff] }
0x1190   : > { %3976 = vadd.xlane.f32.xlu0 %v3975_v37  ;;  %4228 = vmatpush1.msra.mxu0 %v4078_v52  ;;  %v4135_v37 = vld [vmem:[%s9978_s18 + $0x328] sm:$0xff]  ;;  %v4126_v52 = vld [vmem:[%s9978_s18 + $0x2e0] sm:$0xff] }
0x1191   : > { %4229 = vmatprep.subr.mxu0 %v4075_v53  ;;  %v4182_v53 = vld [vmem:[%s9978_s18 + $0x4a0] sm:$0xff]  ;;  %4309 = vmatpush1.msra.mxu1 %v4186_v63  ;;  %v4089_v63 = vld [vmem:[%s9978_s18 + $0x1b8] sm:$0xff] }
0x1192   : > { %4230 = vmatpush1.msra.mxu0 %v4074_v34  ;;  %v4123_v34 = vld [vmem:[%s9978_s18 + $0x2c8] sm:$0xff]  ;;  %4310 = vmatprep.subr.mxu1 %v4183_v51  ;;  %v4188_v51 = vld [vmem:[%s9978_s18 + $0x4d0] sm:$0xff] }
0x1193   : > { %4231 = vmatprep.subr.mxu0 %v4071_v6  ;;  %v4179_v6 = vld [vmem:[%s9978_s18 + $0x488] sm:$0xff]  ;;  %4311 = vmatpush1.msra.mxu1 %v4182_v53  ;;  %v4185_v53 = vld [vmem:[%s9978_s18 + $0x4b8] sm:$0xff] }
0x1194   : > { %4232 = vmatpush1.msra.mxu0 %v4070_v26  ;;  %v4122_v26 = vld [vmem:[%s9978_s18 + $0x2c0] sm:$0xff]  ;;  %4312 = vmatprep.subr.mxu1 %v4179_v6  ;;  %v4184_v6 = vld [vmem:[%s9978_s18 + $0x4b0] sm:$0xff] }
0x1195   : > { %4233 = vmatprep.subr.mxu0 %v4067_v57  ;;  %v4178_v57 = vld [vmem:[%s9978_s18 + $0x480] sm:$0xff] }
0x1196   : > { %4234 = vmatpush1.msra.mxu0 %v4066_v58  ;;  %v4119_v58 = vld [vmem:[%s9978_s18 + $0x2a8] sm:$0xff]  ;;  %4313 = vmatpush1.msra.mxu1 %v4178_v57  ;;  %v4181_v57 = vld [vmem:[%s9978_s18 + $0x498] sm:$0xff] }
0x1197   : > { %4235 = vmatprep.subr.mxu0 %v4063_v59  ;;  %v4175_v59 = vld [vmem:[%s9978_s18 + $0x468] sm:$0xff] }
0x1198   : > { %4236 = vmatpush1.msra.mxu0 %v4062_v60  ;;  %v4118_v60 = vld [vmem:[%s9978_s18 + $0x2a0] sm:$0xff]  ;;  %4314 = vmatprep.subr.mxu1 %v4175_v59  ;;  %v4180_v59 = vld [vmem:[%s9978_s18 + $0x490] sm:$0xff] }
0x1199   : > { %4237 = vmatprep.subr.mxu0 %v4059_v33  ;;  %v4174_v33 = vld [vmem:[%s9978_s18 + $0x460] sm:$0xff] }
0x119a   : > { %4238 = vmatpush1.msra.mxu0 %v4058_v61  ;;  %v4115_v61 = vld [vmem:[%s9978_s18 + $0x288] sm:$0xff]  ;;  %4315 = vmatpush1.msra.mxu1 %v4174_v33  ;;  %v4177_v33 = vld [vmem:[%s9978_s18 + $0x478] sm:$0xff] }
0x119b   : > { %4239 = vmatprep.subr.mxu0 %v4055_v41  ;;  %v4171_v41 = vld [vmem:[%s9978_s18 + $0x448] sm:$0xff] }
0x119c   : > { %4240 = vmatpush1.msra.mxu0 %v4054_v49  ;;  %v4114_v49 = vld [vmem:[%s9978_s18 + $0x280] sm:$0xff]  ;;  %4316 = vmatprep.subr.mxu1 %v4171_v41  ;;  %v4176_v41 = vld [vmem:[%s9978_s18 + $0x470] sm:$0xff] }
0x119d   : > { %4241 = vmatprep.subr.mxu0 %v4051_v29  ;;  %v4170_v29 = vld [vmem:[%s9978_s18 + $0x440] sm:$0xff] }
0x119e   : > { %4242 = vmatpush1.msra.mxu0 %v4050_v48  ;;  %v4111_v48 = vld [vmem:[%s9978_s18 + $0x268] sm:$0xff]  ;;  %4317 = vmatpush1.msra.mxu1 %v4170_v29  ;;  %v4173_v29 = vld [vmem:[%s9978_s18 + $0x458] sm:$0xff] }
0x119f   : > { %4243 = vmatprep.subr.mxu0 %v4047_v50  ;;  %v4167_v50 = vld [vmem:[%s9978_s18 + $0x428] sm:$0xff] }
0x11a0   : > { %4244 = vmatpush1.msra.mxu0 %v4046_v5  ;;  %v4110_v5 = vld [vmem:[%s9978_s18 + $0x260] sm:$0xff]  ;;  %4318 = vmatprep.subr.mxu1 %v4167_v50  ;;  %v4172_v50 = vld [vmem:[%s9978_s18 + $0x450] sm:$0xff] }
0x11a1   : > { %4245 = vmatprep.subr.mxu0 %v4043_v8  ;;  %v4166_v8 = vld [vmem:[%s9978_s18 + $0x420] sm:$0xff] }
0x11a2   : > { %4246 = vmatpush1.msra.mxu0 %v4042_v2  ;;  %v4107_v2 = vld [vmem:[%s9978_s18 + $0x248] sm:$0xff]  ;;  %4319 = vmatpush1.msra.mxu1 %v4166_v8  ;;  %v4169_v8 = vld [vmem:[%s9978_s18 + $0x438] sm:$0xff] }
0x11a3   : > { %4247 = vmatprep.subr.mxu0 %v4039_v24  ;;  %v4163_v24 = vld [vmem:[%s9978_s18 + $0x408] sm:$0xff] }
0x11a4   : > { %4248 = vmatpush1.msra.mxu0 %v4038_v10  ;;  %v4106_v10 = vld [vmem:[%s9978_s18 + $0x240] sm:$0xff]  ;;  %4320 = vmatprep.subr.mxu1 %v4163_v24  ;;  %v4168_v24 = vld [vmem:[%s9978_s18 + $0x430] sm:$0xff] }
0x11a5   : > { %4249 = vmatprep.subr.mxu0 %v4035_v11  ;;  %v4162_v11 = vld [vmem:[%s9978_s18 + $0x400] sm:$0xff] }
0x11a6   : > { %4250 = vmatpush1.msra.mxu0 %v4034_v7  ;;  %v4103_v7 = vld [vmem:[%s9978_s18 + $0x228] sm:$0xff]  ;;  %4321 = vmatpush1.msra.mxu1 %v4162_v11  ;;  %v4165_v11 = vld [vmem:[%s9978_s18 + $0x418] sm:$0xff] }
0x11a7   : > { %4251 = vmatprep.subr.mxu0 %v4159_v27  ;;  %v4097_v27 = vld [vmem:[%s9978_s18 + $0x1f8] sm:$0xff] }
0x11a8   : > { %4252 = vmatpush2.msra.mxu0 %v4158_v13  ;;  %v4102_v13 = vld [vmem:[%s9978_s18 + $0x220] sm:$0xff]  ;;  %4361 = vmatprep.subr.mxu1 %v4097_v27  ;;  %v4164_v27 = vld [vmem:[%s9978_s18 + $0x410] sm:$0xff] }
0x11a9   : > { %4253 = vmatprep.subr.mxu0 %v4155_v14  ;;  %v4099_v14 = vld [vmem:[%s9978_s18 + $0x208] sm:$0xff] }
0x11aa   : > { %4254 = vmatpush2.msra.mxu0 %v4154_v15  ;;  %v4098_v15 = vld [vmem:[%s9978_s18 + $0x200] sm:$0xff] }
0x11ab   : > { %4255 = vmatprep.subr.mxu0 %v4151_v16  ;;  %v4193_v16 = vld [vmem:[%s9978_s18 + $0x4f8] sm:$0xff] }
0x11ac   : > { %4256 = vmatpush2.msra.mxu0 %v4150_v17 }
0x11ad   : > { %4257 = vmatprep.subr.mxu0 %v4147_v54 }
0x11ae   : > { %4258 = vmatpush2.msra.mxu0 %v4146_v55 }
0x11af   : > { %4259 = vmatprep.subr.mxu0 %v4143_v31 }
0x11b0   : > { %4260 = vmatpush2.msra.mxu0 %v4142_v32 }
0x11b1   : > { %4261 = vmatprep.subr.mxu0 %v4139_v36 }
0x11b2   : > { %4262 = vmatpush2.msra.mxu0 %v4138_v47 }
0x11b3   : > { %4263 = vmatprep.subr.mxu0 %v4135_v37 }
0x11b4   : > { %4264 = vmatpush2.msra.mxu0 %v4134_v3 }
0x11b5   : > { %4265 = vmatprep.subr.mxu0 %v4131_v12 }
0x11b6   : > { %4266 = vmatpush2.msra.mxu0 %v4130_v40  ;;  %v4096_v40 = vld [vmem:[%s9978_s18 + $0x1f0] sm:$0xff] }
0x11b7   : > { %4267 = vmatprep.subr.mxu0 %v4127_v46  ;;  %v4189_v46 = vld [vmem:[%s9978_s18 + $0x4d8] sm:$0xff] }
0x11b8   : > { %4268 = vmatpush2.msra.mxu0 %v4126_v52  ;;  %v4088_v52 = vld [vmem:[%s9978_s18 + $0x1b0] sm:$0xff] }
0x11b9   : > { %4269 = vmatprep.subr.mxu0 %v4123_v34  ;;  %v4085_v34 = vld [vmem:[%s9978_s18 + $0x198] sm:$0xff] }
0x11ba   : > { %4270 = vmatpush2.msra.mxu0 %v4122_v26  ;;  %v4084_v26 = vld [vmem:[%s9978_s18 + $0x190] sm:$0xff] }
0x11bb   : > { %4271 = vmatprep.subr.mxu0 %v4119_v58  ;;  %v4081_v58 = vld [vmem:[%s9978_s18 + $0x178] sm:$0xff] }
0x11bc   : > { %4272 = vmatpush2.msra.mxu0 %v4118_v60  ;;  %v4080_v60 = vld [vmem:[%s9978_s18 + $0x170] sm:$0xff] }
0x11bd   : > { %4273 = vmatprep.subr.mxu0 %v4115_v61  ;;  %v4077_v61 = vld [vmem:[%s9978_s18 + $0x158] sm:$0xff] }
0x11be   : > { %4274 = vmatpush2.msra.mxu0 %v4114_v49  ;;  %v4076_v49 = vld [vmem:[%s9978_s18 + $0x150] sm:$0xff] }
0x11bf   : > { %4275 = vmatprep.subr.mxu0 %v4111_v48  ;;  %v4073_v48 = vld [vmem:[%s9978_s18 + $0x138] sm:$0xff] }
0x11c0   : > { %4276 = vmatpush2.msra.mxu0 %v4110_v5  ;;  %v4072_v5 = vld [vmem:[%s9978_s18 + $0x130] sm:$0xff] }
0x11c1   : > { %4277 = vmatprep.subr.mxu0 %v4107_v2  ;;  %v4069_v2 = vld [vmem:[%s9978_s18 + $0x118] sm:$0xff] }
0x11c2   : > { %4278 = vmatpush2.msra.mxu0 %v4106_v10  ;;  %v4068_v10 = vld [vmem:[%s9978_s18 + $0x110] sm:$0xff] }
0x11c3   : > { %4279 = vmatprep.subr.mxu0 %v4103_v7  ;;  %v4065_v7 = vld [vmem:[%s9978_s18 + $0xf8] sm:$0xff] }
0x11c4   : > { %4280 = vmatpush2.msra.mxu0 %v4102_v13  ;;  %v4064_v13 = vld [vmem:[%s9978_s18 + $0xf0] sm:$0xff] }
0x11c5   : > { %4281 = vmatprep.subr.mxu0 %v4099_v14  ;;  %v4061_v14 = vld [vmem:[%s9978_s18 + $0xd8] sm:$0xff] }
0x11c6   : > { %4282 = vmatpush2.msra.mxu0 %v4098_v15  ;;  %v4553_v15 = vld [vmem:[%s9980_s20 + $0x170] sm:$0xff] }
0x11c7   : > { %4448 = vmatprep.subr.mxu0 %v4193_v16  ;;  %v4060_v16 = vld [vmem:[%s9978_s18 + $0xd0] sm:$0xff] }
0x1219   : > { %v3977_v56 = vpop.xlane.xlu0 %3976 }
0x121a   : > { %v3978_v18 = vmul.f32 0.003125, %v3977_v56  ;;  %v3971_v56 = vld [vmem:[%s9976_s16] sm:$0x7] }
0x121c   : > { %v8730_v20 = vsub.f32 %v8601_v62, %v3978_v18  ;;  %v8733_v21 = vsub.f32 %v8603_v9, %v3978_v18  ;;  %v8736_v22 = vsub.f32 %v8599_v35, %v3978_v18  ;;  %v3972_v18 = vld [vmem:[%s9977_s17] sm:$0x7] }
0x121d   : > { %v4019_v47 = vrot.slane %v3972_v18, %v6566_v44 }
0x121e   : > { %v3982_v23 = vmul.f32 %v8730_v20, %v8730_v20  ;;  %v3983_v25 = vmul.f32 %v8733_v21, %v8733_v21  ;;  %v3984_v4 = vmul.f32 %v8736_v22, %v8736_v22 }
0x1220   : > { %v3985_v0 = vadd.f32 %v3983_v25, %v3982_v23  ;;  %v3986_v28 = vsel %vm877_vm1, %v3984_v4, 0.0  ;;  %v4004_v23 = vrot.slane %v3971_v56, %v6560_v42  ;;  %v4008_v25 = vrot.slane %v3971_v56, %v6563_v43 }
0x1221   : > { %v4000_v4 = vrot.slane %v3971_v56, %v6566_v44  ;;  %v4056_v56 = vld [vmem:[%s9978_s18 + $0xb0] sm:$0xff] }
0x1222   : > { %v3987_v30 = vadd.f32 %v3986_v28, %v3985_v0  ;;  %v4023_v28 = vrot.slane %v3972_v18, %v6560_v42 }
0x1224   : > { %3988 = vadd.xlane.f32.xlu1 %v3987_v30  ;;  %v4027_v30 = vrot.slane %v3972_v18, %v6563_v43  ;;  %v4549_v18 = vld [vmem:[%s9980_s20 + $0x150] sm:$0xff] }
0x12ad   : > { %v3989_v17 = vpop.xlane.xlu1 %3988 }
0x12ae   : > { %v3990_v54 = vmul.f32 0.003125, %v3989_v17  ;;  %v4552_v17 = vld [vmem:[%s9980_s20 + $0x168] sm:$0xff] }
0x12b0   : > { %v3991_v55 = vadd.f32 1e-05, %v3990_v54  ;;  %v4057_v54 = vld [vmem:[%s9978_s18 + $0xb8] sm:$0xff] }
0x12b2   : > { %5978 = vrsqrt.f32 %v3991_v55  ;;  %v4550_v55 = vld [vmem:[%s9980_s20 + $0x158] sm:$0xff] }
0x12bf   : > { %v5979_v0 = vpop.eup %5978 }
0x12c0   : > { %v3994_v31 = vmul.f32 %v5979_v0, %v8733_v21  ;;  %v3995_v32 = vmul.f32 %v5979_v0, %v8736_v22  ;;  %v3993_v36 = vmul.f32 %v5979_v0, %v8730_v20  ;;  %v4093_v21 = vld [vmem:[%s9978_s18 + $0x1d8] sm:$0xff]  ;;  %v4192_v20 = vld [vmem:[%s9978_s18 + $0x4f0] sm:$0xff] }
0x12c1   : > { %v4092_v22 = vld [vmem:[%s9978_s18 + $0x1d0] sm:$0xff]  ;;  %v4546_v0 = vld [vmem:[%s9980_s20 + $0x138] sm:$0xff] }
0x12c2   : > { %v4013_v37 = vmul.f32 %v4004_v23, %v3994_v31  ;;  %v4014_v3 = vmul.f32 %v4008_v25, %v3995_v32  ;;  %v4012_v12 = vmul.f32 %v4000_v4, %v3993_v36  ;;  %v4053_v23 = vld [vmem:[%s9978_s18 + $0x98] sm:$0xff]  ;;  %v4547_v25 = vld [vmem:[%s9980_s20 + $0x140] sm:$0xff]  ;;  %v4052_v4 = vld [vmem:[%s9978_s18 + $0x90] sm:$0xff] }
0x12c3   : > { %v4048_v31 = vld [vmem:[%s9978_s18 + $0x70] sm:$0xff]  ;;  %v4543_v32 = vld [vmem:[%s9980_s20 + $0x120] sm:$0xff]  ;;  %v4045_v36 = vld [vmem:[%s9978_s18 + $0x58] sm:$0xff] }
0x12c4   : > { %v4032_v38 = vadd.f32 %v4023_v28, %v4013_v37  ;;  %v8886_v39 = vadd.f32 %v4027_v30, %v4014_v3  ;;  %v8891_v45 = vadd.f32 %v4019_v47, %v4012_v12  ;;  %v4049_v28 = vld [vmem:[%s9978_s18 + $0x78] sm:$0xff]  ;;  %v4544_v30 = vld [vmem:[%s9980_s20 + $0x128] sm:$0xff]  ;;  %v4541_v47 = vld [vmem:[%s9980_s20 + $0x110] sm:$0xff] }
0x12c5   : > { %v4044_v37 = vld [vmem:[%s9978_s18 + $0x50] sm:$0xff]  ;;  %v4540_v3 = vld [vmem:[%s9980_s20 + $0x108] sm:$0xff]  ;;  %v4041_v12 = vld [vmem:[%s9978_s18 + $0x38] sm:$0xff] }
0x12c6   : > { %4283 = vmatprep.mubr.f32.mxu0 %v4032_v38  ;;  %5407 = vmatmul.mubr.msk.f32.vlgmr.msra.gmra.mxu1 %vm877_vm1, %v8886_v39 }
0x12c7   : > { %4362 = vmatpush1.msra.mxu1 %v4096_v40  ;;  %4284 = vmatmul.mubr.f32.vlgmr.msra.gmra.mxu0 %v8891_v45  ;;  %v4537_v40 = vld [vmem:[%s9980_s20 + $0xf0] sm:$0xff] }
0x12c8   : > { %4363 = vmatprep.subr.mxu1 %v4093_v21  ;;  %4425 = vmatprep.mubr.f32.mxu1 %v4032_v38  ;;  %v4538_v38 = vld [vmem:[%s9980_s20 + $0xf8] sm:$0xff] }
0x12c9   : > { %4449 = vmatpush1.msra.mxu0 %v4192_v20  ;;  %4364 = vmatpush1.msra.mxu1 %v4092_v22  ;;  %v4037_v21 = vld [vmem:[%s9978_s18 + $0x18] sm:$0xff]  ;;  %v4535_v20 = vld [vmem:[%s9980_s20 + $0xe0] sm:$0xff]  ;;  %v4036_v22 = vld [vmem:[%s9978_s18 + $0x10] sm:$0xff] }
0x12ca   : > { %4450 = vmatprep.subr.mxu0 %v4189_v46  ;;  %4365 = vmatprep.subr.mxu1 %v4089_v63  ;;  %v4534_v46 = vld [vmem:[%s9980_s20 + $0xd8] sm:$0xff] }
0x12cb   : > { %4451 = vmatpush1.msra.mxu0 %v4188_v51  ;;  %4366 = vmatpush1.msra.mxu1 %v4088_v52  ;;  %v4161_v63 = vld [vmem:[%s9978_s18 + $0x3f8] sm:$0xff]  ;;  %v4532_v51 = vld [vmem:[%s9980_s20 + $0xc8] sm:$0xff]  ;;  %v4160_v52 = vld [vmem:[%s9978_s18 + $0x3f0] sm:$0xff] }
0x12cc   : > { %4452 = vmatprep.subr.mxu0 %v4185_v53  ;;  %4367 = vmatprep.subr.mxu1 %v4085_v34  ;;  %v4531_v53 = vld [vmem:[%s9980_s20 + $0xc0] sm:$0xff]  ;;  %v4157_v34 = vld [vmem:[%s9978_s18 + $0x3d8] sm:$0xff] }
0x12cd   : > { %4453 = vmatpush1.msra.mxu0 %v4184_v6  ;;  %4368 = vmatpush1.msra.mxu1 %v4084_v26  ;;  %v4529_v6 = vld [vmem:[%s9980_s20 + $0xb0] sm:$0xff] }
0x12ce   : > { %4454 = vmatprep.subr.mxu0 %v4181_v57  ;;  %4369 = vmatprep.subr.mxu1 %v4081_v58  ;;  %v4156_v26 = vld [vmem:[%s9978_s18 + $0x3d0] sm:$0xff]  ;;  %v4528_v57 = vld [vmem:[%s9980_s20 + $0xa8] sm:$0xff]  ;;  %v4153_v58 = vld [vmem:[%s9978_s18 + $0x3b8] sm:$0xff] }
0x12cf   : > { %4455 = vmatpush1.msra.mxu0 %v4180_v59  ;;  %4370 = vmatpush1.msra.mxu1 %v4080_v60  ;;  %v4526_v59 = vld [vmem:[%s9980_s20 + $0x98] sm:$0xff]  ;;  %v4152_v60 = vld [vmem:[%s9978_s18 + $0x3b0] sm:$0xff] }
0x12d0   : > { %4456 = vmatprep.subr.mxu0 %v4177_v33  ;;  %4371 = vmatprep.subr.mxu1 %v4077_v61  ;;  %v4525_v33 = vld [vmem:[%s9980_s20 + $0x90] sm:$0xff]  ;;  %v4149_v61 = vld [vmem:[%s9978_s18 + $0x398] sm:$0xff] }
0x12d1   : > { %4457 = vmatpush1.msra.mxu0 %v4176_v41  ;;  %4372 = vmatpush1.msra.mxu1 %v4076_v49  ;;  %v4523_v41 = vld [vmem:[%s9980_s20 + $0x80] sm:$0xff]  ;;  %v4148_v49 = vld [vmem:[%s9978_s18 + $0x390] sm:$0xff] }
0x12d2   : > { %4458 = vmatprep.subr.mxu0 %v4173_v29  ;;  %4373 = vmatprep.subr.mxu1 %v4073_v48  ;;  %v4522_v29 = vld [vmem:[%s9980_s20 + $0x78] sm:$0xff] }
0x12d3   : > { %4459 = vmatpush1.msra.mxu0 %v4172_v50  ;;  %4374 = vmatpush1.msra.mxu1 %v4072_v5  ;;  %v4145_v48 = vld [vmem:[%s9978_s18 + $0x378] sm:$0xff]  ;;  %v4520_v50 = vld [vmem:[%s9980_s20 + $0x68] sm:$0xff]  ;;  %v4144_v5 = vld [vmem:[%s9978_s18 + $0x370] sm:$0xff] }
0x12d4   : > { %4460 = vmatprep.subr.mxu0 %v4169_v8  ;;  %4375 = vmatprep.subr.mxu1 %v4069_v2  ;;  %v4519_v8 = vld [vmem:[%s9980_s20 + $0x60] sm:$0xff]  ;;  %v4141_v2 = vld [vmem:[%s9978_s18 + $0x358] sm:$0xff] }
0x12d5   : > { %4461 = vmatpush1.msra.mxu0 %v4168_v24  ;;  %4376 = vmatpush1.msra.mxu1 %v4068_v10  ;;  %v4517_v24 = vld [vmem:[%s9980_s20 + $0x50] sm:$0xff] }
0x12d6   : > { %4462 = vmatprep.subr.mxu0 %v4165_v11  ;;  %4377 = vmatprep.subr.mxu1 %v4065_v7  ;;  %v4140_v10 = vld [vmem:[%s9978_s18 + $0x350] sm:$0xff]  ;;  %v4516_v11 = vld [vmem:[%s9980_s20 + $0x48] sm:$0xff]  ;;  %v4137_v7 = vld [vmem:[%s9978_s18 + $0x338] sm:$0xff] }
0x12d7   : > { %4463 = vmatpush1.msra.mxu0 %v4164_v27  ;;  %4496 = vmatprep.mubr.f32.mxu0 %v5992_v1  ;;  %v4514_v27 = vld [vmem:[%s9980_s20 + $0x38] sm:$0xff] }
0x12d8   : > { %4378 = vmatpush1.msra.mxu1 %v4064_v13  ;;  %5408 = vmatmul.mubr.msk.f32.vlgmr.msra.gmra.mxu0 %vm877_vm1, %v8886_v39  ;;  %v4040_v39 = vld [vmem:[%s9978_s18 + $0x30] sm:$0xff] }
0x12d9   : > { %4379 = vmatprep.subr.mxu1 %v4061_v14  ;;  %4699 = vmatprep.subr.mxu0 %v4553_v15  ;;  %v4136_v13 = vld [vmem:[%s9978_s18 + $0x330] sm:$0xff]  ;;  %v4133_v15 = vld [vmem:[%s9978_s18 + $0x318] sm:$0xff] }
0x12da   : > { %4380 = vmatpush1.msra.mxu1 %v4060_v16  ;;  %4700 = vmatpush1.msra.mxu0 %v4552_v17  ;;  %v4513_v14 = vld [vmem:[%s9980_s20 + $0x30] sm:$0xff]  ;;  %v4511_v16 = vld [vmem:[%s9980_s20 + $0x20] sm:$0xff] }
0x12db   : > { %4381 = vmatprep.subr.mxu1 %v4057_v54  ;;  %4701 = vmatprep.subr.mxu0 %v4550_v55  ;;  %v4132_v17 = vld [vmem:[%s9978_s18 + $0x310] sm:$0xff]  ;;  %v4510_v54 = vld [vmem:[%s9980_s20 + $0x18] sm:$0xff] }
0x12dc   : > { %4382 = vmatpush1.msra.mxu1 %v4056_v56  ;;  %4702 = vmatpush1.msra.mxu0 %v4549_v18  ;;  %v4129_v55 = vld [vmem:[%s9978_s18 + $0x2f8] sm:$0xff]  ;;  %v4508_v56 = vld [vmem:[%s9980_s20 + $0x8] sm:$0xff]  ;;  %v4128_v18 = vld [vmem:[%s9978_s18 + $0x2f0] sm:$0xff] }
0x12dd   : > { %4383 = vmatprep.subr.mxu1 %v4053_v23  ;;  %4703 = vmatprep.subr.mxu0 %v4547_v25  ;;  %v4507_v23 = vld [vmem:[%s9980_s20] sm:$0xff]  ;;  %v4125_v25 = vld [vmem:[%s9978_s18 + $0x2d8] sm:$0xff] }
0x12de   : > { %4384 = vmatpush1.msra.mxu1 %v4052_v4  ;;  %4704 = vmatpush1.msra.mxu0 %v4546_v0  ;;  %v4601_v4 = vld [vmem:[%s9980_s20 + $0x2f0] sm:$0xff] }
0x12df   : > { %4385 = vmatprep.subr.mxu1 %v4049_v28  ;;  %4705 = vmatprep.subr.mxu0 %v4544_v30  ;;  %v4124_v0 = vld [vmem:[%s9978_s18 + $0x2d0] sm:$0xff]  ;;  %v4600_v28 = vld [vmem:[%s9980_s20 + $0x2e8] sm:$0xff]  ;;  %v4121_v30 = vld [vmem:[%s9978_s18 + $0x2b8] sm:$0xff] }
0x12e0   : > { %4386 = vmatpush1.msra.mxu1 %v4048_v31  ;;  %4706 = vmatpush1.msra.mxu0 %v4543_v32  ;;  %v4598_v31 = vld [vmem:[%s9980_s20 + $0x2d8] sm:$0xff]  ;;  %v4120_v32 = vld [vmem:[%s9978_s18 + $0x2b0] sm:$0xff] }
0x12e1   : > { %4387 = vmatprep.subr.mxu1 %v4045_v36  ;;  %4707 = vmatprep.subr.mxu0 %v4541_v47  ;;  %v4597_v36 = vld [vmem:[%s9980_s20 + $0x2d0] sm:$0xff]  ;;  %v4117_v47 = vld [vmem:[%s9978_s18 + $0x298] sm:$0xff] }
0x12e2   : > { %4388 = vmatpush1.msra.mxu1 %v4044_v37  ;;  %4708 = vmatpush1.msra.mxu0 %v4540_v3  ;;  %v4595_v37 = vld [vmem:[%s9980_s20 + $0x2c0] sm:$0xff]  ;;  %v4116_v3 = vld [vmem:[%s9978_s18 + $0x290] sm:$0xff] }
0x12e3   : > { %4389 = vmatprep.subr.mxu1 %v4041_v12  ;;  %4709 = vmatprep.subr.mxu0 %v4538_v38  ;;  %v4594_v12 = vld [vmem:[%s9980_s20 + $0x2b8] sm:$0xff] }
0x12e4   : > { %4390 = vmatpush1.msra.mxu1 %v4040_v39  ;;  %4710 = vmatpush1.msra.mxu0 %v4537_v40  ;;  %v4113_v38 = vld [vmem:[%s9978_s18 + $0x278] sm:$0xff]  ;;  %v4592_v39 = vld [vmem:[%s9980_s20 + $0x2a8] sm:$0xff]  ;;  %v4112_v40 = vld [vmem:[%s9978_s18 + $0x270] sm:$0xff] }
0x12e5   : > { %4391 = vmatprep.subr.mxu1 %v4037_v21  ;;  %4711 = vmatprep.subr.mxu0 %v4535_v20  ;;  %v4591_v21 = vld [vmem:[%s9980_s20 + $0x2a0] sm:$0xff]  ;;  %v4109_v20 = vld [vmem:[%s9978_s18 + $0x258] sm:$0xff] }
0x12e6   : > { %4392 = vmatpush1.msra.mxu1 %v4036_v22  ;;  %4712 = vmatpush1.msra.mxu0 %v4534_v46  ;;  %v4589_v22 = vld [vmem:[%s9980_s20 + $0x290] sm:$0xff] }
0x12e7   : > { %4393 = vmatprep.subr.mxu1 %v4161_v63  ;;  %4713 = vmatprep.subr.mxu0 %v4532_v51  ;;  %v4108_v46 = vld [vmem:[%s9978_s18 + $0x250] sm:$0xff]  ;;  %v4588_v63 = vld [vmem:[%s9980_s20 + $0x288] sm:$0xff]  ;;  %v4105_v51 = vld [vmem:[%s9978_s18 + $0x238] sm:$0xff] }
0x12e8   : > { %4394 = vmatpush2.msra.mxu1 %v4160_v52  ;;  %4714 = vmatpush1.msra.mxu0 %v4531_v53  ;;  %v4586_v52 = vld [vmem:[%s9980_s20 + $0x278] sm:$0xff]  ;;  %v4104_v53 = vld [vmem:[%s9978_s18 + $0x230] sm:$0xff] }
0x12e9   : > { %4395 = vmatprep.subr.mxu1 %v4157_v34  ;;  %4715 = vmatprep.subr.mxu0 %v4529_v6  ;;  %v4585_v34 = vld [vmem:[%s9980_s20 + $0x270] sm:$0xff]  ;;  %v4101_v6 = vld [vmem:[%s9978_s18 + $0x218] sm:$0xff] }
0x12ea   : > { %4396 = vmatpush2.msra.mxu1 %v4156_v26  ;;  %4716 = vmatpush1.msra.mxu0 %v4528_v57  ;;  %v4583_v26 = vld [vmem:[%s9980_s20 + $0x260] sm:$0xff]  ;;  %v4100_v57 = vld [vmem:[%s9978_s18 + $0x210] sm:$0xff] }
0x12eb   : > { %4397 = vmatprep.subr.mxu1 %v4153_v58  ;;  %4717 = vmatprep.subr.mxu0 %v4526_v59  ;;  %v4582_v58 = vld [vmem:[%s9980_s20 + $0x258] sm:$0xff]  ;;  %v4580_v59 = vld [vmem:[%s9980_s20 + $0x248] sm:$0xff] }
0x12ec   : > { %4398 = vmatpush2.msra.mxu1 %v4152_v60  ;;  %4718 = vmatpush1.msra.mxu0 %v4525_v33  ;;  %v4579_v60 = vld [vmem:[%s9980_s20 + $0x240] sm:$0xff]  ;;  %v4577_v33 = vld [vmem:[%s9980_s20 + $0x230] sm:$0xff] }
0x12ed   : > { %4399 = vmatprep.subr.mxu1 %v4149_v61  ;;  %4719 = vmatprep.subr.mxu0 %v4523_v41  ;;  %v4576_v61 = vld [vmem:[%s9980_s20 + $0x228] sm:$0xff]  ;;  %v4574_v41 = vld [vmem:[%s9980_s20 + $0x218] sm:$0xff] }
0x12ee   : > { %4400 = vmatpush2.msra.mxu1 %v4148_v49  ;;  %4720 = vmatpush1.msra.mxu0 %v4522_v29  ;;  %v4573_v49 = vld [vmem:[%s9980_s20 + $0x210] sm:$0xff]  ;;  %v4570_v29 = vld [vmem:[%s9980_s20 + $0x1f8] sm:$0xff] }
0x12ef   : > { %4401 = vmatprep.subr.mxu1 %v4145_v48  ;;  %4721 = vmatprep.subr.mxu0 %v4520_v50  ;;  %v4568_v48 = vld [vmem:[%s9980_s20 + $0x1e8] sm:$0xff]  ;;  %v4567_v50 = vld [vmem:[%s9980_s20 + $0x1e0] sm:$0xff] }
0x12f0   : > { %4402 = vmatpush2.msra.mxu1 %v4144_v5  ;;  %4722 = vmatpush1.msra.mxu0 %v4519_v8  ;;  %v4565_v5 = vld [vmem:[%s9980_s20 + $0x1d0] sm:$0xff]  ;;  %v4564_v8 = vld [vmem:[%s9980_s20 + $0x1c8] sm:$0xff] }
0x12f1   : > { %4403 = vmatprep.subr.mxu1 %v4141_v2  ;;  %4723 = vmatprep.subr.mxu0 %v4517_v24  ;;  %v4649_v2 = vld [vmem:[%s9980_s20 + $0x470] sm:$0xff]  ;;  %v4648_v24 = vld [vmem:[%s9980_s20 + $0x468] sm:$0xff] }
0x12f2   : > { %4404 = vmatpush2.msra.mxu1 %v4140_v10  ;;  %4724 = vmatpush1.msra.mxu0 %v4516_v11  ;;  %v4562_v10 = vld [vmem:[%s9980_s20 + $0x1b8] sm:$0xff] }
0x12f3   : > { %4405 = vmatprep.subr.mxu1 %v4137_v7  ;;  %4725 = vmatprep.subr.mxu0 %v4514_v27  ;;  %v4646_v11 = vld [vmem:[%s9980_s20 + $0x458] sm:$0xff]  ;;  %v4561_v7 = vld [vmem:[%s9980_s20 + $0x1b0] sm:$0xff] }
0x12f4   : > { %4406 = vmatpush2.msra.mxu1 %v4136_v13  ;;  %4726 = vmatpush1.msra.mxu0 %v4513_v14  ;;  %v4645_v27 = vld [vmem:[%s9980_s20 + $0x450] sm:$0xff]  ;;  %v4559_v13 = vld [vmem:[%s9980_s20 + $0x1a0] sm:$0xff] }
0x12f5   : > { %4407 = vmatprep.subr.mxu1 %v4133_v15  ;;  %4727 = vmatprep.subr.mxu0 %v4511_v16  ;;  %v4643_v14 = vld [vmem:[%s9980_s20 + $0x440] sm:$0xff]  ;;  %v4558_v15 = vld [vmem:[%s9980_s20 + $0x198] sm:$0xff] }
0x12f6   : > { %4408 = vmatpush2.msra.mxu1 %v4132_v17  ;;  %4728 = vmatpush1.msra.mxu0 %v4510_v54  ;;  %v4642_v16 = vld [vmem:[%s9980_s20 + $0x438] sm:$0xff]  ;;  %v4556_v17 = vld [vmem:[%s9980_s20 + $0x188] sm:$0xff] }
0x12f7   : > { %4409 = vmatprep.subr.mxu1 %v4129_v55  ;;  %4729 = vmatprep.subr.mxu0 %v4508_v56  ;;  %v4640_v54 = vld [vmem:[%s9980_s20 + $0x428] sm:$0xff]  ;;  %v4555_v55 = vld [vmem:[%s9980_s20 + $0x180] sm:$0xff] }
0x12f8   : > { %4410 = vmatpush2.msra.mxu1 %v4128_v18  ;;  %4730 = vmatpush1.msra.mxu0 %v4507_v23  ;;  %v4639_v56 = vld [vmem:[%s9980_s20 + $0x420] sm:$0xff]  ;;  %v4602_v18 = vld [vmem:[%s9980_s20 + $0x2f8] sm:$0xff]  ;;  %v4637_v23 = vld [vmem:[%s9980_s20 + $0x410] sm:$0xff] }
0x12f9   : > { %4411 = vmatprep.subr.mxu1 %v4125_v25  ;;  %4731 = vmatprep.subr.mxu0 %v4601_v4  ;;  %v4636_v25 = vld [vmem:[%s9980_s20 + $0x408] sm:$0xff]  ;;  %v4634_v4 = vld [vmem:[%s9980_s20 + $0x3f8] sm:$0xff] }
0x12fa   : > { %4412 = vmatpush2.msra.mxu1 %v4124_v0  ;;  %4732 = vmatpush2.msra.mxu0 %v4600_v28  ;;  %v4633_v0 = vld [vmem:[%s9980_s20 + $0x3f0] sm:$0xff]  ;;  %v4631_v28 = vld [vmem:[%s9980_s20 + $0x3e0] sm:$0xff] }
0x12fb   : > { %4413 = vmatprep.subr.mxu1 %v4121_v30  ;;  %4733 = vmatprep.subr.mxu0 %v4598_v31  ;;  %v4630_v30 = vld [vmem:[%s9980_s20 + $0x3d8] sm:$0xff]  ;;  %v4628_v31 = vld [vmem:[%s9980_s20 + $0x3c8] sm:$0xff] }
0x12fc   : > { %4414 = vmatpush2.msra.mxu1 %v4120_v32  ;;  %4734 = vmatpush2.msra.mxu0 %v4597_v36  ;;  %v4627_v32 = vld [vmem:[%s9980_s20 + $0x3c0] sm:$0xff]  ;;  %v4625_v36 = vld [vmem:[%s9980_s20 + $0x3b0] sm:$0xff] }
0x12fd   : > { %4415 = vmatprep.subr.mxu1 %v4117_v47  ;;  %4735 = vmatprep.subr.mxu0 %v4595_v37  ;;  %v4624_v47 = vld [vmem:[%s9980_s20 + $0x3a8] sm:$0xff]  ;;  %v4622_v37 = vld [vmem:[%s9980_s20 + $0x398] sm:$0xff] }
0x12fe   : > { %4416 = vmatpush2.msra.mxu1 %v4116_v3  ;;  %4736 = vmatpush2.msra.mxu0 %v4594_v12  ;;  %v4621_v3 = vld [vmem:[%s9980_s20 + $0x390] sm:$0xff]  ;;  %v4619_v12 = vld [vmem:[%s9980_s20 + $0x380] sm:$0xff] }
0x12ff   : > { %4417 = vmatprep.subr.mxu1 %v4113_v38  ;;  %4737 = vmatprep.subr.mxu0 %v4592_v39  ;;  %v4618_v38 = vld [vmem:[%s9980_s20 + $0x378] sm:$0xff]  ;;  %v4616_v39 = vld [vmem:[%s9980_s20 + $0x368] sm:$0xff] }
0x1300   : > { %4418 = vmatpush2.msra.mxu1 %v4112_v40  ;;  %4738 = vmatpush2.msra.mxu0 %v4591_v21  ;;  %v4615_v40 = vld [vmem:[%s9980_s20 + $0x360] sm:$0xff]  ;;  %v4613_v21 = vld [vmem:[%s9980_s20 + $0x350] sm:$0xff] }
0x1301   : > { %4419 = vmatprep.subr.mxu1 %v4109_v20  ;;  %4739 = vmatprep.subr.mxu0 %v4589_v22  ;;  %v4612_v20 = vld [vmem:[%s9980_s20 + $0x348] sm:$0xff]  ;;  %v4610_v22 = vld [vmem:[%s9980_s20 + $0x338] sm:$0xff] }
0x1302   : > { %4420 = vmatpush2.msra.mxu1 %v4108_v46  ;;  %4740 = vmatpush2.msra.mxu0 %v4588_v63  ;;  %v4609_v46 = vld [vmem:[%s9980_s20 + $0x330] sm:$0xff]  ;;  %v4607_v63 = vld [vmem:[%s9980_s20 + $0x320] sm:$0xff] }
0x1303   : > { %4421 = vmatprep.subr.mxu1 %v4105_v51  ;;  %4741 = vmatprep.subr.mxu0 %v4586_v52  ;;  %v4606_v51 = vld [vmem:[%s9980_s20 + $0x318] sm:$0xff]  ;;  %v4604_v52 = vld [vmem:[%s9980_s20 + $0x308] sm:$0xff] }
0x1304   : > { %4422 = vmatpush2.msra.mxu1 %v4104_v53  ;;  %4742 = vmatpush2.msra.mxu0 %v4585_v34  ;;  %v4603_v53 = vld [vmem:[%s9980_s20 + $0x300] sm:$0xff]  ;;  %v4697_v34 = vld [vmem:[%s9980_s20 + $0x5f0] sm:$0xff] }
0x1305   : > { %4423 = vmatprep.subr.mxu1 %v4101_v6  ;;  %4743 = vmatprep.subr.mxu0 %v4583_v26  ;;  %v4696_v6 = vld [vmem:[%s9980_s20 + $0x5e8] sm:$0xff]  ;;  %v4694_v26 = vld [vmem:[%s9980_s20 + $0x5d8] sm:$0xff] }
0x1306   : > { %4424 = vmatpush2.msra.mxu1 %v4100_v57  ;;  %4744 = vmatpush2.msra.mxu0 %v4582_v58  ;;  %v4693_v57 = vld [vmem:[%s9980_s20 + $0x5d0] sm:$0xff]  ;;  %v4691_v58 = vld [vmem:[%s9980_s20 + $0x5c0] sm:$0xff] }
0x1307   : > { %4426 = vmatmul.mubr.f32.vlgmr.msra.gmra.mxu1 %v8891_v45  ;;  %4745 = vmatprep.subr.mxu0 %v4580_v59  ;;  %v4571_v45 = vld [vmem:[%s9980_s20 + $0x200] sm:$0xff]  ;;  %v4690_v59 = vld [vmem:[%s9980_s20 + $0x5b8] sm:$0xff] }
0x1308   : > { %4746 = vmatpush2.msra.mxu0 %v4579_v60  ;;  %4770 = vmatprep.subr.mxu1 %v4649_v2  ;;  %v4688_v60 = vld [vmem:[%s9980_s20 + $0x5a8] sm:$0xff] }
0x1309   : > { %4747 = vmatprep.subr.mxu0 %v4577_v33  ;;  %4771 = vmatpush1.msra.mxu1 %v4648_v24  ;;  %v4687_v33 = vld [vmem:[%s9980_s20 + $0x5a0] sm:$0xff]  ;;  %v4672_v2 = vld [vmem:[%s9980_s20 + $0x528] sm:$0xff]  ;;  %v4670_v24 = vld [vmem:[%s9980_s20 + $0x518] sm:$0xff] }
0x130a   : > { %4748 = vmatpush2.msra.mxu0 %v4576_v61  ;;  %4772 = vmatprep.subr.mxu1 %v4646_v11  ;;  %v4685_v61 = vld [vmem:[%s9980_s20 + $0x590] sm:$0xff]  ;;  %v4667_v11 = vld [vmem:[%s9980_s20 + $0x500] sm:$0xff] }
0x130b   : > { %4749 = vmatprep.subr.mxu0 %v4574_v41  ;;  %4773 = vmatpush1.msra.mxu1 %v4645_v27  ;;  %v4684_v41 = vld [vmem:[%s9980_s20 + $0x588] sm:$0xff] }
0x130c   : > { %4750 = vmatpush2.msra.mxu0 %v4573_v49  ;;  %4774 = vmatprep.subr.mxu1 %v4643_v14  ;;  %v4682_v49 = vld [vmem:[%s9980_s20 + $0x578] sm:$0xff]  ;;  %v4664_v27 = vld [vmem:[%s9980_s20 + $0x4e8] sm:$0xff]  ;;  %v4661_v14 = vld [vmem:[%s9980_s20 + $0x4d0] sm:$0xff] }
0x130d   : > { %4751 = vmatprep.subr.mxu0 %v4571_v45  ;;  %4775 = vmatpush1.msra.mxu1 %v4642_v16  ;;  %v4681_v45 = vld [vmem:[%s9980_s20 + $0x570] sm:$0xff]  ;;  %v4658_v16 = vld [vmem:[%s9980_s20 + $0x4b8] sm:$0xff] }
0x130e   : > { %4752 = vmatpush2.msra.mxu0 %v4570_v29  ;;  %4776 = vmatprep.subr.mxu1 %v4640_v54  ;;  %v4679_v29 = vld [vmem:[%s9980_s20 + $0x560] sm:$0xff] }
0x130f   : > { %4753 = vmatprep.subr.mxu0 %v4568_v48  ;;  %4777 = vmatpush1.msra.mxu1 %v4639_v56  ;;  %v4678_v48 = vld [vmem:[%s9980_s20 + $0x558] sm:$0xff]  ;;  %v4655_v54 = vld [vmem:[%s9980_s20 + $0x4a0] sm:$0xff]  ;;  %v4652_v56 = vld [vmem:[%s9980_s20 + $0x488] sm:$0xff] }
0x1310   : > { %4754 = vmatpush2.msra.mxu0 %v4567_v50  ;;  %4778 = vmatprep.subr.mxu1 %v4637_v23  ;;  %v4676_v50 = vld [vmem:[%s9980_s20 + $0x548] sm:$0xff]  ;;  %v4698_v23 = vld [vmem:[%s9980_s20 + $0x5f8] sm:$0xff] }
0x1311   : > { %4755 = vmatprep.subr.mxu0 %v4565_v5  ;;  %4779 = vmatpush1.msra.mxu1 %v4636_v25  ;;  %v4675_v5 = vld [vmem:[%s9980_s20 + $0x540] sm:$0xff] }
0x1312   : > { %4756 = vmatpush2.msra.mxu0 %v4564_v8  ;;  %4780 = vmatprep.subr.mxu1 %v4634_v4  ;;  %v4673_v8 = vld [vmem:[%s9980_s20 + $0x530] sm:$0xff]  ;;  %v9524_v25 = vld [vmem:[%s9979_s19] sm:$0xf] }
0x1313   : > { %4757 = vmatprep.subr.mxu0 %v4562_v10  ;;  %4781 = vmatpush1.msra.mxu1 %v4633_v0  ;;  %v4669_v10 = vld [vmem:[%s9980_s20 + $0x510] sm:$0xff]  ;;  %v4199_v4 = vrot.slane %v9524_v25, %v6566_v44  ;;  %v4203_v0 = vrot.slane %v9524_v25, %v6560_v42 }
0x1314   : > { %4758 = vmatpush2.msra.mxu0 %v4561_v7  ;;  %4782 = vmatprep.subr.mxu1 %v4631_v28  ;;  %v4666_v7 = vld [vmem:[%s9980_s20 + $0x4f8] sm:$0xff] }
0x1315   : > { %4759 = vmatprep.subr.mxu0 %v4559_v13  ;;  %4783 = vmatpush1.msra.mxu1 %v4630_v30  ;;  %v4663_v13 = vld [vmem:[%s9980_s20 + $0x4e0] sm:$0xff] }
0x1316   : > { %4760 = vmatpush2.msra.mxu0 %v4558_v15  ;;  %4784 = vmatprep.subr.mxu1 %v4628_v31  ;;  %v4660_v15 = vld [vmem:[%s9980_s20 + $0x4c8] sm:$0xff] }
0x1317   : > { %4761 = vmatprep.subr.mxu0 %v4556_v17  ;;  %4785 = vmatpush1.msra.mxu1 %v4627_v32  ;;  %v4657_v17 = vld [vmem:[%s9980_s20 + $0x4b0] sm:$0xff] }
0x1318   : > { %4762 = vmatpush2.msra.mxu0 %v4555_v55  ;;  %4786 = vmatprep.subr.mxu1 %v4625_v36  ;;  %v4654_v55 = vld [vmem:[%s9980_s20 + $0x498] sm:$0xff] }
0x1319   : > { %5527 = vmatprep.subr.mxu0 %v4602_v18  ;;  %4787 = vmatpush1.msra.mxu1 %v4624_v47  ;;  %v4651_v18 = vld [vmem:[%s9980_s20 + $0x480] sm:$0xff] }
0x131a   : > { %4788 = vmatprep.subr.mxu1 %v4622_v37 }
0x131b   : > { %4789 = vmatpush1.msra.mxu1 %v4621_v3 }
0x131c   : > { %4790 = vmatprep.subr.mxu1 %v4619_v12 }
0x131d   : > { %4791 = vmatpush1.msra.mxu1 %v4618_v38 }
0x131e   : > { %4792 = vmatprep.subr.mxu1 %v4616_v39  ;;  %v4554_v39 = vld [vmem:[%s9980_s20 + $0x178] sm:$0xff] }
0x131f   : > { %4793 = vmatpush1.msra.mxu1 %v4615_v40  ;;  %v4599_v40 = vld [vmem:[%s9980_s20 + $0x2e0] sm:$0xff] }
0x1320   : > { %4794 = vmatprep.subr.mxu1 %v4613_v21  ;;  %v4551_v21 = vld [vmem:[%s9980_s20 + $0x160] sm:$0xff] }
0x1321   : > { %4795 = vmatpush1.msra.mxu1 %v4612_v20  ;;  %v4596_v20 = vld [vmem:[%s9980_s20 + $0x2c8] sm:$0xff] }
0x1322   : > { %4796 = vmatprep.subr.mxu1 %v4610_v22  ;;  %v4548_v22 = vld [vmem:[%s9980_s20 + $0x148] sm:$0xff] }
0x1323   : > { %4797 = vmatpush1.msra.mxu1 %v4609_v46  ;;  %v4593_v46 = vld [vmem:[%s9980_s20 + $0x2b0] sm:$0xff] }
0x1324   : > { %4798 = vmatprep.subr.mxu1 %v4607_v63  ;;  %v4545_v63 = vld [vmem:[%s9980_s20 + $0x130] sm:$0xff] }
0x1325   : > { %4799 = vmatpush1.msra.mxu1 %v4606_v51  ;;  %v4590_v51 = vld [vmem:[%s9980_s20 + $0x298] sm:$0xff] }
0x1326   : > { %4800 = vmatprep.subr.mxu1 %v4604_v52  ;;  %v4542_v52 = vld [vmem:[%s9980_s20 + $0x118] sm:$0xff] }
0x1327   : > { %4801 = vmatpush1.msra.mxu1 %v4603_v53  ;;  %v4587_v53 = vld [vmem:[%s9980_s20 + $0x280] sm:$0xff] }
0x1328   : > { %4802 = vmatprep.subr.mxu1 %v4697_v34  ;;  %v4539_v34 = vld [vmem:[%s9980_s20 + $0x100] sm:$0xff] }
0x1329   : > { %4803 = vmatpush2.msra.mxu1 %v4696_v6  ;;  %v4584_v6 = vld [vmem:[%s9980_s20 + $0x268] sm:$0xff] }
0x132a   : > { %4804 = vmatprep.subr.mxu1 %v4694_v26  ;;  %v4536_v26 = vld [vmem:[%s9980_s20 + $0xe8] sm:$0xff] }
0x132b   : > { %4805 = vmatpush2.msra.mxu1 %v4693_v57  ;;  %v4581_v57 = vld [vmem:[%s9980_s20 + $0x250] sm:$0xff] }
0x132c   : > { %4806 = vmatprep.subr.mxu1 %v4691_v58  ;;  %v4533_v58 = vld [vmem:[%s9980_s20 + $0xd0] sm:$0xff] }
0x132d   : > { %4807 = vmatpush2.msra.mxu1 %v4690_v59  ;;  %v4578_v59 = vld [vmem:[%s9980_s20 + $0x238] sm:$0xff] }
0x132e   : > { %4808 = vmatprep.subr.mxu1 %v4688_v60  ;;  %v4530_v60 = vld [vmem:[%s9980_s20 + $0xb8] sm:$0xff] }
0x132f   : > { %4809 = vmatpush2.msra.mxu1 %v4687_v33  ;;  %v4575_v33 = vld [vmem:[%s9980_s20 + $0x220] sm:$0xff] }
0x1330   : > { %4810 = vmatprep.subr.mxu1 %v4685_v61  ;;  %v4527_v61 = vld [vmem:[%s9980_s20 + $0xa0] sm:$0xff] }
0x1331   : > { %4811 = vmatpush2.msra.mxu1 %v4684_v41  ;;  %v4572_v41 = vld [vmem:[%s9980_s20 + $0x208] sm:$0xff] }
0x1332   : > { %4812 = vmatprep.subr.mxu1 %v4682_v49  ;;  %v4524_v49 = vld [vmem:[%s9980_s20 + $0x88] sm:$0xff] }
0x1333   : > { %4813 = vmatpush2.msra.mxu1 %v4681_v45  ;;  %v4569_v45 = vld [vmem:[%s9980_s20 + $0x1f0] sm:$0xff] }
0x1334   : > { %4814 = vmatprep.subr.mxu1 %v4679_v29  ;;  %v4521_v29 = vld [vmem:[%s9980_s20 + $0x70] sm:$0xff] }
0x1335   : > { %4815 = vmatpush2.msra.mxu1 %v4678_v48  ;;  %v4566_v48 = vld [vmem:[%s9980_s20 + $0x1d8] sm:$0xff] }
0x1336   : > { %4816 = vmatprep.subr.mxu1 %v4676_v50  ;;  %v4518_v50 = vld [vmem:[%s9980_s20 + $0x58] sm:$0xff] }
0x1337   : > { %4817 = vmatpush2.msra.mxu1 %v4675_v5  ;;  %v4563_v5 = vld [vmem:[%s9980_s20 + $0x1c0] sm:$0xff] }
0x1338   : > { %4818 = vmatprep.subr.mxu1 %v4673_v8  ;;  %v4515_v8 = vld [vmem:[%s9980_s20 + $0x40] sm:$0xff] }
0x1339   : > { %4819 = vmatpush2.msra.mxu1 %v4672_v2  ;;  %v4560_v2 = vld [vmem:[%s9980_s20 + $0x1a8] sm:$0xff] }
0x133a   : > { %4820 = vmatprep.subr.mxu1 %v4670_v24  ;;  %v4512_v24 = vld [vmem:[%s9980_s20 + $0x28] sm:$0xff] }
0x133b   : > { %4821 = vmatpush2.msra.mxu1 %v4669_v10  ;;  %v4557_v10 = vld [vmem:[%s9980_s20 + $0x190] sm:$0xff] }
0x133c   : > { %4822 = vmatprep.subr.mxu1 %v4667_v11  ;;  %v4509_v11 = vld [vmem:[%s9980_s20 + $0x10] sm:$0xff] }
0x133d   : > { %4823 = vmatpush2.msra.mxu1 %v4666_v7  ;;  %v4207_v7 = vrot.slane %v9524_v25, %v6563_v43 }
0x133e   : > { %4824 = vmatprep.subr.mxu1 %v4664_v27  ;;  %v4211_v27 = vrot.slane %v9524_v25, %v7832_v19  ;;  %v4695_v19 = vld [vmem:[%s9980_s20 + $0x5e0] sm:$0xff] }
0x133f   : > { %4825 = vmatpush2.msra.mxu1 %v4663_v13  ;;  %v4647_v25 = vld [vmem:[%s9980_s20 + $0x460] sm:$0xff] }
0x1340   : > { %4826 = vmatprep.subr.mxu1 %v4661_v14 }
0x1341   : > { %4827 = vmatpush2.msra.mxu1 %v4660_v15 }
0x1342   : > { %4828 = vmatprep.subr.mxu1 %v4658_v16 }
0x1343   : > { %4829 = vmatpush2.msra.mxu1 %v4657_v17 }
0x1344   : > { %4830 = vmatprep.subr.mxu1 %v4655_v54 }
0x1345   : > { %4831 = vmatpush2.msra.mxu1 %v4654_v55 }
0x1346   : > { %4832 = vmatprep.subr.mxu1 %v4652_v56 }
0x1347   : > { %4833 = vmatpush2.msra.mxu1 %v4651_v18 }
0x1348   : > { %5562 = vmatprep.subr.mxu1 %v4698_v23 }
0x1386   : > { %v4356_v28 = vpop.f32.mrf.mxu1 }
0x1387   : > { %v4285_v30 = vpop.f32.mrf.mxu0 }
0x1388   : > { %v4286_v31 = vadd.f32 %v4285_v30, %v4199_v4  ;;  %v4358_v37 = vpop.f32.mrf.mxu1  ;;  %v4650_v4 = vld [vmem:[%s9980_s20 + $0x478] sm:$0xff]  ;;  %v4689_v30 = vld [vmem:[%s9980_s20 + $0x5b0] sm:$0xff] }
0x1389   : > { %v4287_v32 = vpop.f32.mrf.mxu0 }
0x138a   : > { %v4288_v36 = vadd.f32 %v4287_v32, %v4203_v0  ;;  %v9530_v47 = vadd.f32 %v4356_v28, %v4286_v31  ;;  %v4692_v0 = vld [vmem:[%s9980_s20 + $0x5c8] sm:$0xff]  ;;  %v4641_v31 = vld [vmem:[%s9980_s20 + $0x430] sm:$0xff]  ;;  %v4686_v32 = vld [vmem:[%s9980_s20 + $0x598] sm:$0xff] }
0x138b   : > { %v4644_v28 = vld [vmem:[%s9980_s20 + $0x448] sm:$0xff] }
0x138c   : > { %v4359_v3 = vadd.f32 %v4358_v37, %v4288_v36  ;;  %v4503_v38 = vmax.f32 %v9530_v47, 0.0  ;;  %v4638_v36 = vld [vmem:[%s9980_s20 + $0x418] sm:$0xff]  ;;  %v4683_v47 = vld [vmem:[%s9980_s20 + $0x580] sm:$0xff] }
0x138d   : > { %v4635_v37 = vld [vmem:[%s9980_s20 + $0x400] sm:$0xff] }
0x138e   : > { %v4504_v12 = vmax.f32 %v4359_v3, 0.0  ;;  %v4680_v3 = vld [vmem:[%s9980_s20 + $0x568] sm:$0xff] }
0x1390   : > { %4763 = vmatprep.mubr.f32.mxu0 %v4504_v12 }
0x1391   : > { %4764 = vmatmul.mubr.f32.vlgmr.msra.gmra.mxu0 %v4503_v38 }
0x1392   : > { %5528 = vmatpush3.msra.mxu0 %v4554_v39  ;;  %4905 = vmatprep.mubr.f32.mxu0 %v4504_v12  ;;  %v4632_v12 = vld [vmem:[%s9980_s20 + $0x3e8] sm:$0xff]  ;;  %v4629_v39 = vld [vmem:[%s9980_s20 + $0x3d0] sm:$0xff] }
0x1393   : > { %5529 = vmatprep.subr.mxu0 %v4599_v40  ;;  %v4674_v40 = vld [vmem:[%s9980_s20 + $0x538] sm:$0xff] }
0x1394   : > { %5530 = vmatpush3.msra.mxu0 %v4551_v21  ;;  %v4626_v21 = vld [vmem:[%s9980_s20 + $0x3b8] sm:$0xff] }
0x1395   : > { %5531 = vmatprep.subr.mxu0 %v4596_v20  ;;  %v4671_v20 = vld [vmem:[%s9980_s20 + $0x520] sm:$0xff] }
0x1396   : > { %5532 = vmatpush3.msra.mxu0 %v4548_v22  ;;  %v4623_v22 = vld [vmem:[%s9980_s20 + $0x3a0] sm:$0xff] }
0x1397   : > { %5533 = vmatprep.subr.mxu0 %v4593_v46  ;;  %v4668_v46 = vld [vmem:[%s9980_s20 + $0x508] sm:$0xff] }
0x1398   : > { %5534 = vmatpush3.msra.mxu0 %v4545_v63  ;;  %v4498_v13 = vpop.f32.mrf.mxu0  ;;  %v4620_v63 = vld [vmem:[%s9980_s20 + $0x388] sm:$0xff] }
0x1399   : > { %5535 = vmatprep.subr.mxu0 %v4590_v51  ;;  %v4665_v51 = vld [vmem:[%s9980_s20 + $0x4f0] sm:$0xff] }
0x139a   : > { %5536 = vmatpush3.msra.mxu0 %v4542_v52  ;;  %v4500_v54 = vpop.f32.mrf.mxu0  ;;  %v4617_v52 = vld [vmem:[%s9980_s20 + $0x370] sm:$0xff] }
0x139b   : > { %5537 = vmatprep.subr.mxu0 %v4587_v53  ;;  %v4662_v53 = vld [vmem:[%s9980_s20 + $0x4d8] sm:$0xff] }
0x139c   : > { %5538 = vmatpush3.msra.mxu0 %v4539_v34  ;;  %v4614_v34 = vld [vmem:[%s9980_s20 + $0x358] sm:$0xff] }
0x139d   : > { %5539 = vmatprep.subr.mxu0 %v4584_v6  ;;  %v4659_v6 = vld [vmem:[%s9980_s20 + $0x4c0] sm:$0xff] }
0x139e   : > { %5540 = vmatpush3.msra.mxu0 %v4536_v26  ;;  %v4611_v26 = vld [vmem:[%s9980_s20 + $0x340] sm:$0xff] }
0x139f   : > { %5541 = vmatprep.subr.mxu0 %v4581_v57  ;;  %v4656_v57 = vld [vmem:[%s9980_s20 + $0x4a8] sm:$0xff] }
0x13a0   : > { %5542 = vmatpush3.msra.mxu0 %v4533_v58  ;;  %v4608_v58 = vld [vmem:[%s9980_s20 + $0x328] sm:$0xff] }
0x13a1   : > { %5543 = vmatprep.subr.mxu0 %v4578_v59  ;;  %v4653_v59 = vld [vmem:[%s9980_s20 + $0x490] sm:$0xff] }
0x13a2   : > { %5544 = vmatpush3.msra.mxu0 %v4530_v60  ;;  %v4605_v60 = vld [vmem:[%s9980_s20 + $0x310] sm:$0xff] }
0x13a3   : > { %5545 = vmatprep.subr.mxu0 %v4575_v33  ;;  %v5035_v33 = vld [vmem:[%s9982_s22 + $0xf8] sm:$0xff] }
0x13a4   : > { %5546 = vmatpush3.msra.mxu0 %v4527_v61  ;;  %v5019_v61 = vld [vmem:[%s9982_s22 + $0x78] sm:$0xff] }
0x13a5   : > { %5547 = vmatprep.subr.mxu0 %v4572_v41  ;;  %v5034_v41 = vld [vmem:[%s9982_s22 + $0xf0] sm:$0xff] }
0x13a6   : > { %5548 = vmatpush3.msra.mxu0 %v4524_v49  ;;  %v5018_v49 = vld [vmem:[%s9982_s22 + $0x70] sm:$0xff] }
0x13a7   : > { %5549 = vmatprep.subr.mxu0 %v4569_v45  ;;  %v5033_v45 = vld [vmem:[%s9982_s22 + $0xe8] sm:$0xff] }
0x13a8   : > { %5550 = vmatpush3.msra.mxu0 %v4521_v29  ;;  %v5017_v29 = vld [vmem:[%s9982_s22 + $0x68] sm:$0xff] }
0x13a9   : > { %5551 = vmatprep.subr.mxu0 %v4566_v48  ;;  %v5032_v48 = vld [vmem:[%s9982_s22 + $0xe0] sm:$0xff] }
0x13aa   : > { %5552 = vmatpush3.msra.mxu0 %v4518_v50  ;;  %v5016_v50 = vld [vmem:[%s9982_s22 + $0x60] sm:$0xff] }
0x13ab   : > { %5553 = vmatprep.subr.mxu0 %v4563_v5  ;;  %v5031_v5 = vld [vmem:[%s9982_s22 + $0xd8] sm:$0xff] }
0x13ac   : > { %5554 = vmatpush3.msra.mxu0 %v4515_v8  ;;  %v5015_v8 = vld [vmem:[%s9982_s22 + $0x58] sm:$0xff] }
0x13ad   : > { %5555 = vmatprep.subr.mxu0 %v4560_v2  ;;  %v5030_v2 = vld [vmem:[%s9982_s22 + $0xd0] sm:$0xff] }
0x13ae   : > { %5556 = vmatpush3.msra.mxu0 %v4512_v24  ;;  %v5014_v24 = vld [vmem:[%s9982_s22 + $0x50] sm:$0xff] }
0x13af   : > { %5557 = vmatprep.subr.mxu0 %v4557_v10  ;;  %v5029_v10 = vld [vmem:[%s9982_s22 + $0xc8] sm:$0xff] }
0x13b0   : > { %5558 = vmatpush3.msra.mxu0 %v4509_v11  ;;  %v5013_v11 = vld [vmem:[%s9982_s22 + $0x48] sm:$0xff] }
0x13b1   : > { %4906 = vmatmul.mubr.f32.vlgmr.msra.gmra.mxu0 %v4503_v38  ;;  %v4677_v38 = vld [vmem:[%s9980_s20 + $0x550] sm:$0xff]  ;;  %5597 = vmatprep.subr.mxu0 %v5035_v33 }
0x13b2   : > { %5598 = vmatpush3.msra.mxu0 %v5019_v61 }
0x13b3   : > { %5599 = vmatprep.subr.mxu0 %v5034_v41 }
0x13b4   : > { %5600 = vmatpush3.msra.mxu0 %v5018_v49 }
0x13b5   : > { %5601 = vmatprep.subr.mxu0 %v5033_v45 }
0x13b6   : > { %5602 = vmatpush3.msra.mxu0 %v5017_v29  ;;  %v5409_v29 = vld [vmem:[%s9983_s23] ss:$0 sm:$0xff] }
0x13b7   : > { %5603 = vmatprep.subr.mxu0 %v5032_v48 }
0x13b8   : > { %5604 = vmatpush3.msra.mxu0 %v5016_v50 }
0x13b9   : > { %5605 = vmatprep.subr.mxu0 %v5031_v5 }
0x13ba   : > { %5606 = vmatpush3.msra.mxu0 %v5015_v8 }
0x13bb   : > { %5607 = vmatprep.subr.mxu0 %v5030_v2  ;;  %v5235_v2 = vld [vmem:[%s9986_s26 + $0x68] sm:$0xff] }
0x13bc   : > { %5608 = vmatpush3.msra.mxu0 %v5014_v24 }
0x13bd   : > { %5609 = vmatprep.subr.mxu0 %v5029_v10 }
0x13be   : > { %5610 = vmatpush3.msra.mxu0 %v5013_v11 }
0x13c7   : > { %v4427_v14 = vpop.f32.mrf.mxu1 }
0x13c8   : > { %v4428_v15 = vadd.f32 %v4427_v14, %v4207_v7  ;;  %v5028_v7 = vld [vmem:[%s9982_s22 + $0xc0] sm:$0xff]  ;;  %v5011_v14 = vld [vmem:[%s9982_s22 + $0x38] sm:$0xff] }
0x13c9   : > { %v4429_v16 = vpop.f32.mrf.mxu1  ;;  %5611 = vmatprep.subr.mxu0 %v5028_v7 }
0x13ca   : > { %v4430_v17 = vadd.f32 %v4429_v16, %v4211_v27  ;;  %v9634_v55 = vadd.f32 %v4498_v13, %v4428_v15  ;;  %v5012_v27 = vld [vmem:[%s9982_s22 + $0x40] sm:$0xff]  ;;  %v5027_v13 = vld [vmem:[%s9982_s22 + $0xb8] sm:$0xff]  ;;  %v5026_v15 = vld [vmem:[%s9982_s22 + $0xb0] sm:$0xff] }
0x13cb   : > { %5612 = vmatpush3.msra.mxu0 %v5012_v27  ;;  %v5010_v16 = vld [vmem:[%s9982_s22 + $0x30] sm:$0xff]  ;;  %v5234_v27 = vld [vmem:[%s9986_s26 + $0x60] sm:$0xff] }
0x13cc   : > { %v4501_v56 = vadd.f32 %v4500_v54, %v4430_v17  ;;  %v4505_v23 = vmax.f32 %v9634_v55, 0.0  ;;  %5613 = vmatprep.subr.mxu0 %v5027_v13  ;;  %v5025_v17 = vld [vmem:[%s9982_s22 + $0xa8] sm:$0xff]  ;;  %v5024_v55 = vld [vmem:[%s9982_s22 + $0xa0] sm:$0xff]  ;;  %v5233_v13 = vld [vmem:[%s9986_s26 + $0x58] sm:$0xff] }
0x13cd   : > { %5614 = vmatpush3.msra.mxu0 %v5011_v14  ;;  %v5009_v54 = vld [vmem:[%s9982_s22 + $0x28] sm:$0xff]  ;;  %v5232_v14 = vld [vmem:[%s9986_s26 + $0x50] sm:$0xff] }
0x13ce   : > { %v4506_v18 = vmax.f32 %v4501_v56, 0.0  ;;  %5615 = vmatprep.subr.mxu0 %v5026_v15  ;;  %v5008_v56 = vld [vmem:[%s9982_s22 + $0x20] sm:$0xff]  ;;  %v5231_v15 = vld [vmem:[%s9986_s26 + $0x48] sm:$0xff] }
0x13cf   : > { %5616 = vmatpush3.msra.mxu0 %v5010_v16  ;;  %v5230_v16 = vld [vmem:[%s9986_s26 + $0x40] sm:$0xff] }
0x13d0   : > { %4834 = vmatprep.mubr.f32.mxu1 %v4506_v18  ;;  %5617 = vmatprep.subr.mxu0 %v5025_v17  ;;  %v5229_v17 = vld [vmem:[%s9986_s26 + $0x38] sm:$0xff] }
0x13d1   : > { %4835 = vmatmul.mubr.f32.vlgmr.msra.gmra.mxu1 %v4505_v23  ;;  %5618 = vmatpush3.msra.mxu0 %v5009_v54  ;;  %v5228_v54 = vld [vmem:[%s9986_s26 + $0x30] sm:$0xff] }
0x13d2   : > { %5563 = vmatpush3.msra.mxu1 %v4650_v4  ;;  %4975 = vmatprep.mubr.f32.mxu1 %v4506_v18  ;;  %v5023_v18 = vld [vmem:[%s9982_s22 + $0x98] sm:$0xff]  ;;  %v5022_v4 = vld [vmem:[%s9982_s22 + $0x90] sm:$0xff] }
0x13d3   : > { %5564 = vmatprep.subr.mxu1 %v4695_v19  ;;  %5619 = vmatprep.subr.mxu0 %v5024_v55  ;;  %v5006_v19 = vld [vmem:[%s9982_s22 + $0x10] sm:$0xff]  ;;  %v5227_v55 = vld [vmem:[%s9986_s26 + $0x28] sm:$0xff] }
0x13d4   : > { %5565 = vmatpush3.msra.mxu1 %v4647_v25  ;;  %5620 = vmatpush3.msra.mxu0 %v5008_v56  ;;  %v5021_v25 = vld [vmem:[%s9982_s22 + $0x88] sm:$0xff]  ;;  %v5226_v56 = vld [vmem:[%s9986_s26 + $0x20] sm:$0xff] }
0x13d5   : > { %5566 = vmatprep.subr.mxu1 %v4692_v0  ;;  %5621 = vmatprep.subr.mxu0 %v5023_v18  ;;  %v5005_v0 = vld [vmem:[%s9982_s22 + $0x8] sm:$0xff]  ;;  %v5225_v18 = vld [vmem:[%s9986_s26 + $0x18] sm:$0xff] }
0x13d6   : > { %5567 = vmatpush3.msra.mxu1 %v4644_v28  ;;  %v5020_v28 = vld [vmem:[%s9982_s22 + $0x80] sm:$0xff] }
0x13d7   : > { %5568 = vmatprep.subr.mxu1 %v4689_v30  ;;  %v5004_v30 = vld [vmem:[%s9982_s22] sm:$0xff] }
0x13d8   : > { %5569 = vmatpush3.msra.mxu1 %v4641_v31  ;;  %v5043_v31 = vld [vmem:[%s9982_s22 + $0x138] sm:$0xff] }
0x13d9   : > { %5570 = vmatprep.subr.mxu1 %v4686_v32  ;;  %v5042_v32 = vld [vmem:[%s9982_s22 + $0x130] sm:$0xff] }
0x13da   : > { %5571 = vmatpush3.msra.mxu1 %v4638_v36  ;;  %v5041_v36 = vld [vmem:[%s9982_s22 + $0x128] sm:$0xff] }
0x13db   : > { %5572 = vmatprep.subr.mxu1 %v4683_v47  ;;  %v5040_v47 = vld [vmem:[%s9982_s22 + $0x120] sm:$0xff] }
0x13dc   : > { %5573 = vmatpush3.msra.mxu1 %v4635_v37  ;;  %v5039_v37 = vld [vmem:[%s9982_s22 + $0x118] sm:$0xff] }
0x13dd   : > { %5574 = vmatprep.subr.mxu1 %v4680_v3  ;;  %v5038_v3 = vld [vmem:[%s9982_s22 + $0x110] sm:$0xff] }
0x13de   : > { %5575 = vmatpush3.msra.mxu1 %v4632_v12  ;;  %v5037_v12 = vld [vmem:[%s9982_s22 + $0x108] sm:$0xff] }
0x13df   : > { %5576 = vmatprep.subr.mxu1 %v4677_v38  ;;  %v5036_v38 = vld [vmem:[%s9982_s22 + $0x100] sm:$0xff] }
0x13e0   : > { %5577 = vmatpush3.msra.mxu1 %v4629_v39 }
0x13e1   : > { %5578 = vmatprep.subr.mxu1 %v4674_v40 }
0x13e2   : > { %5579 = vmatpush3.msra.mxu1 %v4626_v21 }
0x13e3   : > { %5580 = vmatprep.subr.mxu1 %v4671_v20  ;;  %v4984_v20 = vld [vmem:[%s9981_s21] sm:$0x7] }
0x13e4   : > { %5581 = vmatpush3.msra.mxu1 %v4623_v22  ;;  %v4997_v49 = vrot.slane %v4984_v20, %v6563_v43  ;;  %v5237_v43 = vld [vmem:[%s9986_s26 + $0x78] sm:$0xff] }
0x13e5   : > { %5582 = vmatprep.subr.mxu1 %v4668_v46 }
0x13e6   : > { %5583 = vmatpush3.msra.mxu1 %v4620_v63 }
0x13e7   : > { %5584 = vmatprep.subr.mxu1 %v4665_v51  ;;  %v4993_v51 = vrot.slane %v4984_v20, %v6560_v42 }
0x13e8   : > { %5585 = vmatpush3.msra.mxu1 %v4617_v52 }
0x13e9   : > { %5586 = vmatprep.subr.mxu1 %v4662_v53  ;;  %v4989_v53 = vrot.slane %v4984_v20, %v6566_v44 }
0x13ea   : > { %5587 = vmatpush3.msra.mxu1 %v4614_v34 }
0x13eb   : > { %5588 = vmatprep.subr.mxu1 %v4659_v6 }
0x13ec   : > { %5589 = vmatpush3.msra.mxu1 %v4611_v26 }
0x13ed   : > { %5590 = vmatprep.subr.mxu1 %v4656_v57 }
0x13ee   : > { %5591 = vmatpush3.msra.mxu1 %v4608_v58 }
0x13ef   : > { %5592 = vmatprep.subr.mxu1 %v4653_v59 }
0x13f0   : > { %5593 = vmatpush3.msra.mxu1 %v4605_v60 }
0x13f1   : > { %4976 = vmatmul.mubr.f32.vlgmr.msra.gmra.mxu1 %v4505_v23  ;;  %5892 = vmatprep.subr.mxu1 %v5992_v1  ;;  %v5007_v23 = vld [vmem:[%s9982_s22 + $0x18] sm:$0xff] }
0x13f2   : > { %5908 = vmatprep.mubr.msk.f32.mxu1 %vm5993_vm0, %v5992_v1  ;;  %5622 = vmatpush3.msra.mxu0 %v5007_v23  ;;  %v5224_v23 = vld [vmem:[%s9986_s26 + $0x10] sm:$0xff] }
0x13f3   : > { %5623 = vmatprep.subr.mxu0 %v5022_v4  ;;  %5893 = vmatpush3.msra.mxu1 %v5043_v31  ;;  %v5223_v4 = vld [vmem:[%s9986_s26 + $0x8] sm:$0xff]  ;;  %v5411_v31 = vld [vmem:[%s9984_s24] ss:$0 sm:$0xff] }
0x13f4   : > { %5624 = vmatpush3.msra.mxu0 %v5006_v19  ;;  %5894 = vmatprep.subr.mxu1 %v5992_v1  ;;  %v5222_v19 = vld [vmem:[%s9986_s26] sm:$0xff] }
0x13f5   : > { %5625 = vmatprep.subr.mxu0 %v5021_v25  ;;  %5895 = vmatpush3.msra.mxu1 %v5042_v32 }
0x13f6   : > { %5626 = vmatpush3.msra.mxu0 %v5005_v0  ;;  %5896 = vmatprep.subr.mxu1 %v5992_v1 }
0x13f7   : > { %5627 = vmatprep.subr.mxu0 %v5020_v28  ;;  %5897 = vmatpush3.msra.mxu1 %v5041_v36  ;;  %v5412_v36 = vld [vmem:[%s9985_s25] ss:$0 sm:$0xff] }
0x13f8   : > { %5628 = vmatpush3.msra.mxu0 %v5004_v30  ;;  %5898 = vmatprep.subr.mxu1 %v5992_v1 }
0x13f9   : > { %5899 = vmatpush3.msra.mxu1 %v5040_v47 }
0x13fa   : > { %5900 = vmatprep.subr.mxu1 %v5992_v1 }
0x13fb   : > { %5901 = vmatpush3.msra.mxu1 %v5039_v37 }
0x13fc   : > { %5902 = vmatprep.subr.mxu1 %v5992_v1 }
0x13fd   : > { %5903 = vmatpush3.msra.mxu1 %v5038_v3 }
0x13fe   : > { %5904 = vmatprep.subr.mxu1 %v5992_v1 }
0x13ff   : > { %5905 = vmatpush3.msra.mxu1 %v5037_v12 }
0x1400   : > { %5906 = vmatprep.subr.mxu1 %v5992_v1 }
0x1401   : > { %5907 = vmatpush3.msra.mxu1 %v5036_v38 }
0x1402   : > { %5911 = vmatprep.subr.mxu1 %v5992_v1 }
0x1451   : > { %v4765_v39 = vpop.f32.mrf.mxu0 }
0x1453   : > { %v4767_v22 = vpop.f32.mrf.mxu0 }
0x1471   : > { %v5559_v57 = vpop.f32.mrf.mxu0 }
0x1473   : > { %v5560_v58 = vpop.f32.mrf.mxu0 }
0x1474   : > { %v5561_v33 = vadd.f32 %v5560_v58, %v5559_v57 }
0x1491   : > { %v4836_v40 = vpop.f32.mrf.mxu1 }
0x1492   : > { %v4837_v21 = vadd.f32 %v4836_v40, %v4765_v39 }
0x1493   : > { %v4838_v46 = vpop.f32.mrf.mxu1 }
0x1494   : > { %v4839_v63 = vadd.f32 %v4838_v46, %v4767_v22  ;;  %v4981_v52 = vadd.f32 %v4837_v21, %v8601_v62 }
0x1496   : > { %v4982_v34 = vadd.f32 %v4839_v63, %v8603_v9  ;;  %v5001_v26 = vadd.f32 %v4989_v53, %v4981_v52 }
0x1498   : > { %v5002_v6 = vadd.f32 %v4993_v51, %v4982_v34 }
0x149a   : > { %5118 = vmatprep.mubr.f32.mxu0 %v5002_v6 }
0x149b   : > { %5119 = vmatmul.mubr.f32.vlgmr.msra.gmra.mxu0 %v5001_v26 }
0x14b1   : > { %v5594_v59 = vpop.f32.mrf.mxu1 }
0x14b3   : > { %v5595_v60 = vpop.f32.mrf.mxu1 }
0x14b4   : > { %v5596_v61 = vadd.f32 %v5595_v60, %v5594_v59 }
0x14b6   : > { %v4978_v41 = vadd.f32 %v5596_v61, %v5561_v33 }
0x14b8   : > { %v4983_v42 = vadd.f32 %v4978_v41, %v8599_v35  ;;  %v5236_v35 = vld [vmem:[%s9986_s26 + $0x70] sm:$0xff] }
0x14ba   : > { %v5003_v62 = vadd.f32 %v4997_v49, %v4983_v42 }
0x14bc   : > { %5909 = vmatmul.mubr.msk.f32.vlgmr.msra.gmra.mxu1 %vm877_vm1, %v5003_v62 }
0x14bd   : > { %5943 = vmatprep.mubr.msk.f32.mxu1 %vm5993_vm0, %v5992_v1  ;;  %5912 = vmatpush3.msra.mxu1 %v5237_v43 }
0x14be   : > { %5913 = vmatprep.subr.mxu1 %v5992_v1 }
0x14bf   : > { %5914 = vmatpush3.msra.mxu1 %v5236_v35 }
0x14c0   : > { %5915 = vmatprep.subr.mxu1 %v5992_v1 }
0x14c1   : > { %5916 = vmatpush3.msra.mxu1 %v5235_v2 }
0x14c2   : > { %5917 = vmatprep.subr.mxu1 %v5992_v1 }
0x14c3   : > { %5918 = vmatpush3.msra.mxu1 %v5234_v27 }
0x14c4   : > { %5919 = vmatprep.subr.mxu1 %v5992_v1 }
0x14c5   : > { %5920 = vmatpush3.msra.mxu1 %v5233_v13 }
0x14c6   : > { %5921 = vmatprep.subr.mxu1 %v5992_v1 }
0x14c7   : > { %5922 = vmatpush3.msra.mxu1 %v5232_v14 }
0x14c8   : > { %5923 = vmatprep.subr.mxu1 %v5992_v1 }
0x14c9   : > { %5924 = vmatpush3.msra.mxu1 %v5231_v15 }
0x14ca   : > { %5925 = vmatprep.subr.mxu1 %v5992_v1 }
0x14cb   : > { %5926 = vmatpush3.msra.mxu1 %v5230_v16 }
0x14cc   : > { %5927 = vmatprep.subr.mxu1 %v5992_v1 }
0x14cd   : > { %5928 = vmatpush3.msra.mxu1 %v5229_v17 }
0x14ce   : > { %5929 = vmatprep.subr.mxu1 %v5992_v1 }
0x14cf   : > { %5930 = vmatpush3.msra.mxu1 %v5228_v54 }
0x14d0   : > { %5931 = vmatprep.subr.mxu1 %v5992_v1 }
0x14d1   : > { %5932 = vmatpush3.msra.mxu1 %v5227_v55 }
0x14d2   : > { %5933 = vmatprep.subr.mxu1 %v5992_v1 }
0x14d3   : > { %5934 = vmatpush3.msra.mxu1 %v5226_v56 }
0x14d4   : > { %5935 = vmatprep.subr.mxu1 %v5992_v1 }
0x14d5   : > { %5936 = vmatpush3.msra.mxu1 %v5225_v18 }
0x14d6   : > { %5937 = vmatprep.subr.mxu1 %v5992_v1 }
0x14d7   : > { %5938 = vmatpush3.msra.mxu1 %v5224_v23 }
0x14d8   : > { %5939 = vmatprep.subr.mxu1 %v5992_v1 }
0x14d9   : > { %5940 = vmatpush3.msra.mxu1 %v5223_v4 }
0x14da   : > { %5941 = vmatprep.subr.mxu1 %v5992_v1  ;;  %v5413_v1 = vld [vmem:[%s9987_s27] ss:$0 sm:$0xff] }
0x14db   : > { %5942 = vmatpush3.msra.mxu1 %v5222_v19 }
0x155b   : > { %v5629_v44 = vpop.f32.mrf.mxu0 }
0x155d   : > { %v5630_v9 = vpop.f32.mrf.mxu0 }
0x155e   : > { %v5631_v45 = vadd.f32 %v5630_v9, %v5629_v44 }
0x1560   : > { %v5121_v48 = vadd.f32 %v5631_v45, %v5409_v29 }
0x157c   : > { %v5190_v50 = vpop.f32.mrf.mxu1 }
0x157d   : > { %v5191_v5 = vadd.f32 %v5190_v50, %v5121_v48 }
0x157e   : > { %v5910_v8 = vpop.f32.mrf.mxu1 }
0x157f   : > { %5196 = vadd.xlane.f32.xlu0 %v5191_v5 }
0x1608   : > { %v5197_v24 = vpop.xlane.xlu0 %5196 }
0x1609   : > { %v5198_v10 = vmul.f32 0.0078125, %v5197_v24 }
0x160b   : > { %v5199_v11 = vsub.f32 %v5191_v5, %v5198_v10 }
0x160d   : > { %v5200_v7 = vmul.f32 %v5199_v11, %v5199_v11 }
0x160f   : > { %5201 = vadd.xlane.f32.xlu1 %v5200_v7 }
0x1698   : > { %v5202_v25 = vpop.xlane.xlu1 %5201 }
0x1699   : > { %v5203_v0 = vmul.f32 0.0078125, %v5202_v25 }
0x169b   : > { %v5204_v28 = vadd.f32 1e-05, %v5203_v0 }
0x169d   : > { %5980 = vrsqrt.f32 %v5204_v28 }
0x16aa   : > { %v5981_v30 = vpop.eup %5980 }
0x16ab   : > { %v5206_v32 = vmul.f32 %v5981_v30, %v5199_v11 }
0x16ad   : > { %v5213_v47 = vmul.f32 %v5411_v31, %v5206_v32 }
0x16af   : > { %v5220_v37 = vadd.f32 %v5412_v36, %v5213_v47 }
0x16b1   : > { %v5221_v3 = vmax.f32 %v5220_v37, 0.0 }
0x16b3   : > { %5944 = vmatmul.mubr.f32.vlgmr.msra.gmra.mxu1 %v5221_v3 }
0x1773   : > { %v5311_v12 = vpop.f32.mrf.mxu1 }
0x1774   : > { %v5312_v38 = vadd.f32 %v5413_v1, %v5311_v12 }
0x1775   : > { %v5945_v39 = vpop.f32.mrf.mxu1 }
0x1776   : > { %5315 = vst [vmem:[%s860_s9] sm:$0xff] %v5312_v38 }
0x1777 PF: > { %s38_s8 = sadd.s32 1, %s5990_s8  }
0x1778   : > { %p35_p4 = scmp.ge.s32.totalorder %s38_s8, 4  }
0x177a   :  { %37 = sbr.rel (!%p35_p4) target bundleno = 14 (0xe), region = 165 }

</bundles_post_ra>
